<compile_context>
chip_gen: v5e
topology: v5e:2x2
jax: 0.10.0
libtpu: 0.0.40
codegen_flags: <defaults>
</compile_context>

<pallas_src>
import jax
import jax.numpy as jnp
import numpy as np
from jax.experimental import pallas as pl
from jax.experimental.pallas import tpu as pltpu

LANE = 128


def _round_up(x, m):
    return (x + m - 1) // m * m


def _vmem_limit_bytes():
    # ~75% of per-core VMEM: ≈48 MiB on v7x, ≈96 MiB on v5e/v6e.
    try:
        cap = int(pltpu.get_tpu_info().vmem_capacity_bytes)
        return int(min(max(cap * 3 // 4, 32 * 1024 * 1024), 96 * 1024 * 1024))
    except Exception:
        return 48 * 1024 * 1024


def _pick_tile_h(H, W, Cp, vmem_budget):
    """Largest even row-band TH (divisor of H) whose per-band VMEM footprint
    fits comfortably; bigger bands amortize grid-step overhead and halo work."""
    for th in (256, 128, 64, 32, 16, 8, 4, 2):
        if th > H or H % th:
            continue
        band_bytes = (
            (th + 2) * (W + 2) * Cp * 2      # bf16 im2col pad scratch
            + 2 * th * W * Cp * 2            # double-buffered bf16 conv-out band
            + 2 * th * W * Cp * 4            # double-buffered f32 conv/pool bands
            + th * W * 9 * Cp * 2            # im2col value (worst-case spill)
            + 2 * 9 * Cp * Cp * 2            # double-buffered bf16 weights
        )
        if band_bytes <= vmem_budget // 2:
            return th
    return 2


# ---------------------------------------------------------------------------
# Conv kernel factory: (optional BN-affine + ReLU) -> in-scratch zero-pad (bf16)
# -> 3x3 conv as one MXU matmul, plus per-band BN stats of the conv output.
# ---------------------------------------------------------------------------
def _make_conv_kernel(TH, H, W, Ci, Cp, Kp, apply_act):
    HB = H // TH

    def body(x_ref, s_ref, t_ref, w_ref, o_ref, stat_ref, pad_ref):
        # x_ref   : (1, H, W, Ci)  bf16   whole image (resident across hb)
        # s_ref   : (1, Cp) f32           pre-conv BN scale (only if apply_act)
        # t_ref   : (1, Cp) f32           pre-conv BN shift
        # w_ref   : (Kp, Cp) bf16         weights, contraction order (kh,kw,cin)
        # o_ref   : (1, TH, W, Cp) bf16   conv output row band
        # stat_ref: (1, 1, 8, Cp) f32     rows 0/1 = [sum, sumsq] of this band
        # pad_ref : (TH+2, W+2, Ci) bf16  zero-padded activated band (scratch)
        hb = pl.program_id(1)
        row0 = pl.multiple_of(hb * TH, TH)

        def act(v):
            if apply_act:
                v = jnp.maximum(v.astype(jnp.float32) * s_ref[0] + t_ref[0], 0.0)
            return v.astype(jnp.bfloat16)

        # Zero only the 1-pixel left/right padding columns (interior + halo
        # rows are fully rewritten below).  Cheap, and correct for any
        # grid->core assignment on multi-core chips.
        zcol = jnp.zeros((TH + 2, 1, Ci), jnp.bfloat16)
        pad_ref[:, 0:1, :] = zcol
        pad_ref[:, W + 1:W + 2, :] = zcol

        # Body rows of this band.
        rows = act(x_ref[0, pl.ds(row0, TH), :, :])                 # (TH, W, Ci)
        pad_ref[1:TH + 1, 1:W + 1, :] = rows

        # Halo rows (zero at the image boundary).
        top_i = jnp.maximum(row0 - 1, 0)
        bot_i = jnp.minimum(row0 + TH, H - 1)
        top = act(x_ref[0, pl.ds(top_i, 1), :, :])                  # (1, W, Ci)
        bot = act(x_ref[0, pl.ds(bot_i, 1), :, :])
        pad_ref[0:1, 1:W + 1, :] = jnp.where(hb > 0, top, jnp.zeros_like(top))
        pad_ref[TH + 1:TH + 2, 1:W + 1, :] = jnp.where(
            hb < HB - 1, bot, jnp.zeros_like(bot))

        # 3x3 conv: fold all 9 taps into the contraction dim -> one MXU matmul.
        patch = pad_ref[...]                                        # (TH+2, W+2, Ci) bf16
        taps = [patch[kh:kh + TH, kw:kw + W, :]
                for kh in range(3) for kw in range(3)]
        cols = jnp.concatenate(taps, axis=-1)                       # (TH, W, 9*Ci)
        if 9 * Ci < Kp:                                             # lane-align K
            cols = jnp.concatenate(
                [cols, jnp.zeros((TH, W, Kp - 9 * Ci), jnp.bfloat16)], axis=-1)
        cols = cols.reshape(TH * W, Kp)
        acc = jnp.dot(cols, w_ref[...],
                      preferred_element_type=jnp.float32)           # (TH*W, Cp) f32

        o_ref[...] = acc.reshape(1, TH, W, Cp).astype(o_ref.dtype)

        # Per-band BN stats from the f32 accumulator; padded to 8 sublanes so
        # the stats write-back is an unmasked full-sublane store.
        s_sum = jnp.sum(acc, axis=0, keepdims=True)                 # (1, Cp)
        s_sq = jnp.sum(acc * acc, axis=0, keepdims=True)            # (1, Cp)
        stat = jnp.concatenate(
            [s_sum, s_sq, jnp.zeros((6, Cp), jnp.float32)], axis=0)
        stat_ref[...] = stat.reshape(1, 1, 8, Cp)

    if apply_act:
        return body

    def body_noact(x_ref, w_ref, o_ref, stat_ref, pad_ref):
        return body(x_ref, None, None, w_ref, o_ref, stat_ref, pad_ref)

    return body_noact


def _conv3x3_with_stats(x, scale, shift, w9, *, tile_h, apply_act, vmem_limit):
    N, H, W, Ci = x.shape
    Kp, Cp = w9.shape
    TH = tile_h
    HB = H // TH
    kernel = _make_conv_kernel(TH, H, W, Ci, Cp, Kp, apply_act)

    in_specs = [pl.BlockSpec((1, H, W, Ci), lambda n, hb: (n, 0, 0, 0))]
    args = [x]
    if apply_act:
        sspec = pl.BlockSpec((1, Cp), lambda n, hb: (0, 0))
        in_specs += [sspec, sspec]
        args += [scale, shift]
    in_specs += [pl.BlockSpec((Kp, Cp), lambda n, hb: (0, 0))]
    args += [w9]

    return pl.pallas_call(
        kernel,
        out_shape=(
            jax.ShapeDtypeStruct((N, H, W, Cp), jnp.bfloat16),   # bf16 intermediate
            jax.ShapeDtypeStruct((N, HB, 8, Cp), jnp.float32),
        ),
        grid_spec=pltpu.PrefetchScalarGridSpec(
            num_scalar_prefetch=0,
            grid=(N, HB),
            in_specs=in_specs,
            out_specs=[
                pl.BlockSpec((1, TH, W, Cp), lambda n, hb: (n, hb, 0, 0)),
                pl.BlockSpec((1, 1, 8, Cp), lambda n, hb: (n, hb, 0, 0)),
            ],
            scratch_shapes=[pltpu.VMEM((TH + 2, W + 2, Ci), jnp.bfloat16)],
        ),
        compiler_params=pltpu.CompilerParams(
            # hb "arbitrary": a 2-TC chip splits on n, so each core holds a
            # distinct resident image instead of both DMA-ing the same one.
            dimension_semantics=("parallel", "arbitrary"),
            vmem_limit_bytes=vmem_limit),
    )(*args)


# ---------------------------------------------------------------------------
# Kernel 3: BN2 + ReLU -> `conv`, 2x2/stride-2 max-pool -> `down`.
# Pools from the in-register value (no read-back of the output ref).
# ---------------------------------------------------------------------------
def _bn_relu_pool_kernel(x_ref, s_ref, t_ref, conv_ref, down_ref):
    TH, W, Cp = x_ref.shape[1], x_ref.shape[2], x_ref.shape[3]
    a = jnp.maximum(x_ref[0].astype(jnp.float32) * s_ref[0] + t_ref[0], 0.0)
    conv_ref[...] = a[None]
    # H direction: pairwise max over a leading (major) axis — layout-free.
    ar = a.reshape(TH // 2, 2, W, Cp)
    m = jnp.maximum(ar[:, 0], ar[:, 1])                             # (TH//2, W, Cp)
    # W direction: split the sublane dim and take a pairwise max.
    br = m.reshape(TH // 2, W // 2, 2, Cp)
    d = jnp.maximum(br[:, :, 0], br[:, :, 1])                       # (TH//2, W//2, Cp)
    down_ref[...] = d[None]


def _bn_relu_pool(x, scale, shift, *, tile_h, vmem_limit):
    N, H, W, Cp = x.shape
    TH = tile_h
    HB = H // TH
    return pl.pallas_call(
        _bn_relu_pool_kernel,
        out_shape=(
            jax.ShapeDtypeStruct((N, H, W, Cp), jnp.float32),
            jax.ShapeDtypeStruct((N, H // 2, W // 2, Cp), jnp.float32),
        ),
        grid_spec=pltpu.PrefetchScalarGridSpec(
            num_scalar_prefetch=0,
            grid=(N, HB),
            in_specs=[
                pl.BlockSpec((1, TH, W, Cp), lambda n, hb: (n, hb, 0, 0)),
                pl.BlockSpec((1, Cp), lambda n, hb: (0, 0)),
                pl.BlockSpec((1, Cp), lambda n, hb: (0, 0)),
            ],
            out_specs=[
                pl.BlockSpec((1, TH, W, Cp), lambda n, hb: (n, hb, 0, 0)),
                pl.BlockSpec((1, TH // 2, W // 2, Cp), lambda n, hb: (n, hb, 0, 0)),
            ],
        ),
        compiler_params=pltpu.CompilerParams(
            dimension_semantics=("parallel", "parallel"),
            vmem_limit_bytes=vmem_limit),
    )(x, scale, shift)


# ---------------------------------------------------------------------------
# Plain-JAX glue: BN stat finalization, weight packing, top-level forward.
# ---------------------------------------------------------------------------
def _finalize_bn(stats, gamma, beta, count, Cp, eps=1e-5):
    # stats: (N, HB, 8, Cp); rows 0/1 = per-band [sum, sumsq]; biased variance.
    # NOTE: E[x^2]-E[x]^2 in f32 can cancel for very large counts; clamped >=0.
    tot = jnp.sum(stats, axis=(0, 1))                    # (8, Cp)
    Cout = gamma.shape[0]
    mean = tot[0, :Cout] / count
    var = jnp.maximum(tot[1, :Cout] / count - mean * mean, 0.0)
    sc = gamma / jnp.sqrt(var + eps)
    sh = beta - mean * sc
    scale = jnp.zeros((1, Cp), jnp.float32).at[0, :Cout].set(sc)
    shift = jnp.zeros((1, Cp), jnp.float32).at[0, :Cout].set(sh)
    return scale, shift          # padded channels: scale=shift=0 -> stay zero


def _prep_weight(w_hwio, Ci, Cp):
    # (3,3,cin,cout) -> (Kp, Cp) bf16, contraction order (kh, kw, cin),
    # K zero-padded to a lane multiple.
    _, _, cin, cout = w_hwio.shape
    Kp = _round_up(9 * Ci, LANE)
    w = jnp.zeros((3, 3, Ci, Cp), jnp.float32).at[:, :, :cin, :cout].set(w_hwio)
    w = w.reshape(9 * Ci, Cp)
    if Kp > 9 * Ci:
        w = jnp.concatenate([w, jnp.zeros((Kp - 9 * Ci, Cp), jnp.float32)], axis=0)
    return w.astype(jnp.bfloat16)


def down_convert_forward(x_nchw, p):
    """DownConvert.forward: returns (conv, down), both NCHW like PyTorch."""
    x = jnp.transpose(x_nchw, (0, 2, 3, 1)).astype(jnp.bfloat16)   # NCHW -> NHWC
    N, H, W, Cin = x.shape
    Cout = p["w1"].shape[-1]
    assert H % 2 == 0 and W % 2 == 0
    Cp = _round_up(Cout, LANE)
    vmem_limit = _vmem_limit_bytes()
    TH = _pick_tile_h(H, W, Cp, vmem_limit)
    count = N * H * W

    # conv1 packs (kh,kw,cin) directly (no Cin->128 padding of the input).
    w1 = _prep_weight(p["w1"], Cin, Cp)      # (round_up(9*Cin,128), Cp)
    w2 = _prep_weight(p["w2"], Cp, Cp)       # (9*Cp, Cp)

    # conv1 (+ per-band BN1 stats); conv biases are absorbed by training-mode BN.
    c1, st1 = _conv3x3_with_stats(x, None, None, w1,
                                  tile_h=TH, apply_act=False, vmem_limit=vmem_limit)
    s1, t1 = _finalize_bn(st1, p["g1"], p["beta1"], count, Cp)
    # BN1 + ReLU fused into conv2 (+ per-band BN2 stats); c1 is bf16 in HBM.
    c2, st2 = _conv3x3_with_stats(c1, s1, t1, w2,
                                  tile_h=TH, apply_act=True, vmem_limit=vmem_limit)
    s2, t2 = _finalize_bn(st2, p["g2"], p["beta2"], count, Cp)
    # BN2 + ReLU -> `conv`, 2x2/2 max-pool -> `down`.
    conv, down = _bn_relu_pool(c2, s2, t2, tile_h=TH, vmem_limit=vmem_limit)

    conv = jnp.transpose(conv[..., :Cout], (0, 3, 1, 2))
    down = jnp.transpose(down[..., :Cout], (0, 3, 1, 2))
    return conv, down


# ---------------------------------------------------------------------------
# Pure-JAX reference (for correctness checking)
# ---------------------------------------------------------------------------
def _bn_train_ref(x, gamma, beta, eps=1e-5):
    mean = jnp.mean(x, axis=(0, 1, 2))
    var = jnp.mean(jnp.square(x - mean), axis=(0, 1, 2))
    return (x - mean) / jnp.sqrt(var + eps) * gamma + beta


def _ref_forward(x_nchw, p, conv_dtype=jnp.float32):
    x = jnp.transpose(x_nchw, (0, 2, 3, 1)).astype(jnp.float32)
    dn = ("NHWC", "HWIO", "NHWC")

    def conv(a, w, b):
        out = jax.lax.conv_general_dilated(
            a.astype(conv_dtype), w.astype(conv_dtype), (1, 1), "SAME",
            dimension_numbers=dn, preferred_element_type=jnp.float32)
        return out + b

    c1 = conv(x, p["w1"], p["b1"])
    a1 = jax.nn.relu(_bn_train_ref(c1, p["g1"], p["beta1"]))
    c2 = conv(a1, p["w2"], p["b2"])
    a2 = jax.nn.relu(_bn_train_ref(c2, p["g2"], p["beta2"]))
    down = jax.lax.reduce_window(a2, -jnp.inf, jax.lax.max,
                                 (1, 2, 2, 1), (1, 2, 2, 1), "VALID")
    return (jnp.transpose(a2, (0, 3, 1, 2)),
            jnp.transpose(down, (0, 3, 1, 2)))


if __name__ == "__main__":
    N, Cin, Cout, H, W = 2, 4, 8, 16, 16
    key = jax.random.PRNGKey(0)
    ks = jax.random.split(key, 5)
    x = jax.random.normal(ks[0], (N, Cin, H, W), jnp.float32)
    params = {
        "w1": jax.random.normal(ks[1], (3, 3, Cin, Cout), jnp.float32) * 0.1,
        "b1": jax.random.normal(ks[2], (Cout,), jnp.float32) * 0.1,
        "g1": jnp.ones((Cout,), jnp.float32),      # BatchNorm2d default init
        "beta1": jnp.zeros((Cout,), jnp.float32),
        "w2": jax.random.normal(ks[3], (3, 3, Cout, Cout), jnp.float32) * 0.1,
        "b2": jax.random.normal(ks[4], (Cout,), jnp.float32) * 0.1,
        "g2": jnp.ones((Cout,), jnp.float32),
        "beta2": jnp.zeros((Cout,), jnp.float32),
    }

    fwd = jax.jit(down_convert_forward)
    conv, down = jax.block_until_ready(fwd(x, params))
    assert conv.shape == (N, Cout, H, W)
    assert down.shape == (N, Cout, H // 2, W // 2)

    # Check vs a reference with the same MXU precision policy (bf16 operands,
    # f32 accumulation); slack covers bf16 storage of intermediates.
    rconv, rdown = _ref_forward(x, params, conv_dtype=jnp.bfloat16)
    np.testing.assert_allclose(np.asarray(conv), np.asarray(rconv),
                               rtol=5e-2, atol=5e-2)
    np.testing.assert_allclose(np.asarray(down), np.asarray(rdown),
                               rtol=5e-2, atol=5e-2)

    # Sanity check vs exact f32 PyTorch semantics (slack = bf16 policy).
    rconv32, rdown32 = _ref_forward(x, params, conv_dtype=jnp.float32)
    np.testing.assert_allclose(np.asarray(conv), np.asarray(rconv32),
                               rtol=1.2e-1, atol=1.2e-1)
    np.testing.assert_allclose(np.asarray(down), np.asarray(rdown32),
                               rtol=1.2e-1, atol=1.2e-1)

    print("KERNEL_OK")
</pallas_src>

<mosaic_0001>
module attributes {stable_mosaic.version = 11 : i64} {
  func.func @body_noact(%arg0: i32, %arg1: i32, %arg2: memref<1x16x16x4xbf16, #tpu.memory_space<vmem>>, %arg3: memref<128x128xbf16, #tpu.memory_space<vmem>>, %arg4: memref<1x16x16x128xbf16, #tpu.memory_space<vmem>>, %arg5: memref<1x1x8x128xf32, #tpu.memory_space<vmem>>, %arg6: memref<18x18x4xbf16, #tpu.memory_space<vmem>>) attributes {dimension_semantics = [#tpu.dimension_semantics<parallel>, #tpu.dimension_semantics<arbitrary>], iteration_bounds = array<i64: 2, 1>, scalar_prefetch = 0 : i64, scratch_operands = 1 : i64, tpu.core_type = #tpu.core_type<tc>, window_params = [{transform_indices = @transform_0, window_bounds = array<i64: 1, 16, 16, 4>}, {pipeline_mode = #tpu.pipeline_mode<synchronous>, transform_indices = @transform_1, window_bounds = array<i64: 128, 128>}, {transform_indices = @transform_2, window_bounds = array<i64: 1, 16, 16, 128>}, {transform_indices = @transform_3, window_bounds = array<i64: 1, 1, 8, 128>}]} {
    %c16_i32 = arith.constant 16 : i32
    %0 = arith.muli %arg1, %c16_i32 : i32
    %1 = tpu.assume_multiple %0, 16 : i32
    %cst = arith.constant 0.000000e+00 : bf16
    %2 = vector.broadcast %cst : bf16 to vector<18x1x4xbf16>
    %c0 = arith.constant 0 : index
    %c0_0 = arith.constant 0 : index
    %c0_1 = arith.constant 0 : index
    %3 = vector.load %arg6[%c0, %c0_0, %c0_1] : memref<18x18x4xbf16, #tpu.memory_space<vmem>>, vector<18x1x4xbf16>
    tpu.vector_store %arg6[%c0, %c0_0, %c0_1], %2 {strides = array<i32>} : memref<18x18x4xbf16, #tpu.memory_space<vmem>>, vector<18x1x4xbf16>,
    %c0_2 = arith.constant 0 : index
    %c17 = arith.constant 17 : index
    %c0_3 = arith.constant 0 : index
    %4 = vector.load %arg6[%c0_2, %c17, %c0_3] : memref<18x18x4xbf16, #tpu.memory_space<vmem>>, vector<18x1x4xbf16>
    tpu.vector_store %arg6[%c0_2, %c17, %c0_3], %2 {strides = array<i32>} : memref<18x18x4xbf16, #tpu.memory_space<vmem>>, vector<18x1x4xbf16>,
    %c0_4 = arith.constant 0 : index
    %5 = arith.index_cast %1 : i32 to index
    %c0_5 = arith.constant 0 : index
    %c0_6 = arith.constant 0 : index
    %6 = vector.load %arg2[%c0_4, %5, %c0_5, %c0_6] : memref<1x16x16x4xbf16, #tpu.memory_space<vmem>>, vector<1x16x16x4xbf16>
    %7 = vector.shape_cast %6 : vector<1x16x16x4xbf16> to vector<16x16x4xbf16>
    %c1 = arith.constant 1 : index
    %c1_7 = arith.constant 1 : index
    %c0_8 = arith.constant 0 : index
    %8 = vector.load %arg6[%c1, %c1_7, %c0_8] : memref<18x18x4xbf16, #tpu.memory_space<vmem>>, vector<16x16x4xbf16>
    tpu.vector_store %arg6[%c1, %c1_7, %c0_8], %7 {strides = array<i32>} : memref<18x18x4xbf16, #tpu.memory_space<vmem>>, vector<16x16x4xbf16>,
    %c1_i32 = arith.constant 1 : i32
    %9 = arith.subi %1, %c1_i32 : i32
    %c0_i32 = arith.constant 0 : i32
    %10 = arith.maxsi %9, %c0_i32 : i32
    %c16_i32_9 = arith.constant 16 : i32
    %11 = arith.addi %1, %c16_i32_9 : i32
    %c15_i32 = arith.constant 15 : i32
    %12 = arith.minsi %11, %c15_i32 : i32
    %c0_10 = arith.constant 0 : index
    %13 = arith.index_cast %10 : i32 to index
    %c0_11 = arith.constant 0 : index
    %c0_12 = arith.constant 0 : index
    %14 = vector.load %arg2[%c0_10, %13, %c0_11, %c0_12] : memref<1x16x16x4xbf16, #tpu.memory_space<vmem>>, vector<1x1x16x4xbf16>
    %15 = vector.shape_cast %14 : vector<1x1x16x4xbf16> to vector<1x16x4xbf16>
    %c0_13 = arith.constant 0 : index
    %16 = arith.index_cast %12 : i32 to index
    %c0_14 = arith.constant 0 : index
    %c0_15 = arith.constant 0 : index
    %17 = vector.load %arg2[%c0_13, %16, %c0_14, %c0_15] : memref<1x16x16x4xbf16, #tpu.memory_space<vmem>>, vector<1x1x16x4xbf16>
    %18 = vector.shape_cast %17 : vector<1x1x16x4xbf16> to vector<1x16x4xbf16>
    %c0_i32_16 = arith.constant 0 : i32
    %19 = arith.cmpi sgt, %arg1, %c0_i32_16 : i32
    %cst_17 = arith.constant 0.000000e+00 : bf16
    %20 = vector.broadcast %cst_17 : bf16 to vector<1x16x4xbf16>
    %21 = arith.select %19, %15, %20 : vector<1x16x4xbf16>
    %c0_18 = arith.constant 0 : index
    %c1_19 = arith.constant 1 : index
    %c0_20 = arith.constant 0 : index
    %22 = vector.load %arg6[%c0_18, %c1_19, %c0_20] : memref<18x18x4xbf16, #tpu.memory_space<vmem>>, vector<1x16x4xbf16>
    tpu.vector_store %arg6[%c0_18, %c1_19, %c0_20], %21 {strides = array<i32>} : memref<18x18x4xbf16, #tpu.memory_space<vmem>>, vector<1x16x4xbf16>,
    %c0_i32_21 = arith.constant 0 : i32
    %23 = arith.cmpi slt, %arg1, %c0_i32_21 : i32
    %cst_22 = arith.constant 0.000000e+00 : bf16
    %24 = vector.broadcast %cst_22 : bf16 to vector<1x16x4xbf16>
    %25 = arith.select %23, %18, %24 : vector<1x16x4xbf16>
    %c17_23 = arith.constant 17 : index
    %c1_24 = arith.constant 1 : index
    %c0_25 = arith.constant 0 : index
    %26 = vector.load %arg6[%c17_23, %c1_24, %c0_25] : memref<18x18x4xbf16, #tpu.memory_space<vmem>>, vector<1x16x4xbf16>
    tpu.vector_store %arg6[%c17_23, %c1_24, %c0_25], %25 {strides = array<i32>} : memref<18x18x4xbf16, #tpu.memory_space<vmem>>, vector<1x16x4xbf16>,
    %c0_26 = arith.constant 0 : index
    %c0_27 = arith.constant 0 : index
    %c0_28 = arith.constant 0 : index
    %27 = vector.load %arg6[%c0_26, %c0_27, %c0_28] : memref<18x18x4xbf16, #tpu.memory_space<vmem>>, vector<18x18x4xbf16>
    %28 = vector.extract_strided_slice %27 {offsets = [0, 0, 0], sizes = [16, 16, 4], strides = [1, 1, 1]} : vector<18x18x4xbf16> to vector<16x16x4xbf16>
    %29 = vector.extract_strided_slice %27 {offsets = [0, 1, 0], sizes = [16, 16, 4], strides = [1, 1, 1]} : vector<18x18x4xbf16> to vector<16x16x4xbf16>
    %30 = vector.extract_strided_slice %27 {offsets = [0, 2, 0], sizes = [16, 16, 4], strides = [1, 1, 1]} : vector<18x18x4xbf16> to vector<16x16x4xbf16>
    %31 = vector.extract_strided_slice %27 {offsets = [1, 0, 0], sizes = [16, 16, 4], strides = [1, 1, 1]} : vector<18x18x4xbf16> to vector<16x16x4xbf16>
    %32 = vector.extract_strided_slice %27 {offsets = [1, 1, 0], sizes = [16, 16, 4], strides = [1, 1, 1]} : vector<18x18x4xbf16> to vector<16x16x4xbf16>
    %33 = vector.extract_strided_slice %27 {offsets = [1, 2, 0], sizes = [16, 16, 4], strides = [1, 1, 1]} : vector<18x18x4xbf16> to vector<16x16x4xbf16>
    %34 = vector.extract_strided_slice %27 {offsets = [2, 0, 0], sizes = [16, 16, 4], strides = [1, 1, 1]} : vector<18x18x4xbf16> to vector<16x16x4xbf16>
    %35 = vector.extract_strided_slice %27 {offsets = [2, 1, 0], sizes = [16, 16, 4], strides = [1, 1, 1]} : vector<18x18x4xbf16> to vector<16x16x4xbf16>
    %36 = vector.extract_strided_slice %27 {offsets = [2, 2, 0], sizes = [16, 16, 4], strides = [1, 1, 1]} : vector<18x18x4xbf16> to vector<16x16x4xbf16>
    %37 = tpu.concatenate %28, %29, %30, %31, %32, %33, %34, %35, %36 in 2 : vector<16x16x4xbf16>, vector<16x16x4xbf16>, vector<16x16x4xbf16>, vector<16x16x4xbf16>, vector<16x16x4xbf16>, vector<16x16x4xbf16>, vector<16x16x4xbf16>, vector<16x16x4xbf16>, vector<16x16x4xbf16> -> vector<16x16x36xbf16>
    %cst_29 = arith.constant 0.000000e+00 : bf16
    %38 = vector.broadcast %cst_29 : bf16 to vector<16x16x92xbf16>
    %39 = tpu.concatenate %37, %38 in 2 : vector<16x16x36xbf16>, vector<16x16x92xbf16> -> vector<16x16x128xbf16>
    %40 = vector.shape_cast %39 : vector<16x16x128xbf16> to vector<256x128xbf16>
    %c0_30 = arith.constant 0 : index
    %c0_31 = arith.constant 0 : index
    %41 = vector.load %arg3[%c0_30, %c0_31] : memref<128x128xbf16, #tpu.memory_space<vmem>>, vector<128x128xbf16>
    %cst_32 = arith.constant dense<0.000000e+00> : vector<256x128xf32>
    %42 = tpu.matmul %40, %41, %cst_32 {dimension_numbers = #tpu.dot_dimension_numbers<[1], [0], [0], [1], [0, 0, 1, 1], [], []>} : vector<256x128xbf16>, vector<128x128xbf16>, vector<256x128xf32> -> vector<256x128xf32>
    %43 = vector.shape_cast %42 : vector<256x128xf32> to vector<1x16x16x128xf32>
    %44 = arith.truncf %43 : vector<1x16x16x128xf32> to vector<1x16x16x128xbf16>
    %c0_33 = arith.constant 0 : index
    %c0_34 = arith.constant 0 : index
    %c0_35 = arith.constant 0 : index
    %c0_36 = arith.constant 0 : index
    %45 = vector.load %arg4[%c0_33, %c0_34, %c0_35, %c0_36] : memref<1x16x16x128xbf16, #tpu.memory_space<vmem>>, vector<1x16x16x128xbf16>
    tpu.vector_store %arg4[%c0_33, %c0_34, %c0_35, %c0_36], %44 {strides = array<i32>} : memref<1x16x16x128xbf16, #tpu.memory_space<vmem>>, vector<1x16x16x128xbf16>,
    %cst_37 = arith.constant dense<0.000000e+00> : vector<128xf32>
    %46 = vector.multi_reduction <add>, %42, %cst_37 [0] : vector<256x128xf32> to vector<128xf32>
    %47 = vector.shape_cast %46 : vector<128xf32> to vector<1x128xf32>
    %48 = arith.mulf %42, %42 : vector<256x128xf32>
    %cst_38 = arith.constant dense<0.000000e+00> : vector<128xf32>
    %49 = vector.multi_reduction <add>, %48, %cst_38 [0] : vector<256x128xf32> to vector<128xf32>
    %50 = vector.shape_cast %49 : vector<128xf32> to vector<1x128xf32>
    %cst_39 = arith.constant 0.000000e+00 : f32
    %51 = vector.broadcast %cst_39 : f32 to vector<6x128xf32>
    %52 = tpu.concatenate %47, %50, %51 in 0 : vector<1x128xf32>, vector<1x128xf32>, vector<6x128xf32> -> vector<8x128xf32>
    %53 = vector.shape_cast %52 : vector<8x128xf32> to vector<1x1x8x128xf32>
    %c0_40 = arith.constant 0 : index
    %c0_41 = arith.constant 0 : index
    %c0_42 = arith.constant 0 : index
    %c0_43 = arith.constant 0 : index
    %54 = vector.load %arg5[%c0_40, %c0_41, %c0_42, %c0_43] : memref<1x1x8x128xf32, #tpu.memory_space<vmem>>, vector<1x1x8x128xf32>
    tpu.vector_store %arg5[%c0_40, %c0_41, %c0_42, %c0_43], %53 {strides = array<i32>} : memref<1x1x8x128xf32, #tpu.memory_space<vmem>>, vector<1x1x8x128xf32>,
    return
  }
  func.func @transform_0(%arg0: i32, %arg1: i32) -> (i32, i32, i32, i32) {
    %c0_i32 = arith.constant 0 : i32
    %c0_i32_0 = arith.constant 0 : i32
    %c0_i32_1 = arith.constant 0 : i32
    %c0_i32_2 = arith.constant 0 : i32
    return %arg0, %c0_i32, %c0_i32_0, %c0_i32_1 : i32, i32, i32, i32
  }
  func.func @transform_1(%arg0: i32, %arg1: i32) -> (i32, i32) {
    %c0_i32 = arith.constant 0 : i32
    %c0_i32_0 = arith.constant 0 : i32
    %c0_i32_1 = arith.constant 0 : i32
    return %c0_i32, %c0_i32_0 : i32, i32
  }
  func.func @transform_2(%arg0: i32, %arg1: i32) -> (i32, i32, i32, i32) {
    %c0_i32 = arith.constant 0 : i32
    %c0_i32_0 = arith.constant 0 : i32
    %c0_i32_1 = arith.constant 0 : i32
    return %arg0, %arg1, %c0_i32, %c0_i32_0 : i32, i32, i32, i32
  }
  func.func @transform_3(%arg0: i32, %arg1: i32) -> (i32, i32, i32, i32) {
    %c0_i32 = arith.constant 0 : i32
    %c0_i32_0 = arith.constant 0 : i32
    %c0_i32_1 = arith.constant 0 : i32
    return %arg0, %arg1, %c0_i32, %c0_i32_0 : i32, i32, i32, i32
  }
}

module attributes {stable_mosaic.version = 11 : i64} {
  func.func @body(%arg0: i32, %arg1: i32, %arg2: memref<1x16x16x128xbf16, #tpu.memory_space<vmem>>, %arg3: memref<1x128xf32, #tpu.memory_space<vmem>>, %arg4: memref<1x128xf32, #tpu.memory_space<vmem>>, %arg5: memref<1152x128xbf16, #tpu.memory_space<vmem>>, %arg6: memref<1x16x16x128xbf16, #tpu.memory_space<vmem>>, %arg7: memref<1x1x8x128xf32, #tpu.memory_space<vmem>>, %arg8: memref<18x18x128xbf16, #tpu.memory_space<vmem>>) attributes {dimension_semantics = [#tpu.dimension_semantics<parallel>, #tpu.dimension_semantics<arbitrary>], iteration_bounds = array<i64: 2, 1>, scalar_prefetch = 0 : i64, scratch_operands = 1 : i64, tpu.core_type = #tpu.core_type<tc>, window_params = [{transform_indices = @transform_0, window_bounds = array<i64: 1, 16, 16, 128>}, {pipeline_mode = #tpu.pipeline_mode<synchronous>, transform_indices = @transform_1, window_bounds = array<i64: 1, 128>}, {pipeline_mode = #tpu.pipeline_mode<synchronous>, transform_indices = @transform_2, window_bounds = array<i64: 1, 128>}, {pipeline_mode = #tpu.pipeline_mode<synchronous>, transform_indices = @transform_3, window_bounds = array<i64: 1152, 128>}, {transform_indices = @transform_4, window_bounds = array<i64: 1, 16, 16, 128>}, {transform_indices = @transform_5, window_bounds = array<i64: 1, 1, 8, 128>}]} {
    %c16_i32 = arith.constant 16 : i32
    %0 = arith.muli %arg1, %c16_i32 : i32
    %1 = tpu.assume_multiple %0, 16 : i32
    %cst = arith.constant 0.000000e+00 : bf16
    %2 = vector.broadcast %cst : bf16 to vector<18x1x128xbf16>
    %c0 = arith.constant 0 : index
    %c0_0 = arith.constant 0 : index
    %c0_1 = arith.constant 0 : index
    %3 = vector.load %arg8[%c0, %c0_0, %c0_1] : memref<18x18x128xbf16, #tpu.memory_space<vmem>>, vector<18x1x128xbf16>
    tpu.vector_store %arg8[%c0, %c0_0, %c0_1], %2 {strides = array<i32>} : memref<18x18x128xbf16, #tpu.memory_space<vmem>>, vector<18x1x128xbf16>,
    %c0_2 = arith.constant 0 : index
    %c17 = arith.constant 17 : index
    %c0_3 = arith.constant 0 : index
    %4 = vector.load %arg8[%c0_2, %c17, %c0_3] : memref<18x18x128xbf16, #tpu.memory_space<vmem>>, vector<18x1x128xbf16>
    tpu.vector_store %arg8[%c0_2, %c17, %c0_3], %2 {strides = array<i32>} : memref<18x18x128xbf16, #tpu.memory_space<vmem>>, vector<18x1x128xbf16>,
    %c0_4 = arith.constant 0 : index
    %5 = arith.index_cast %1 : i32 to index
    %c0_5 = arith.constant 0 : index
    %c0_6 = arith.constant 0 : index
    %6 = vector.load %arg2[%c0_4, %5, %c0_5, %c0_6] : memref<1x16x16x128xbf16, #tpu.memory_space<vmem>>, vector<1x16x16x128xbf16>
    %7 = vector.shape_cast %6 : vector<1x16x16x128xbf16> to vector<16x16x128xbf16>
    %8 = arith.extf %7 : vector<16x16x128xbf16> to vector<16x16x128xf32>
    %c0_7 = arith.constant 0 : index
    %c0_8 = arith.constant 0 : index
    %9 = vector.load %arg3[%c0_7, %c0_8] : memref<1x128xf32, #tpu.memory_space<vmem>>, vector<1x128xf32>
    %10 = vector.shape_cast %9 : vector<1x128xf32> to vector<128xf32>
    %11 = vector.shape_cast %10 : vector<128xf32> to vector<1x1x128xf32>
    %12 = vector.broadcast %11 : vector<1x1x128xf32> to vector<16x16x128xf32>
    %13 = arith.mulf %8, %12 : vector<16x16x128xf32>
    %c0_9 = arith.constant 0 : index
    %c0_10 = arith.constant 0 : index
    %14 = vector.load %arg4[%c0_9, %c0_10] : memref<1x128xf32, #tpu.memory_space<vmem>>, vector<1x128xf32>
    %15 = vector.shape_cast %14 : vector<1x128xf32> to vector<128xf32>
    %16 = vector.shape_cast %15 : vector<128xf32> to vector<1x1x128xf32>
    %17 = vector.broadcast %16 : vector<1x1x128xf32> to vector<16x16x128xf32>
    %18 = arith.addf %13, %17 : vector<16x16x128xf32>
    %cst_11 = arith.constant 0.000000e+00 : f32
    %19 = vector.broadcast %cst_11 : f32 to vector<16x16x128xf32>
    %20 = arith.maximumf %18, %19 : vector<16x16x128xf32>
    %21 = arith.truncf %20 : vector<16x16x128xf32> to vector<16x16x128xbf16>
    %c1 = arith.constant 1 : index
    %c1_12 = arith.constant 1 : index
    %c0_13 = arith.constant 0 : index
    %22 = vector.load %arg8[%c1, %c1_12, %c0_13] : memref<18x18x128xbf16, #tpu.memory_space<vmem>>, vector<16x16x128xbf16>
    tpu.vector_store %arg8[%c1, %c1_12, %c0_13], %21 {strides = array<i32>} : memref<18x18x128xbf16, #tpu.memory_space<vmem>>, vector<16x16x128xbf16>,
    %c1_i32 = arith.constant 1 : i32
    %23 = arith.subi %1, %c1_i32 : i32
    %c0_i32 = arith.constant 0 : i32
    %24 = arith.maxsi %23, %c0_i32 : i32
    %c16_i32_14 = arith.constant 16 : i32
    %25 = arith.addi %1, %c16_i32_14 : i32
    %c15_i32 = arith.constant 15 : i32
    %26 = arith.minsi %25, %c15_i32 : i32
    %c0_15 = arith.constant 0 : index
    %27 = arith.index_cast %24 : i32 to index
    %c0_16 = arith.constant 0 : index
    %c0_17 = arith.constant 0 : index
    %28 = vector.load %arg2[%c0_15, %27, %c0_16, %c0_17] : memref<1x16x16x128xbf16, #tpu.memory_space<vmem>>, vector<1x1x16x128xbf16>
    %29 = vector.shape_cast %28 : vector<1x1x16x128xbf16> to vector<1x16x128xbf16>
    %30 = arith.extf %29 : vector<1x16x128xbf16> to vector<1x16x128xf32>
    %c0_18 = arith.constant 0 : index
    %c0_19 = arith.constant 0 : index
    %31 = vector.load %arg3[%c0_18, %c0_19] : memref<1x128xf32, #tpu.memory_space<vmem>>, vector<1x128xf32>
    %32 = vector.shape_cast %31 : vector<1x128xf32> to vector<128xf32>
    %33 = vector.shape_cast %32 : vector<128xf32> to vector<1x1x128xf32>
    %34 = vector.broadcast %33 : vector<1x1x128xf32> to vector<1x16x128xf32>
    %35 = arith.mulf %30, %34 : vector<1x16x128xf32>
    %c0_20 = arith.constant 0 : index
    %c0_21 = arith.constant 0 : index
    %36 = vector.load %arg4[%c0_20, %c0_21] : memref<1x128xf32, #tpu.memory_space<vmem>>, vector<1x128xf32>
    %37 = vector.shape_cast %36 : vector<1x128xf32> to vector<128xf32>
    %38 = vector.shape_cast %37 : vector<128xf32> to vector<1x1x128xf32>
    %39 = vector.broadcast %38 : vector<1x1x128xf32> to vector<1x16x128xf32>
    %40 = arith.addf %35, %39 : vector<1x16x128xf32>
    %cst_22 = arith.constant 0.000000e+00 : f32
    %41 = vector.broadcast %cst_22 : f32 to vector<1x16x128xf32>
    %42 = arith.maximumf %40, %41 : vector<1x16x128xf32>
    %43 = arith.truncf %42 : vector<1x16x128xf32> to vector<1x16x128xbf16>
    %c0_23 = arith.constant 0 : index
    %44 = arith.index_cast %26 : i32 to index
    %c0_24 = arith.constant 0 : index
    %c0_25 = arith.constant 0 : index
    %45 = vector.load %arg2[%c0_23, %44, %c0_24, %c0_25] : memref<1x16x16x128xbf16, #tpu.memory_space<vmem>>, vector<1x1x16x128xbf16>
    %46 = vector.shape_cast %45 : vector<1x1x16x128xbf16> to vector<1x16x128xbf16>
    %47 = arith.extf %46 : vector<1x16x128xbf16> to vector<1x16x128xf32>
    %c0_26 = arith.constant 0 : index
    %c0_27 = arith.constant 0 : index
    %48 = vector.load %arg3[%c0_26, %c0_27] : memref<1x128xf32, #tpu.memory_space<vmem>>, vector<1x128xf32>
    %49 = vector.shape_cast %48 : vector<1x128xf32> to vector<128xf32>
    %50 = vector.shape_cast %49 : vector<128xf32> to vector<1x1x128xf32>
    %51 = vector.broadcast %50 : vector<1x1x128xf32> to vector<1x16x128xf32>
    %52 = arith.mulf %47, %51 : vector<1x16x128xf32>
    %c0_28 = arith.constant 0 : index
    %c0_29 = arith.constant 0 : index
    %53 = vector.load %arg4[%c0_28, %c0_29] : memref<1x128xf32, #tpu.memory_space<vmem>>, vector<1x128xf32>
    %54 = vector.shape_cast %53 : vector<1x128xf32> to vector<128xf32>
    %55 = vector.shape_cast %54 : vector<128xf32> to vector<1x1x128xf32>
    %56 = vector.broadcast %55 : vector<1x1x128xf32> to vector<1x16x128xf32>
    %57 = arith.addf %52, %56 : vector<1x16x128xf32>
    %cst_30 = arith.constant 0.000000e+00 : f32
    %58 = vector.broadcast %cst_30 : f32 to vector<1x16x128xf32>
    %59 = arith.maximumf %57, %58 : vector<1x16x128xf32>
    %60 = arith.truncf %59 : vector<1x16x128xf32> to vector<1x16x128xbf16>
    %c0_i32_31 = arith.constant 0 : i32
    %61 = arith.cmpi sgt, %arg1, %c0_i32_31 : i32
    %cst_32 = arith.constant 0.000000e+00 : bf16
    %62 = vector.broadcast %cst_32 : bf16 to vector<1x16x128xbf16>
    %63 = arith.select %61, %43, %62 : vector<1x16x128xbf16>
    %c0_33 = arith.constant 0 : index
    %c1_34 = arith.constant 1 : index
    %c0_35 = arith.constant 0 : index
    %64 = vector.load %arg8[%c0_33, %c1_34, %c0_35] : memref<18x18x128xbf16, #tpu.memory_space<vmem>>, vector<1x16x128xbf16>
    tpu.vector_store %arg8[%c0_33, %c1_34, %c0_35], %63 {strides = array<i32>} : memref<18x18x128xbf16, #tpu.memory_space<vmem>>, vector<1x16x128xbf16>,
    %c0_i32_36 = arith.constant 0 : i32
    %65 = arith.cmpi slt, %arg1, %c0_i32_36 : i32
    %cst_37 = arith.constant 0.000000e+00 : bf16
    %66 = vector.broadcast %cst_37 : bf16 to vector<1x16x128xbf16>
    %67 = arith.select %65, %60, %66 : vector<1x16x128xbf16>
    %c17_38 = arith.constant 17 : index
    %c1_39 = arith.constant 1 : index
    %c0_40 = arith.constant 0 : index
    %68 = vector.load %arg8[%c17_38, %c1_39, %c0_40] : memref<18x18x128xbf16, #tpu.memory_space<vmem>>, vector<1x16x128xbf16>
    tpu.vector_store %arg8[%c17_38, %c1_39, %c0_40], %67 {strides = array<i32>} : memref<18x18x128xbf16, #tpu.memory_space<vmem>>, vector<1x16x128xbf16>,
    %c0_41 = arith.constant 0 : index
    %c0_42 = arith.constant 0 : index
    %c0_43 = arith.constant 0 : index
    %69 = vector.load %arg8[%c0_41, %c0_42, %c0_43] : memref<18x18x128xbf16, #tpu.memory_space<vmem>>, vector<18x18x128xbf16>
    %70 = vector.extract_strided_slice %69 {offsets = [0, 0, 0], sizes = [16, 16, 128], strides = [1, 1, 1]} : vector<18x18x128xbf16> to vector<16x16x128xbf16>
    %71 = vector.extract_strided_slice %69 {offsets = [0, 1, 0], sizes = [16, 16, 128], strides = [1, 1, 1]} : vector<18x18x128xbf16> to vector<16x16x128xbf16>
    %72 = vector.extract_strided_slice %69 {offsets = [0, 2, 0], sizes = [16, 16, 128], strides = [1, 1, 1]} : vector<18x18x128xbf16> to vector<16x16x128xbf16>
    %73 = vector.extract_strided_slice %69 {offsets = [1, 0, 0], sizes = [16, 16, 128], strides = [1, 1, 1]} : vector<18x18x128xbf16> to vector<16x16x128xbf16>
    %74 = vector.extract_strided_slice %69 {offsets = [1, 1, 0], sizes = [16, 16, 128], strides = [1, 1, 1]} : vector<18x18x128xbf16> to vector<16x16x128xbf16>
    %75 = vector.extract_strided_slice %69 {offsets = [1, 2, 0], sizes = [16, 16, 128], strides = [1, 1, 1]} : vector<18x18x128xbf16> to vector<16x16x128xbf16>
    %76 = vector.extract_strided_slice %69 {offsets = [2, 0, 0], sizes = [16, 16, 128], strides = [1, 1, 1]} : vector<18x18x128xbf16> to vector<16x16x128xbf16>
    %77 = vector.extract_strided_slice %69 {offsets = [2, 1, 0], sizes = [16, 16, 128], strides = [1, 1, 1]} : vector<18x18x128xbf16> to vector<16x16x128xbf16>
    %78 = vector.extract_strided_slice %69 {offsets = [2, 2, 0], sizes = [16, 16, 128], strides = [1, 1, 1]} : vector<18x18x128xbf16> to vector<16x16x128xbf16>
    %79 = tpu.concatenate %70, %71, %72, %73, %74, %75, %76, %77, %78 in 2 : vector<16x16x128xbf16>, vector<16x16x128xbf16>, vector<16x16x128xbf16>, vector<16x16x128xbf16>, vector<16x16x128xbf16>, vector<16x16x128xbf16>, vector<16x16x128xbf16>, vector<16x16x128xbf16>, vector<16x16x128xbf16> -> vector<16x16x1152xbf16>
    %80 = vector.shape_cast %79 : vector<16x16x1152xbf16> to vector<256x1152xbf16>
    %c0_44 = arith.constant 0 : index
    %c0_45 = arith.constant 0 : index
    %81 = vector.load %arg5[%c0_44, %c0_45] : memref<1152x128xbf16, #tpu.memory_space<vmem>>, vector<1152x128xbf16>
    %cst_46 = arith.constant dense<0.000000e+00> : vector<256x128xf32>
    %82 = tpu.matmul %80, %81, %cst_46 {dimension_numbers = #tpu.dot_dimension_numbers<[1], [0], [0], [1], [0, 0, 1, 1], [], []>} : vector<256x1152xbf16>, vector<1152x128xbf16>, vector<256x128xf32> -> vector<256x128xf32>
    %83 = vector.shape_cast %82 : vector<256x128xf32> to vector<1x16x16x128xf32>
    %84 = arith.truncf %83 : vector<1x16x16x128xf32> to vector<1x16x16x128xbf16>
    %c0_47 = arith.constant 0 : index
    %c0_48 = arith.constant 0 : index
    %c0_49 = arith.constant 0 : index
    %c0_50 = arith.constant 0 : index
    %85 = vector.load %arg6[%c0_47, %c0_48, %c0_49, %c0_50] : memref<1x16x16x128xbf16, #tpu.memory_space<vmem>>, vector<1x16x16x128xbf16>
    tpu.vector_store %arg6[%c0_47, %c0_48, %c0_49, %c0_50], %84 {strides = array<i32>} : memref<1x16x16x128xbf16, #tpu.memory_space<vmem>>, vector<1x16x16x128xbf16>,
    %cst_51 = arith.constant dense<0.000000e+00> : vector<128xf32>
    %86 = vector.multi_reduction <add>, %82, %cst_51 [0] : vector<256x128xf32> to vector<128xf32>
    %87 = vector.shape_cast %86 : vector<128xf32> to vector<1x128xf32>
    %88 = arith.mulf %82, %82 : vector<256x128xf32>
    %cst_52 = arith.constant dense<0.000000e+00> : vector<128xf32>
    %89 = vector.multi_reduction <add>, %88, %cst_52 [0] : vector<256x128xf32> to vector<128xf32>
    %90 = vector.shape_cast %89 : vector<128xf32> to vector<1x128xf32>
    %cst_53 = arith.constant 0.000000e+00 : f32
    %91 = vector.broadcast %cst_53 : f32 to vector<6x128xf32>
    %92 = tpu.concatenate %87, %90, %91 in 0 : vector<1x128xf32>, vector<1x128xf32>, vector<6x128xf32> -> vector<8x128xf32>
    %93 = vector.shape_cast %92 : vector<8x128xf32> to vector<1x1x8x128xf32>
    %c0_54 = arith.constant 0 : index
    %c0_55 = arith.constant 0 : index
    %c0_56 = arith.constant 0 : index
    %c0_57 = arith.constant 0 : index
    %94 = vector.load %arg7[%c0_54, %c0_55, %c0_56, %c0_57] : memref<1x1x8x128xf32, #tpu.memory_space<vmem>>, vector<1x1x8x128xf32>
    tpu.vector_store %arg7[%c0_54, %c0_55, %c0_56, %c0_57], %93 {strides = array<i32>} : memref<1x1x8x128xf32, #tpu.memory_space<vmem>>, vector<1x1x8x128xf32>,
    return
  }
  func.func @transform_0(%arg0: i32, %arg1: i32) -> (i32, i32, i32, i32) {
    %c0_i32 = arith.constant 0 : i32
    %c0_i32_0 = arith.constant 0 : i32
    %c0_i32_1 = arith.constant 0 : i32
    %c0_i32_2 = arith.constant 0 : i32
    return %arg0, %c0_i32, %c0_i32_0, %c0_i32_1 : i32, i32, i32, i32
  }
  func.func @transform_1(%arg0: i32, %arg1: i32) -> (i32, i32) {
    %c0_i32 = arith.constant 0 : i32
    %c0_i32_0 = arith.constant 0 : i32
    %c0_i32_1 = arith.constant 0 : i32
    return %c0_i32, %c0_i32_0 : i32, i32
  }
  func.func @transform_2(%arg0: i32, %arg1: i32) -> (i32, i32) {
    %c0_i32 = arith.constant 0 : i32
    %c0_i32_0 = arith.constant 0 : i32
    %c0_i32_1 = arith.constant 0 : i32
    return %c0_i32, %c0_i32_0 : i32, i32
  }
  func.func @transform_3(%arg0: i32, %arg1: i32) -> (i32, i32) {
    %c0_i32 = arith.constant 0 : i32
    %c0_i32_0 = arith.constant 0 : i32
    %c0_i32_1 = arith.constant 0 : i32
    return %c0_i32, %c0_i32_0 : i32, i32
  }
  func.func @transform_4(%arg0: i32, %arg1: i32) -> (i32, i32, i32, i32) {
    %c0_i32 = arith.constant 0 : i32
    %c0_i32_0 = arith.constant 0 : i32
    %c0_i32_1 = arith.constant 0 : i32
    return %arg0, %arg1, %c0_i32, %c0_i32_0 : i32, i32, i32, i32
  }
  func.func @transform_5(%arg0: i32, %arg1: i32) -> (i32, i32, i32, i32) {
    %c0_i32 = arith.constant 0 : i32
    %c0_i32_0 = arith.constant 0 : i32
    %c0_i32_1 = arith.constant 0 : i32
    return %arg0, %arg1, %c0_i32, %c0_i32_0 : i32, i32, i32, i32
  }
}

module attributes {stable_mosaic.version = 11 : i64} {
  func.func @_bn_relu_pool_kernel(%arg0: i32, %arg1: i32, %arg2: memref<1x16x16x128xbf16, #tpu.memory_space<vmem>>, %arg3: memref<1x128xf32, #tpu.memory_space<vmem>>, %arg4: memref<1x128xf32, #tpu.memory_space<vmem>>, %arg5: memref<1x16x16x128xf32, #tpu.memory_space<vmem>>, %arg6: memref<1x8x8x128xf32, #tpu.memory_space<vmem>>) attributes {dimension_semantics = [#tpu.dimension_semantics<parallel>, #tpu.dimension_semantics<parallel>], iteration_bounds = array<i64: 2, 1>, scalar_prefetch = 0 : i64, scratch_operands = 0 : i64, tpu.core_type = #tpu.core_type<tc>, window_params = [{transform_indices = @transform_0, window_bounds = array<i64: 1, 16, 16, 128>}, {pipeline_mode = #tpu.pipeline_mode<synchronous>, transform_indices = @transform_1, window_bounds = array<i64: 1, 128>}, {pipeline_mode = #tpu.pipeline_mode<synchronous>, transform_indices = @transform_2, window_bounds = array<i64: 1, 128>}, {transform_indices = @transform_3, window_bounds = array<i64: 1, 16, 16, 128>}, {transform_indices = @transform_4, window_bounds = array<i64: 1, 8, 8, 128>}]} {
    %c0 = arith.constant 0 : index
    %c0_0 = arith.constant 0 : index
    %c0_1 = arith.constant 0 : index
    %c0_2 = arith.constant 0 : index
    %0 = vector.load %arg2[%c0, %c0_0, %c0_1, %c0_2] : memref<1x16x16x128xbf16, #tpu.memory_space<vmem>>, vector<1x16x16x128xbf16>
    %1 = vector.shape_cast %0 : vector<1x16x16x128xbf16> to vector<16x16x128xbf16>
    %2 = arith.extf %1 : vector<16x16x128xbf16> to vector<16x16x128xf32>
    %c0_3 = arith.constant 0 : index
    %c0_4 = arith.constant 0 : index
    %3 = vector.load %arg3[%c0_3, %c0_4] : memref<1x128xf32, #tpu.memory_space<vmem>>, vector<1x128xf32>
    %4 = vector.shape_cast %3 : vector<1x128xf32> to vector<128xf32>
    %5 = vector.shape_cast %4 : vector<128xf32> to vector<1x1x128xf32>
    %6 = vector.broadcast %5 : vector<1x1x128xf32> to vector<16x16x128xf32>
    %7 = arith.mulf %2, %6 : vector<16x16x128xf32>
    %c0_5 = arith.constant 0 : index
    %c0_6 = arith.constant 0 : index
    %8 = vector.load %arg4[%c0_5, %c0_6] : memref<1x128xf32, #tpu.memory_space<vmem>>, vector<1x128xf32>
    %9 = vector.shape_cast %8 : vector<1x128xf32> to vector<128xf32>
    %10 = vector.shape_cast %9 : vector<128xf32> to vector<1x1x128xf32>
    %11 = vector.broadcast %10 : vector<1x1x128xf32> to vector<16x16x128xf32>
    %12 = arith.addf %7, %11 : vector<16x16x128xf32>
    %cst = arith.constant 0.000000e+00 : f32
    %13 = vector.broadcast %cst : f32 to vector<16x16x128xf32>
    %14 = arith.maximumf %12, %13 : vector<16x16x128xf32>
    %15 = vector.shape_cast %14 : vector<16x16x128xf32> to vector<1x16x16x128xf32>
    %c0_7 = arith.constant 0 : index
    %c0_8 = arith.constant 0 : index
    %c0_9 = arith.constant 0 : index
    %c0_10 = arith.constant 0 : index
    %16 = vector.load %arg5[%c0_7, %c0_8, %c0_9, %c0_10] : memref<1x16x16x128xf32, #tpu.memory_space<vmem>>, vector<1x16x16x128xf32>
    tpu.vector_store %arg5[%c0_7, %c0_8, %c0_9, %c0_10], %15 {strides = array<i32>} : memref<1x16x16x128xf32, #tpu.memory_space<vmem>>, vector<1x16x16x128xf32>,
    %17 = vector.shape_cast %14 : vector<16x16x128xf32> to vector<8x2x16x128xf32>
    %18 = vector.extract_strided_slice %17 {offsets = [0, 0, 0, 0], sizes = [8, 1, 16, 128], strides = [1, 1, 1, 1]} : vector<8x2x16x128xf32> to vector<8x1x16x128xf32>
    %19 = vector.shape_cast %18 : vector<8x1x16x128xf32> to vector<8x16x128xf32>
    %20 = vector.extract_strided_slice %17 {offsets = [0, 1, 0, 0], sizes = [8, 1, 16, 128], strides = [1, 1, 1, 1]} : vector<8x2x16x128xf32> to vector<8x1x16x128xf32>
    %21 = vector.shape_cast %20 : vector<8x1x16x128xf32> to vector<8x16x128xf32>
    %22 = arith.maximumf %19, %21 : vector<8x16x128xf32>
    %23 = vector.shape_cast %22 : vector<8x16x128xf32> to vector<8x8x2x128xf32>
    %24 = vector.extract_strided_slice %23 {offsets = [0, 0, 0, 0], sizes = [8, 8, 1, 128], strides = [1, 1, 1, 1]} : vector<8x8x2x128xf32> to vector<8x8x1x128xf32>
    %25 = vector.shape_cast %24 : vector<8x8x1x128xf32> to vector<8x8x128xf32>
    %26 = vector.extract_strided_slice %23 {offsets = [0, 0, 1, 0], sizes = [8, 8, 1, 128], strides = [1, 1, 1, 1]} : vector<8x8x2x128xf32> to vector<8x8x1x128xf32>
    %27 = vector.shape_cast %26 : vector<8x8x1x128xf32> to vector<8x8x128xf32>
    %28 = arith.maximumf %25, %27 : vector<8x8x128xf32>
    %29 = vector.shape_cast %28 : vector<8x8x128xf32> to vector<1x8x8x128xf32>
    %c0_11 = arith.constant 0 : index
    %c0_12 = arith.constant 0 : index
    %c0_13 = arith.constant 0 : index
    %c0_14 = arith.constant 0 : index
    %30 = vector.load %arg6[%c0_11, %c0_12, %c0_13, %c0_14] : memref<1x8x8x128xf32, #tpu.memory_space<vmem>>, vector<1x8x8x128xf32>
    tpu.vector_store %arg6[%c0_11, %c0_12, %c0_13, %c0_14], %29 {strides = array<i32>} : memref<1x8x8x128xf32, #tpu.memory_space<vmem>>, vector<1x8x8x128xf32>,
    return
  }
  func.func @transform_0(%arg0: i32, %arg1: i32) -> (i32, i32, i32, i32) {
    %c0_i32 = arith.constant 0 : i32
    %c0_i32_0 = arith.constant 0 : i32
    %c0_i32_1 = arith.constant 0 : i32
    return %arg0, %arg1, %c0_i32, %c0_i32_0 : i32, i32, i32, i32
  }
  func.func @transform_1(%arg0: i32, %arg1: i32) -> (i32, i32) {
    %c0_i32 = arith.constant 0 : i32
    %c0_i32_0 = arith.constant 0 : i32
    %c0_i32_1 = arith.constant 0 : i32
    return %c0_i32, %c0_i32_0 : i32, i32
  }
  func.func @transform_2(%arg0: i32, %arg1: i32) -> (i32, i32) {
    %c0_i32 = arith.constant 0 : i32
    %c0_i32_0 = arith.constant 0 : i32
    %c0_i32_1 = arith.constant 0 : i32
    return %c0_i32, %c0_i32_0 : i32, i32
  }
  func.func @transform_3(%arg0: i32, %arg1: i32) -> (i32, i32, i32, i32) {
    %c0_i32 = arith.constant 0 : i32
    %c0_i32_0 = arith.constant 0 : i32
    %c0_i32_1 = arith.constant 0 : i32
    return %arg0, %arg1, %c0_i32, %c0_i32_0 : i32, i32, i32, i32
  }
  func.func @transform_4(%arg0: i32, %arg1: i32) -> (i32, i32, i32, i32) {
    %c0_i32 = arith.constant 0 : i32
    %c0_i32_0 = arith.constant 0 : i32
    %c0_i32_1 = arith.constant 0 : i32
    return %arg0, %arg1, %c0_i32, %c0_i32_0 : i32, i32, i32, i32
  }
}

</mosaic_0001>

<bundles_post_ra>
// kernel: down_convert_forward.5
= control target key start
LH: loop header
LB: loop body
LE: loop exit
PB: predicated region body
PF: predicated region fallthrough
CT: control target
= control target key end

     0   :  { %s1437_s15 = smov 0   ;;  %s1439_s16 = smov 0   ;;  %s1934_s0 = inlined_call_operand.vmem [shape: bf16[2,16,16,128], index: 0, kind: input, shape index: {}]   ;;  %s1935_s1 = inlined_call_operand.vmem [shape: f32[1,128], index: 1, kind: input, shape index: {}]   ;;  %s1936_s2 = inlined_call_operand.vmem [shape: f32[1,128], index: 2, kind: input, shape index: {}]   ;;  %s1937_s3 = inlined_call_operand.vmem [shape: f32[2,16,16,128], index: 3, kind: output, shape index: {0}]   ;;  %s1938_s4 = inlined_call_operand.vmem [shape: f32[2,8,8,128], index: 4, kind: output, shape index: {1}]  }
   0x1   :  { %s1441_s17 = smov 0  }
   0x2 LB: > { %s27_s18 = sadd.s32 1, %s1406_s16  ;;  %p1207_p0 = scmp.ge.s32.totalorder %s1410_s17, 1  ;;  %s1410_s17 = sphi %s1441_s17, %s15_s17   ;;  %s1406_s16 = sphi %s1439_s16, %s1975_s16   ;;  %s1402_s15 = sphi %s1437_s15, %s1974_s15  }
   0x3   : > { %p29_p1 = scmp.ge.s32.totalorder %s27_s18, 2  ;;  %p189_p2 = scmp.lt.s32.totalorder %s1410_s17, 3 }
   0x5   : > { %s1977_s18 = smov (%p29_p1, %s27_s18), 0  ;;  %p190_p3 = pnand %p1207_p0, %p189_p2 }
   0x6   : > { %p235_p4 = scmp.lt.s32.totalorder (!%p190_p3), %s1402_s15, 1 }
   0x7   : > { %193 = sbr.rel (%p190_p3) target bundleno = 135 (0x87), region = 32 }
   0xc   : > { %s1979_s15 = smov (!%p235_p4, %s1402_s15), 1  ;;  %v1466_v0 = vld [vmem:[%s1935_s1] ss:$0 sm:$0xff]  ;;  %vm978_vm0 = vcmask 1041409   ;;  %vm980_vm1 = vcmask 1042434   ;;  %vm982_vm2 = vcmask 1043459  }
   0xd   : > { %s1280_s19 = sshll.u32 %s1979_s15, 7  ;;  %v1474_v5 = vld [vmem:[%s1936_s2] ss:$0 sm:$0xff]  ;;  %s1281_s27 = sshll.u32 %s1979_s15, 8  ;;  %vm984_vm3 = vcmask 1044484   ;;  %vm986_vm4 = vcmask 1045509  }
   0xe   : > { %s1461_s22 = scalar_lea.vmem %s1934_s0, %s1280_s19  ;;  %s1493_s30 = scalar_lea.vmem %s1937_s3, %s1281_s27  ;;  %vm988_vm5 = vcmask 1046534   ;;  %vm990_vm6 = vcmask 1047559  }
   0xf   : > { %v1284_v1 = vld [vmem:[%s1461_s22] sm:$0xff]   ;;  %v1347_v2 = vld [vmem:[%s1461_s22 + $0x8] sm:$0xff]   ;;  %v1348_v3 = vld [vmem:[%s1461_s22 + $0x10] sm:$0xff]   ;;  %s1282_s5 = sshll.u32 %s1979_s15, 6 }
  0x10   : > { %v1285_v4 = vunpack.c.l.bf16 %v1284_v1  ;;  %v1286_v6 = vunpack.c.h.bf16 %v1284_v1  ;;  %v1289_v7 = vunpack.c.l.bf16 %v1347_v2  ;;  %v1290_v8 = vunpack.c.h.bf16 %v1347_v2  ;;  %v1349_v9 = vld [vmem:[%s1461_s22 + $0x18] sm:$0xff]   ;;  %v1350_v30 = vld [vmem:[%s1461_s22 + $0x20] sm:$0xff]   ;;  %v1351_v35 = vld [vmem:[%s1461_s22 + $0x28] sm:$0xff]   ;;  %s1767_s8 = scalar_lea.vmem %s1938_s4, %s1282_s5 }
  0x11   : > { %v1293_v10 = vunpack.c.l.bf16 %v1348_v3  ;;  %v1294_v11 = vunpack.c.h.bf16 %v1348_v3  ;;  %v1297_v12 = vunpack.c.l.bf16 %v1349_v9  ;;  %v1298_v13 = vunpack.c.h.bf16 %v1349_v9  ;;  %v1352_v1 = vld [vmem:[%s1461_s22 + $0x30] sm:$0xff]  }
  0x12   : > { %v334_v14 = vmul.f32 %v1466_v0, %v1285_v4  ;;  %v335_v15 = vmul.f32 %v1466_v0, %v1286_v6  ;;  %v336_v16 = vmul.f32 %v1466_v0, %v1289_v7  ;;  %v337_v17 = vmul.f32 %v1466_v0, %v1290_v8  ;;  %v1353_v7 = vld [vmem:[%s1461_s22 + $0x38] sm:$0xff]  }
  0x13   : > { %v338_v18 = vmul.f32 %v1466_v0, %v1293_v10  ;;  %v339_v19 = vmul.f32 %v1466_v0, %v1294_v11  ;;  %v340_v20 = vmul.f32 %v1466_v0, %v1297_v12  ;;  %v341_v21 = vmul.f32 %v1466_v0, %v1298_v13  ;;  %v1354_v12 = vld [vmem:[%s1461_s22 + $0x40] sm:$0xff]  }
  0x14   : > { %v370_v22 = vadd.f32 %v1474_v5, %v334_v14  ;;  %v371_v23 = vadd.f32 %v1474_v5, %v335_v15  ;;  %v372_v24 = vadd.f32 %v1474_v5, %v336_v16  ;;  %v373_v25 = vadd.f32 %v1474_v5, %v337_v17 }
  0x15   : > { %v374_v26 = vadd.f32 %v1474_v5, %v338_v18  ;;  %v375_v27 = vadd.f32 %v1474_v5, %v339_v19  ;;  %v376_v28 = vadd.f32 %v1474_v5, %v340_v20  ;;  %v377_v29 = vadd.f32 %v1474_v5, %v341_v21 }
  0x16   : > { %v402_v31 = vmax.f32 %v370_v22, 0.0  ;;  %v403_v32 = vmax.f32 %v371_v23, 0.0  ;;  %v404_v33 = vmax.f32 %v372_v24, 0.0  ;;  %v405_v34 = vmax.f32 %v373_v25, 0.0 }
  0x17   : > { %v406_v36 = vmax.f32 %v374_v26, 0.0  ;;  %v407_v37 = vmax.f32 %v375_v27, 0.0  ;;  %v408_v38 = vmax.f32 %v376_v28, 0.0  ;;  %v409_v39 = vmax.f32 %v377_v29, 0.0 }
  0x18   : > { %434 = vst [vmem:[%s1493_s30] sm:$0xff] %v402_v31  ;;  %v1502_v40 = vmax.f32 %v402_v31, %v404_v33  ;;  %v1504_v41 = vmax.f32 %v403_v32, %v405_v34  ;;  %v1301_v42 = vunpack.c.l.bf16 %v1350_v30  ;;  %v1302_v43 = vunpack.c.h.bf16 %v1350_v30 }
  0x19   : > { %435 = vst [vmem:[%s1493_s30 + $0x8] sm:$0xff] %v403_v32  ;;  %v1507_v44 = vmax.f32 %v406_v36, %v408_v38  ;;  %v1509_v45 = vmax.f32 %v407_v37, %v409_v39  ;;  %v1305_v46 = vunpack.c.l.bf16 %v1351_v35  ;;  %v1306_v47 = vunpack.c.h.bf16 %v1351_v35 }
  0x1a   : > { %436 = vst [vmem:[%s1493_s30 + $0x10] sm:$0xff] %v404_v33  ;;  %v498_v48 = vrot.slane %v1502_v40, 2  ;;  %v499_v49 = vrot.slane %v1502_v40, 4  ;;  %v500_v50 = vrot.slane %v1502_v40, 6  ;;  %v1214_v51 = vrot.slane %v1502_v40, 9 }
  0x1b   : > { %437 = vst [vmem:[%s1493_s30 + $0x18] sm:$0xff] %v405_v34  ;;  %v504_v52 = vrot.slane %v1507_v44, 2  ;;  %v1945_v53 = vrot.slane %v1507_v44, 4  ;;  %v1222_v55 = vrot.slane %v1507_v44, 9  ;;  %v342_v59 = vmul.f32 %v1466_v0, %v1301_v42 }
  0x1c   : > { %v1215_v56 = vrot.slane %v498_v48, 9  ;;  %v1523_v57 = vrot.slane %v499_v49, 9  ;;  %v1526_v58 = vmax.f32 %v1502_v40, %v1214_v51  ;;  %438 = vst [vmem:[%s1493_s30 + $0x20] sm:$0xff] %v406_v36  ;;  %v343_v63 = vmul.f32 %v1466_v0, %v1302_v43  ;;  %v1355_v43 = vld [vmem:[%s1461_s22 + $0x48] sm:$0xff]  }
  0x1d   : > { %439 = vst [vmem:[%s1493_s30 + $0x28] sm:$0xff] %v407_v37  ;;  %v1223_v60 = vrot.slane %v504_v52, 9  ;;  %v1533_v61 = vrot.slane %v1945_v53, 9  ;;  %v1536_v62 = vmax.f32 %v1507_v44, %v1222_v55  ;;  %v378_v4 = vadd.f32 %v1474_v5, %v342_v59 }
  0x1e   : > { %v1540_v2 = vmax.f32 %v498_v48, %v1215_v56  ;;  %440 = vst [vmem:[%s1493_s30 + $0x30] sm:$0xff] %v408_v38  ;;  %v344_v6 = vmul.f32 %v1466_v0, %v1305_v46  ;;  %v379_v10 = vadd.f32 %v1474_v5, %v343_v63  ;;  %v345_v11 = vmul.f32 %v1466_v0, %v1306_v47 }
  0x1f   : > { %v1547_v8 = vmax.f32 %v504_v52, %v1223_v60  ;;  %441 = vst [vmem:[%s1493_s30 + $0x38] sm:$0xff] %v409_v39  ;;  %v410_v13 = vmax.f32 %v378_v4, 0.0  ;;  %v1309_v15 = vunpack.c.l.bf16 %v1352_v1  ;;  %v1310_v16 = vunpack.c.h.bf16 %v1352_v1 }
  0x20   : > { %v380_v14 = vadd.f32 %v1474_v5, %v344_v6  ;;  %v411_v17 = vmax.f32 %v379_v10, 0.0  ;;  %v381_v18 = vadd.f32 %v1474_v5, %v345_v11  ;;  %v1313_v19 = vunpack.c.l.bf16 %v1353_v7  ;;  %v1356_v6 = vld [vmem:[%s1461_s22 + $0x50] sm:$0xff]  }
  0x21   : > { %v1314_v20 = vunpack.c.h.bf16 %v1353_v7  ;;  %442 = vst [vmem:[%s1493_s30 + $0x40] sm:$0xff] %v410_v13  ;;  %v346_v22 = vmul.f32 %v1466_v0, %v1309_v15  ;;  %v347_v23 = vmul.f32 %v1466_v0, %v1310_v16  ;;  %v1317_v24 = vunpack.c.l.bf16 %v1354_v12 }
  0x22   : > { %v412_v21 = vmax.f32 %v380_v14, 0.0  ;;  %443 = vst [vmem:[%s1493_s30 + $0x48] sm:$0xff] %v411_v17  ;;  %v413_v25 = vmax.f32 %v381_v18, 0.0  ;;  %v348_v26 = vmul.f32 %v1466_v0, %v1313_v19  ;;  %v1318_v28 = vunpack.c.h.bf16 %v1354_v12 }
  0x23   : > { %v349_v27 = vmul.f32 %v1466_v0, %v1314_v20  ;;  %v382_v30 = vadd.f32 %v1474_v5, %v346_v22  ;;  %v383_v31 = vadd.f32 %v1474_v5, %v347_v23  ;;  %v350_v32 = vmul.f32 %v1466_v0, %v1317_v24 }
  0x24   : > { %444 = vst [vmem:[%s1493_s30 + $0x50] sm:$0xff] %v412_v21  ;;  %v1563_v29 = vmax.f32 %v410_v13, %v412_v21  ;;  %v1569_v33 = vmax.f32 %v411_v17, %v413_v25  ;;  %v384_v34 = vadd.f32 %v1474_v5, %v348_v26  ;;  %v351_v36 = vmul.f32 %v1466_v0, %v1318_v28  ;;  %v1357_v17 = vld [vmem:[%s1461_s22 + $0x58] sm:$0xff]  }
  0x25   : > { %445 = vst [vmem:[%s1493_s30 + $0x58] sm:$0xff] %v413_v25  ;;  %v385_v35 = vadd.f32 %v1474_v5, %v349_v27  ;;  %v414_v46 = vmax.f32 %v382_v30, 0.0  ;;  %v415_v47 = vmax.f32 %v383_v31, 0.0  ;;  %v386_v59 = vadd.f32 %v1474_v5, %v350_v32  ;;  %v1358_v31 = vld [vmem:[%s1461_s22 + $0x60] sm:$0xff]  }
  0x26   : > { %v510_v37 = vrot.slane %v1563_v29, 2  ;;  %v1943_v38 = vrot.slane %v1563_v29, 4  ;;  %v1230_v42 = vrot.slane %v1563_v29, 9  ;;  %v416_v48 = vmax.f32 %v384_v34, 0.0 }
  0x27   : > { %v417_v51 = vmax.f32 %v385_v35, 0.0  ;;  %446 = vst [vmem:[%s1493_s30 + $0x60] sm:$0xff] %v414_v46  ;;  %v387_v1 = vadd.f32 %v1474_v5, %v351_v36  ;;  %v1321_v4 = vunpack.c.l.bf16 %v1355_v43  ;;  %v418_v11 = vmax.f32 %v386_v59, 0.0 }
  0x28   : > { %v1231_v52 = vrot.slane %v510_v37, 9  ;;  %v1581_v55 = vrot.slane %v1943_v38, 9  ;;  %v1584_v56 = vmax.f32 %v1563_v29, %v1230_v42  ;;  %v1588_v60 = vmax.f32 %v414_v46, %v416_v48  ;;  %447 = vst [vmem:[%s1493_s30 + $0x68] sm:$0xff] %v415_v47 }
  0x29   : > { %v1590_v63 = vmax.f32 %v415_v47, %v417_v51  ;;  %v1322_v12 = vunpack.c.h.bf16 %v1355_v43  ;;  %448 = vst [vmem:[%s1493_s30 + $0x70] sm:$0xff] %v416_v48  ;;  %v419_v18 = vmax.f32 %v387_v1, 0.0  ;;  %v352_v19 = vmul.f32 %v1466_v0, %v1321_v4 }
  0x2a   : > { %v1594_v7 = vmax.f32 %v510_v37, %v1231_v52  ;;  %v516_v13 = vrot.slane %v1588_v60, 2  ;;  %v1942_v14 = vrot.slane %v1588_v60, 4  ;;  %v1238_v16 = vrot.slane %v1588_v60, 9  ;;  %449 = vst [vmem:[%s1493_s30 + $0x78] sm:$0xff] %v417_v51 }
  0x2b   : > { %v353_v20 = vmul.f32 %v1466_v0, %v1322_v12  ;;  %v1325_v21 = vunpack.c.l.bf16 %v1356_v6  ;;  %450 = vst [vmem:[%s1493_s30 + $0x80] sm:$0xff] %v418_v11  ;;  %v1326_v25 = vunpack.c.h.bf16 %v1356_v6  ;;  %v388_v26 = vadd.f32 %v1474_v5, %v352_v19  ;;  %v1359_v19 = vld [vmem:[%s1461_s22 + $0x68] sm:$0xff]  }
  0x2c   : > { %v1239_v22 = vrot.slane %v516_v13, 9  ;;  %v1609_v23 = vrot.slane %v1942_v14, 9  ;;  %v1612_v24 = vmax.f32 %v1588_v60, %v1238_v16  ;;  %451 = vst [vmem:[%s1493_s30 + $0x88] sm:$0xff] %v419_v18  ;;  %v1329_v30 = vunpack.c.l.bf16 %v1357_v17 }
  0x2d   : > { %v389_v27 = vadd.f32 %v1474_v5, %v353_v20  ;;  %v354_v28 = vmul.f32 %v1466_v0, %v1325_v21  ;;  %v355_v35 = vmul.f32 %v1466_v0, %v1326_v25  ;;  %v1330_v36 = vunpack.c.h.bf16 %v1357_v17 }
  0x2e   : > { %v1620_v32 = vmax.f32 %v516_v13, %v1239_v22  ;;  %v420_v37 = vmax.f32 %v388_v26, 0.0  ;;  %v356_v46 = vmul.f32 %v1466_v0, %v1329_v30  ;;  %v1333_v51 = vunpack.c.l.bf16 %v1358_v31 }
  0x2f   : > { %v421_v42 = vmax.f32 %v389_v27, 0.0  ;;  %v390_v43 = vadd.f32 %v1474_v5, %v354_v28  ;;  %v391_v47 = vadd.f32 %v1474_v5, %v355_v35  ;;  %v357_v48 = vmul.f32 %v1466_v0, %v1330_v36 }
  0x30   : > { %v1334_v52 = vunpack.c.h.bf16 %v1358_v31  ;;  %452 = vst [vmem:[%s1493_s30 + $0x90] sm:$0xff] %v420_v37  ;;  %v1629_v59 = vmax.f32 %v418_v11, %v420_v37  ;;  %v392_v6 = vadd.f32 %v1474_v5, %v356_v46  ;;  %v358_v16 = vmul.f32 %v1466_v0, %v1333_v51  ;;  %v1360_v46 = vld [vmem:[%s1461_s22 + $0x70] sm:$0xff]  }
  0x31   : > { %v1631_v1 = vmax.f32 %v419_v18, %v421_v42  ;;  %v422_v4 = vmax.f32 %v390_v43, 0.0  ;;  %453 = vst [vmem:[%s1493_s30 + $0x98] sm:$0xff] %v421_v42  ;;  %v423_v12 = vmax.f32 %v391_v47, 0.0  ;;  %v393_v13 = vadd.f32 %v1474_v5, %v357_v48 }
  0x32   : > { %v359_v17 = vmul.f32 %v1466_v0, %v1334_v52  ;;  %v522_v20 = vrot.slane %v1629_v59, 2  ;;  %v1940_v11 = vrot.slane %v1629_v59, 4  ;;  %v1246_v21 = vrot.slane %v1629_v59, 9 }
  0x33   : > { %454 = vst [vmem:[%s1493_s30 + $0xa0] sm:$0xff] %v422_v4  ;;  %v424_v22 = vmax.f32 %v392_v6, 0.0  ;;  %v425_v25 = vmax.f32 %v393_v13, 0.0  ;;  %v394_v26 = vadd.f32 %v1474_v5, %v358_v16  ;;  %v1337_v35 = vunpack.c.l.bf16 %v1359_v19  ;;  %v1361_v6 = vld [vmem:[%s1461_s22 + $0x78] sm:$0xff]  }
  0x34   : > { %455 = vst [vmem:[%s1493_s30 + $0xa8] sm:$0xff] %v423_v12  ;;  %v395_v27 = vadd.f32 %v1474_v5, %v359_v17  ;;  %v1247_v28 = vrot.slane %v522_v20, 9  ;;  %v1649_v30 = vrot.slane %v1940_v11, 9  ;;  %v1652_v31 = vmax.f32 %v1629_v59, %v1246_v21 }
  0x35   : > { %456 = vst [vmem:[%s1493_s30 + $0xb0] sm:$0xff] %v424_v22  ;;  %v1655_v36 = vmax.f32 %v422_v4, %v424_v22  ;;  %v1657_v37 = vmax.f32 %v423_v12, %v425_v25  ;;  %v426_v42 = vmax.f32 %v394_v26, 0.0  ;;  %v360_v51 = vmul.f32 %v1466_v0, %v1337_v35 }
  0x36   : > { %v427_v43 = vmax.f32 %v395_v27, 0.0  ;;  %v1660_v47 = vmax.f32 %v522_v20, %v1247_v28  ;;  %457 = vst [vmem:[%s1493_s30 + $0xb8] sm:$0xff] %v425_v25  ;;  %v1338_v52 = vunpack.c.h.bf16 %v1359_v19  ;;  %v1341_v21 = vunpack.c.l.bf16 %v1360_v46 }
  0x37   : > { %v528_v13 = vrot.slane %v1655_v36, 2  ;;  %v1939_v4 = vrot.slane %v1655_v36, 4  ;;  %v1254_v12 = vrot.slane %v1655_v36, 9  ;;  %458 = vst [vmem:[%s1493_s30 + $0xc0] sm:$0xff] %v426_v42  ;;  %v396_v17 = vadd.f32 %v1474_v5, %v360_v51 }
  0x38   : > { %459 = vst [vmem:[%s1493_s30 + $0xc8] sm:$0xff] %v427_v43  ;;  %v361_v20 = vmul.f32 %v1466_v0, %v1338_v52  ;;  %v1342_v22 = vunpack.c.h.bf16 %v1360_v46  ;;  %v1345_v27 = vunpack.c.l.bf16 %v1361_v6  ;;  %v362_v16 = vmul.f32 %v1466_v0, %v1341_v21 }
  0x39   : > { %v1255_v25 = vrot.slane %v528_v13, 9  ;;  %v1676_v19 = vrot.slane %v1939_v4, 9  ;;  %v1679_v26 = vmax.f32 %v1655_v36, %v1254_v12  ;;  %v428_v28 = vmax.f32 %v396_v17, 0.0 }
  0x3a   : > { %v397_v35 = vadd.f32 %v1474_v5, %v361_v20  ;;  %v363_v51 = vmul.f32 %v1466_v0, %v1342_v22  ;;  %v364_v52 = vmul.f32 %v1466_v0, %v1345_v27  ;;  %v1346_v4 = vunpack.c.h.bf16 %v1361_v6 }
  0x3b   : > { %v1684_v48 = vmax.f32 %v528_v13, %v1255_v25  ;;  %460 = vst [vmem:[%s1493_s30 + $0xd0] sm:$0xff] %v428_v28  ;;  %v1689_v11 = vmax.f32 %v426_v42, %v428_v28  ;;  %v398_v17 = vadd.f32 %v1474_v5, %v362_v16  ;;  %v501_v13 = vrot.slane %v1504_v41, 2 }
  0x3c   : > { %v429_v12 = vmax.f32 %v397_v35, 0.0  ;;  %v399_v20 = vadd.f32 %v1474_v5, %v363_v51  ;;  %v400_v21 = vadd.f32 %v1474_v5, %v364_v52  ;;  %v365_v22 = vmul.f32 %v1466_v0, %v1346_v4 }
  0x3d   : > { %v502_v25 = vrot.slane %v1504_v41, 4  ;;  %v534_v27 = vrot.slane %v1689_v11, 2  ;;  %v1941_v6 = vrot.slane %v1689_v11, 4  ;;  %v1262_v28 = vrot.slane %v1689_v11, 9 }
  0x3e   : > { %461 = vst [vmem:[%s1493_s30 + $0xd8] sm:$0xff] %v429_v12  ;;  %v1702_v16 = vmax.f32 %v427_v43, %v429_v12  ;;  %v430_v35 = vmax.f32 %v398_v17, 0.0  ;;  %v431_v51 = vmax.f32 %v399_v20, 0.0  ;;  %v432_v0 = vmax.f32 %v400_v21, 0.0 }
  0x3f   : > { %v1263_v4 = vrot.slane %v534_v27, 9  ;;  %v1706_v52 = vrot.slane %v1941_v6, 9  ;;  %v1709_v46 = vmax.f32 %v1689_v11, %v1262_v28  ;;  %v401_v42 = vadd.f32 %v1474_v5, %v365_v22 }
  0x40   : > { %462 = vst [vmem:[%s1493_s30 + $0xe0] sm:$0xff] %v430_v35  ;;  %v1713_v18 = vmax.f32 %v430_v35, %v432_v0  ;;  %v503_v43 = vrot.slane %v1504_v41, 6  ;;  %v1217_v12 = vrot.slane %v500_v50, 9  ;;  %v1218_v17 = vrot.slane %v1504_v41, 9 }
  0x41   : > { %v1719_v20 = vmax.f32 %v534_v27, %v1263_v4  ;;  %463 = vst [vmem:[%s1493_s30 + $0xe8] sm:$0xff] %v431_v51  ;;  %v433_v28 = vmax.f32 %v401_v42, 0.0  ;;  %v1219_v6 = vrot.slane %v501_v13, 9  ;;  %v1220_v15 = vrot.slane %v502_v25, 9 }
  0x42   : > { %464 = vst [vmem:[%s1493_s30 + $0xf0] sm:$0xff] %v432_v0  ;;  %v540_v5 = vrot.slane %v1713_v18, 2  ;;  %v1944_v22 = vrot.slane %v1713_v18, 4  ;;  %v1270_v34 = vrot.slane %v1713_v18, 9  ;;  %v1221_v27 = vrot.slane %v503_v43, 9 }
  0x43   : > { %465 = vst [vmem:[%s1493_s30 + $0xf8] sm:$0xff] %v433_v28  ;;  %v1729_v14 = vmax.f32 %v431_v51, %v433_v28  ;;  %v788_v4 = vmax.f32 %v499_v49, %v1523_v57  ;;  %v789_v35 = vmax.f32 %v500_v50, %v1217_v12  ;;  %v790_v51 = vmax.f32 %v1504_v41, %v1218_v17 }
  0x44   : > { %v1271_v42 = vrot.slane %v540_v5, 9  ;;  %v1736_v0 = vrot.slane %v1944_v22, 9  ;;  %v1739_v21 = vmax.f32 %v1713_v18, %v1270_v34  ;;  %v791_v28 = vmax.f32 %v501_v13, %v1219_v6 }
  0x45   : > { %v792_v10 = vmax.f32 %v502_v25, %v1220_v15  ;;  %v793_v38 = vmax.f32 %v503_v43, %v1221_v27  ;;  %v915_v57 = vperm.slane %v1540_v2, 0  ;;  %v916_v22 = vperm.slane %v788_v4, 0 }
  0x46   : > { %v1744_v39 = vmax.f32 %v540_v5, %v1271_v42  ;;  %v970_v49 = vperm.slane %v1739_v21, 0  ;;  %v917_v9 = vperm.slane %v789_v35, 0  ;;  %v918_v53 = vperm.slane %v790_v51, 0 }
  0x47   : > { %v919_v34 = vperm.slane %v791_v28, 0  ;;  %v920_v54 = vperm.slane %v792_v10, 0  ;;  %v921_v3 = vperm.slane %v793_v38, 0  ;;  %v1946_v40 = vperm.slane %v1526_v58, 0 }
  0x48   : > { %v507_v2 = vrot.slane %v1509_v45, 2  ;;  %v508_v15 = vrot.slane %v1509_v45, 4  ;;  %v509_v10 = vrot.slane %v1509_v45, 6  ;;  %v1947_v13 = vrot.slane %v1507_v44, 6 }
  0x49   : > { %v979_v41 = vsel %vm978_vm0, %v915_v57, %v1946_v40  ;;  %v1226_v25 = vrot.slane %v1509_v45, 9  ;;  %v1948_v17 = vrot.slane %v1507_v44, 4  ;;  %v1950_v44 = vperm.slane %v1536_v62, 0 }
  0x4a   : > { %v981_v50 = vsel %vm980_vm1, %v916_v22, %v979_v41  ;;  %v1225_v58 = vrot.slane %v1947_v13, 9  ;;  %v1227_v43 = vrot.slane %v507_v2, 9  ;;  %v1228_v12 = vrot.slane %v508_v15, 9 }
  0x4b   : > { %v983_v38 = vsel %vm982_vm2, %v917_v9, %v981_v50  ;;  %v796_v5 = vmax.f32 %v1948_v17, %v1533_v61  ;;  %v1229_v22 = vrot.slane %v509_v10, 9  ;;  %v1949_v35 = vmov %v1947_v13 }
  0x4c   : > { %v985_v6 = vsel %vm984_vm3, %v918_v53, %v983_v38  ;;  %v797_v27 = vmax.f32 %v1949_v35, %v1225_v58  ;;  %v798_v53 = vmax.f32 %v1509_v45, %v1226_v25  ;;  %v799_v42 = vmax.f32 %v507_v2, %v1227_v43 }
  0x4d   : > { %v987_v9 = vsel %vm986_vm4, %v919_v34, %v985_v6  ;;  %v800_v51 = vmax.f32 %v508_v15, %v1228_v12  ;;  %v923_v61 = vperm.slane %v1547_v8, 0  ;;  %v801_v57 = vmax.f32 %v509_v10, %v1229_v22 }
  0x4e   : > { %v989_v4 = vsel %vm988_vm5, %v920_v54, %v987_v9  ;;  %v924_v40 = vperm.slane %v796_v5, 0  ;;  %v925_v41 = vperm.slane %v797_v27, 0  ;;  %v926_v50 = vperm.slane %v798_v53, 0 }
  0x4f   : > { %v991_v28 = vsel %vm990_vm6, %v921_v3, %v989_v4  ;;  %v927_v34 = vperm.slane %v799_v42, 0  ;;  %v928_v38 = vperm.slane %v800_v51, 0  ;;  %v992_v13 = vsel %vm978_vm0, %v923_v61, %v1950_v44 }
  0x50   : > { %1049 = vst [vmem:[%s1767_s8] sm:$0xff] %v991_v28  ;;  %v929_v45 = vperm.slane %v801_v57, 0  ;;  %v993_v54 = vsel %vm980_vm1, %v924_v40, %v992_v13  ;;  %v513_v2 = vrot.slane %v1569_v33, 2  ;;  %v514_v8 = vrot.slane %v1569_v33, 4 }
  0x51   : > { %v994_v3 = vsel %vm982_vm2, %v925_v41, %v993_v54  ;;  %v515_v15 = vrot.slane %v1569_v33, 6  ;;  %v1951_v10 = vrot.slane %v1563_v29, 6  ;;  %v1234_v25 = vrot.slane %v1569_v33, 9 }
  0x52   : > { %v995_v62 = vsel %vm984_vm3, %v926_v50, %v994_v3  ;;  %v1235_v6 = vrot.slane %v513_v2, 9  ;;  %v1236_v43 = vrot.slane %v514_v8, 9  ;;  %v1952_v12 = vrot.slane %v1563_v29, 4 }
  0x53   : > { %v1233_v58 = vrot.slane %v1951_v10, 9  ;;  %v996_v5 = vsel %vm986_vm4, %v927_v34, %v995_v62  ;;  %v1237_v9 = vrot.slane %v515_v15, 9  ;;  %v1953_v22 = vmov %v1951_v10 }
  0x54   : > { %v804_v17 = vmax.f32 %v1952_v12, %v1581_v55  ;;  %v806_v27 = vmax.f32 %v1569_v33, %v1234_v25  ;;  %v997_v53 = vsel %vm988_vm5, %v928_v38, %v996_v5  ;;  %v807_v4 = vmax.f32 %v513_v2, %v1235_v6 }
  0x55   : > { %v805_v35 = vmax.f32 %v1953_v22, %v1233_v58  ;;  %v808_v42 = vmax.f32 %v514_v8, %v1236_v43  ;;  %v931_v51 = vperm.slane %v1594_v7, 0  ;;  %v998_v61 = vsel %vm990_vm6, %v929_v45, %v997_v53 }
  0x56   : > { %v809_v28 = vmax.f32 %v515_v15, %v1237_v9  ;;  %v932_v57 = vperm.slane %v804_v17, 0  ;;  %1050 = vst [vmem:[%s1767_s8 + $0x8] sm:$0xff] %v998_v61  ;;  %v934_v55 = vperm.slane %v806_v27, 0  ;;  %v935_v41 = vperm.slane %v807_v4, 0 }
  0x57   : > { %v933_v40 = vperm.slane %v805_v35, 0  ;;  %v936_v50 = vperm.slane %v808_v42, 0  ;;  %v1954_v29 = vperm.slane %v1584_v56, 0  ;;  %v519_v44 = vrot.slane %v1590_v63, 2 }
  0x58   : > { %v937_v33 = vperm.slane %v809_v28, 0  ;;  %v520_v7 = vrot.slane %v1590_v63, 4  ;;  %v521_v45 = vrot.slane %v1590_v63, 6  ;;  %v1955_v54 = vrot.slane %v1588_v60, 6 }
  0x59   : > { %v999_v34 = vsel %vm978_vm0, %v931_v51, %v1954_v29  ;;  %v1242_v8 = vrot.slane %v1590_v63, 9  ;;  %v1243_v3 = vrot.slane %v519_v44, 9  ;;  %v1956_v10 = vrot.slane %v1588_v60, 4 }
  0x5a   : > { %v1000_v38 = vsel %vm980_vm1, %v932_v57, %v999_v34  ;;  %v1241_v2 = vrot.slane %v1955_v54, 9  ;;  %v1244_v15 = vrot.slane %v520_v7, 9  ;;  %v1245_v62 = vrot.slane %v521_v45, 9 }
  0x5b   : > { %v1001_v13 = vsel %vm982_vm2, %v933_v40, %v1000_v38  ;;  %v812_v58 = vmax.f32 %v1956_v10, %v1609_v23  ;;  %v1957_v6 = vmov %v1955_v54  ;;  %v814_v12 = vmax.f32 %v1590_v63, %v1242_v8 }
  0x5c   : > { %v1002_v56 = vsel %vm984_vm3, %v934_v55, %v1001_v13  ;;  %v813_v43 = vmax.f32 %v1957_v6, %v1241_v2  ;;  %v815_v5 = vmax.f32 %v519_v44, %v1243_v3  ;;  %v816_v9 = vmax.f32 %v520_v7, %v1244_v15 }
  0x5d   : > { %v1003_v25 = vsel %vm986_vm4, %v935_v41, %v1002_v56  ;;  %v939_v22 = vperm.slane %v1620_v32, 0  ;;  %v817_v27 = vmax.f32 %v521_v45, %v1245_v62  ;;  %v940_v53 = vperm.slane %v812_v58, 0 }
  0x5e   : > { %v1004_v17 = vsel %vm988_vm5, %v936_v50, %v1003_v25  ;;  %v941_v4 = vperm.slane %v813_v43, 0  ;;  %v942_v23 = vperm.slane %v814_v12, 0  ;;  %v943_v42 = vperm.slane %v815_v5, 0 }
  0x5f   : > { %v1005_v35 = vsel %vm990_vm6, %v937_v33, %v1004_v17  ;;  %v944_v51 = vperm.slane %v816_v9, 0  ;;  %v1958_v60 = vperm.slane %v1612_v24, 0  ;;  %v945_v63 = vperm.slane %v817_v27, 0 }
  0x60   : > { %1051 = vst [vmem:[%s1767_s8 + $0x10] sm:$0xff] %v1005_v35  ;;  %v525_v57 = vrot.slane %v1631_v1, 2  ;;  %v526_v32 = vrot.slane %v1631_v1, 4  ;;  %v527_v55 = vrot.slane %v1631_v1, 6  ;;  %v1959_v41 = vrot.slane %v1629_v59, 6 }
  0x61   : > { %v1006_v61 = vsel %vm978_vm0, %v939_v22, %v1958_v60  ;;  %v1250_v29 = vrot.slane %v1631_v1, 9  ;;  %v1960_v38 = vrot.slane %v1629_v59, 4  ;;  %v947_v15 = vperm.slane %v1660_v47, 0 }
  0x62   : > { %v1007_v28 = vsel %vm980_vm1, %v940_v53, %v1006_v61  ;;  %v1249_v50 = vrot.slane %v1959_v41, 9  ;;  %v1251_v34 = vrot.slane %v525_v57, 9  ;;  %v1252_v33 = vrot.slane %v526_v32, 9 }
  0x63   : > { %v1008_v40 = vsel %vm982_vm2, %v941_v4, %v1007_v28  ;;  %v820_v44 = vmax.f32 %v1960_v38, %v1649_v30  ;;  %v1253_v13 = vrot.slane %v527_v55, 9  ;;  %v1961_v45 = vmov %v1959_v41 }
  0x64   : > { %v1009_v24 = vsel %vm984_vm3, %v942_v23, %v1008_v40  ;;  %v821_v54 = vmax.f32 %v1961_v45, %v1249_v50  ;;  %v822_v2 = vmax.f32 %v1631_v1, %v1250_v29  ;;  %v823_v56 = vmax.f32 %v525_v57, %v1251_v34 }
  0x65   : > { %v1010_v7 = vsel %vm986_vm4, %v943_v42, %v1009_v24  ;;  %v824_v3 = vmax.f32 %v526_v32, %v1252_v33  ;;  %v825_v58 = vmax.f32 %v527_v55, %v1253_v13  ;;  %v948_v25 = vperm.slane %v820_v44, 0 }
  0x66   : > { %v1011_v8 = vsel %vm988_vm5, %v944_v51, %v1010_v7  ;;  %v949_v62 = vperm.slane %v821_v54, 0  ;;  %v950_v30 = vperm.slane %v822_v2, 0  ;;  %v951_v6 = vperm.slane %v823_v56, 0 }
  0x67   : > { %v1012_v10 = vsel %vm990_vm6, %v945_v63, %v1011_v8  ;;  %v952_v43 = vperm.slane %v824_v3, 0  ;;  %v1962_v59 = vperm.slane %v1652_v31, 0  ;;  %v953_v1 = vperm.slane %v825_v58, 0 }
  0x68   : > { %1052 = vst [vmem:[%s1767_s8 + $0x18] sm:$0xff] %v1012_v10  ;;  %v531_v5 = vrot.slane %v1657_v37, 2  ;;  %v532_v47 = vrot.slane %v1657_v37, 4  ;;  %v533_v22 = vrot.slane %v1657_v37, 6  ;;  %v1963_v35 = vrot.slane %v1655_v36, 6 }
  0x69   : > { %v1013_v12 = vsel %vm978_vm0, %v947_v15, %v1962_v59  ;;  %v1258_v53 = vrot.slane %v1657_v37, 9  ;;  %v1964_v42 = vrot.slane %v1655_v36, 4  ;;  %v955_v41 = vperm.slane %v1684_v48, 0 }
  0x6a   : > { %v1014_v17 = vsel %vm980_vm1, %v948_v25, %v1013_v12  ;;  %v1257_v27 = vrot.slane %v1963_v35, 9  ;;  %v1259_v4 = vrot.slane %v531_v5, 9  ;;  %v1260_v23 = vrot.slane %v532_v47, 9 }
  0x6b   : > { %v1015_v9 = vsel %vm982_vm2, %v949_v62, %v1014_v17  ;;  %v828_v51 = vmax.f32 %v1964_v42, %v1676_v19  ;;  %v1261_v61 = vrot.slane %v533_v22, 9  ;;  %v1965_v63 = vmov %v1963_v35 }
  0x6c   : > { %v1016_v31 = vsel %vm984_vm3, %v950_v30, %v1015_v9  ;;  %v829_v28 = vmax.f32 %v1965_v63, %v1257_v27  ;;  %v830_v57 = vmax.f32 %v1657_v37, %v1258_v53  ;;  %v831_v40 = vmax.f32 %v531_v5, %v1259_v4 }
  0x6d   : > { %v1017_v60 = vsel %vm986_vm4, %v951_v6, %v1016_v31  ;;  %v832_v55 = vmax.f32 %v532_v47, %v1260_v23  ;;  %v833_v29 = vmax.f32 %v533_v22, %v1261_v61  ;;  %v956_v24 = vperm.slane %v828_v51, 0 }
  0x6e   : > { %v1018_v32 = vsel %vm988_vm5, %v952_v43, %v1017_v60  ;;  %v957_v34 = vperm.slane %v829_v28, 0  ;;  %v958_v19 = vperm.slane %v830_v57, 0  ;;  %v959_v33 = vperm.slane %v831_v40, 0 }
  0x6f   : > { %v1019_v50 = vsel %vm990_vm6, %v953_v1, %v1018_v32  ;;  %v960_v38 = vperm.slane %v832_v55, 0  ;;  %v1966_v36 = vperm.slane %v1679_v26, 0  ;;  %v961_v37 = vperm.slane %v833_v29, 0 }
  0x70   : > { %1053 = vst [vmem:[%s1767_s8 + $0x20] sm:$0xff] %v1019_v50  ;;  %v537_v13 = vrot.slane %v1702_v16, 2  ;;  %v538_v48 = vrot.slane %v1702_v16, 4  ;;  %v539_v54 = vrot.slane %v1702_v16, 6  ;;  %v1967_v2 = vrot.slane %v1689_v11, 6 }
  0x71   : > { %v1020_v44 = vsel %vm978_vm0, %v955_v41, %v1966_v36  ;;  %v1266_v56 = vrot.slane %v1702_v16, 9  ;;  %v1968_v10 = vrot.slane %v1689_v11, 4  ;;  %v963_v17 = vperm.slane %v1719_v20, 0 }
  0x72   : > { %v1021_v7 = vsel %vm980_vm1, %v956_v24, %v1020_v44  ;;  %v1265_v8 = vrot.slane %v1967_v2, 9  ;;  %v1267_v3 = vrot.slane %v537_v13, 9  ;;  %v1268_v15 = vrot.slane %v538_v48, 9 }
  0x73   : > { %v1022_v45 = vsel %vm982_vm2, %v957_v34, %v1021_v7  ;;  %v836_v58 = vmax.f32 %v1968_v10, %v1706_v52  ;;  %v1269_v62 = vrot.slane %v539_v54, 9  ;;  %v1969_v30 = vmov %v1967_v2 }
  0x74   : > { %v1023_v26 = vsel %vm984_vm3, %v958_v19, %v1022_v45  ;;  %v837_v6 = vmax.f32 %v1969_v30, %v1265_v8  ;;  %v838_v43 = vmax.f32 %v1702_v16, %v1266_v56  ;;  %v839_v12 = vmax.f32 %v537_v13, %v1267_v3 }
  0x75   : > { %v1024_v25 = vsel %vm986_vm4, %v959_v33, %v1023_v26  ;;  %v840_v1 = vmax.f32 %v538_v48, %v1268_v15  ;;  %v841_v47 = vmax.f32 %v539_v54, %v1269_v62  ;;  %v964_v9 = vperm.slane %v836_v58, 0 }
  0x76   : > { %v1025_v59 = vsel %vm988_vm5, %v960_v38, %v1024_v25  ;;  %v965_v22 = vperm.slane %v837_v6, 0  ;;  %v966_v52 = vperm.slane %v838_v43, 0  ;;  %v967_v35 = vperm.slane %v839_v12, 0 }
  0x77   : > { %v1026_v5 = vsel %vm990_vm6, %v961_v37, %v1025_v59  ;;  %v968_v27 = vperm.slane %v840_v1, 0  ;;  %v1970_v11 = vperm.slane %v1709_v46, 0  ;;  %v969_v16 = vperm.slane %v841_v47, 0 }
  0x78   : > { %1054 = vst [vmem:[%s1767_s8 + $0x28] sm:$0xff] %v1026_v5  ;;  %v543_v4 = vrot.slane %v1729_v14, 2  ;;  %v544_v20 = vrot.slane %v1729_v14, 4  ;;  %v545_v42 = vrot.slane %v1729_v14, 6  ;;  %v1971_v51 = vrot.slane %v1713_v18, 6 }
  0x79   : > { %v1027_v53 = vsel %vm978_vm0, %v963_v17, %v1970_v11  ;;  %v1274_v61 = vrot.slane %v1729_v14, 9  ;;  %v1972_v57 = vrot.slane %v1713_v18, 4  ;;  %v971_v33 = vperm.slane %v1744_v39, 0 }
  0x7a   : > { %v1028_v31 = vsel %vm980_vm1, %v964_v9, %v1027_v53  ;;  %v1273_v60 = vrot.slane %v1971_v51, 9  ;;  %v1275_v63 = vrot.slane %v543_v4, 9  ;;  %v1276_v28 = vrot.slane %v544_v20, 9 }
  0x7b   : > { %v1029_v23 = vsel %vm982_vm2, %v965_v22, %v1028_v31  ;;  %v844_v32 = vmax.f32 %v1972_v57, %v1736_v0  ;;  %v1277_v55 = vrot.slane %v545_v42, 9  ;;  %v1973_v41 = vmov %v1971_v51 }
  0x7c   : > { %v1030_v46 = vsel %vm984_vm3, %v966_v52, %v1029_v23  ;;  %v845_v50 = vmax.f32 %v1973_v41, %v1273_v60  ;;  %v846_v29 = vmax.f32 %v1729_v14, %v1274_v61  ;;  %v847_v34 = vmax.f32 %v543_v4, %v1275_v63 }
  0x7d   : > { %v1031_v40 = vsel %vm986_vm4, %v967_v35, %v1030_v46  ;;  %v848_v19 = vmax.f32 %v544_v20, %v1276_v28  ;;  %v849_v36 = vmax.f32 %v545_v42, %v1277_v55  ;;  %v972_v44 = vperm.slane %v844_v32, 0 }
  0x7e   : > { %v1032_v24 = vsel %vm988_vm5, %v968_v27, %v1031_v40  ;;  %v973_v0 = vperm.slane %v845_v50, 0  ;;  %v974_v37 = vperm.slane %v846_v29, 0  ;;  %v975_v7 = vperm.slane %v847_v34, 0 }
  0x7f   : > { %v1033_v38 = vsel %vm990_vm6, %v969_v16, %v1032_v24  ;;  %v1034_v18 = vsel %vm978_vm0, %v971_v33, %v970_v49  ;;  %v976_v14 = vperm.slane %v848_v19, 0  ;;  %v977_v48 = vperm.slane %v849_v36, 0 }
  0x80   : > { %1055 = vst [vmem:[%s1767_s8 + $0x30] sm:$0xff] %v1033_v38  ;;  %v1035_v13 = vsel %vm980_vm1, %v972_v44, %v1034_v18 }
  0x81   : > { %v1036_v45 = vsel %vm982_vm2, %v973_v0, %v1035_v13 }
  0x82   : > { %v1037_v39 = vsel %vm984_vm3, %v974_v37, %v1036_v45 }
  0x83   : > { %v1038_v54 = vsel %vm986_vm4, %v975_v7, %v1037_v39 }
  0x84   : > { %v1039_v2 = vsel %vm988_vm5, %v976_v14, %v1038_v54 }
  0x85   : > { %v1040_v8 = vsel %vm990_vm6, %v977_v48, %v1039_v2 }
  0x86   : > { %1056 = vst [vmem:[%s1767_s8 + $0x38] sm:$0xff] %v1040_v8 }
  0x87 PF: > { %s15_s17 = sadd.s32 1, %s1410_s17   ;;  %s1974_s15 = smov %s1406_s16 }
  0x88   : > { %p12_p5 = scmp.ge.s32.totalorder %s15_s17, 4   ;;  %s1975_s16 = smov %s1977_s18 }
  0x8a   :  { %14 = sbr.rel (!%p12_p5) target bundleno = 2 (0x2), region = 74 }

// kernel: down_convert_forward.3
= control target key start
LH: loop header
LB: loop body
LE: loop exit
PB: predicated region body
PF: predicated region fallthrough
CT: control target
= control target key end

     0   :  { %s2747_s12 = smov 0   ;;  %s2749_s13 = smov 0   ;;  %s3905_s0 = inlined_call_operand.vmem [shape: bf16[2,16,16,4], index: 0, kind: input, shape index: {}]   ;;  %s3906_s1 = inlined_call_operand.vmem [shape: bf16[128,128], index: 1, kind: input, shape index: {}]   ;;  %s3907_s2 = inlined_call_operand.vmem [shape: bf16[2,16,16,128], index: 2, kind: output, shape index: {0}]   ;;  %s3908_s3 = inlined_call_operand.vmem [shape: f32[2,1,8,128], index: 3, kind: output, shape index: {1}]  }
   0x1   :  { %s2751_s14 = smov 0  }
   0x2 LB: > { %s26_s15 = sadd.s32 1, %s2712_s13  ;;  %p2376_p0 = scmp.ge.s32.totalorder %s2716_s14, 1  ;;  %s2716_s14 = sphi %s2751_s14, %s14_s14   ;;  %s2712_s13 = sphi %s2749_s13, %s3926_s13   ;;  %s2708_s12 = sphi %s2747_s12, %s3925_s12  }
   0x3   : > { %p28_p1 = scmp.ge.s32.totalorder %s26_s15, 2  ;;  %p156_p2 = scmp.lt.s32.totalorder %s2716_s14, 3 }
   0x5   : > { %s3928_s15 = smov (%p28_p1, %s26_s15), 0  ;;  %p157_p3 = pnand %p2376_p0, %p156_p2 }
   0x7   : > { %160 = sbr.rel (%p157_p3) target bundleno = 714 (0x2ca), region = 28 }
   0xc   : > { %vm217_vm0 = vcmask 24576   ;;  %vm218_vm1 = vsmask.f32 256  ;;  %v220_v0 = vld [vmem:[#allocation2] sm:$0x1]  ;;  %vm688_vm6 = vcmask 27648  }
   0xd   : > { %vm2766_vm2 = vmand %vm217_vm0, %vm218_vm1  ;;  %vm274_vm3 = vsmask.f32 7938  ;;  %v276_v2 = vld [vmem:[#allocation2 + $0x8] sm:$0x1]  ;;  %vm365_vm4 = vsmask.f32 4368 }
   0xe   : > { %v221_v3 = vsel %vm2766_vm2, 0, %v220_v0  ;;  %vm2773_vm5 = vmand %vm217_vm0, %vm274_vm3  ;;  %p192_p4 = scmp.lt.s32.totalorder %s2708_s12, 1  ;;  %v2718_v6 = vmov 0   ;;  %v232_v8 = vld [vmem:[#allocation2 + $0x30] sm:$0x1]  ;;  %s2719_s20 = smov 4  }
   0xf   : > { %222 = vst [vmem:[#allocation2] sm:$0x1] %v221_v3  ;;  %v277_v5 = vsel %vm2773_vm5, 0, %v276_v2  ;;  %v2779_v7 = vrot.slane %v2718_v6, 7  ;;  %vm2782_vm7 = vmor %vm218_vm1, %vm365_vm4  ;;  %v233_v10 = vsel %vm2766_vm2, 0, %v232_v8  ;;  %vm1293_vm10 = vcmask 1046528  }
  0x10   : > { %278 = vst [vmem:[#allocation2 + $0x8] sm:$0x1] %v277_v5  ;;  %s3930_s12 = smov (!%p192_p4, %s2708_s12), 1  ;;  %v288_v11 = vld [vmem:[#allocation2 + $0x38] sm:$0x1]  ;;  %vm2813_vm8 = vmand %vm688_vm6, %vm274_vm3  ;;  %s2720_s21 = smov 8  }
  0x11   : > { %3915 = vst [vmem:[#allocation3_spill] sm:$0xff] %v2779_v7  ;;  %v2791_v12 = vrot.slane %v2779_v7, 4  ;;  %v289_v13 = vsel %vm2773_vm5, 0, %v288_v11  ;;  %v226_v14 = vld [vmem:[#allocation2 + $0x18] sm:$0x1]  ;;  %s2506_s16 = sshll.u32 %s3930_s12, 7 }
  0x12   : > { %234 = vst [vmem:[#allocation2 + $0x30] sm:$0x1] %v233_v10  ;;  %v227_v15 = vsel %vm2766_vm2, 0, %v226_v14  ;;  %v282_v16 = vld [vmem:[#allocation2 + $0x20] sm:$0x1]  ;;  %s2807_s19 = scalar_lea.vmem %s3905_s0, %s2506_s16  ;;  %s2721_s22 = smov 16  }
  0x13   : > { %3918 = vst [vmem:[#allocation4_spill] sm:$0xff] %v2791_v12  ;;  %v840_v17 = vsel %vm2782_vm7, %v2791_v12, %v2779_v7  ;;  %v283_v18 = vsel %vm2773_vm5, 0, %v282_v16  ;;  %v339_v20 = vld [vmem:[%s2807_s19 + $0x18] sm:$0xf]  ;;  %v340_v21 = vld [vmem:[%s2807_s19 + $0x1c] sm:$0xf] }
  0x14   : > { %290 = vst [vmem:[#allocation2 + $0x38] sm:$0x1] %v289_v13  ;;  %v419_v22 = vshrl.u32 %v339_v20, 16  ;;  %v422_v23 = vshll.u32 %v339_v20, 16  ;;  %v427_v24 = vshrl.u32 %v340_v21, 16  ;;  %v430_v25 = vshll.u32 %v340_v21, 16 }
  0x15   : > { %228 = vst [vmem:[#allocation2 + $0x18] sm:$0x1] %v227_v15  ;;  %v223_v26 = vld [vmem:[#allocation2 + $0xc] sm:$0x1]  ;;  %v335_v28 = vld [vmem:[%s2807_s19 + $0x8] sm:$0xf] }
  0x16   : > { %848 = vst.msk [vmem:[#allocation2 + $0x4] sm:$0xf] %vm688_vm6, %v840_v17  ;;  %v845_v27 = vld [vmem:[#allocation2] sm:$0xf]  ;;  %v421_v31 = vrot.slane %v419_v22, 7  ;;  %v429_v32 = vrot.slane %v427_v24, 7 }
  0x17   : > { %882 = vst.msk [vmem:[#allocation2 + $0xd0] sm:$0xf] %vm688_vm6, %v840_v17  ;;  %v846_v29 = vsel %vm2813_vm8, %v2779_v7, %v845_v27  ;;  %v849_v30 = vld [vmem:[#allocation2 + $0x8] sm:$0x1]  ;;  %v336_v33 = vld [vmem:[%s2807_s19 + $0xc] sm:$0xf] }
  0x18   : > { %284 = vst [vmem:[#allocation2 + $0x20] sm:$0x1] %v283_v18  ;;  %v850_v34 = vsel %vm2766_vm2, %v2791_v12, %v849_v30  ;;  %v385_v36 = vshrl.u32 %v335_v28, 16  ;;  %v388_v37 = vshll.u32 %v335_v28, 16  ;;  %v424_v38 = vor.u32 %v422_v23, %v421_v31  ;;  %v279_v51 = vld [vmem:[#allocation2 + $0x14] sm:$0x1] }
  0x19   : > { %847 = vst [vmem:[#allocation2] sm:$0xf] %v846_v29  ;;  %v712_v35 = vld [vmem:[#allocation2 + $0x30] sm:$0xf]  ;;  %v425_v39 = vrot.slane %v421_v31, 4  ;;  %v432_v40 = vor.u32 %v430_v25, %v429_v32  ;;  %v434_v41 = vrot.slane %v429_v32, 4 }
  0x1a   : > { %851 = vst [vmem:[#allocation2 + $0x8] sm:$0x1] %v850_v34  ;;  %v387_v43 = vrot.slane %v385_v36, 7  ;;  %v393_v44 = vshrl.u32 %v336_v33, 16  ;;  %v396_v45 = vshll.u32 %v336_v33, 16  ;;  %v224_v47 = vsel %vm2766_vm2, 0, %v223_v26 }
  0x1b   : > { %v716_v42 = vld [vmem:[#allocation2 + $0x38] sm:$0x1]  ;;  %v433_v48 = vsel %vm2782_vm7, %v425_v39, %v432_v40  ;;  %v713_v49 = vsel %vm2813_vm8, %v424_v38, %v712_v35  ;;  %225 = vst [vmem:[#allocation2 + $0xc] sm:$0x1] %v224_v47  ;;  %v333_v52 = vld [vmem:[%s2807_s19] sm:$0xf] }
  0x1c   : > { %v698_v46 = vld [vmem:[#allocation2 + $0x18] sm:$0xf]  ;;  %v717_v50 = vsel %vm2766_vm2, %v434_v41, %v716_v42  ;;  %714 = vst [vmem:[#allocation2 + $0x30] sm:$0xf] %v713_v49  ;;  %v390_v53 = vor.u32 %v388_v37, %v387_v43  ;;  %v391_v54 = vrot.slane %v387_v43, 4  ;;  %v395_v55 = vrot.slane %v393_v44, 7 }
  0x1d   : > { %v280_v56 = vsel %vm2773_vm5, 0, %v279_v51  ;;  %715 = vst.msk [vmem:[#allocation2 + $0x34] sm:$0xf] %vm688_vm6, %v433_v48  ;;  %v334_v58 = vld [vmem:[%s2807_s19 + $0x4] sm:$0xf]  ;;  %v368_v62 = vshrl.u32 %v333_v52, 16 }
  0x1e   : > { %vm1068_vm9 = vsmask.f32 7424  ;;  %718 = vst [vmem:[#allocation2 + $0x38] sm:$0x1] %v717_v50  ;;  %v398_v59 = vor.u32 %v396_v45, %v395_v55  ;;  %v400_v60 = vrot.slane %v395_v55, 4  ;;  %v699_v61 = vsel %vm2813_vm8, %v390_v53, %v698_v46  ;;  %s2722_s23 = smov 12  }
  0x1f   : > { %v702_v57 = vld [vmem:[#allocation2 + $0x20] sm:$0x1]  ;;  %v235_v63 = vld [vmem:[#allocation2 + $0x3c] sm:$0x1]  ;;  %700 = vst [vmem:[#allocation2 + $0x18] sm:$0xf] %v699_v61 }
  0x20   : > { %v2508_v0 = vld [vmem:[#allocation2] sm:$0xff]  ;;  %v371_v2 = vshll.u32 %v333_v52, 16  ;;  %v376_v3 = vshrl.u32 %v334_v58, 16  ;;  %v379_v5 = vshll.u32 %v334_v58, 16  ;;  %v399_v8 = vsel %vm2782_vm7, %v391_v54, %v398_v59  ;;  %281 = vst [vmem:[#allocation2 + $0x14] sm:$0x1] %v280_v56 }
  0x21   : > { %v888_v6 = vld [vmem:[#allocation2 + $0x8] sm:$0x1]  ;;  %v703_v10 = vsel %vm2766_vm2, %v400_v60, %v702_v57  ;;  %v370_v11 = vrot.slane %v368_v62, 7  ;;  %v236_v13 = vsel %vm2766_vm2, 0, %v235_v63  ;;  %v1070_v15 = vshrl.u32 %v2508_v0, 16  ;;  %s2723_s24 = smov 28  }
  0x22   : > { %v1036_v14 = vunpack.c.l.b16 %v888_v6  ;;  %v1072_v16 = vshll.u32 %v2508_v0, 16  ;;  %701 = vst.msk [vmem:[#allocation2 + $0x1c] sm:$0xf] %vm688_vm6, %v399_v8  ;;  %v378_v17 = vrot.slane %v376_v3, 7  ;;  %v690_v21 = vld [vmem:[#allocation2 + $0xc] sm:$0xf] }
  0x23   : > { %704 = vst [vmem:[#allocation2 + $0x20] sm:$0x1] %v703_v10  ;;  %v373_v18 = vor.u32 %v371_v2, %v370_v11  ;;  %v374_v20 = vrot.slane %v370_v11, 4  ;;  %v291_v26 = vld [vmem:[#allocation2 + $0x44] sm:$0x1]  ;;  %s2724_s25 = smov 20  }
  0x24   : > { %v2851_v22 = vpack.c.b16 %v1036_v14, %v1036_v14  ;;  %v1074_v23 = vrot.slane %v1072_v16, 1  ;;  %v381_v24 = vor.u32 %v379_v5, %v378_v17  ;;  %v383_v25 = vrot.slane %v378_v17, 4  ;;  %237 = vst [vmem:[#allocation2 + $0x3c] sm:$0x1] %v236_v13  ;;  %v2853_v27 = vld [vmem:[#allocation2 + $0x30] sm:$0xff]  ;;  %s2725_s26 = smov 24  }
  0x25   : > { %v691_v28 = vsel %vm2813_vm8, %v373_v18, %v690_v21  ;;  %v292_v29 = vsel %vm2773_vm5, 0, %v291_v26  ;;  %v341_v30 = vld [vmem:[%s2807_s19 + $0x20] sm:$0xf]  ;;  %v342_v31 = vld [vmem:[%s2807_s19 + $0x24] sm:$0xf]  ;;  %v1118_v38 = vshrl.u32 %v2853_v27, 16 }
  0x26   : > { %v1075_v32 = vor.u32 %v1074_v23, %v1070_v15  ;;  %v1077_v33 = vshll.u32 %v2851_v22, 16  ;;  %v900_v34 = vld [vmem:[#allocation2 + $0x38] sm:$0x1]  ;;  %v382_v35 = vsel %vm2782_vm7, %v374_v20, %v381_v24  ;;  %692 = vst [vmem:[#allocation2 + $0xc] sm:$0xf] %v691_v28  ;;  %v436_v36 = vshrl.u32 %v341_v30, 16 }
  0x27   : > { %v1040_v37 = vunpack.c.l.b16 %v900_v34  ;;  %v1120_v39 = vshll.u32 %v2853_v27, 16  ;;  %694 = vst.msk [vmem:[#allocation2 + $0x10] sm:$0xf] %vm688_vm6, %v382_v35  ;;  %v439_v40 = vshll.u32 %v341_v30, 16  ;;  %v695_v42 = vld [vmem:[#allocation2 + $0x14] sm:$0x1] }
  0x28   : > { %v1079_v41 = vrot.slane %v1077_v33, 1  ;;  %293 = vst [vmem:[#allocation2 + $0x44] sm:$0x1] %v292_v29  ;;  %v438_v43 = vrot.slane %v436_v36, 7  ;;  %v696_v47 = vsel %vm2766_vm2, %v383_v25, %v695_v42  ;;  %v444_v48 = vshrl.u32 %v342_v31, 16  ;;  %s2726_s27 = smov 32  }
  0x29   : > { %v2867_v44 = vpack.c.b16 %v1040_v37, %v1040_v37  ;;  %v1122_v45 = vrot.slane %v1120_v39, 1  ;;  %v2869_v46 = vld [vmem:[#allocation2 + $0x18] sm:$0xff]  ;;  %v229_v49 = vld [vmem:[#allocation2 + $0x24] sm:$0x1]  ;;  %697 = vst [vmem:[#allocation2 + $0x14] sm:$0x1] %v696_v47 }
  0x2a   : > { %v1080_v50 = vsel %vm1068_vm9, %v1075_v32, %v1079_v41  ;;  %v894_v51 = vld [vmem:[#allocation2 + $0x20] sm:$0x1]  ;;  %v441_v52 = vor.u32 %v439_v40, %v438_v43  ;;  %v442_v53 = vrot.slane %v438_v43, 4  ;;  %v447_v54 = vshll.u32 %v342_v31, 16  ;;  %v285_v60 = vld [vmem:[#allocation2 + $0x2c] sm:$0x1] }
  0x2b   : > { %1261 = vrot.lane.b32.xlu0 %v1080_v50, %s2719_s20  ;;  %v1123_v55 = vor.u32 %v1122_v45, %v1118_v38  ;;  %v1125_v56 = vshll.u32 %v2867_v44, 16  ;;  %v1038_v57 = vunpack.c.l.b16 %v894_v51  ;;  %v1094_v58 = vshrl.u32 %v2869_v46, 16  ;;  %v719_v59 = vld [vmem:[#allocation2 + $0x3c] sm:$0xf]  ;;  %v337_v2 = vld [vmem:[%s2807_s19 + $0x10] sm:$0xf] }
  0x2c   : > { %v1096_v61 = vshll.u32 %v2869_v46, 16  ;;  %v446_v62 = vrot.slane %v444_v48, 7  ;;  %v720_v63 = vsel %vm2813_vm8, %v441_v52, %v719_v59  ;;  %v230_v0 = vsel %vm2766_vm2, 0, %v229_v49  ;;  %v338_v8 = vld [vmem:[%s2807_s19 + $0x14] sm:$0xf] }
  0x2d   : > { %v1127_v3 = vrot.slane %v1125_v56, 1  ;;  %v2883_v5 = vpack.c.b16 %v1038_v57, %v1038_v57  ;;  %721 = vst [vmem:[#allocation2 + $0x3c] sm:$0xf] %v720_v63  ;;  %v286_v6 = vsel %vm2773_vm5, 0, %v285_v60  ;;  %v402_v15 = vshrl.u32 %v337_v2, 16 }
  0x2e   : > { %v1098_v10 = vrot.slane %v1096_v61, 1  ;;  %v2888_v11 = vld [vmem:[#allocation2 + $0xc] sm:$0xff]  ;;  %v449_v13 = vor.u32 %v447_v54, %v446_v62  ;;  %v451_v14 = vrot.slane %v446_v62, 4  ;;  %231 = vst [vmem:[#allocation2 + $0x24] sm:$0x1] %v230_v0  ;;  %v405_v20 = vshll.u32 %v337_v2, 16 }
  0x2f   : > { %v2891_v16 = vsel %vm1068_vm9, %v1123_v55, %v1127_v3  ;;  %v1101_v17 = vshll.u32 %v2883_v5, 16  ;;  %v723_v18 = vld [vmem:[#allocation2 + $0x44] sm:$0x1]  ;;  %287 = vst [vmem:[#allocation2 + $0x2c] sm:$0x1] %v286_v6  ;;  %v1082_v23 = vshrl.u32 %v2888_v11, 16 }
  0x30   : > { %1269 = vrot.lane.b32.xlu2 %v2891_v16, %s2719_s20  ;;  %v1099_v21 = vor.u32 %v1098_v10, %v1094_v58  ;;  %v1084_v24 = vshll.u32 %v2888_v11, 16  ;;  %v450_v25 = vsel %vm2782_vm7, %v442_v53, %v449_v13  ;;  %v238_v26 = vld [vmem:[#allocation2 + $0x48] sm:$0x1]  ;;  %v294_v28 = vld [vmem:[#allocation2 + $0x50] sm:$0x1]  ;;  %v724_v31 = vsel %vm2766_vm2, %v451_v14, %v723_v18 }
  0x31   : > { %v1103_v29 = vrot.slane %v1101_v17, 1  ;;  %v891_v30 = vld [vmem:[#allocation2 + $0x14] sm:$0x1]  ;;  %722 = vst.msk [vmem:[#allocation2 + $0x40] sm:$0xf] %vm688_vm6, %v450_v25  ;;  %v404_v32 = vrot.slane %v402_v15, 7 }
  0x32   : > { %v1037_v33 = vunpack.c.l.b16 %v891_v30  ;;  %v1086_v34 = vrot.slane %v1084_v24, 1  ;;  %725 = vst [vmem:[#allocation2 + $0x44] sm:$0x1] %v724_v31  ;;  %v410_v35 = vshrl.u32 %v338_v8, 16  ;;  %v413_v36 = vshll.u32 %v338_v8, 16 }
  0x33   : > { %v2904_v37 = vsel %vm1068_vm9, %v1099_v21, %v1103_v29  ;;  %v407_v38 = vor.u32 %v405_v20, %v404_v32  ;;  %v408_v39 = vrot.slane %v404_v32, 4  ;;  %v239_v40 = vsel %vm2766_vm2, 0, %v238_v26  ;;  %v343_v41 = vld [vmem:[%s2807_s19 + $0x28] sm:$0xf]  ;;  %v344_v42 = vld [vmem:[%s2807_s19 + $0x2c] sm:$0xf] }
  0x34   : > { %1265 = vrot.lane.b32.xlu1 %v2904_v37, %s2719_s20  ;;  %v2912_v43 = vpack.c.b16 %v1037_v33, %v1037_v33  ;;  %v412_v45 = vrot.slane %v410_v35, 7  ;;  %240 = vst [vmem:[#allocation2 + $0x48] sm:$0x1] %v239_v40  ;;  %v295_v47 = vsel %vm2773_vm5, 0, %v294_v28  ;;  %v244_v48 = vld [vmem:[#allocation2 + $0x60] sm:$0x1]  ;;  %v1087_v49 = vor.u32 %v1086_v34, %v1082_v23 }
  0x35   : > { %v705_v50 = vld [vmem:[#allocation2 + $0x24] sm:$0xf]  ;;  %296 = vst [vmem:[#allocation2 + $0x50] sm:$0x1] %v295_v47  ;;  %v453_v51 = vshrl.u32 %v343_v41, 16  ;;  %v456_v52 = vshll.u32 %v343_v41, 16 }
  0x36   : > { %v1089_v53 = vshll.u32 %v2912_v43, 16  ;;  %v415_v54 = vor.u32 %v413_v36, %v412_v45  ;;  %v417_v55 = vrot.slane %v412_v45, 4  ;;  %v706_v56 = vsel %vm2813_vm8, %v407_v38, %v705_v50  ;;  %v709_v57 = vld [vmem:[#allocation2 + $0x2c] sm:$0x1]  ;;  %v300_v58 = vld [vmem:[#allocation2 + $0x68] sm:$0x1] }
  0x37   : > { %707 = vst [vmem:[#allocation2 + $0x24] sm:$0xf] %v706_v56  ;;  %v455_v59 = vrot.slane %v453_v51, 7  ;;  %v461_v60 = vshrl.u32 %v344_v42, 16  ;;  %v464_v61 = vshll.u32 %v344_v42, 16  ;;  %v245_v62 = vsel %vm2766_vm2, 0, %v244_v48 }
  0x38   : > { %v1091_v63 = vrot.slane %v1089_v53, 1  ;;  %v2921_v0 = vld [vmem:[#allocation2 + $0x3c] sm:$0xff]  ;;  %v416_v2 = vsel %vm2782_vm7, %v408_v39, %v415_v54  ;;  %v710_v3 = vsel %vm2766_vm2, %v417_v55, %v709_v57  ;;  %246 = vst [vmem:[#allocation2 + $0x60] sm:$0x1] %v245_v62  ;;  %v301_v6 = vsel %vm2773_vm5, 0, %v300_v58 }
  0x39   : > { %v903_v8 = vld [vmem:[#allocation2 + $0x44] sm:$0x1]  ;;  %708 = vst.msk [vmem:[#allocation2 + $0x28] sm:$0xf] %vm688_vm6, %v416_v2  ;;  %v458_v10 = vor.u32 %v456_v52, %v455_v59  ;;  %v459_v13 = vrot.slane %v455_v59, 4  ;;  %v463_v14 = vrot.slane %v461_v60, 7 }
  0x3a   : > { %v2931_v15 = vsel %vm1068_vm9, %v1087_v49, %v1091_v63  ;;  %v1041_v17 = vunpack.c.l.b16 %v903_v8  ;;  %v1130_v18 = vshrl.u32 %v2921_v0, 16  ;;  %v1132_v20 = vshll.u32 %v2921_v0, 16  ;;  %711 = vst [vmem:[#allocation2 + $0x2c] sm:$0x1] %v710_v3  ;;  %v347_v21 = vld [vmem:[%s2807_s19 + $0x38] sm:$0xf] }
  0x3b   : > { %1263 = vrot.lane.b32.xlu0 %v2931_v15, %s2719_s20  ;;  %v466_v23 = vor.u32 %v464_v61, %v463_v14  ;;  %v468_v24 = vrot.slane %v463_v14, 4  ;;  %v726_v25 = vld [vmem:[#allocation2 + $0x48] sm:$0xf]  ;;  %302 = vst [vmem:[#allocation2 + $0x68] sm:$0x1] %v301_v6  ;;  %v487_v26 = vshrl.u32 %v347_v21, 16 }
  0x3c   : > { %v2938_v28 = vpack.c.b16 %v1041_v17, %v1041_v17  ;;  %v1134_v29 = vrot.slane %v1132_v20, 1  ;;  %v727_v30 = vsel %vm2813_vm8, %v458_v10, %v726_v25  ;;  %v730_v31 = vld [vmem:[#allocation2 + $0x50] sm:$0x1]  ;;  %v348_v32 = vld [vmem:[%s2807_s19 + $0x3c] sm:$0xf]  ;;  %v490_v33 = vshll.u32 %v347_v21, 16 }
  0x3d   : > { %v467_v34 = vsel %vm2782_vm7, %v459_v13, %v466_v23  ;;  %728 = vst [vmem:[#allocation2 + $0x48] sm:$0xf] %v727_v30  ;;  %v731_v35 = vsel %vm2766_vm2, %v468_v24, %v730_v31  ;;  %v489_v36 = vrot.slane %v487_v26, 7  ;;  %v495_v38 = vshrl.u32 %v348_v32, 16  ;;  %v241_v39 = vld [vmem:[#allocation2 + $0x54] sm:$0x1] }
  0x3e   : > { %v1135_v40 = vor.u32 %v1134_v29, %v1130_v18  ;;  %v1137_v41 = vshll.u32 %v2938_v28, 16  ;;  %729 = vst.msk [vmem:[#allocation2 + $0x4c] sm:$0xf] %vm688_vm6, %v467_v34  ;;  %v498_v42 = vshll.u32 %v348_v32, 16  ;;  %v242_v45 = vsel %vm2766_vm2, 0, %v241_v39 }
  0x3f   : > { %732 = vst [vmem:[#allocation2 + $0x50] sm:$0x1] %v731_v35  ;;  %v492_v47 = vor.u32 %v490_v33, %v489_v36  ;;  %v493_v48 = vrot.slane %v489_v36, 4  ;;  %v497_v49 = vrot.slane %v495_v38, 7  ;;  %v740_v50 = vld [vmem:[#allocation2 + $0x60] sm:$0xf] }
  0x40   : > { %v1139_v51 = vrot.slane %v1137_v41, 1  ;;  %v2951_v52 = vld [vmem:[#allocation2 + $0x24] sm:$0xff]  ;;  %243 = vst [vmem:[#allocation2 + $0x54] sm:$0x1] %v242_v45  ;;  %v297_v53 = vld [vmem:[#allocation2 + $0x5c] sm:$0x1] }
  0x41   : > { %v897_v54 = vld [vmem:[#allocation2 + $0x2c] sm:$0x1]  ;;  %v500_v55 = vor.u32 %v498_v42, %v497_v49  ;;  %v502_v56 = vrot.slane %v497_v49, 4  ;;  %v741_v57 = vsel %vm2813_vm8, %v492_v47, %v740_v50  ;;  %v298_v58 = vsel %vm2773_vm5, 0, %v297_v53  ;;  %v345_v59 = vld [vmem:[%s2807_s19 + $0x30] sm:$0xf] }
  0x42   : > { %v2959_v60 = vsel %vm1068_vm9, %v1135_v40, %v1139_v51  ;;  %v1039_v61 = vunpack.c.l.b16 %v897_v54  ;;  %v1106_v62 = vshrl.u32 %v2951_v52, 16  ;;  %v1108_v63 = vshll.u32 %v2951_v52, 16  ;;  %742 = vst [vmem:[#allocation2 + $0x60] sm:$0xf] %v741_v57  ;;  %v744_v2 = vld [vmem:[#allocation2 + $0x68] sm:$0x1] }
  0x43   : > { %1271 = vrot.lane.b32.xlu2 %v2959_v60, %s2719_s20  ;;  %v501_v3 = vsel %vm2782_vm7, %v493_v48, %v500_v55  ;;  %v745_v6 = vsel %vm2766_vm2, %v502_v56, %v744_v2  ;;  %299 = vst [vmem:[#allocation2 + $0x5c] sm:$0x1] %v298_v58  ;;  %v346_v8 = vld [vmem:[%s2807_s19 + $0x34] sm:$0xf]  ;;  %v470_v10 = vshrl.u32 %v345_v59, 16  ;;  %v473_v13 = vshll.u32 %v345_v59, 16 }
  0x44   : > { %v2970_v14 = vpack.c.b16 %v1039_v61, %v1039_v61  ;;  %v1110_v17 = vrot.slane %v1108_v63, 1  ;;  %743 = vst.msk [vmem:[#allocation2 + $0x64] sm:$0xf] %vm688_vm6, %v501_v3  ;;  %v478_v18 = vshrl.u32 %v346_v8, 16  ;;  %v481_v20 = vshll.u32 %v346_v8, 16 }
  0x45   : > { %v2973_v21 = vld [vmem:[#allocation2 + $0x48] sm:$0xff]  ;;  %746 = vst [vmem:[#allocation2 + $0x68] sm:$0x1] %v745_v6  ;;  %v472_v23 = vrot.slane %v470_v10, 7  ;;  %v303_v42 = vld [vmem:[#allocation2 + $0x74] sm:$0x1] }
  0x46   : > { %v247_v24 = vld [vmem:[#allocation2 + $0x6c] sm:$0x1]  ;;  %v1111_v25 = vor.u32 %v1110_v17, %v1106_v62  ;;  %v1113_v26 = vshll.u32 %v2970_v14, 16  ;;  %v906_v29 = vld [vmem:[#allocation2 + $0x50] sm:$0x1]  ;;  %v480_v30 = vrot.slane %v478_v18, 7 }
  0x47   : > { %v248_v31 = vsel %vm2766_vm2, 0, %v247_v24  ;;  %v1042_v32 = vunpack.c.l.b16 %v906_v29  ;;  %v1142_v33 = vshrl.u32 %v2973_v21, 16  ;;  %v1144_v34 = vshll.u32 %v2973_v21, 16  ;;  %v733_v36 = vld [vmem:[#allocation2 + $0x54] sm:$0xf] }
  0x48   : > { %v475_v35 = vor.u32 %v473_v13, %v472_v23  ;;  %249 = vst [vmem:[#allocation2 + $0x6c] sm:$0x1] %v248_v31  ;;  %v1115_v38 = vrot.slane %v1113_v26, 1  ;;  %v476_v39 = vrot.slane %v472_v23, 4  ;;  %v483_v40 = vor.u32 %v481_v20, %v480_v30  ;;  %v349_v50 = vld [vmem:[%s2807_s19 + $0x40] sm:$0xf] }
  0x49   : > { %v485_v41 = vrot.slane %v480_v30, 4  ;;  %v2980_v45 = vpack.c.b16 %v1042_v32, %v1042_v32  ;;  %v1146_v47 = vrot.slane %v1144_v34, 1  ;;  %v304_v49 = vsel %vm2773_vm5, 0, %v303_v42  ;;  %v350_v51 = vld [vmem:[%s2807_s19 + $0x44] sm:$0xf] }
  0x4a   : > { %v734_v48 = vsel %vm2813_vm8, %v475_v35, %v733_v36  ;;  %v2989_v53 = vsel %vm1068_vm9, %v1111_v25, %v1115_v38  ;;  %v484_v54 = vsel %vm2782_vm7, %v476_v39, %v483_v40  ;;  %v737_v55 = vld [vmem:[#allocation2 + $0x5c] sm:$0x1]  ;;  %v504_v56 = vshrl.u32 %v349_v50, 16  ;;  %305 = vst [vmem:[#allocation2 + $0x74] sm:$0x1] %v304_v49 }
  0x4b   : > { %735 = vst [vmem:[#allocation2 + $0x54] sm:$0xf] %v734_v48  ;;  %v507_v57 = vshll.u32 %v349_v50, 16  ;;  %1267 = vrot.lane.b32.xlu1 %v2989_v53, %s2719_s20  ;;  %v1147_v58 = vor.u32 %v1146_v47, %v1142_v33  ;;  %v1149_v59 = vshll.u32 %v2980_v45, 16  ;;  %v2996_v61 = vld [vmem:[#allocation2 + $0x60] sm:$0xff]  ;;  %v738_v62 = vsel %vm2766_vm2, %v485_v41, %v737_v55 }
  0x4c   : > { %736 = vst.msk [vmem:[#allocation2 + $0x58] sm:$0xf] %vm688_vm6, %v484_v54  ;;  %v512_v63 = vshrl.u32 %v350_v51, 16  ;;  %v912_v2 = vld [vmem:[#allocation2 + $0x68] sm:$0x1]  ;;  %v506_v3 = vrot.slane %v504_v56, 7 }
  0x4d   : > { %739 = vst [vmem:[#allocation2 + $0x5c] sm:$0x1] %v738_v62  ;;  %v515_v6 = vshll.u32 %v350_v51, 16  ;;  %v1151_v8 = vrot.slane %v1149_v59, 1  ;;  %v1044_v10 = vunpack.c.l.b16 %v912_v2  ;;  %v1166_v13 = vshrl.u32 %v2996_v61, 16 }
  0x4e   : > { %v1168_v17 = vshll.u32 %v2996_v61, 16  ;;  %v509_v18 = vor.u32 %v507_v57, %v506_v3  ;;  %v510_v20 = vrot.slane %v506_v3, 4  ;;  %v514_v23 = vrot.slane %v512_v63, 7  ;;  %v253_v25 = vld [vmem:[#allocation2 + $0x84] sm:$0x1] }
  0x4f   : > { %v747_v24 = vld [vmem:[#allocation2 + $0x6c] sm:$0xf]  ;;  %v3004_v26 = vsel %vm1068_vm9, %v1147_v58, %v1151_v8  ;;  %v3006_v29 = vpack.c.b16 %v1044_v10, %v1044_v10  ;;  %v254_v31 = vsel %vm2766_vm2, 0, %v253_v25  ;;  %v353_v33 = vld [vmem:[%s2807_s19 + $0x50] sm:$0xf]  ;;  %vm1645_vm11 = vcmask 64512  }
  0x50   : > { %v1170_v30 = vrot.slane %v1168_v17, 1  ;;  %v309_v32 = vld [vmem:[#allocation2 + $0x8c] sm:$0x1]  ;;  %1273 = vrot.lane.b32.xlu0 %v3004_v26, %s2719_s20  ;;  %v517_v34 = vor.u32 %v515_v6, %v514_v23  ;;  %v519_v35 = vrot.slane %v514_v23, 4  ;;  %v748_v36 = vsel %vm2813_vm8, %v509_v18, %v747_v24  ;;  %255 = vst [vmem:[#allocation2 + $0x84] sm:$0x1] %v254_v31 }
  0x51   : > { %v310_v38 = vsel %vm2773_vm5, 0, %v309_v32  ;;  %v354_v39 = vld [vmem:[%s2807_s19 + $0x54] sm:$0xf]  ;;  %v1173_v41 = vshll.u32 %v3006_v29, 16  ;;  %749 = vst [vmem:[#allocation2 + $0x6c] sm:$0xf] %v748_v36 }
  0x52   : > { %v1171_v40 = vor.u32 %v1170_v30, %v1166_v13  ;;  %v538_v42 = vshrl.u32 %v353_v33, 16  ;;  %v541_v47 = vshll.u32 %v353_v33, 16  ;;  %v518_v49 = vsel %vm2782_vm7, %v510_v20, %v517_v34  ;;  %311 = vst [vmem:[#allocation2 + $0x8c] sm:$0x1] %v310_v38  ;;  %v751_v62 = vld [vmem:[#allocation2 + $0x74] sm:$0x1] }
  0x53   : > { %v3019_v48 = vld [vmem:[#allocation2 + $0x54] sm:$0xff]  ;;  %v546_v50 = vshrl.u32 %v354_v39, 16  ;;  %v549_v51 = vshll.u32 %v354_v39, 16  ;;  %v1175_v54 = vrot.slane %v1173_v41, 1  ;;  %750 = vst.msk [vmem:[#allocation2 + $0x70] sm:$0xf] %vm688_vm6, %v518_v49  ;;  %v752_v3 = vsel %vm2766_vm2, %v519_v35, %v751_v62 }
  0x54   : > { %v909_v55 = vld [vmem:[#allocation2 + $0x5c] sm:$0x1]  ;;  %v540_v56 = vrot.slane %v538_v42, 7  ;;  %v1154_v58 = vshrl.u32 %v3019_v48, 16  ;;  %v1156_v59 = vshll.u32 %v3019_v48, 16  ;;  %vm1612_vm12 = vcmask 31744  }
  0x55   : > { %v1043_v57 = vunpack.c.l.b16 %v909_v55  ;;  %v548_v63 = vrot.slane %v546_v50, 7  ;;  %v3027_v2 = vsel %vm1068_vm9, %v1171_v40, %v1175_v54  ;;  %v250_v10 = vld [vmem:[#allocation2 + $0x78] sm:$0x1]  ;;  %v306_v13 = vld [vmem:[#allocation2 + $0x80] sm:$0x1]  ;;  %vm1678_vm13 = vcmask 97280  }
  0x56   : > { %v543_v6 = vor.u32 %v541_v47, %v540_v56  ;;  %v544_v8 = vrot.slane %v540_v56, 4  ;;  %1277 = vrot.lane.b32.xlu2 %v3027_v2, %s2719_s20  ;;  %v1158_v18 = vrot.slane %v1156_v59, 1  ;;  %753 = vst [vmem:[#allocation2 + $0x74] sm:$0x1] %v752_v3  ;;  %v351_v24 = vld [vmem:[%s2807_s19 + $0x48] sm:$0xf] }
  0x57   : > { %v3033_v17 = vpack.c.b16 %v1043_v57, %v1043_v57  ;;  %v551_v20 = vor.u32 %v549_v51, %v548_v63  ;;  %v553_v23 = vrot.slane %v548_v63, 4  ;;  %v761_v25 = vld [vmem:[#allocation2 + $0x84] sm:$0xf]  ;;  %v251_v30 = vsel %vm2766_vm2, 0, %v250_v10  ;;  %v352_v32 = vld [vmem:[%s2807_s19 + $0x4c] sm:$0xf] }
  0x58   : > { %v307_v31 = vsel %vm2773_vm5, 0, %v306_v13  ;;  %v1159_v33 = vor.u32 %v1158_v18, %v1154_v58  ;;  %v762_v36 = vsel %vm2813_vm8, %v543_v6, %v761_v25  ;;  %252 = vst [vmem:[#allocation2 + $0x78] sm:$0x1] %v251_v30  ;;  %v256_v38 = vld [vmem:[#allocation2 + $0x90] sm:$0x1]  ;;  %v521_v40 = vshrl.u32 %v351_v24, 16 }
  0x59   : > { %v1161_v34 = vshll.u32 %v3033_v17, 16  ;;  %v552_v35 = vsel %vm2782_vm7, %v544_v8, %v551_v20  ;;  %763 = vst [vmem:[#allocation2 + $0x84] sm:$0xf] %v762_v36  ;;  %v765_v39 = vld [vmem:[#allocation2 + $0x8c] sm:$0x1]  ;;  %v524_v41 = vshll.u32 %v351_v24, 16 }
  0x5a   : > { %v3046_v47 = vld [vmem:[#allocation2 + $0x6c] sm:$0xff]  ;;  %764 = vst.msk [vmem:[#allocation2 + $0x88] sm:$0xf] %vm688_vm6, %v552_v35  ;;  %v766_v49 = vsel %vm2766_vm2, %v553_v23, %v765_v39  ;;  %v529_v50 = vshrl.u32 %v352_v32, 16  ;;  %v532_v51 = vshll.u32 %v352_v32, 16  ;;  %v523_v54 = vrot.slane %v521_v40, 7 }
  0x5b   : > { %v1163_v42 = vrot.slane %v1161_v34, 1  ;;  %767 = vst [vmem:[#allocation2 + $0x8c] sm:$0x1] %v766_v49  ;;  %v257_v55 = vsel %vm2766_vm2, 0, %v256_v38  ;;  %v312_v56 = vld [vmem:[#allocation2 + $0x98] sm:$0x1] }
  0x5c   : > { %v1180_v58 = vshll.u32 %v3046_v47, 16  ;;  %308 = vst [vmem:[#allocation2 + $0x80] sm:$0x1] %v307_v31  ;;  %v531_v59 = vrot.slane %v529_v50, 7  ;;  %v526_v63 = vor.u32 %v524_v41, %v523_v54  ;;  %v527_v3 = vrot.slane %v523_v54, 4 }
  0x5d   : > { %v3054_v57 = vsel %vm1068_vm9, %v1159_v33, %v1163_v42  ;;  %v915_v62 = vld [vmem:[#allocation2 + $0x74] sm:$0x1]  ;;  %258 = vst [vmem:[#allocation2 + $0x90] sm:$0x1] %v257_v55  ;;  %v313_v6 = vsel %vm2773_vm5, 0, %v312_v56  ;;  %v1178_v10 = vshrl.u32 %v3046_v47, 16 }
  0x5e   : > { %1275 = vrot.lane.b32.xlu1 %v3054_v57, %s2719_s20  ;;  %v1045_v8 = vunpack.c.l.b16 %v915_v62  ;;  %v1182_v13 = vrot.slane %v1180_v58, 1  ;;  %v534_v18 = vor.u32 %v532_v51, %v531_v59  ;;  %314 = vst [vmem:[#allocation2 + $0x98] sm:$0x1] %v313_v6  ;;  %v355_v20 = vld [vmem:[%s2807_s19 + $0x58] sm:$0xf]  ;;  %v536_v33 = vrot.slane %v531_v59, 4 }
  0x5f   : > { %v754_v23 = vld [vmem:[#allocation2 + $0x78] sm:$0xf]  ;;  %v356_v24 = vld [vmem:[%s2807_s19 + $0x5c] sm:$0xf]  ;;  %v555_v25 = vshrl.u32 %v355_v20, 16  ;;  %v558_v30 = vshll.u32 %v355_v20, 16 }
  0x60   : > { %v3064_v31 = vpack.c.b16 %v1045_v8, %v1045_v8  ;;  %v535_v32 = vsel %vm2782_vm7, %v527_v3, %v534_v18  ;;  %v755_v34 = vsel %vm2813_vm8, %v526_v63, %v754_v23  ;;  %v262_v35 = vld [vmem:[#allocation2 + $0xa8] sm:$0x1]  ;;  %v318_v36 = vld [vmem:[#allocation2 + $0xb0] sm:$0x1]  ;;  %v563_v40 = vshrl.u32 %v356_v24, 16 }
  0x61   : > { %v3070_v38 = vld [vmem:[#allocation2 + $0x84] sm:$0xff]  ;;  %756 = vst [vmem:[#allocation2 + $0x78] sm:$0xf] %v755_v34  ;;  %v557_v39 = vrot.slane %v555_v25, 7  ;;  %v566_v41 = vshll.u32 %v356_v24, 16  ;;  %v1183_v49 = vor.u32 %v1182_v13, %v1178_v10  ;;  %v263_v54 = vsel %vm2766_vm2, 0, %v262_v35 }
  0x62   : > { %v359_v42 = vld [vmem:[%s2807_s19 + $0x68] sm:$0xf]  ;;  %v1185_v50 = vshll.u32 %v3064_v31, 16  ;;  %v921_v51 = vld [vmem:[#allocation2 + $0x8c] sm:$0x1]  ;;  %v1202_v56 = vshrl.u32 %v3070_v38, 16 }
  0x63   : > { %757 = vst.msk [vmem:[#allocation2 + $0x7c] sm:$0xf] %vm688_vm6, %v535_v32  ;;  %v1047_v55 = vunpack.c.l.b16 %v921_v51  ;;  %v1204_v58 = vshll.u32 %v3070_v38, 16  ;;  %v758_v59 = vld [vmem:[#allocation2 + $0x80] sm:$0x1]  ;;  %v560_v62 = vor.u32 %v558_v30, %v557_v39  ;;  %v561_v6 = vrot.slane %v557_v39, 4 }
  0x64   : > { %264 = vst [vmem:[#allocation2 + $0xa8] sm:$0x1] %v263_v54  ;;  %v1187_v63 = vrot.slane %v1185_v50, 1  ;;  %v759_v3 = vsel %vm2766_vm2, %v536_v33, %v758_v59  ;;  %v565_v8 = vrot.slane %v563_v40, 7  ;;  %v768_v10 = vld [vmem:[#allocation2 + $0x90] sm:$0xf] }
  0x65   : > { %v3081_v13 = vpack.c.b16 %v1047_v55, %v1047_v55  ;;  %v1206_v18 = vrot.slane %v1204_v58, 1  ;;  %760 = vst [vmem:[#allocation2 + $0x80] sm:$0x1] %v759_v3  ;;  %v769_v20 = vsel %vm2813_vm8, %v560_v62, %v768_v10  ;;  %v772_v23 = vld [vmem:[#allocation2 + $0x98] sm:$0x1]  ;;  %v319_v24 = vsel %vm2773_vm5, 0, %v318_v36 }
  0x66   : > { %v3088_v25 = vsel %vm1068_vm9, %v1183_v49, %v1187_v63  ;;  %v568_v30 = vor.u32 %v566_v41, %v565_v8  ;;  %v570_v32 = vrot.slane %v565_v8, 4  ;;  %770 = vst [vmem:[#allocation2 + $0x90] sm:$0xf] %v769_v20  ;;  %v360_v33 = vld [vmem:[%s2807_s19 + $0x6c] sm:$0xf]  ;;  %v589_v34 = vshrl.u32 %v359_v42, 16 }
  0x67   : > { %1279 = vrot.lane.b32.xlu0 %v3088_v25, %s2719_s20  ;;  %v1207_v35 = vor.u32 %v1206_v18, %v1202_v56  ;;  %v1209_v39 = vshll.u32 %v3081_v13, 16  ;;  %320 = vst [vmem:[#allocation2 + $0xb0] sm:$0x1] %v319_v24  ;;  %v592_v40 = vshll.u32 %v359_v42, 16  ;;  %v597_v50 = vshrl.u32 %v360_v33, 16 }
  0x68   : > { %v569_v36 = vsel %vm2782_vm7, %v561_v6, %v568_v30  ;;  %v773_v49 = vsel %vm2766_vm2, %v570_v32, %v772_v23  ;;  %v591_v41 = vrot.slane %v589_v34, 7  ;;  %v600_v51 = vshll.u32 %v360_v33, 16  ;;  %v259_v54 = vld [vmem:[#allocation2 + $0x9c] sm:$0x1]  ;;  %v315_v55 = vld [vmem:[#allocation2 + $0xa4] sm:$0x1] }
  0x69   : > { %v1211_v58 = vrot.slane %v1209_v39, 1  ;;  %771 = vst.msk [vmem:[#allocation2 + $0x94] sm:$0xf] %vm688_vm6, %v569_v36  ;;  %v599_v56 = vrot.slane %v597_v50, 7  ;;  %v260_v42 = vsel %vm2766_vm2, 0, %v259_v54  ;;  %v316_v6 = vsel %vm2773_vm5, 0, %v315_v55 }
  0x6a   : > { %v3098_v59 = vld [vmem:[#allocation2 + $0x78] sm:$0xff]  ;;  %774 = vst [vmem:[#allocation2 + $0x98] sm:$0x1] %v773_v49  ;;  %v594_v62 = vor.u32 %v592_v40, %v591_v41  ;;  %v595_v63 = vrot.slane %v591_v41, 4  ;;  %v357_v23 = vld [vmem:[%s2807_s19 + $0x60] sm:$0xf] }
  0x6b   : > { %v782_v3 = vld [vmem:[#allocation2 + $0xa8] sm:$0xf]  ;;  %v3106_v8 = vsel %vm1068_vm9, %v1207_v35, %v1211_v58  ;;  %v1190_v10 = vshrl.u32 %v3098_v59, 16  ;;  %v1192_v18 = vshll.u32 %v3098_v59, 16  ;;  %v602_v20 = vor.u32 %v600_v51, %v599_v56  ;;  %261 = vst [vmem:[#allocation2 + $0x9c] sm:$0x1] %v260_v42 }
  0x6c   : > { %1283 = vrot.lane.b32.xlu2 %v3106_v8, %s2719_s20  ;;  %v918_v24 = vld [vmem:[#allocation2 + $0x80] sm:$0x1]  ;;  %v604_v30 = vrot.slane %v599_v56, 4  ;;  %v783_v32 = vsel %vm2813_vm8, %v594_v62, %v782_v3  ;;  %317 = vst [vmem:[#allocation2 + $0xa4] sm:$0x1] %v316_v6  ;;  %v572_v33 = vshrl.u32 %v357_v23, 16 }
  0x6d   : > { %v1046_v34 = vunpack.c.l.b16 %v918_v24  ;;  %v1194_v35 = vrot.slane %v1192_v18, 1  ;;  %v603_v39 = vsel %vm2782_vm7, %v595_v63, %v602_v20  ;;  %784 = vst [vmem:[#allocation2 + $0xa8] sm:$0xf] %v783_v32  ;;  %v358_v40 = vld [vmem:[%s2807_s19 + $0x64] sm:$0xf]  ;;  %v575_v50 = vshll.u32 %v357_v23, 16 }
  0x6e   : > { %785 = vst.msk [vmem:[#allocation2 + $0xac] sm:$0xf] %vm688_vm6, %v603_v39  ;;  %v786_v36 = vld [vmem:[#allocation2 + $0xb0] sm:$0x1]  ;;  %v574_v49 = vrot.slane %v572_v33, 7  ;;  %v580_v41 = vshrl.u32 %v358_v40, 16 }
  0x6f   : > { %v3119_v51 = vpack.c.b16 %v1046_v34, %v1046_v34  ;;  %v787_v54 = vsel %vm2766_vm2, %v604_v30, %v786_v36  ;;  %v583_v55 = vshll.u32 %v358_v40, 16  ;;  %v265_v58 = vld [vmem:[#allocation2 + $0xb4] sm:$0x1]  ;;  %v321_v56 = vld [vmem:[#allocation2 + $0xbc] sm:$0x1]  ;;  %v1195_v18 = vor.u32 %v1194_v35, %v1190_v10 }
  0x70   : > { %v3123_v42 = vld [vmem:[#allocation2 + $0x90] sm:$0xff]  ;;  %788 = vst [vmem:[#allocation2 + $0xb0] sm:$0x1] %v787_v54  ;;  %v577_v62 = vor.u32 %v575_v50, %v574_v49  ;;  %v578_v63 = vrot.slane %v574_v49, 4  ;;  %v582_v3 = vrot.slane %v580_v41, 7  ;;  %v266_v6 = vsel %vm2766_vm2, 0, %v265_v58 }
  0x71   : > { %v1197_v20 = vshll.u32 %v3119_v51, 16  ;;  %v924_v23 = vld [vmem:[#allocation2 + $0x98] sm:$0x1]  ;;  %267 = vst [vmem:[#allocation2 + $0xb4] sm:$0x1] %v266_v6  ;;  %v322_v24 = vsel %vm2773_vm5, 0, %v321_v56 }
  0x72   : > { %v1048_v30 = vunpack.c.l.b16 %v924_v23  ;;  %v1214_v32 = vshrl.u32 %v3123_v42, 16  ;;  %v1216_v33 = vshll.u32 %v3123_v42, 16  ;;  %v585_v34 = vor.u32 %v583_v55, %v582_v3  ;;  %v775_v39 = vld [vmem:[#allocation2 + $0x9c] sm:$0xf]  ;;  %323 = vst [vmem:[#allocation2 + $0xbc] sm:$0x1] %v322_v24 }
  0x73   : > { %v1199_v40 = vrot.slane %v1197_v20, 1  ;;  %v587_v50 = vrot.slane %v582_v3, 4  ;;  %v776_v10 = vsel %vm2813_vm8, %v577_v62, %v775_v39  ;;  %v779_v35 = vld [vmem:[#allocation2 + $0xa4] sm:$0x1]  ;;  %v361_v36 = vld [vmem:[%s2807_s19 + $0x70] sm:$0xf] }
  0x74   : > { %v3135_v49 = vpack.c.b16 %v1048_v30, %v1048_v30  ;;  %v1218_v41 = vrot.slane %v1216_v33, 1  ;;  %v586_v54 = vsel %vm2782_vm7, %v578_v63, %v585_v34  ;;  %777 = vst [vmem:[#allocation2 + $0x9c] sm:$0xf] %v776_v10  ;;  %v362_v58 = vld [vmem:[%s2807_s19 + $0x74] sm:$0xf]  ;;  %v606_v56 = vshrl.u32 %v361_v36, 16 }
  0x75   : > { %v3141_v55 = vsel %vm1068_vm9, %v1195_v18, %v1199_v40  ;;  %v3143_v6 = vld [vmem:[#allocation2 + $0xa8] sm:$0xff]  ;;  %778 = vst.msk [vmem:[#allocation2 + $0xa0] sm:$0xf] %vm688_vm6, %v586_v54  ;;  %v780_v62 = vsel %vm2766_vm2, %v587_v50, %v779_v35  ;;  %v609_v3 = vshll.u32 %v361_v36, 16  ;;  %v614_v20 = vshrl.u32 %v362_v58, 16 }
  0x76   : > { %1281 = vrot.lane.b32.xlu1 %v3141_v55, %s2719_s20  ;;  %v1219_v23 = vor.u32 %v1218_v41, %v1214_v32  ;;  %v1221_v63 = vshll.u32 %v3135_v49, 16  ;;  %781 = vst [vmem:[#allocation2 + $0xa4] sm:$0x1] %v780_v62  ;;  %v608_v24 = vrot.slane %v606_v56, 7  ;;  %v617_v30 = vshll.u32 %v362_v58, 16 }
  0x77   : > { %v930_v18 = vld [vmem:[#allocation2 + $0xb0] sm:$0x1]  ;;  %v1238_v33 = vshrl.u32 %v3143_v6, 16  ;;  %v1240_v34 = vshll.u32 %v3143_v6, 16  ;;  %v616_v39 = vrot.slane %v614_v20, 7  ;;  %vm1711_vm14 = vcmask 130048  }
  0x78   : > { %v1223_v40 = vrot.slane %v1221_v63, 1  ;;  %v1050_v10 = vunpack.c.l.b16 %v930_v18  ;;  %v611_v50 = vor.u32 %v609_v3, %v608_v24  ;;  %v612_v35 = vrot.slane %v608_v24, 4  ;;  %v789_v36 = vld [vmem:[#allocation2 + $0xb4] sm:$0xf] }
  0x79   : > { %v1242_v54 = vrot.slane %v1240_v34, 1  ;;  %v619_v7 = vor.u32 %v617_v30, %v616_v39  ;;  %v621_v12 = vrot.slane %v616_v39, 4  ;;  %v793_v32 = vld [vmem:[#allocation2 + $0xbc] sm:$0x1]  ;;  %vm1744_vm15 = vcmask 162816  }
  0x7a   : > { %v3154_v41 = vsel %vm1068_vm9, %v1219_v23, %v1223_v40  ;;  %v3156_v56 = vpack.c.b16 %v1050_v10, %v1050_v10  ;;  %v790_v58 = vsel %vm2813_vm8, %v611_v50, %v789_v36  ;;  %v1297_v50 = vrot.slane %v2888_v11, 1 }
  0x7b   : > { %1285 = vrot.lane.b32.xlu0 %v3154_v41, %s2719_s20  ;;  %v620_v62 = vsel %vm2782_vm7, %v612_v35, %v619_v7  ;;  %791 = vst [vmem:[#allocation2 + $0xb4] sm:$0xf] %v790_v58  ;;  %v794_v3 = vsel %vm2766_vm2, %v621_v12, %v793_v32  ;;  %v1243_v20 = vor.u32 %v1242_v54, %v1238_v33  ;;  %v1298_v35 = vrot.slane %v2912_v43, 1 }
  0x7c   : > { %v1245_v63 = vshll.u32 %v3156_v56, 16  ;;  %v3167_v23 = vld [vmem:[#allocation2 + $0x9c] sm:$0xff]  ;;  %792 = vst.msk [vmem:[#allocation2 + $0xb8] sm:$0xf] %vm688_vm6, %v620_v62  ;;  %vm1777_vm0 = vcmask 195584   ;;  %vm1810_vm1 = vcmask 228352  }
  0x7d   : > { %v927_v24 = vld [vmem:[#allocation2 + $0xa4] sm:$0x1]  ;;  %795 = vst [vmem:[#allocation2 + $0xbc] sm:$0x1] %v794_v3  ;;  %v1226_v34 = vshrl.u32 %v3167_v23, 16  ;;  %v1228_v39 = vshll.u32 %v3167_v23, 16 }
  0x7e   : > { %v1247_v30 = vrot.slane %v1245_v63, 1  ;;  %v1049_v18 = vunpack.c.l.b16 %v927_v24  ;;  %v3190_v63 = vsel %vm1293_vm10, %v1297_v50, %v1298_v35  ;;  %v3196_v24 = vld [vmem:[#allocation2] sm:$0xff]  ;;  %vm1843_vm3 = vcmask 261120  }
  0x7f   : > { %v1230_v12 = vrot.slane %v1228_v39, 1  ;;  %vm1876_vm4 = vcmask 293888  }
  0x80   : > { %v3173_v7 = vsel %vm1068_vm9, %v1243_v20, %v1247_v30  ;;  %v3175_v40 = vpack.c.b16 %v1049_v18, %v1049_v18  ;;  %v1294_v30 = vrot.slane %v3196_v24, 1  ;;  %v1295_v18 = vrot.slane %v2851_v22, 1 }
  0x81   : > { %1289 = vrot.lane.b32.xlu2 %v3173_v7, %s2719_s20  ;;  %v1231_v33 = vor.u32 %v1230_v12, %v1226_v34  ;;  %v1306_v12 = vrot.slane %v2853_v27, 1  ;;  %v1301_v27 = vrot.slane %v2883_v5, 1  ;;  %v1309_v5 = vrot.slane %v2921_v0, 1 }
  0x82   : > { %v1233_v10 = vshll.u32 %v3175_v40, 16  ;;  %v1296_v50 = vsel %vm1293_vm10, %v1294_v30, %v1295_v18  ;;  %v1312_v30 = vrot.slane %v2973_v21, 1  ;;  %v1324_v18 = vrot.slane %v3098_v59, 1 }
  0x83   : > { %v3182_v36 = vld [vmem:[#allocation2 + $0xb4] sm:$0xff] }
  0x84   : > { %v1235_v54 = vrot.slane %v1233_v10, 1  ;;  %v933_v32 = vld [vmem:[#allocation2 + $0xbc] sm:$0x1]  ;;  %v1250_v62 = vshrl.u32 %v3182_v36, 16  ;;  %v1252_v3 = vshll.u32 %v3182_v36, 16 }
  0x85   : > { %v1051_v58 = vunpack.c.l.b16 %v933_v32  ;;  %v1304_v32 = vrot.slane %v2970_v14, 1  ;;  %v1310_v14 = vrot.slane %v2938_v28, 1 }
  0x86   : > { %v3187_v20 = vsel %vm1068_vm9, %v1231_v33, %v1235_v54  ;;  %v1254_v43 = vrot.slane %v1252_v3, 1  ;;  %v1307_v33 = vrot.slane %v2867_v44, 1  ;;  %v1300_v54 = vrot.slane %v2869_v46, 1 }
  0x87   : > { %1287 = vrot.lane.b32.xlu1 %v3187_v20, %s2719_s20  ;;  %v3194_v11 = vpack.c.b16 %v1051_v58, %v1051_v58  ;;  %v1303_v44 = vrot.slane %v2951_v52, 1  ;;  %v1315_v58 = vrot.slane %v3019_v48, 1 }
  0x88   : > { %v1255_v34 = vor.u32 %v1254_v43, %v1250_v62  ;;  %v3212_v22 = vsel %vm1293_vm10, %v1306_v12, %v1307_v33  ;;  %v1316_v62 = vrot.slane %v3033_v17, 1  ;;  %v1302_v3 = vsel %vm1293_vm10, %v1300_v54, %v1301_v27 }
  0x89   : > { %v1257_v39 = vshll.u32 %v3194_v11, 16  ;;  %1344 = vrot.lane.b32.xlu2 %v3190_v63, %s2720_s21  ;;  %v3225_v43 = vsel %vm1293_vm10, %v1303_v44, %v1304_v32  ;;  %v1313_v17 = vrot.slane %v2980_v45, 1  ;;  %v1318_v45 = vrot.slane %v2996_v61, 1 }
  0x8a   : > { %v3229_v46 = vsel %vm1293_vm10, %v1315_v58, %v1316_v62  ;;  %v1319_v33 = vrot.slane %v3006_v29, 1  ;;  %v1334_v54 = vrot.slane %v3175_v40, 1  ;;  %v1328_v32 = vrot.slane %v3081_v13, 1 }
  0x8b   : > { %v1259_v10 = vrot.slane %v1257_v39, 1  ;;  %v3242_v39 = vsel %vm1293_vm10, %v1309_v5, %v1310_v14  ;;  %v3245_v12 = vsel %vm1293_vm10, %v1312_v30, %v1313_v17  ;;  %v1330_v40 = vrot.slane %v3123_v42, 1  ;;  %v1270_v30 = vpop.permute.xlu2 %1269  ;;  %v2687_v17 = vld [vmem:[#allocation2 + $0xc] sm:$0xff] }
  0x8c   : > { %v3263_v27 = vsel %vm1293_vm10, %v1318_v45, %v1319_v33  ;;  %v1331_v58 = vrot.slane %v3135_v49, 1  ;;  %v1336_v13 = vrot.slane %v3143_v6, 1  ;;  %v1337_v14 = vrot.slane %v3156_v56, 1 }
  0x8d   : > { %v3207_v35 = vsel %vm1068_vm9, %v1255_v34, %v1259_v10  ;;  %v1325_v34 = vrot.slane %v3119_v51, 1  ;;  %v1321_v51 = vrot.slane %v3046_v47, 1  ;;  %v1322_v10 = vrot.slane %v3064_v31, 1 }
  0x8e   : > { %1291 = vrot.lane.b32.xlu0 %v3207_v35, %s2719_s20  ;;  %v1327_v31 = vrot.slane %v3070_v38, 1  ;;  %v3285_v5 = vsel %vm1293_vm10, %v1330_v40, %v1331_v58  ;;  %v3296_v49 = vsel %vm1293_vm10, %v1336_v13, %v1337_v14 }
  0x8f   : > { %1342 = vrot.lane.b32.xlu1 %v1296_v50, %s2720_s21  ;;  %v3250_v28 = vsel %vm1293_vm10, %v1324_v18, %v1325_v34  ;;  %v1333_v50 = vrot.slane %v3167_v23, 1  ;;  %v3266_v44 = vsel %vm1293_vm10, %v1321_v51, %v1322_v10 }
  0x90   : > { %v3282_v62 = vsel %vm1293_vm10, %v1327_v31, %v1328_v32  ;;  %v3359_v31 = vld [vmem:[#allocation2 + $0x30] sm:$0xff] }
  0x91   : > { %1350 = vrot.lane.b32.xlu2 %v3212_v22, %s2720_s21  ;;  %v3271_v29 = vsel %vm1293_vm10, %v1333_v50, %v1334_v54  ;;  %v1622_v32 = vsel %vm1612_vm12, %v3359_v31, %v1270_v30 }
  0x96   : > { %1346 = vrot.lane.b32.xlu0 %v1302_v3, %s2720_s21 }
  0x97   : > { %1348 = vrot.lane.b32.xlu1 %v3225_v43, %s2720_s21 }
  0x99   : > { %1356 = vrot.lane.b32.xlu2 %v3229_v46, %s2720_s21 }
  0x9d   : > { %v3303_v56 = vpop.permute.xlu2 %1271 }
  0x9e   : > { %1352 = vrot.lane.b32.xlu0 %v3242_v39, %s2720_s21 }
  0x9f   : > { %1354 = vrot.lane.b32.xlu1 %v3245_v12, %s2720_s21 }
  0xa1   : > { %1362 = vrot.lane.b32.xlu2 %v3250_v28, %s2720_s21 }
  0xa6   : > { %1358 = vrot.lane.b32.xlu0 %v3263_v27, %s2720_s21  ;;  %v3329_v34 = vpop.permute.xlu1 %1265 }
  0xa7   : > { %1360 = vrot.lane.b32.xlu1 %v3266_v44, %s2720_s21 }
  0xa9   : > { %1368 = vrot.lane.b32.xlu2 %v3271_v29, %s2720_s21 }
  0xae   : > { %1364 = vrot.lane.b32.xlu0 %v3282_v62, %s2720_s21 }
  0xaf   : > { %1366 = vrot.lane.b32.xlu1 %v3285_v5, %s2720_s21 }
  0xb0   : > { %v3316_v18 = vpop.permute.xlu2 %1277 }
  0xb1   : > { %1426 = vrot.lane.b32.xlu2 %v2931_v15, %s2721_s22  ;;  %v3307_v15 = vld [vmem:[#allocation2 + $0x18] sm:$0xff] }
  0xb6   : > { %1370 = vrot.lane.b32.xlu0 %v3296_v49, %s2720_s21 }
  0xb7   : > { %1379 = vrot.lane.b32.xlu1 %v2687_v17, %s2722_s23 }
  0xb9   : > { %1545 = vrot.lane.b32.xlu2 %v2904_v37, %s2723_s24 }
  0xbd   : > { %v3339_v45 = vpop.permute.xlu1 %1267 }
  0xbe   : > { %1461 = vrot.lane.b32.xlu0 %v3190_v63, %s2724_s25  ;;  %v3321_v63 = vpop.permute.xlu0 %1261 }
  0xbf   : > { %1498 = vrot.lane.b32.xlu1 %v3307_v15, %s2725_s26 }
  0xc1   : > { %1387 = vrot.lane.b32.xlu2 %v2921_v0, %s2722_s23 }
  0xc6   : > { %1580 = vrot.lane.b32.xlu0 %v1302_v3, %s2726_s27  ;;  %v3327_v0 = vpop.permute.xlu2 %1283 }
  0xc7   : > { %1381 = vrot.lane.b32.xlu1 %v3307_v15, %s2722_s23 }
  0xc9   : > { %1463 = vrot.lane.b32.xlu2 %v1302_v3, %s2724_s25  ;;  %v1264_v3 = vpop.permute.xlu0 %1263 }
  0xca   : > { %v1616_v51 = vsel %vm1612_vm12, %v2687_v17, %v1264_v3 }
  0xce   : > { %1428 = vrot.lane.b32.xlu0 %v2904_v37, %s2721_s22 }
  0xcf   : > { %1434 = vrot.lane.b32.xlu1 %v2959_v60, %s2721_s22 }
  0xd0   : > { %v1276_v54 = vpop.permute.xlu1 %1275 }
  0xd1   : > { %1506 = vrot.lane.b32.xlu2 %v2973_v21, %s2725_s26  ;;  %v3347_v33 = vpop.permute.xlu0 %1273  ;;  %v1628_v17 = vsel %vm1612_vm12, %v3019_v48, %v1276_v54  ;;  %v2533_v54 = vld [vmem:[%s3906_s1 + $0x38] sm:$0xff] }
  0xd2   : > { %1974 = vmatpush.bf16.msra.mxu0 %v2533_v54  ;;  %2629 = vmatpush.bf16.msra.mxu1 %v2533_v54 }
  0xd3   : > { %2630 = vmatpush.bf16.msra.mxu2 %v2533_v54  ;;  %2631 = vmatpush.bf16.msra.mxu3 %v2533_v54  ;;  %v2531_v54 = vld [vmem:[%s3906_s1 + $0x28] sm:$0xff] }
  0xd6   : > { %1469 = vrot.lane.b32.xlu0 %v3242_v39, %s2724_s25 }
  0xd7   : > { %1500 = vrot.lane.b32.xlu1 %v2951_v52, %s2725_s26 }
  0xd9   : > { %1582 = vrot.lane.b32.xlu2 %v3225_v43, %s2726_s27  ;;  %v3363_v58 = vpop.permute.xlu0 %1279 }
  0xdb   : > { %v3337_v37 = vpop.permute.xlu2 %1289 }
  0xde   : > { %1547 = vrot.lane.b32.xlu0 %v2989_v53, %s2723_s24 }
  0xdf   : > { %1553 = vrot.lane.b32.xlu1 %v3004_v26, %s2723_s24 }
  0xe1   : > { %1442 = vrot.lane.b32.xlu2 %v3088_v25, %s2721_s22 }
  0xe3   : > { %v1345_v10 = vpop.permute.xlu2 %1344 }
  0xe4   : > { %v3351_v50 = vsel %vm1645_vm11, %v1616_v51, %v1345_v10 }
  0xe6   : > { %1588 = vrot.lane.b32.xlu0 %v3245_v12, %s2726_s27 }
  0xe7   : > { %1395 = vrot.lane.b32.xlu1 %v3046_v47, %s2722_s23 }
  0xe8   : > { %v1282_v14 = vpop.permute.xlu1 %1281 }
  0xe9   : > { %1561 = vrot.lane.b32.xlu2 %v3141_v55, %s2723_s24 }
  0xeb   : > { %v1351_v40 = vpop.permute.xlu2 %1350 }
  0xec   : > { %v3366_v13 = vsel %vm1645_vm11, %v1622_v32, %v1351_v40  ;;  %v1634_v32 = vsel %vm1612_vm12, %v3098_v59, %v1282_v14 }
  0xed   : > { %v3381_v51 = vpop.permute.xlu0 %1285 }
  0xee   : > { %1477 = vrot.lane.b32.xlu0 %v3266_v44, %s2724_s25 }
  0xef   : > { %1514 = vrot.lane.b32.xlu1 %v3098_v59, %s2725_s26 }
  0xf1   : > { %1389 = vrot.lane.b32.xlu2 %v2973_v21, %s2722_s23 }
  0xf3   : > { %v1357_v30 = vpop.permute.xlu2 %1356 }
  0xf4   : > { %v3377_v3 = vsel %vm1645_vm11, %v1628_v17, %v1357_v30  ;;  %v2532_v30 = vld [vmem:[%s3906_s1 + $0x30] sm:$0xff] }
  0xf5   : > { %1975 = vmatpush.bf16.msra.mxu0 %v2532_v30  ;;  %2632 = vmatpush.bf16.msra.mxu1 %v2532_v30 }
  0xf6   : > { %1596 = vrot.lane.b32.xlu0 %v3250_v28, %s2726_s27  ;;  %2633 = vmatpush.bf16.msra.mxu2 %v2532_v30 }
  0xf7   : > { %1383 = vrot.lane.b32.xlu1 %v2951_v52, %s2722_s23  ;;  %2634 = vmatpush.bf16.msra.mxu3 %v2532_v30 }
  0xf9   : > { %v1288_v10 = vpop.permute.xlu1 %1287  ;;  %1465 = vrot.lane.b32.xlu2 %v3225_v43, %s2724_s25  ;;  %1976 = vmatpush.bf16.msra.mxu0 %v2531_v54 }
  0xfa   : > { %2635 = vmatpush.bf16.msra.mxu1 %v2531_v54  ;;  %2636 = vmatpush.bf16.msra.mxu2 %v2531_v54 }
  0xfb   : > { %v1363_v40 = vpop.permute.xlu2 %1362  ;;  %2637 = vmatpush.bf16.msra.mxu3 %v2531_v54 }
  0xfc   : > { %v3393_v17 = vsel %vm1645_vm11, %v1634_v32, %v1363_v40  ;;  %v2530_v40 = vld [vmem:[%s3906_s1 + $0x20] sm:$0xff] }
  0xfd   : > { %1977 = vmatpush.bf16.msra.mxu0 %v2530_v40 }
  0xfe   : > { %1430 = vrot.lane.b32.xlu0 %v2989_v53, %s2721_s22  ;;  %v1640_v53 = vsel %vm1612_vm12, %v3167_v23, %v1288_v10  ;;  %v1618_v10 = vsel %vm1612_vm12, %v3307_v15, %v3329_v34  ;;  %2638 = vmatpush.bf16.msra.mxu1 %v2530_v40 }
  0xff   : > { %1436 = vrot.lane.b32.xlu1 %v3004_v26, %s2721_s22  ;;  %2639 = vmatpush.bf16.msra.mxu2 %v2530_v40 }
 0x100   : > { %v3402_v43 = vpop.permute.xlu0 %1291  ;;  %2640 = vmatpush.bf16.msra.mxu3 %v2530_v40 }
 0x101   : > { %3921 = vst [vmem:[#allocation5_spill] sm:$0xff] %v3402_v43  ;;  %v3404_v14 = vpop.permute.xlu1 %1342  ;;  %1508 = vrot.lane.b32.xlu2 %v3019_v48, %s2725_s26 }
 0x103   : > { %v1369_v32 = vpop.permute.xlu2 %1368 }
 0x104   : > { %v3414_v26 = vsel %vm1645_vm11, %v1640_v53, %v1369_v32  ;;  %v1620_v53 = vsel %vm1612_vm12, %v2951_v52, %v3339_v45  ;;  %v2528_v52 = vld [vmem:[%s3906_s1 + $0x10] sm:$0xff]  ;;  %v3449_v45 = vld [vmem:[#allocation2 + $0x3c] sm:$0xff] }
 0x105   : > { %v1624_v40 = vsel %vm1612_vm12, %v3449_v45, %v3303_v56 }
 0x106   : > { %1471 = vrot.lane.b32.xlu0 %v3245_v12, %s2724_s25  ;;  %v2529_v12 = vld [vmem:[%s3906_s1 + $0x18] sm:$0xff] }
 0x107   : > { %1502 = vrot.lane.b32.xlu1 %v3359_v31, %s2725_s26  ;;  %1978 = vmatpush.bf16.msra.mxu0 %v2529_v12 }
 0x108   : > { %v1347_v30 = vpop.permute.xlu0 %1346  ;;  %2641 = vmatpush.bf16.msra.mxu1 %v2529_v12  ;;  %2642 = vmatpush.bf16.msra.mxu2 %v2529_v12 }
 0x109   : > { %v3430_v54 = vsel %vm1645_vm11, %v1618_v10, %v1347_v30  ;;  %v1349_v32 = vpop.permute.xlu1 %1348  ;;  %1584 = vrot.lane.b32.xlu2 %v3212_v22, %s2726_s27  ;;  %2643 = vmatpush.bf16.msra.mxu3 %v2529_v12  ;;  %v1626_v30 = vsel %vm1612_vm12, %v2973_v21, %v3347_v33  ;;  %v2527_v12 = vld [vmem:[%s3906_s1 + $0x8] sm:$0xff]  ;;  %v2526_v21 = vld [vmem:[%s3906_s1] sm:$0xff]  ;;  %v1630_v33 = vsel %vm1612_vm12, %v2996_v61, %v3316_v18 }
 0x10a   : > { %v3438_v15 = vsel %vm1645_vm11, %v1620_v53, %v1349_v32  ;;  %v1636_v61 = vsel %vm1612_vm12, %v3070_v38, %v3327_v0  ;;  %v1642_v0 = vsel %vm1612_vm12, %v3143_v6, %v3337_v37 }
 0x10b   : > { %v3440_v34 = vpop.permute.xlu2 %1426  ;;  %1979 = vmatpush.bf16.msra.mxu0 %v2528_v52 }
 0x10c   : > { %2644 = vmatpush.bf16.msra.mxu1 %v2528_v52  ;;  %2645 = vmatpush.bf16.msra.mxu2 %v2528_v52 }
 0x10d   : > { %2646 = vmatpush.bf16.msra.mxu3 %v2528_v52 }
 0x10e   : > { %1549 = vrot.lane.b32.xlu0 %v2891_v16, %s2723_s24 }
 0x10f   : > { %1555 = vrot.lane.b32.xlu1 %v3054_v57, %s2723_s24  ;;  %1980 = vmatpush.bf16.msra.mxu0 %v2527_v12 }
 0x110   : > { %v1353_v10 = vpop.permute.xlu0 %1352  ;;  %2647 = vmatpush.bf16.msra.mxu1 %v2527_v12  ;;  %2648 = vmatpush.bf16.msra.mxu2 %v2527_v12 }
 0x111   : > { %v3458_v53 = vsel %vm1645_vm11, %v1624_v40, %v1353_v10  ;;  %v1355_v32 = vpop.permute.xlu1 %1354  ;;  %1403 = vrot.lane.b32.xlu2 %v3167_v23, %s2722_s23  ;;  %2649 = vmatpush.bf16.msra.mxu3 %v2527_v12  ;;  %v1632_v40 = vsel %vm1612_vm12, %v3046_v47, %v3363_v58 }
 0x112   : > { %v3466_v56 = vsel %vm1645_vm11, %v1626_v30, %v1355_v32 }
 0x113   : > { %v1546_v43 = vpop.permute.xlu2 %1545  ;;  %1981 = vmatpush.bf16.msra.mxu0 %v2526_v21 }
 0x114   : > { %2650 = vmatpush.bf16.msra.mxu1 %v2526_v21  ;;  %2651 = vmatpush.bf16.msra.mxu2 %v2526_v21 }
 0x115   : > { %2652 = vmatpush.bf16.msra.mxu3 %v2526_v21 }
 0x116   : > { %1590 = vrot.lane.b32.xlu0 %v3229_v46, %s2726_s27 }
 0x117   : > { %1397 = vrot.lane.b32.xlu1 %v3098_v59, %s2722_s23 }
 0x118   : > { %v1359_v52 = vpop.permute.xlu0 %1358 }
 0x119   : > { %v3482_v10 = vsel %vm1645_vm11, %v1630_v33, %v1359_v52  ;;  %v1361_v30 = vpop.permute.xlu1 %1360  ;;  %1479 = vrot.lane.b32.xlu2 %v3250_v28, %s2724_s25  ;;  %v1638_v28 = vsel %vm1612_vm12, %v3123_v42, %v3381_v51 }
 0x11a   : > { %v3487_v59 = vsel %vm1645_vm11, %v1632_v40, %v1361_v30  ;;  %v1614_v40 = vsel %vm1612_vm12, %v3196_v24, %v3321_v63 }
 0x11b   : > { %v3489_v32 = vpop.permute.xlu2 %1387  ;;  %v1647_v30 = vsel %vm1645_vm11, %v1614_v40, %v3404_v14  ;;  %v3550_v40 = vld [vmem:[#allocation2 + $0x60] sm:$0xff] }
 0x11e   : > { %1444 = vrot.lane.b32.xlu0 %v3141_v55, %s2721_s22 }
 0x11f   : > { %1450 = vrot.lane.b32.xlu1 %v3187_v20, %s2721_s22 }
 0x120   : > { %v1365_v47 = vpop.permute.xlu0 %1364 }
 0x121   : > { %v3502_v18 = vsel %vm1645_vm11, %v1636_v61, %v1365_v47  ;;  %v1367_v58 = vpop.permute.xlu1 %1366  ;;  %1522 = vrot.lane.b32.xlu2 %v3143_v6, %s2725_s26 }
 0x122   : > { %v3507_v55 = vsel %vm1645_vm11, %v1638_v28, %v1367_v58 }
 0x123   : > { %v1464_v12 = vpop.permute.xlu2 %1463 }
 0x126   : > { %1485 = vrot.lane.b32.xlu0 %v3271_v29, %s2724_s25 }
 0x127   : > { %1516 = vrot.lane.b32.xlu1 %v3070_v38, %s2725_s26 }
 0x128   : > { %v1371_v51 = vpop.permute.xlu0 %1370 }
 0x129   : > { %v3517_v21 = vsel %vm1645_vm11, %v1642_v0, %v1371_v51  ;;  %v1380_v33 = vpop.permute.xlu1 %1379  ;;  %1598 = vrot.lane.b32.xlu2 %v3282_v62, %s2726_s27 }
 0x12a   : > { %v1680_v61 = vsel %vm1678_vm13, %v1647_v30, %v1380_v33 }
 0x12b   : > { %v1507_v52 = vpop.permute.xlu2 %1506  ;;  %v1713_v47 = vsel %vm1711_vm14, %v1680_v61, %v3440_v34 }
 0x12e   : > { %1563 = vrot.lane.b32.xlu0 %v3106_v8, %s2723_s24 }
 0x12f   : > { %1569 = vrot.lane.b32.xlu1 %v3173_v7, %s2723_s24 }
 0x130   : > { %v1462_v37 = vpop.permute.xlu0 %1461 }
 0x131   : > { %v1499_v28 = vpop.permute.xlu1 %1498  ;;  %1391 = vrot.lane.b32.xlu2 %v3019_v48, %s2722_s23  ;;  %v1746_v24 = vsel %vm1744_vm15, %v1713_v47, %v1462_v37 }
 0x132   : > { %v1779_v14 = vsel %vm1777_vm0, %v1746_v24, %v1499_v28 }
 0x133   : > { %v1583_v63 = vpop.permute.xlu2 %1582  ;;  %v1812_v58 = vsel %vm1810_vm1, %v1779_v14, %v1546_v43 }
 0x136   : > { %1604 = vrot.lane.b32.xlu0 %v3296_v49, %s2726_s27 }
 0x137   : > { %1385 = vrot.lane.b32.xlu1 %v3359_v31, %s2722_s23 }
 0x138   : > { %v1581_v34 = vpop.permute.xlu0 %1580 }
 0x139   : > { %v1382_v0 = vpop.permute.xlu1 %1381  ;;  %v1845_v48 = vsel %vm1843_vm3, %v1812_v58, %v1581_v34  ;;  %1467 = vrot.lane.b32.xlu2 %v3212_v22, %s2724_s25 }
 0x13a   : > { %2488 = vmatmul.msk.bf16.vlgmr.msra.gmra.mxu0 %vm1876_vm4, %v1845_v48 }
 0x13b   : > { %v1443_v51 = vpop.permute.xlu2 %1442 }
 0x13e   : > { %1432 = vrot.lane.b32.xlu0 %v2891_v16, %s2721_s22  ;;  %v1682_v16 = vsel %vm1678_vm13, %v3351_v50, %v1382_v0  ;;  %v1688_v50 = vsel %vm1678_vm13, %v3366_v13, %v3489_v32 }
 0x13f   : > { %1438 = vrot.lane.b32.xlu1 %v3054_v57, %s2721_s22 }
 0x140   : > { %v1429_v31 = vpop.permute.xlu0 %1428 }
 0x141   : > { %v1435_v33 = vpop.permute.xlu1 %1434  ;;  %1510 = vrot.lane.b32.xlu2 %v3550_v40, %s2725_s26  ;;  %v1715_v61 = vsel %vm1711_vm14, %v1682_v16, %v1429_v31  ;;  %v363_v16 = vld [vmem:[%s2807_s19 + $0x78] sm:$0xf] }
 0x143   : > { %v1562_v43 = vpop.permute.xlu2 %1561 }
 0x146   : > { %1473 = vrot.lane.b32.xlu0 %v3229_v46, %s2724_s25  ;;  %v1748_v46 = vsel %vm1744_vm15, %v1715_v61, %v1464_v12  ;;  %v1721_v12 = vsel %vm1711_vm14, %v1688_v50, %v1435_v33  ;;  %v364_v33 = vld [vmem:[%s2807_s19 + $0x7c] sm:$0xf]  ;;  %v626_v50 = vshll.u32 %v363_v16, 16 }
 0x147   : > { %1504 = vrot.lane.b32.xlu1 %v3449_v45, %s2725_s26  ;;  %v631_v61 = vshrl.u32 %v364_v33, 16 }
 0x148   : > { %v1470_v22 = vpop.permute.xlu0 %1469 }
 0x149   : > { %v1501_v30 = vpop.permute.xlu1 %1500  ;;  %1586 = vrot.lane.b32.xlu2 %v3242_v39, %s2726_s27  ;;  %v1754_v24 = vsel %vm1744_vm15, %v1721_v12, %v1470_v22 }
 0x14a   : > { %v1781_v45 = vsel %vm1777_vm0, %v1748_v46, %v1501_v30  ;;  %v1787_v14 = vsel %vm1777_vm0, %v1754_v24, %v1507_v52 }
 0x14b   : > { %v3562_v57 = vpop.permute.xlu2 %1389 }
 0x14e   : > { %1551 = vrot.lane.b32.xlu0 %v2959_v60, %s2723_s24 }
 0x14f   : > { %1557 = vrot.lane.b32.xlu1 %v3027_v2, %s2723_s24 }
 0x150   : > { %v1548_v37 = vpop.permute.xlu0 %1547 }
 0x151   : > { %v1814_v39 = vsel %vm1810_vm1, %v1781_v45, %v1548_v37  ;;  %v1554_v47 = vpop.permute.xlu1 %1553  ;;  %1405 = vrot.lane.b32.xlu2 %v3143_v6, %s2722_s23  ;;  %v633_v37 = vrot.slane %v631_v61, 7 }
 0x152   : > { %v1847_v60 = vsel %vm1843_vm3, %v1814_v39, %v1583_v63  ;;  %v1820_v6 = vsel %vm1810_vm1, %v1787_v14, %v1554_v47 }
 0x153   : > { %2489 = vmatmul.msk.bf16.gmra.mxu0 %vm1876_vm4, %v1847_v60  ;;  %v3580_v28 = vpop.permute.xlu2 %1465  ;;  %v634_v60 = vshll.u32 %v364_v33, 16  ;;  %v638_v12 = vrot.slane %v633_v37, 4 }
 0x155   : > { %v636_v14 = vor.u32 %v634_v60, %v633_v37  ;;  %v3923_v60 = vld [vmem:[#allocation3_spill] sm:$0xff] }
 0x156   : > { %1592 = vrot.lane.b32.xlu0 %v3263_v27, %s2726_s27 }
 0x157   : > { %1399 = vrot.lane.b32.xlu1 %v3070_v38, %s2722_s23 }
 0x158   : > { %v1589_v13 = vpop.permute.xlu0 %1588 }
 0x159   : > { %v1396_v32 = vpop.permute.xlu1 %1395  ;;  %v1853_v63 = vsel %vm1843_vm3, %v1820_v6, %v1589_v13  ;;  %1481 = vrot.lane.b32.xlu2 %v3282_v62, %s2724_s25 }
 0x15a   : > { %2492 = vmatmul.msk.bf16.vlgmr.msra.gmra.mxu1 %vm1876_vm4, %v1853_v63  ;;  %v1696_v58 = vsel %vm1678_vm13, %v3482_v10, %v1396_v32  ;;  %v324_v10 = vld [vmem:[#allocation2 + $0xc8] sm:$0x1]  ;;  %v1339_v63 = vrot.slane %v3182_v36, 1 }
 0x15b   : > { %v3593_v34 = vpop.permute.xlu2 %1508  ;;  %v1729_v52 = vsel %vm1711_vm14, %v1696_v58, %v1443_v51  ;;  %v1340_v58 = vrot.slane %v3194_v11, 1 }
 0x15e   : > { %1446 = vrot.lane.b32.xlu0 %v3106_v8, %s2721_s22  ;;  %v268_v8 = vld [vmem:[#allocation2 + $0xc0] sm:$0x1] }
 0x15f   : > { %1452 = vrot.lane.b32.xlu1 %v3173_v7, %s2721_s22  ;;  %v325_v7 = vsel %vm2773_vm5, 0, %v324_v10  ;;  %v269_v51 = vsel %vm2766_vm2, 0, %v268_v8  ;;  %v3641_v10 = vsel %vm1293_vm10, %v1339_v63, %v1340_v58  ;;  %v327_v8 = vld [vmem:[#allocation2 + $0xd4] sm:$0x1] }
 0x160   : > { %v1478_v38 = vpop.permute.xlu0 %1477  ;;  %326 = vst [vmem:[#allocation2 + $0xc8] sm:$0x1] %v325_v7  ;;  %v328_v33 = vsel %vm2773_vm5, 0, %v327_v8  ;;  %vm2235_vm5 = vcmask 1041408  }
 0x161   : > { %v1515_v0 = vpop.permute.xlu1 %1514  ;;  %1524 = vrot.lane.b32.xlu2 %v3182_v36, %s2725_s26  ;;  %v1762_v62 = vsel %vm1744_vm15, %v1729_v52, %v1478_v38  ;;  %270 = vst [vmem:[#allocation2 + $0xc0] sm:$0x1] %v269_v51  ;;  %v271_v51 = vld [vmem:[#allocation2 + $0xcc] sm:$0x1] }
 0x162   : > { %v1795_v31 = vsel %vm1777_vm0, %v1762_v62, %v1515_v0  ;;  %329 = vst [vmem:[#allocation2 + $0xd4] sm:$0x1] %v328_v33 }
 0x163   : > { %v3605_v48 = vpop.permute.xlu2 %1584  ;;  %v1828_v30 = vsel %vm1810_vm1, %v1795_v31, %v1562_v43 }
 0x166   : > { %1487 = vrot.lane.b32.xlu0 %v3296_v49, %s2724_s25  ;;  %v623_v49 = vshrl.u32 %v363_v16, 16 }
 0x167   : > { %1518 = vrot.lane.b32.xlu1 %v3123_v42, %s2725_s26  ;;  %v800_v6 = vld [vmem:[#allocation2 + $0xc8] sm:$0x1] }
 0x168   : > { %v1597_v22 = vpop.permute.xlu0 %1596  ;;  %v625_v47 = vrot.slane %v623_v49, 7  ;;  %v796_v13 = vld [vmem:[#allocation2 + $0xc0] sm:$0xf]  ;;  %v801_v32 = vsel %vm2766_vm2, %v638_v12, %v800_v6 }
 0x169   : > { %v1384_v46 = vpop.permute.xlu1 %1383  ;;  %v1861_v45 = vsel %vm1843_vm3, %v1828_v30, %v1597_v22  ;;  %1600 = vrot.lane.b32.xlu2 %v3285_v5, %s2726_s27  ;;  %802 = vst [vmem:[#allocation2 + $0xc8] sm:$0x1] %v801_v32 }
 0x16a   : > { %2496 = vmatmul.msk.bf16.vlgmr.msra.gmra.mxu2 %vm1876_vm4, %v1861_v45  ;;  %v628_v24 = vor.u32 %v626_v50, %v625_v47  ;;  %v629_v43 = vrot.slane %v625_v47, 4  ;;  %v883_v45 = vld [vmem:[#allocation2 + $0xd4] sm:$0x1]  ;;  %v3922_v47 = vld [vmem:[#allocation4_spill] sm:$0xff] }
 0x16b   : > { %v3623_v39 = vpop.permute.xlu2 %1403  ;;  %v884_v50 = vsel %vm2766_vm2, %v3922_v47, %v883_v45 }
 0x16c   : > { %v637_v38 = vsel %vm2782_vm7, %v629_v43, %v636_v14  ;;  %v797_v52 = vsel %vm2813_vm8, %v628_v24, %v796_v13  ;;  %885 = vst [vmem:[#allocation2 + $0xd4] sm:$0x1] %v884_v50 }
 0x16d   : > { %798 = vst [vmem:[#allocation2 + $0xc0] sm:$0xf] %v797_v52 }
 0x16e   : > { %1565 = vrot.lane.b32.xlu0 %v3154_v41, %s2723_s24  ;;  %799 = vst.msk [vmem:[#allocation2 + $0xc4] sm:$0xf] %vm688_vm6, %v637_v38 }
 0x16f   : > { %1571 = vrot.lane.b32.xlu1 %v3207_v35, %s2723_s24 }
 0x170   : > { %v1431_v0 = vpop.permute.xlu0 %1430  ;;  %v936_v43 = vld [vmem:[#allocation2 + $0xc8] sm:$0x1] }
 0x171   : > { %v1437_v62 = vpop.permute.xlu1 %1436  ;;  %1440 = vrot.lane.b32.xlu2 %v3027_v2, %s2721_s22  ;;  %v1684_v2 = vsel %vm1678_vm13, %v3430_v54, %v1384_v46  ;;  %v2692_v54 = vld [vmem:[#allocation2 + $0x6c] sm:$0xff]  ;;  %v1690_v46 = vsel %vm1678_vm13, %v3458_v53, %v3562_v57 }
 0x172   : > { %v1717_v22 = vsel %vm1711_vm14, %v1684_v2, %v1431_v0 }
 0x173   : > { %v3643_v31 = vpop.permute.xlu2 %1479 }
 0x175   : > { %v2524_v19 = vld [vmem:[#allocation2 + $0xc0] sm:$0xff] }
 0x176   : > { %1606 = vrot.lane.b32.xlu0 %v3641_v10, %s2726_s27  ;;  %v1417_v6 = vshll.u32 %v2524_v19, 16  ;;  %v1415_v32 = vshrl.u32 %v2524_v19, 16 }
 0x177   : > { %1393 = vrot.lane.b32.xlu1 %v3550_v40, %s2722_s23  ;;  %v272_v40 = vsel %vm2766_vm2, 0, %v271_v51  ;;  %v939_v51 = vld [vmem:[#allocation2 + $0xd4] sm:$0x1]  ;;  %vm2233_vm2 = vcmask 1040384  }
 0x178   : > { %v1472_v9 = vpop.permute.xlu0 %1471  ;;  %273 = vst [vmem:[#allocation2 + $0xcc] sm:$0x1] %v272_v40 }
 0x179   : > { %v1503_v11 = vpop.permute.xlu1 %1502  ;;  %1559 = vrot.lane.b32.xlu2 %v3088_v25, %s2723_s24  ;;  %v1750_v25 = vsel %vm1744_vm15, %v1717_v22, %v3580_v28  ;;  %v1723_v28 = vsel %vm1711_vm14, %v1690_v46, %v1437_v62 }
 0x17a   : > { %v1783_v30 = vsel %vm1777_vm0, %v1750_v25, %v1503_v11  ;;  %v1756_v49 = vsel %vm1744_vm15, %v1723_v28, %v1472_v9  ;;  %v1458_v11 = vrot.slane %v2524_v19, 1 }
 0x17b   : > { %v3653_v7 = vpop.permute.xlu2 %1522  ;;  %v1789_v57 = vsel %vm1777_vm0, %v1756_v49, %v3593_v34 }
 0x17e   : > { %1475 = vrot.lane.b32.xlu0 %v3263_v27, %s2724_s25 }
 0x17f   : > { %1512 = vrot.lane.b32.xlu1 %v2692_v54, %s2725_s26  ;;  %v879_v37 = vld [vmem:[#allocation2 + $0xcc] sm:$0xf] }
 0x180   : > { %v1550_v4 = vpop.permute.xlu0 %1549  ;;  %v880_v53 = vsel %vm2813_vm8, %v3923_v60, %v879_v37 }
 0x181   : > { %v1816_v16 = vsel %vm1810_vm1, %v1783_v30, %v1550_v4  ;;  %v1556_v61 = vpop.permute.xlu1 %1555  ;;  %1407 = vrot.lane.b32.xlu2 %v3182_v36, %s2722_s23  ;;  %881 = vst [vmem:[#allocation2 + $0xcc] sm:$0xf] %v880_v53  ;;  %v1531_v30 = vunpack.c.l.b16 %v939_v51 }
 0x182   : > { %v1849_v27 = vsel %vm1843_vm3, %v1816_v16, %v3605_v48  ;;  %v1822_v48 = vsel %vm1810_vm1, %v1789_v57, %v1556_v61 }
 0x183   : > { %2490 = vmatmul.msk.bf16.gmra.mxu0 %vm1876_vm4, %v1849_v27  ;;  %v1599_v36 = vpop.permute.xlu2 %1598 }
 0x186   : > { %1594 = vrot.lane.b32.xlu0 %v3266_v44, %s2726_s27  ;;  %v1412_v44 = vunpack.c.l.b16 %v936_v43 }
 0x187   : > { %1401 = vrot.lane.b32.xlu1 %v3123_v42, %s2722_s23 }
 0x188   : > { %v1591_v1 = vpop.permute.xlu0 %1590  ;;  %v1413_v14 = vpack.c.b16 %v1412_v44, %v1412_v44  ;;  %v2525_v54 = vld [vmem:[#allocation2 + $0xcc] sm:$0xff] }
 0x189   : > { %v1398_v12 = vpop.permute.xlu1 %1397  ;;  %v1855_v24 = vsel %vm1843_vm3, %v1822_v48, %v1591_v1  ;;  %1483 = vrot.lane.b32.xlu2 %v3285_v5, %s2724_s25  ;;  %v1419_v5 = vrot.slane %v1417_v6, 1  ;;  %v1534_v45 = vshrl.u32 %v2525_v54, 16 }
 0x18a   : > { %2493 = vmatmul.msk.bf16.gmra.mxu1 %vm1876_vm4, %v1855_v24  ;;  %v1422_v63 = vshll.u32 %v1413_v14, 16  ;;  %v1698_v0 = vsel %vm1678_vm13, %v3487_v59, %v1398_v12  ;;  %v1459_v8 = vrot.slane %v1413_v14, 1 }
 0x18b   : > { %v3698_v42 = vpop.permute.xlu2 %1391  ;;  %v1420_v58 = vor.u32 %v1419_v5, %v1415_v32 }
 0x18c   : > { %v1460_v25 = vsel %vm1293_vm10, %v1458_v11, %v1459_v8 }
 0x18e   : > { %1448 = vrot.lane.b32.xlu0 %v3154_v41, %s2721_s22 }
 0x18f   : > { %1454 = vrot.lane.b32.xlu1 %v3207_v35, %s2721_s22  ;;  %v1424_v35 = vrot.slane %v1422_v63, 1 }
 0x190   : > { %v1445_v34 = vpop.permute.xlu0 %1444 }
 0x191   : > { %v1451_v13 = vpop.permute.xlu1 %1450  ;;  %1526 = vrot.lane.b32.xlu2 %v2524_v19, %s2725_s26  ;;  %v1731_v62 = vsel %vm1711_vm14, %v1698_v0, %v1445_v34  ;;  %v1425_v9 = vsel %vm1068_vm9, %v1420_v58, %v1424_v35 }
 0x193   : > { %v1468_v52 = vpop.permute.xlu2 %1467 }
 0x196   : > { %1489 = vrot.lane.b32.xlu0 %v3641_v10, %s2724_s25 }
 0x197   : > { %1520 = vrot.lane.b32.xlu1 %v3167_v23, %s2725_s26  ;;  %v1764_v23 = vsel %vm1744_vm15, %v1731_v62, %v3643_v31 }
 0x198   : > { %v1486_v41 = vpop.permute.xlu0 %1485 }
 0x199   : > { %v1517_v38 = vpop.permute.xlu1 %1516  ;;  %1602 = vrot.lane.b32.xlu2 %v3271_v29, %s2726_s27 }
 0x19a   : > { %v1797_v2 = vsel %vm1777_vm0, %v1764_v23, %v1517_v38  ;;  %v1692_v38 = vsel %vm1678_vm13, %v3466_v56, %v3698_v42 }
 0x19b   : > { %v1511_v40 = vpop.permute.xlu2 %1510 }
 0x19e   : > { %1567 = vrot.lane.b32.xlu0 %v3187_v20, %s2723_s24  ;;  %v1704_v20 = vsel %vm1678_vm13, %v3507_v55, %v3623_v39  ;;  %v1532_v55 = vpack.c.b16 %v1531_v30, %v1531_v30  ;;  %v1536_v39 = vshll.u32 %v2525_v54, 16 }
 0x19f   : > { %1573 = vrot.lane.b32.xlu1 %v1425_v9, %s2723_s24  ;;  %v1737_v31 = vsel %vm1711_vm14, %v1704_v20, %v1451_v13 }
 0x1a0   : > { %v1564_v29 = vpop.permute.xlu0 %1563  ;;  %v1770_v4 = vsel %vm1744_vm15, %v1737_v31, %v1486_v41  ;;  %v1538_v49 = vrot.slane %v1536_v39, 1  ;;  %v1541_v37 = vshll.u32 %v1532_v55, 16  ;;  %v1578_v60 = vrot.slane %v1532_v55, 1 }
 0x1a1   : > { %v1830_v59 = vsel %vm1810_vm1, %v1797_v2, %v1564_v29  ;;  %v1570_v33 = vpop.permute.xlu1 %1569  ;;  %1409 = vrot.lane.b32.xlu2 %v2524_v19, %s2722_s23  ;;  %v1803_v16 = vsel %vm1777_vm0, %v1770_v4, %v3653_v7 }
 0x1a2   : > { %v1863_v22 = vsel %vm1843_vm3, %v1830_v59, %v1599_v36  ;;  %v1836_v61 = vsel %vm1810_vm1, %v1803_v16, %v1570_v33  ;;  %v1543_v7 = vrot.slane %v1541_v37, 1  ;;  %v1577_v36 = vrot.slane %v2525_v54, 1 }
 0x1a3   : > { %2497 = vmatmul.msk.bf16.gmra.mxu2 %vm1876_vm4, %v1863_v22  ;;  %v1587_v47 = vpop.permute.xlu2 %1586 }
 0x1a4   : > { %v1579_v48 = vsel %vm1293_vm10, %v1577_v36, %v1578_v60 }
 0x1a6   : > { %1608 = vrot.lane.b32.xlu0 %v1460_v25, %s2726_s27 }
 0x1a7   : > { %1372 = vrot.lane.b32.xlu1 %v3641_v10, %s2720_s21  ;;  %v1539_v10 = vor.u32 %v1538_v49, %v1534_v45 }
 0x1a8   : > { %v1605_v46 = vpop.permute.xlu0 %1604 }
 0x1a9   : > { %v1386_v27 = vpop.permute.xlu1 %1385  ;;  %v1869_v28 = vsel %vm1843_vm3, %v1836_v61, %v1605_v46  ;;  %1528 = vrot.lane.b32.xlu2 %v2525_v54, %s2725_s26  ;;  %v1544_v57 = vsel %vm1068_vm9, %v1539_v10, %v1543_v7 }
 0x1aa   : > { %2500 = vmatmul.msk.bf16.vlgmr.msra.gmra.mxu3 %vm1876_vm4, %v1869_v28  ;;  %v1686_v19 = vsel %vm1678_vm13, %v3438_v15, %v1386_v27 }
 0x1ab   : > { %v1406_v1 = vpop.permute.xlu2 %1405 }
 0x1ae   : > { %1456 = vrot.lane.b32.xlu0 %v1425_v9, %s2721_s22  ;;  %s3751_s22 = scalar_lea.vmem %s3907_s2, %s2506_s16  ;;  %s2381_s16 = sshll.u32 %s3930_s12, 3 }
 0x1af   : > { %1491 = vrot.lane.b32.xlu1 %v1460_v25, %s2724_s25  ;;  %s214_s25 = scalar_lea.vmem %s3908_s3, %s2381_s16 }
 0x1b0   : > { %v1433_v50 = vpop.permute.xlu0 %1432 }
 0x1b1   : > { %v1439_v53 = vpop.permute.xlu1 %1438  ;;  %v1719_v44 = vsel %vm1711_vm14, %v1686_v19, %v1433_v50 }
 0x1b2   : > { %v1752_v14 = vsel %vm1744_vm15, %v1719_v44, %v1468_v52  ;;  %v1725_v62 = vsel %vm1711_vm14, %v1692_v38, %v1439_v53 }
 0x1b3   : > { %v1482_v15 = vpop.permute.xlu2 %1481 }
 0x1b6   : > { %1575 = vrot.lane.b32.xlu0 %v1544_v57, %s2723_s24 }
 0x1b7   : > { %v1983_v12 = vpop.f32.mrf.mxu0  ;;  %1610 = vrot.lane.b32.xlu1 %v1579_v48, %s2726_s27 }
 0x1b8   : > { %v1474_v24 = vpop.permute.xlu0 %1473  ;;  %v2164_v34 = vmul.f32 %v1983_v12, %v1983_v12 }
 0x1b9   : > { %v1505_v43 = vpop.permute.xlu1 %1504  ;;  %v1758_v9 = vsel %vm1744_vm15, %v1725_v62, %v1474_v24 }
 0x1ba   : > { %v1785_v13 = vsel %vm1777_vm0, %v1752_v14, %v1505_v43  ;;  %v1791_v23 = vsel %vm1777_vm0, %v1758_v9, %v1511_v40 }
 0x1bb   : > { %v1525_v56 = vpop.permute.xlu2 %1524 }
 0x1bf   : > { %v1985_v6 = vpop.f32.mrf.mxu0 }
 0x1c0   : > { %v2537_v32 = vpack.c.bf16 %v1985_v6, %v1983_v12  ;;  %v2127_v5 = vadd.f32 %v1985_v6, %v1983_v12  ;;  %v2165_v63 = vmul.f32 %v1985_v6, %v1985_v6  ;;  %v1552_v41 = vpop.permute.xlu0 %1551 }
 0x1c1   : > { %v1818_v58 = vsel %vm1810_vm1, %v1785_v13, %v1552_v41  ;;  %v1558_v35 = vpop.permute.xlu1 %1557 }
 0x1c2   : > { %2538 = vst [vmem:[%s3751_s22] sm:$0xff] %v2537_v32   ;;  %v2196_v52 = vadd.f32 %v2165_v63, %v2164_v34  ;;  %v1851_v0 = vsel %vm1843_vm3, %v1818_v58, %v1587_v47  ;;  %v1824_v11 = vsel %vm1810_vm1, %v1791_v23, %v1558_v35 }
 0x1c3   : > { %2491 = vmatmul.msk.bf16.gmra.mxu0 %vm1876_vm4, %v1851_v0  ;;  %v1601_v31 = vpop.permute.xlu2 %1600 }
 0x1c8   : > { %v1593_v8 = vpop.permute.xlu0 %1592 }
 0x1c9   : > { %v1400_v2 = vpop.permute.xlu1 %1399  ;;  %v1857_v29 = vsel %vm1843_vm3, %v1824_v11, %v1593_v8 }
 0x1ca   : > { %2494 = vmatmul.msk.bf16.gmra.mxu1 %vm1876_vm4, %v1857_v29  ;;  %v1700_v39 = vsel %vm1678_vm13, %v3393_v17, %v1400_v2  ;;  %v1706_v17 = vsel %vm1678_vm13, %v3414_v26, %v1406_v1 }
 0x1cb   : > { %v1441_v27 = vpop.permute.xlu2 %1440 }
 0x1d0   : > { %v1988_v42 = vpop.f32.mrf.mxu0  ;;  %v1447_v51 = vpop.permute.xlu0 %1446 }
 0x1d1   : > { %v2128_v59 = vadd.f32 %v2127_v5, %v1988_v42  ;;  %v2166_v33 = vmul.f32 %v1988_v42, %v1988_v42  ;;  %v1453_v20 = vpop.permute.xlu1 %1452  ;;  %v1733_v46 = vsel %vm1711_vm14, %v1700_v39, %v1447_v51 }
 0x1d2   : > { %v1766_v28 = vsel %vm1744_vm15, %v1733_v46, %v1482_v15  ;;  %v1739_v36 = vsel %vm1711_vm14, %v1706_v17, %v1453_v20 }
 0x1d3   : > { %v2197_v22 = vadd.f32 %v2196_v52, %v2166_v33  ;;  %v1560_v12 = vpop.permute.xlu2 %1559 }
 0x1d7   : > { %v3767_v25 = vpop.f32.mrf.mxu1 }
 0x1d8   : > { %v1990_v40 = vpop.f32.mrf.mxu0  ;;  %v1488_v54 = vpop.permute.xlu0 %1487 }
 0x1d9   : > { %v2542_v30 = vpack.c.bf16 %v1990_v40, %v1988_v42  ;;  %v2129_v4 = vadd.f32 %v2128_v59, %v1990_v40  ;;  %v2167_v16 = vmul.f32 %v1990_v40, %v1990_v40  ;;  %v1519_v55 = vpop.permute.xlu1 %1518  ;;  %v1772_v60 = vsel %vm1744_vm15, %v1739_v36, %v1488_v54 }
 0x1da   : > { %v1799_v49 = vsel %vm1777_vm0, %v1766_v28, %v1519_v55  ;;  %v1805_v53 = vsel %vm1777_vm0, %v1772_v60, %v1525_v56 }
 0x1db   : > { %2614 = vst [vmem:[%s3751_s22 + $0x8] sm:$0xff] %v2542_v30   ;;  %v2198_v61 = vadd.f32 %v2197_v22, %v2167_v16  ;;  %v1408_v6 = vpop.permute.xlu2 %1407 }
 0x1df   : > { %v3774_v45 = vpop.f32.mrf.mxu1 }
 0x1e0   : > { %v2557_v37 = vpack.c.bf16 %v3774_v45, %v3767_v25  ;;  %v1566_v47 = vpop.permute.xlu0 %1565 }
 0x1e1   : > { %v1832_v10 = vsel %vm1810_vm1, %v1799_v49, %v1566_v47  ;;  %v1572_v7 = vpop.permute.xlu1 %1571 }
 0x1e2   : > { %2617 = vst [vmem:[%s3751_s22 + $0x20] sm:$0xff] %v2557_v37   ;;  %v1865_v50 = vsel %vm1843_vm3, %v1832_v10, %v1601_v31  ;;  %v1838_v57 = vsel %vm1810_vm1, %v1805_v53, %v1572_v7  ;;  %v2693_v10 = vld [vmem:[#allocation2 + $0xb4] sm:$0xff]  ;;  %v3924_v7 = vld [vmem:[#allocation5_spill] sm:$0xff] }
 0x1e3   : > { %2498 = vmatmul.msk.bf16.gmra.mxu2 %vm1876_vm4, %v1865_v50  ;;  %v1484_v58 = vpop.permute.xlu2 %1483  ;;  %v1644_v17 = vsel %vm1612_vm12, %v2693_v10, %v3924_v7 }
 0x1e8   : > { %v1607_v48 = vpop.permute.xlu0 %1606 }
 0x1e9   : > { %v1394_v24 = vpop.permute.xlu1 %1393  ;;  %v1871_v43 = vsel %vm1843_vm3, %v1838_v57, %v1607_v48 }
 0x1ea   : > { %2501 = vmatmul.msk.bf16.gmra.mxu3 %vm1876_vm4, %v1871_v43  ;;  %v1694_v1 = vsel %vm1678_vm13, %v3377_v3, %v1394_v24 }
 0x1eb   : > { %v1727_v44 = vsel %vm1711_vm14, %v1694_v1, %v1441_v27  ;;  %v1527_v23 = vpop.permute.xlu2 %1526 }
 0x1ed   : > { %v3791_v26 = vpop.f32.mrf.mxu2 }
 0x1f0   : > { %v1476_v19 = vpop.permute.xlu0 %1475 }
 0x1f1   : > { %v1513_v34 = vpop.permute.xlu1 %1512  ;;  %v1760_v14 = vsel %vm1744_vm15, %v1727_v44, %v1476_v19 }
 0x1f2   : > { %v1793_v13 = vsel %vm1777_vm0, %v1760_v14, %v1513_v34 }
 0x1f3   : > { %v1826_v41 = vsel %vm1810_vm1, %v1793_v13, %v1560_v12  ;;  %v1603_v40 = vpop.permute.xlu2 %1602 }
 0x1f5   : > { %v3798_v32 = vpop.f32.mrf.mxu2 }
 0x1f6   : > { %v2577_v5 = vpack.c.bf16 %v3798_v32, %v3791_v26 }
 0x1f8   : > { %2621 = vst [vmem:[%s3751_s22 + $0x40] sm:$0xff] %v2577_v5   ;;  %v1595_v63 = vpop.permute.xlu0 %1594 }
 0x1f9   : > { %v1402_v15 = vpop.permute.xlu1 %1401  ;;  %v1859_v3 = vsel %vm1843_vm3, %v1826_v41, %v1595_v63 }
 0x1fa   : > { %2495 = vmatmul.msk.bf16.gmra.mxu1 %vm1876_vm4, %v1859_v3  ;;  %v1702_v59 = vsel %vm1678_vm13, %v3502_v18, %v1402_v15  ;;  %v1708_v18 = vsel %vm1678_vm13, %v3517_v21, %v1408_v6 }
 0x1fb   : > { %v1410_v21 = vpop.permute.xlu2 %1409 }
 0x200   : > { %v1993_v35 = vpop.f32.mrf.mxu0  ;;  %v1449_v38 = vpop.permute.xlu0 %1448 }
 0x201   : > { %v2130_v52 = vadd.f32 %v2129_v4, %v1993_v35  ;;  %v2168_v0 = vmul.f32 %v1993_v35, %v1993_v35  ;;  %v1455_v62 = vpop.permute.xlu1 %1454  ;;  %v1735_v20 = vsel %vm1711_vm14, %v1702_v59, %v1449_v38 }
 0x202   : > { %v1768_v22 = vsel %vm1744_vm15, %v1735_v20, %v1484_v58 }
 0x203   : > { %v2199_v9 = vadd.f32 %v2198_v61, %v2168_v0  ;;  %v1741_v61 = vsel %vm1711_vm14, %v1708_v18, %v1455_v62  ;;  %v1529_v12 = vpop.permute.xlu2 %1528 }
 0x207   : > { %v3806_v11 = vpop.f32.mrf.mxu1 }
 0x208   : > { %v1995_v8 = vpop.f32.mrf.mxu0  ;;  %v1490_v2 = vpop.permute.xlu0 %1489 }
 0x209   : > { %v2547_v29 = vpack.c.bf16 %v1995_v8, %v1993_v35  ;;  %v2131_v56 = vadd.f32 %v2130_v52, %v1995_v8  ;;  %v2169_v42 = vmul.f32 %v1995_v8, %v1995_v8  ;;  %v1521_v51 = vpop.permute.xlu1 %1520  ;;  %v1774_v46 = vsel %vm1744_vm15, %v1741_v61, %v1490_v2 }
 0x20a   : > { %v1801_v54 = vsel %vm1777_vm0, %v1768_v22, %v1521_v51  ;;  %v1807_v27 = vsel %vm1777_vm0, %v1774_v46, %v1527_v23  ;;  %v2173_v2 = vmul.f32 %v3774_v45, %v3774_v45 }
 0x20b   : > { %2615 = vst [vmem:[%s3751_s22 + $0x10] sm:$0xff] %v2547_v29   ;;  %v2200_v33 = vadd.f32 %v2199_v9, %v2169_v42  ;;  %v2172_v9 = vmul.f32 %v3767_v25, %v3767_v25  ;;  %v2174_v42 = vmul.f32 %v3806_v11, %v3806_v11 }
 0x20f   : > { %v3813_v31 = vpop.f32.mrf.mxu1 }
 0x210   : > { %v2562_v30 = vpack.c.bf16 %v3813_v31, %v3806_v11  ;;  %v1568_v4 = vpop.permute.xlu0 %1567  ;;  %v2175_v22 = vmul.f32 %v3813_v31, %v3813_v31 }
 0x211   : > { %v1834_v16 = vsel %vm1810_vm1, %v1801_v54, %v1568_v4  ;;  %v1574_v55 = vpop.permute.xlu1 %1573 }
 0x212   : > { %2618 = vst [vmem:[%s3751_s22 + $0x28] sm:$0xff] %v2562_v30   ;;  %v1867_v39 = vsel %vm1843_vm3, %v1834_v16, %v1603_v40  ;;  %v1840_v28 = vsel %vm1810_vm1, %v1807_v27, %v1574_v55 }
 0x213   : > { %2499 = vmatmul.msk.bf16.gmra.mxu2 %vm1876_vm4, %v1867_v39 }
 0x218   : > { %v1609_v49 = vpop.permute.xlu0 %1608 }
 0x219   : > { %v1373_v37 = vpop.permute.xlu1 %1372  ;;  %v1873_v47 = vsel %vm1843_vm3, %v1840_v28, %v1609_v49 }
 0x21a   : > { %2502 = vmatmul.msk.bf16.gmra.mxu3 %vm1876_vm4, %v1873_v47  ;;  %v1677_v50 = vsel %vm1645_vm11, %v1644_v17, %v1373_v37 }
 0x21b   : > { %v1710_v60 = vsel %vm1678_vm13, %v1677_v50, %v1410_v21 }
 0x220   : > { %v1457_v36 = vpop.permute.xlu0 %1456 }
 0x221   : > { %v1492_v53 = vpop.permute.xlu1 %1491  ;;  %v1743_v57 = vsel %vm1711_vm14, %v1710_v60, %v1457_v36  ;;  %v2180_v36 = vmul.f32 %v3791_v26, %v3791_v26 }
 0x222   : > { %v1776_v48 = vsel %vm1744_vm15, %v1743_v57, %v1492_v53  ;;  %v2181_v57 = vmul.f32 %v3798_v32, %v3798_v32 }
 0x223   : > { %v1809_v43 = vsel %vm1777_vm0, %v1776_v48, %v1529_v12 }
 0x226   : > { %v3836_v24 = vpop.f32.mrf.mxu2 }
 0x228   : > { %v1576_v1 = vpop.permute.xlu0 %1575 }
 0x229   : > { %v1842_v19 = vsel %vm1810_vm1, %v1809_v43, %v1576_v1  ;;  %v1611_v44 = vpop.permute.xlu1 %1610  ;;  %v2182_v43 = vmul.f32 %v3836_v24, %v3836_v24 }
 0x22a   : > { %v1875_v34 = vsel %vm1843_vm3, %v1842_v19, %v1611_v44 }
 0x22b   : > { %2503 = vmatmul.msk.bf16.gmra.mxu3 %vm1876_vm4, %v1875_v34 }
 0x22d   : > { %v3842_v14 = vpop.f32.mrf.mxu3 }
 0x22e   : > { %v3844_v6 = vpop.f32.mrf.mxu2 }
 0x22f   : > { %v2582_v13 = vpack.c.bf16 %v3844_v6, %v3836_v24  ;;  %v2183_v44 = vmul.f32 %v3844_v6, %v3844_v6 }
 0x231   : > { %2622 = vst [vmem:[%s3751_s22 + $0x48] sm:$0xff] %v2582_v13  }
 0x235   : > { %v3849_v5 = vpop.f32.mrf.mxu3 }
 0x236   : > { %v2597_v63 = vpack.c.bf16 %v3849_v5, %v3842_v14 }
 0x238   : > { %2625 = vst [vmem:[%s3751_s22 + $0x60] sm:$0xff] %v2597_v63  }
 0x240   : > { %v1998_v41 = vpop.f32.mrf.mxu0 }
 0x241   : > { %v2132_v15 = vadd.f32 %v2131_v56, %v1998_v41  ;;  %v2170_v3 = vmul.f32 %v1998_v41, %v1998_v41 }
 0x243   : > { %v2201_v58 = vadd.f32 %v2200_v33, %v2170_v3 }
 0x247   : > { %v2013_v35 = vpop.f32.mrf.mxu1 }
 0x248   : > { %v2000_v38 = vpop.f32.mrf.mxu0  ;;  %v2176_v54 = vmul.f32 %v2013_v35, %v2013_v35 }
 0x249   : > { %v2552_v52 = vpack.c.bf16 %v2000_v38, %v1998_v41  ;;  %v2133_v0 = vadd.f32 %v2132_v15, %v2000_v38  ;;  %v2171_v62 = vmul.f32 %v2000_v38, %v2000_v38 }
 0x24b   : > { %2616 = vst [vmem:[%s3751_s22 + $0x18] sm:$0xff] %v2552_v52   ;;  %v2134_v23 = vadd.f32 %v2133_v0, %v3767_v25  ;;  %v2202_v8 = vadd.f32 %v2201_v58, %v2171_v62 }
 0x24d   : > { %v2135_v29 = vadd.f32 %v2134_v23, %v3774_v45  ;;  %v2203_v56 = vadd.f32 %v2202_v8, %v2172_v9 }
 0x24f   : > { %v2136_v51 = vadd.f32 %v2135_v29, %v3806_v11  ;;  %v2204_v59 = vadd.f32 %v2203_v56, %v2173_v2  ;;  %v2015_v33 = vpop.f32.mrf.mxu1  ;;  %v2189_v29 = vmul.f32 %v3849_v5, %v3849_v5 }
 0x250   : > { %v2567_v20 = vpack.c.bf16 %v2015_v33, %v2013_v35  ;;  %v2177_v16 = vmul.f32 %v2015_v33, %v2015_v33 }
 0x251   : > { %v2205_v25 = vadd.f32 %v2204_v59, %v2174_v42  ;;  %v2137_v40 = vadd.f32 %v2136_v51, %v3813_v31 }
 0x252   : > { %2619 = vst [vmem:[%s3751_s22 + $0x30] sm:$0xff] %v2567_v20  }
 0x253   : > { %v2138_v45 = vadd.f32 %v2137_v40, %v2013_v35  ;;  %v2206_v30 = vadd.f32 %v2205_v25, %v2175_v22 }
 0x255   : > { %v2139_v4 = vadd.f32 %v2138_v45, %v2015_v33  ;;  %v2207_v55 = vadd.f32 %v2206_v30, %v2176_v54 }
 0x257   : > { %v2208_v11 = vadd.f32 %v2207_v55, %v2177_v16 }
 0x266   : > { %v2033_v18 = vpop.f32.mrf.mxu2 }
 0x267   : > { %v2184_v63 = vmul.f32 %v2033_v18, %v2033_v18 }
 0x26d   : > { %v2048_v39 = vpop.f32.mrf.mxu3 }
 0x26e   : > { %v2035_v61 = vpop.f32.mrf.mxu2  ;;  %v2190_v22 = vmul.f32 %v2048_v39, %v2048_v39 }
 0x26f   : > { %v2587_v46 = vpack.c.bf16 %v2035_v61, %v2033_v18  ;;  %v2185_v3 = vmul.f32 %v2035_v61, %v2035_v61 }
 0x271   : > { %2623 = vst [vmem:[%s3751_s22 + $0x50] sm:$0xff] %v2587_v46  }
 0x275   : > { %v2050_v27 = vpop.f32.mrf.mxu3 }
 0x276   : > { %v2602_v28 = vpack.c.bf16 %v2050_v27, %v2048_v39  ;;  %v2191_v40 = vmul.f32 %v2050_v27, %v2050_v27 }
 0x277   : > { %v2018_v49 = vpop.f32.mrf.mxu1 }
 0x278   : > { %2626 = vst [vmem:[%s3751_s22 + $0x68] sm:$0xff] %v2602_v28   ;;  %v2178_v31 = vmul.f32 %v2018_v49, %v2018_v49  ;;  %v2140_v21 = vadd.f32 %v2139_v4, %v2018_v49 }
 0x27a   : > { %v2209_v7 = vadd.f32 %v2208_v11, %v2178_v31 }
 0x27f   : > { %v2020_v37 = vpop.f32.mrf.mxu1 }
 0x280   : > { %v2572_v47 = vpack.c.bf16 %v2020_v37, %v2018_v49  ;;  %v2179_v10 = vmul.f32 %v2020_v37, %v2020_v37  ;;  %v2141_v17 = vadd.f32 %v2140_v21, %v2020_v37 }
 0x282   : > { %2620 = vst [vmem:[%s3751_s22 + $0x38] sm:$0xff] %v2572_v47   ;;  %v2210_v50 = vadd.f32 %v2209_v7, %v2179_v10  ;;  %v2142_v60 = vadd.f32 %v2141_v17, %v3791_v26 }
 0x284   : > { %v2211_v53 = vadd.f32 %v2210_v50, %v2180_v36  ;;  %v2143_v48 = vadd.f32 %v2142_v60, %v3798_v32 }
 0x286   : > { %v2212_v12 = vadd.f32 %v2211_v53, %v2181_v57  ;;  %v2144_v1 = vadd.f32 %v2143_v48, %v3836_v24 }
 0x288   : > { %v2213_v19 = vadd.f32 %v2212_v12, %v2182_v43  ;;  %v2145_v34 = vadd.f32 %v2144_v1, %v3844_v6  ;;  %v2188_v6 = vmul.f32 %v3842_v14, %v3842_v14 }
 0x28a   : > { %v2214_v13 = vadd.f32 %v2213_v19, %v2183_v44  ;;  %v2146_v41 = vadd.f32 %v2145_v34, %v2033_v18 }
 0x28c   : > { %v2215_v15 = vadd.f32 %v2214_v13, %v2184_v63  ;;  %v2147_v32 = vadd.f32 %v2146_v41, %v2035_v61 }
 0x28e   : > { %v2216_v38 = vadd.f32 %v2215_v15, %v2185_v3 }
 0x296   : > { %v2038_v26 = vpop.f32.mrf.mxu2 }
 0x297   : > { %v2186_v58 = vmul.f32 %v2038_v26, %v2038_v26  ;;  %v2148_v35 = vadd.f32 %v2147_v32, %v2038_v26 }
 0x299   : > { %v2217_v24 = vadd.f32 %v2216_v38, %v2186_v58 }
 0x29d   : > { %v2053_v52 = vpop.f32.mrf.mxu3 }
 0x29e   : > { %v2040_v0 = vpop.f32.mrf.mxu2 }
 0x29f   : > { %v2592_v62 = vpack.c.bf16 %v2040_v0, %v2038_v26  ;;  %v2149_v9 = vadd.f32 %v2148_v35, %v2040_v0  ;;  %v2187_v23 = vmul.f32 %v2040_v0, %v2040_v0 }
 0x2a1   : > { %2624 = vst [vmem:[%s3751_s22 + $0x58] sm:$0xff] %v2592_v62   ;;  %v2150_v8 = vadd.f32 %v2149_v9, %v3842_v14  ;;  %v2218_v2 = vadd.f32 %v2217_v24, %v2187_v23  ;;  %v2192_v14 = vmul.f32 %v2053_v52, %v2053_v52 }
 0x2a3   : > { %v2151_v56 = vadd.f32 %v2150_v8, %v3849_v5  ;;  %v2219_v42 = vadd.f32 %v2218_v2, %v2188_v6 }
 0x2a5   : > { %v2152_v51 = vadd.f32 %v2151_v56, %v2048_v39  ;;  %v2220_v59 = vadd.f32 %v2219_v42, %v2189_v29  ;;  %v2055_v33 = vpop.f32.mrf.mxu3 }
 0x2a6   : > { %v2607_v20 = vpack.c.bf16 %v2055_v33, %v2053_v52  ;;  %v2193_v11 = vmul.f32 %v2055_v33, %v2055_v33 }
 0x2a7   : > { %v2221_v25 = vadd.f32 %v2220_v59, %v2190_v22  ;;  %v2153_v54 = vadd.f32 %v2152_v51, %v2050_v27 }
 0x2a8   : > { %2627 = vst [vmem:[%s3751_s22 + $0x70] sm:$0xff] %v2607_v20  }
 0x2a9   : > { %v2222_v45 = vadd.f32 %v2221_v25, %v2191_v40  ;;  %v2154_v4 = vadd.f32 %v2153_v54, %v2053_v52 }
 0x2ab   : > { %v2223_v16 = vadd.f32 %v2222_v45, %v2192_v14  ;;  %v2155_v55 = vadd.f32 %v2154_v4, %v2055_v33 }
 0x2ad   : > { %v2224_v5 = vadd.f32 %v2223_v16, %v2193_v11 }
 0x2ae   : > { %v2058_v30 = vpop.f32.mrf.mxu3 }
 0x2af   : > { %v2194_v18 = vmul.f32 %v2058_v30, %v2058_v30  ;;  %v2156_v61 = vadd.f32 %v2155_v55, %v2058_v30 }
 0x2b1   : > { %v2225_v28 = vadd.f32 %v2224_v5, %v2194_v18 }
 0x2b6   : > { %v2060_v46 = vpop.f32.mrf.mxu3 }
 0x2b7   : > { %v2612_v49 = vpack.c.bf16 %v2060_v46, %v2058_v30  ;;  %v2157_v39 = vadd.f32 %v2156_v61, %v2060_v46  ;;  %v2195_v31 = vmul.f32 %v2060_v46, %v2060_v46 }
 0x2b9   : > { %2628 = vst [vmem:[%s3751_s22 + $0x78] sm:$0xff] %v2612_v49   ;;  %v2158_v37 = vrot.slane %v2157_v39, 4  ;;  %v2226_v27 = vadd.f32 %v2225_v28, %v2195_v31 }
 0x2bb   : > { %v2159_v47 = vadd.f32 %v2158_v37, %v2157_v39  ;;  %v2227_v21 = vrot.slane %v2226_v27, 4 }
 0x2bd   : > { %v2160_v10 = vrot.slane %v2159_v47, 2  ;;  %v2228_v7 = vadd.f32 %v2227_v21, %v2226_v27 }
 0x2bf   : > { %v2161_v17 = vadd.f32 %v2160_v10, %v2159_v47  ;;  %v2229_v50 = vrot.slane %v2228_v7, 2 }
 0x2c1   : > { %v2162_v36 = vrot.slane %v2161_v17, 1  ;;  %v2230_v60 = vadd.f32 %v2229_v50, %v2228_v7 }
 0x2c3   : > { %v2231_v53 = vrot.slane %v2230_v60, 1  ;;  %v2163_v57 = vadd.f32 %v2162_v36, %v2161_v17 }
 0x2c5   : > { %v2232_v48 = vadd.f32 %v2231_v53, %v2230_v60 }
 0x2c7   : > { %v2234_v12 = vsel %vm2233_vm2, %v2163_v57, %v2232_v48 }
 0x2c8   : > { %v2236_v43 = vsel %vm2235_vm5, %v2234_v12, 0.0 }
 0x2c9   : > { %2237 = vst [vmem:[%s214_s25] sm:$0xff] %v2236_v43 }
 0x2ca PF: > { %s14_s14 = sadd.s32 1, %s2716_s14   ;;  %s3925_s12 = smov %s2712_s13 }
 0x2cb   : > { %p11_p5 = scmp.ge.s32.totalorder %s14_s14, 4   ;;  %s3926_s13 = smov %s3928_s15 }
 0x2cd   :  { %13 = sbr.rel (!%p11_p5) target bundleno = 2 (0x2), region = 75 }

// kernel: down_convert_forward.4
= control target key start
LH: loop header
LB: loop body
LE: loop exit
PB: predicated region body
PF: predicated region fallthrough
CT: control target
= control target key end

     0   :  { %s4110_s18 = smov 0   ;;  %s4112_s19 = smov 0   ;;  %s5259_s0 = inlined_call_operand.vmem [shape: bf16[2,16,16,128], index: 0, kind: input, shape index: {}]   ;;  %s5260_s1 = inlined_call_operand.vmem [shape: f32[1,128], index: 1, kind: input, shape index: {}]   ;;  %s5261_s2 = inlined_call_operand.vmem [shape: f32[1,128], index: 2, kind: input, shape index: {}]   ;;  %s5262_s3 = inlined_call_operand.vmem [shape: bf16[1152,128], index: 3, kind: input, shape index: {}]   ;;  %s5263_s4 = inlined_call_operand.vmem [shape: bf16[2,16,16,128], index: 4, kind: output, shape index: {0}]   ;;  %s5264_s5 = inlined_call_operand.vmem [shape: f32[2,1,8,128], index: 5, kind: output, shape index: {1}]  }
   0x1   :  { %s4114_s20 = smov 0  }
   0x2 LB: > { %s28_s21 = sadd.s32 1, %s4073_s19  ;;  %p3349_p0 = scmp.ge.s32.totalorder %s4077_s20, 1  ;;  %s4077_s20 = sphi %s4114_s20, %s16_s20   ;;  %s4073_s19 = sphi %s4112_s19, %s5357_s19   ;;  %s4069_s18 = sphi %s4110_s18, %s5356_s18  }
   0x3   : > { %p30_p1 = scmp.ge.s32.totalorder %s28_s21, 2  ;;  %p206_p2 = scmp.lt.s32.totalorder %s4077_s20, 3 }
   0x5   : > { %s5359_s21 = smov (%p30_p1, %s28_s21), 0  ;;  %p207_p3 = pnand %p3349_p0, %p206_p2 }
   0x7   : > { %210 = sbr.rel (%p207_p3) target bundleno = 788 (0x314), region = 36 }
   0xc   : > { %v3746_v0 = vld [vmem:[%s5262_s3 + $0x38] sm:$0xff]  ;;  %p246_p4 = scmp.lt.s32.totalorder %s4069_s18, 1  ;;  %vm271_vm0 = vcmask 1040384   ;;  %vm272_vm1 = vsmask.f32 256  ;;  %v3745_v1 = vld [vmem:[%s5262_s3 + $0x30] sm:$0xff] }
   0xd   : > { %3985 = vmatpush.bf16.msra.mxu1 %v3746_v0  ;;  %3986 = vmatpush.bf16.msra.mxu2 %v3746_v0  ;;  %vm4138_vm2 = vmand %vm271_vm0, %vm272_vm1  ;;  %v4079_v3 = vmov 0   ;;  %v286_v5 = vld [vmem:[#allocation2 + $0x30] sm:$0x1]  ;;  %v3744_v6 = vld [vmem:[%s5262_s3 + $0x28] sm:$0xff]  ;;  %vm587_vm3 = vsmask.f32 4368 }
   0xe   : > { %s5361_s18 = smov (!%p246_p4, %s4069_s18), 1  ;;  %v4142_v4 = vrot.slane %v4079_v3, 7  ;;  %3987 = vmatpush.bf16.msra.mxu3 %v3746_v0  ;;  %2235 = vmatpush.bf16.msra.mxu0 %v3746_v0  ;;  %v287_v7 = vsel %vm4138_vm2, 0, %v286_v5  ;;  %v4153_v8 = vld [vmem:[%s5260_s1] ss:$0 sm:$0xff]  ;;  %vm4175_vm4 = vmor %vm272_vm1, %vm587_vm3  ;;  %vm910_vm5 = vcmask 1043456  }
   0xf   : > { %s3719_s28 = sshll.u32 %s5361_s18, 7  ;;  %288 = vst [vmem:[#allocation2 + $0x30] sm:$0x1] %v287_v7  ;;  %v298_v9 = vld [vmem:[#allocation2 + $0x60] sm:$0x1]  ;;  %v3742_v49 = vld [vmem:[%s5262_s3 + $0x18] sm:$0xff] }
  0x10   : > { %5290 = vst [vmem:[#allocation3_spill] sm:$0xff] %v4142_v4  ;;  %s4160_s8 = scalar_lea.vmem %s5259_s0, %s3719_s28  ;;  %v4166_v11 = vld [vmem:[%s5261_s2] ss:$0 sm:$0xff]  ;;  %v299_v12 = vsel %vm4138_vm2, 0, %v298_v9  ;;  %v4172_v14 = vrot.slane %v4142_v4, 4  ;;  %v3741_v3 = vld [vmem:[%s5262_s3 + $0x10] sm:$0xff]  ;;  %s5162_s30 = scalar_lea.vmem %s5263_s4, %s3719_s28 }
  0x11   : > { %3988 = vmatpush.bf16.msra.mxu1 %v3745_v1  ;;  %3989 = vmatpush.bf16.msra.mxu2 %v3745_v1  ;;  %v3957_v10 = vld [vmem:[%s4160_s8 + $0x18] sm:$0xff]   ;;  %300 = vst [vmem:[#allocation2 + $0x60] sm:$0x1] %v299_v12  ;;  %v310_v20 = vld [vmem:[#allocation2 + $0x90] sm:$0x1]  ;;  %v3743_v31 = vld [vmem:[%s5262_s3 + $0x20] sm:$0xff] }
  0x12   : > { %v3961_v13 = vld [vmem:[%s4160_s8 + $0x38] sm:$0xff]   ;;  %5291 = vst [vmem:[#allocation4_spill] sm:$0xff] %v4172_v14  ;;  %3990 = vmatpush.bf16.msra.mxu3 %v3745_v1  ;;  %2236 = vmatpush.bf16.msra.mxu0 %v3745_v1  ;;  %v3825_v15 = vunpack.c.l.bf16 %v3957_v10  ;;  %v3826_v16 = vunpack.c.h.bf16 %v3957_v10  ;;  %v311_v22 = vsel %vm4138_vm2, 0, %v310_v20  ;;  %v274_v25 = vld [vmem:[#allocation2] sm:$0x1]  ;;  %v1089_v26 = vsel %vm4175_vm4, %v4172_v14, %v4142_v4  ;;  %s3354_s28 = sshll.u32 %s5361_s18, 3 }
  0x13   : > { %v3841_v18 = vunpack.c.l.bf16 %v3961_v13  ;;  %v3842_v19 = vunpack.c.h.bf16 %v3961_v13  ;;  %v3965_v21 = vld [vmem:[%s4160_s8 + $0x58] sm:$0xff]   ;;  %312 = vst [vmem:[#allocation2 + $0x90] sm:$0x1] %v311_v22  ;;  %v275_v34 = vsel %vm4138_vm2, 0, %v274_v25  ;;  %vm328_vm6 = vsmask.f32 7938  ;;  %s268_s9 = scalar_lea.vmem %s5264_s5, %s3354_s28 }
  0x14   : > { %v3857_v23 = vunpack.c.l.bf16 %v3965_v21  ;;  %v3858_v24 = vunpack.c.h.bf16 %v3965_v21  ;;  %v461_v27 = vmul.f32 %v4153_v8, %v3825_v15  ;;  %v462_v28 = vmul.f32 %v4153_v8, %v3826_v16  ;;  %1097 = vst [vmem:[#allocation2 + $0x4] sm:$0xf] %v1089_v26  ;;  %v289_v35 = vld [vmem:[#allocation2 + $0x3c] sm:$0x1]  ;;  %v4201_v39 = vld [vmem:[%s4160_s8 + $0x20] sm:$0xff]   ;;  %vm4223_vm7 = vmand %vm910_vm5, %vm328_vm6 }
  0x15   : > { %v469_v29 = vmul.f32 %v4153_v8, %v3841_v18  ;;  %v470_v30 = vmul.f32 %v4153_v8, %v3842_v19  ;;  %3991 = vmatpush.bf16.msra.mxu1 %v3744_v6  ;;  %3992 = vmatpush.bf16.msra.mxu2 %v3744_v6  ;;  %276 = vst [vmem:[#allocation2] sm:$0x1] %v275_v34  ;;  %v290_v43 = vsel %vm4138_vm2, 0, %v289_v35  ;;  %v301_v44 = vld [vmem:[#allocation2 + $0x6c] sm:$0x1]  ;;  %v3829_v48 = vunpack.c.l.bf16 %v4201_v39  ;;  %v3962_v35 = vld [vmem:[%s4160_s8 + $0x40] sm:$0xff]   ;;  %vm4502_vm8 = vmand %vm271_vm0, %vm328_vm6 }
  0x16   : > { %v477_v32 = vmul.f32 %v4153_v8, %v3857_v23  ;;  %v478_v33 = vmul.f32 %v4153_v8, %v3858_v24  ;;  %3993 = vmatpush.bf16.msra.mxu3 %v3744_v6  ;;  %2237 = vmatpush.bf16.msra.mxu0 %v3744_v6  ;;  %v497_v36 = vadd.f32 %v4166_v11, %v461_v27  ;;  %v3830_v53 = vunpack.c.h.bf16 %v4201_v39  ;;  %v933_v18 = vld [vmem:[#allocation2 + $0x30] sm:$0xf]  ;;  %v3803_v17 = vld [vmem:[%s5262_s3 + $0x200] sm:$0xff] }
  0x17   : > { %v498_v37 = vadd.f32 %v4166_v11, %v462_v28  ;;  %v505_v38 = vadd.f32 %v4166_v11, %v469_v29  ;;  %v506_v40 = vadd.f32 %v4166_v11, %v470_v30  ;;  %1131 = vst [vmem:[#allocation2 + $0xd0] sm:$0xf] %v1089_v26  ;;  %v302_v57 = vsel %vm4138_vm2, 0, %v301_v44  ;;  %v3740_v29 = vld [vmem:[%s5262_s3 + $0x8] sm:$0xff] }
  0x18   : > { %v513_v41 = vadd.f32 %v4166_v11, %v477_v32  ;;  %v514_v42 = vadd.f32 %v4166_v11, %v478_v33  ;;  %v529_v45 = vmax.f32 %v497_v36, 0.0  ;;  %291 = vst [vmem:[#allocation2 + $0x3c] sm:$0x1] %v290_v43  ;;  %v463_v61 = vmul.f32 %v4153_v8, %v3829_v48  ;;  %v961_v26 = vld [vmem:[#allocation2 + $0x60] sm:$0xf] }
  0x19   : > { %v530_v46 = vmax.f32 %v498_v37, 0.0  ;;  %v537_v47 = vmax.f32 %v505_v38, 0.0  ;;  %3994 = vmatpush.bf16.msra.mxu1 %v3743_v31  ;;  %3995 = vmatpush.bf16.msra.mxu2 %v3743_v31  ;;  %v538_v50 = vmax.f32 %v506_v40, 0.0  ;;  %303 = vst [vmem:[#allocation2 + $0x6c] sm:$0x1] %v302_v57  ;;  %v464_v48 = vmul.f32 %v4153_v8, %v3830_v53 }
  0x1a   : > { %v545_v51 = vmax.f32 %v513_v41, 0.0  ;;  %v546_v52 = vmax.f32 %v514_v42, 0.0  ;;  %3996 = vmatpush.bf16.msra.mxu3 %v3743_v31  ;;  %2238 = vmatpush.bf16.msra.mxu0 %v3743_v31  ;;  %v561_v54 = vpack.c.bf16 %v529_v45, %v529_v45  ;;  %v989_v34 = vld [vmem:[#allocation2 + $0x90] sm:$0xf]  ;;  %v313_v41 = vld [vmem:[#allocation2 + $0x9c] sm:$0x1] }
  0x1b   : > { %v562_v55 = vpack.c.bf16 %v530_v46, %v530_v46  ;;  %v569_v56 = vpack.c.bf16 %v537_v47, %v537_v47  ;;  %v570_v58 = vpack.c.bf16 %v538_v50, %v538_v50  ;;  %v3966_v42 = vld [vmem:[%s4160_s8 + $0x60] sm:$0xff]   ;;  %v3845_v50 = vunpack.c.l.bf16 %v3962_v35 }
  0x1c   : > { %v577_v59 = vpack.c.bf16 %v545_v51, %v545_v51  ;;  %v578_v60 = vpack.c.bf16 %v546_v52, %v546_v52  ;;  %v641_v62 = vshrl.u32 %v561_v54, 16  ;;  %v644_v63 = vshll.u32 %v561_v54, 16  ;;  %v1094_v28 = vld [vmem:[#allocation2] sm:$0xf]  ;;  %v277_v51 = vld [vmem:[#allocation2 + $0xc] sm:$0x1] }
  0x1d   : > { %v649_v0 = vshrl.u32 %v562_v55, 16  ;;  %v652_v1 = vshll.u32 %v562_v55, 16  ;;  %3997 = vmatpush.bf16.msra.mxu1 %v3742_v49  ;;  %3998 = vmatpush.bf16.msra.mxu2 %v3742_v49  ;;  %v709_v5 = vshrl.u32 %v569_v56, 16  ;;  %v712_v6 = vshll.u32 %v569_v56, 16  ;;  %v4257_v52 = vld [vmem:[%s4160_s8] sm:$0xff]  }
  0x1e   : > { %v717_v7 = vshrl.u32 %v570_v58, 16  ;;  %v720_v9 = vshll.u32 %v570_v58, 16  ;;  %3999 = vmatpush.bf16.msra.mxu3 %v3742_v49  ;;  %2239 = vmatpush.bf16.msra.mxu0 %v3742_v49  ;;  %v643_v10 = vrot.slane %v641_v62, 7  ;;  %v777_v13 = vshrl.u32 %v577_v59, 16  ;;  %v3739_v54 = vld [vmem:[%s5262_s3] sm:$0xff]  ;;  %v3762_v62 = vld [vmem:[%s5262_s3 + $0xb8] sm:$0xff] }
  0x1f   : > { %v4219_v12 = vrot.slane %v649_v0, 7  ;;  %v780_v15 = vshll.u32 %v577_v59, 16  ;;  %v711_v19 = vrot.slane %v709_v5, 7  ;;  %v785_v21 = vshrl.u32 %v578_v60, 16 }
  0x20   : > { %v4227_v20 = vrot.slane %v717_v7, 7  ;;  %v788_v22 = vshll.u32 %v578_v60, 16  ;;  %v646_v23 = vor.u32 %v644_v63, %v643_v10  ;;  %v647_v24 = vrot.slane %v643_v10, 4  ;;  %v3770_v63 = vld [vmem:[%s5262_s3 + $0xf8] sm:$0xff] }
  0x21   : > { %v654_v25 = vor.u32 %v652_v1, %v4219_v12  ;;  %v779_v27 = vrot.slane %v777_v13, 7  ;;  %4000 = vmatpush.bf16.msra.mxu1 %v3741_v3  ;;  %4001 = vmatpush.bf16.msra.mxu2 %v3741_v3  ;;  %v714_v30 = vor.u32 %v712_v6, %v711_v19  ;;  %v715_v31 = vrot.slane %v711_v19, 4  ;;  %v3754_v6 = vld [vmem:[%s5262_s3 + $0x78] sm:$0xff] }
  0x22   : > { %v722_v32 = vor.u32 %v720_v9, %v4227_v20  ;;  %v4234_v33 = vrot.slane %v785_v21, 7  ;;  %4002 = vmatpush.bf16.msra.mxu3 %v3741_v3  ;;  %2240 = vmatpush.bf16.msra.mxu0 %v3741_v3  ;;  %v934_v37 = vsel %vm4223_vm7, %v646_v23, %v933_v18  ;;  %v1095_v46 = vsel %vm4223_vm7, %v4142_v4, %v1094_v28  ;;  %v3778_v7 = vld [vmem:[%s5262_s3 + $0x138] sm:$0xff]  ;;  %v3761_v23 = vld [vmem:[%s5262_s3 + $0xb0] sm:$0xff] }
  0x23   : > { %v655_v36 = vsel %vm4175_vm4, %v647_v24, %v654_v25  ;;  %v782_v38 = vor.u32 %v780_v15, %v779_v27  ;;  %v783_v40 = vrot.slane %v779_v27, 4  ;;  %935 = vst [vmem:[#allocation2 + $0x30] sm:$0xf] %v934_v37  ;;  %v962_v44 = vsel %vm4223_vm7, %v714_v30, %v961_v26 }
  0x24   : > { %v723_v43 = vsel %vm4175_vm4, %v715_v31, %v722_v32  ;;  %v790_v45 = vor.u32 %v788_v22, %v4234_v33  ;;  %936 = vst [vmem:[#allocation2 + $0x34] sm:$0xf] %v655_v36  ;;  %v499_v49 = vadd.f32 %v4166_v11, %v463_v61  ;;  %v3846_v56 = vunpack.c.h.bf16 %v3962_v35  ;;  %v292_v61 = vld [vmem:[#allocation2 + $0x48] sm:$0x1]  ;;  %v3753_v35 = vld [vmem:[%s5262_s3 + $0x70] sm:$0xff] }
  0x25   : > { %v990_v47 = vsel %vm4223_vm7, %v782_v38, %v989_v34  ;;  %4003 = vmatpush.bf16.msra.mxu1 %v3740_v29  ;;  %4004 = vmatpush.bf16.msra.mxu2 %v3740_v29  ;;  %963 = vst [vmem:[#allocation2 + $0x60] sm:$0xf] %v962_v44  ;;  %v314_v39 = vsel %vm4138_vm2, 0, %v313_v41  ;;  %v3861_v53 = vunpack.c.l.bf16 %v3966_v42  ;;  %v500_v57 = vadd.f32 %v4166_v11, %v464_v48 }
  0x26   : > { %v791_v55 = vsel %vm4175_vm4, %v783_v40, %v790_v45  ;;  %4005 = vmatpush.bf16.msra.mxu3 %v3740_v29  ;;  %2241 = vmatpush.bf16.msra.mxu0 %v3740_v29  ;;  %964 = vst [vmem:[#allocation2 + $0x64] sm:$0xf] %v723_v43  ;;  %v531_v58 = vmax.f32 %v499_v49, 0.0  ;;  %v471_v59 = vmul.f32 %v4153_v8, %v3845_v50  ;;  %v3862_v60 = vunpack.c.h.bf16 %v3966_v42  ;;  %v3769_v29 = vld [vmem:[%s5262_s3 + $0xf0] sm:$0xff]  ;;  %v940_v40 = vld [vmem:[#allocation2 + $0x3c] sm:$0xf] }
  0x27   : > { %991 = vst [vmem:[#allocation2 + $0x90] sm:$0xf] %v990_v47  ;;  %v472_v0 = vmul.f32 %v4153_v8, %v3846_v56  ;;  %v479_v1 = vmul.f32 %v4153_v8, %v3861_v53  ;;  %v278_v3 = vsel %vm4138_vm2, 0, %v277_v51  ;;  %v3813_v5 = vunpack.c.l.bf16 %v4257_v52  ;;  %v3777_v47 = vld [vmem:[%s5262_s3 + $0x130] sm:$0xff] }
  0x28   : > { %992 = vst [vmem:[#allocation2 + $0x94] sm:$0xf] %v791_v55  ;;  %v532_v9 = vmax.f32 %v500_v57, 0.0  ;;  %v563_v10 = vpack.c.bf16 %v531_v58, %v531_v58  ;;  %v507_v13 = vadd.f32 %v4166_v11, %v471_v59  ;;  %v480_v15 = vmul.f32 %v4153_v8, %v3862_v60  ;;  %v3760_v57 = vld [vmem:[%s5262_s3 + $0xa8] sm:$0xff] }
  0x29   : > { %4006 = vmatpush.bf16.msra.mxu1 %v3739_v54  ;;  %4007 = vmatpush.bf16.msra.mxu2 %v3739_v54  ;;  %1096 = vst [vmem:[#allocation2] sm:$0xf] %v1095_v46  ;;  %v508_v18 = vadd.f32 %v4166_v11, %v472_v0  ;;  %v515_v19 = vadd.f32 %v4166_v11, %v479_v1  ;;  %v3814_v21 = vunpack.c.h.bf16 %v4257_v52  ;;  %v293_v22 = vsel %vm4138_vm2, 0, %v292_v61  ;;  %v3768_v58 = vld [vmem:[%s5262_s3 + $0xe8] sm:$0xff] }
  0x2a   : > { %4008 = vmatpush.bf16.msra.mxu3 %v3739_v54  ;;  %2242 = vmatpush.bf16.msra.mxu0 %v3739_v54  ;;  %v564_v24 = vpack.c.bf16 %v532_v9, %v532_v9  ;;  %v658_v25 = vshrl.u32 %v563_v10, 16  ;;  %v661_v26 = vshll.u32 %v563_v10, 16  ;;  %v539_v27 = vmax.f32 %v507_v13, 0.0  ;;  %315 = vst [vmem:[#allocation2 + $0x9c] sm:$0x1] %v314_v39  ;;  %v3959_v59 = vld [vmem:[%s4160_s8 + $0x28] sm:$0xff]  }
  0x2b   : > { %v3725_v28 = vld [vmem:[#allocation2 + $0x30] sm:$0xff]  ;;  %v540_v30 = vmax.f32 %v508_v18, 0.0  ;;  %v516_v31 = vadd.f32 %v4166_v11, %v480_v15  ;;  %v547_v32 = vmax.f32 %v515_v19, 0.0  ;;  %279 = vst [vmem:[#allocation2 + $0xc] sm:$0x1] %v278_v3  ;;  %v455_v34 = vmul.f32 %v4153_v8, %v3813_v5  ;;  %v3752_v1 = vld [vmem:[%s5262_s3 + $0x68] sm:$0xff] }
  0x2c   : > { %v660_v36 = vrot.slane %v658_v25, 7  ;;  %v666_v37 = vshrl.u32 %v564_v24, 16  ;;  %v669_v38 = vshll.u32 %v564_v24, 16  ;;  %v571_v41 = vpack.c.bf16 %v539_v27, %v539_v27  ;;  %2263 = vmatmul.bf16.vlgmr.msra.gmra.mxu1 %v3725_v28  ;;  %294 = vst [vmem:[#allocation2 + $0x48] sm:$0x1] %v293_v22  ;;  %v3776_v3 = vld [vmem:[%s5262_s3 + $0x128] sm:$0xff] }
  0x2d   : > { %2413 = vmatpush.bf16.msrb.mxu2 %v3762_v62  ;;  %2324 = vmatpush.bf16.msrb.mxu1 %v3754_v6  ;;  %v3729_v42 = vld [vmem:[#allocation2 + $0x60] sm:$0xff]  ;;  %v572_v43 = vpack.c.bf16 %v540_v30, %v540_v30  ;;  %v548_v44 = vmax.f32 %v516_v31, 0.0  ;;  %v579_v45 = vpack.c.bf16 %v547_v32, %v547_v32  ;;  %v456_v46 = vmul.f32 %v4153_v8, %v3814_v21  ;;  %v968_v39 = vld [vmem:[#allocation2 + $0x6c] sm:$0xf]  ;;  %v304_v19 = vld [vmem:[#allocation2 + $0x78] sm:$0x1] }
  0x2e   : > { %2502 = vmatpush.bf16.msrb.mxu3 %v3770_v63  ;;  %2591 = vmatpush.bf16.msrb.mxu0 %v3778_v7  ;;  %v663_v48 = vor.u32 %v661_v26, %v660_v36  ;;  %v664_v49 = vrot.slane %v660_v36, 4  ;;  %v4307_v50 = vrot.slane %v666_v37, 7  ;;  %v726_v51 = vshrl.u32 %v571_v41, 16  ;;  %v3767_v26 = vld [vmem:[%s5262_s3 + $0xe0] sm:$0xff] }
  0x2f   : > { %2283 = vmatmul.bf16.vlgmr.msra.gmra.mxu2 %v3729_v42  ;;  %v3733_v52 = vld [vmem:[#allocation2 + $0x90] sm:$0xff]  ;;  %v729_v54 = vshll.u32 %v571_v41, 16  ;;  %v734_v55 = vshrl.u32 %v572_v43, 16  ;;  %v737_v56 = vshll.u32 %v572_v43, 16  ;;  %v580_v53 = vpack.c.bf16 %v548_v44, %v548_v44  ;;  %v3759_v30 = vld [vmem:[%s5262_s3 + $0xa0] sm:$0xff] }
  0x30   : > { %v4316_v60 = vld [vmem:[#allocation2] sm:$0xff]  ;;  %v671_v61 = vor.u32 %v669_v38, %v4307_v50  ;;  %v941_v62 = vsel %vm4223_vm7, %v663_v48, %v940_v40  ;;  %v728_v63 = vrot.slane %v726_v51, 7  ;;  %v794_v0 = vshrl.u32 %v579_v45, 16  ;;  %2303 = vmatmul.bf16.vlgmr.msra.gmra.mxu3 %v3733_v52  ;;  %v316_v40 = vld [vmem:[#allocation2 + $0xa8] sm:$0x1] }
  0x31   : > { %2414 = vmatpush.bf16.msrb.mxu2 %v3761_v23  ;;  %2325 = vmatpush.bf16.msrb.mxu1 %v3753_v35  ;;  %942 = vst [vmem:[#allocation2 + $0x3c] sm:$0xf] %v941_v62  ;;  %v4327_v5 = vrot.slane %v734_v55, 7  ;;  %v797_v6 = vshll.u32 %v579_v45, 16  ;;  %v802_v7 = vshrl.u32 %v580_v53, 16  ;;  %v805_v9 = vshll.u32 %v580_v53, 16 }
  0x32   : > { %2503 = vmatpush.bf16.msrb.mxu3 %v3769_v29  ;;  %2592 = vmatpush.bf16.msrb.mxu0 %v3777_v47  ;;  %v672_v10 = vsel %vm4175_vm4, %v664_v49, %v671_v61  ;;  %v731_v13 = vor.u32 %v729_v54, %v728_v63  ;;  %v732_v15 = vrot.slane %v728_v63, 4  ;;  %v796_v18 = vrot.slane %v794_v0, 7  ;;  %v996_v23 = vld [vmem:[#allocation2 + $0x9c] sm:$0xf]  ;;  %v3751_v31 = vld [vmem:[%s5262_s3 + $0x60] sm:$0xff]  ;;  %v3967_v55 = vld [vmem:[%s4160_s8 + $0x68] sm:$0xff]  }
  0x33   : > { %2243 = vmatmul.bf16.vlgmr.msra.gmra.mxu0 %v4316_v60  ;;  %943 = vst [vmem:[#allocation2 + $0x40] sm:$0xf] %v672_v10  ;;  %v739_v21 = vor.u32 %v737_v56, %v4327_v5  ;;  %v4333_v22 = vrot.slane %v802_v7, 7  ;;  %v491_v24 = vadd.f32 %v4166_v11, %v455_v34  ;;  %v492_v25 = vadd.f32 %v4166_v11, %v456_v46  ;;  %v3963_v34 = vld [vmem:[%s4160_s8 + $0x48] sm:$0xff]   ;;  %v3758_v56 = vld [vmem:[%s5262_s3 + $0x98] sm:$0xff] }
  0x34   : > { %v969_v27 = vsel %vm4223_vm7, %v731_v13, %v968_v39  ;;  %v799_v28 = vor.u32 %v797_v6, %v796_v18  ;;  %v800_v29 = vrot.slane %v796_v18, 4  ;;  %v3833_v32 = vunpack.c.l.bf16 %v3959_v59 }
  0x35   : > { %2415 = vmatpush.bf16.msrb.mxu2 %v3760_v57  ;;  %2326 = vmatpush.bf16.msrb.mxu1 %v3752_v1  ;;  %v740_v35 = vsel %vm4175_vm4, %v732_v15, %v739_v21  ;;  %970 = vst [vmem:[#allocation2 + $0x6c] sm:$0xf] %v969_v27  ;;  %v807_v36 = vor.u32 %v805_v9, %v4333_v22  ;;  %v523_v37 = vmax.f32 %v491_v24, 0.0  ;;  %v524_v38 = vmax.f32 %v492_v25, 0.0  ;;  %v912_v9 = vld [vmem:[#allocation2 + $0xc] sm:$0xf] }
  0x36   : > { %2504 = vmatpush.bf16.msrb.mxu3 %v3768_v58  ;;  %2593 = vmatpush.bf16.msrb.mxu0 %v3776_v3  ;;  %971 = vst [vmem:[#allocation2 + $0x70] sm:$0xf] %v740_v35  ;;  %v997_v41 = vsel %vm4223_vm7, %v799_v28, %v996_v23  ;;  %v3834_v42 = vunpack.c.h.bf16 %v3959_v59  ;;  %v465_v43 = vmul.f32 %v4153_v8, %v3833_v32  ;;  %v305_v44 = vsel %vm4138_vm2, 0, %v304_v19 }
  0x37   : > { %v808_v45 = vsel %vm4175_vm4, %v800_v29, %v807_v36  ;;  %998 = vst [vmem:[#allocation2 + $0x9c] sm:$0xf] %v997_v41  ;;  %v555_v46 = vpack.c.bf16 %v523_v37, %v523_v37  ;;  %v556_v47 = vpack.c.bf16 %v524_v38, %v524_v38  ;;  %v3849_v48 = vunpack.c.l.bf16 %v3963_v34 }
  0x38   : > { %999 = vst [vmem:[#allocation2 + $0xa0] sm:$0xf] %v808_v45  ;;  %v466_v49 = vmul.f32 %v4153_v8, %v3834_v42  ;;  %v501_v51 = vadd.f32 %v4166_v11, %v465_v43  ;;  %v3850_v52 = vunpack.c.h.bf16 %v3963_v34  ;;  %v317_v54 = vsel %vm4138_vm2, 0, %v316_v40  ;;  %v3766_v42 = vld [vmem:[%s5262_s3 + $0xd8] sm:$0xff]  ;;  %v947_v43 = vld [vmem:[#allocation2 + $0x48] sm:$0xf] }
  0x39   : > { %2416 = vmatpush.bf16.msrb.mxu2 %v3759_v30  ;;  %2327 = vmatpush.bf16.msrb.mxu1 %v3751_v31  ;;  %v590_v39 = vshrl.u32 %v555_v46, 16  ;;  %v593_v53 = vshll.u32 %v555_v46, 16  ;;  %v598_v57 = vshrl.u32 %v556_v47, 16  ;;  %v601_v58 = vshll.u32 %v556_v47, 16  ;;  %306 = vst [vmem:[#allocation2 + $0x78] sm:$0x1] %v305_v44 }
  0x3a   : > { %2505 = vmatpush.bf16.msrb.mxu3 %v3767_v26  ;;  %v4367_v59 = vld [vmem:[#allocation2 + $0x3c] sm:$0xff]  ;;  %v502_v61 = vadd.f32 %v4166_v11, %v466_v49  ;;  %v533_v62 = vmax.f32 %v501_v51, 0.0  ;;  %v473_v63 = vmul.f32 %v4153_v8, %v3849_v48  ;;  %v474_v0 = vmul.f32 %v4153_v8, %v3850_v52  ;;  %318 = vst [vmem:[#allocation2 + $0xa8] sm:$0x1] %v317_v54  ;;  %v4380_v30 = vld [vmem:[%s4160_s8 + $0x8] sm:$0xff]  }
  0x3b   : > { %v592_v1 = vrot.slane %v590_v39, 7  ;;  %v4372_v3 = vrot.slane %v598_v57, 7  ;;  %v3865_v6 = vunpack.c.l.bf16 %v3967_v55  ;;  %v3866_v7 = vunpack.c.h.bf16 %v3967_v55  ;;  %v280_v47 = vld [vmem:[#allocation2 + $0x18] sm:$0x1]  ;;  %v3775_v55 = vld [vmem:[%s5262_s3 + $0x120] sm:$0xff]  ;;  %v3757_v39 = vld [vmem:[%s5262_s3 + $0x90] sm:$0xff] }
  0x3c   : > { %v534_v10 = vmax.f32 %v502_v61, 0.0  ;;  %v565_v13 = vpack.c.bf16 %v533_v62, %v533_v62  ;;  %v509_v15 = vadd.f32 %v4166_v11, %v473_v63  ;;  %v510_v18 = vadd.f32 %v4166_v11, %v474_v0  ;;  %2268 = vmatmul.bf16.gmra.mxu1 %v4367_v59  ;;  %v3765_v62 = vld [vmem:[%s5262_s3 + $0xd0] sm:$0xff]  ;;  %2594 = vmatpush.bf16.msrb.mxu0 %v3775_v55 }
  0x3d   : > { %2417 = vmatpush.bf16.msrb.mxu2 %v3758_v56  ;;  %v3730_v19 = vld [vmem:[#allocation2 + $0x6c] sm:$0xff]  ;;  %v595_v21 = vor.u32 %v593_v53, %v592_v1  ;;  %v596_v23 = vrot.slane %v592_v1, 4  ;;  %v603_v24 = vor.u32 %v601_v58, %v4372_v3  ;;  %v481_v25 = vmul.f32 %v4153_v8, %v3865_v6  ;;  %v3750_v56 = vld [vmem:[%s5262_s3 + $0x58] sm:$0xff] }
  0x3e   : > { %v566_v26 = vpack.c.bf16 %v534_v10, %v534_v10  ;;  %v675_v27 = vshrl.u32 %v565_v13, 16  ;;  %v678_v28 = vshll.u32 %v565_v13, 16  ;;  %v541_v29 = vmax.f32 %v509_v15, 0.0  ;;  %2506 = vmatpush.bf16.msrb.mxu3 %v3766_v42  ;;  %2328 = vmatpush.bf16.msrb.mxu1 %v3750_v56 }
  0x3f   : > { %2288 = vmatmul.bf16.gmra.mxu2 %v3730_v19  ;;  %v3734_v31 = vld [vmem:[#allocation2 + $0x9c] sm:$0xff]  ;;  %v604_v32 = vsel %vm4175_vm4, %v596_v23, %v603_v24  ;;  %v913_v34 = vsel %vm4223_vm7, %v595_v21, %v912_v9  ;;  %v542_v35 = vmax.f32 %v510_v18, 0.0  ;;  %v482_v36 = vmul.f32 %v4153_v8, %v3866_v7  ;;  %v3749_v9 = vld [vmem:[%s5262_s3 + $0x50] sm:$0xff] }
  0x40   : > { %914 = vst [vmem:[#allocation2 + $0xc] sm:$0xf] %v913_v34  ;;  %v677_v37 = vrot.slane %v675_v27, 7  ;;  %v683_v38 = vshrl.u32 %v566_v26, 16  ;;  %v686_v40 = vshll.u32 %v566_v26, 16  ;;  %v573_v41 = vpack.c.bf16 %v541_v29, %v541_v29  ;;  %2308 = vmatmul.bf16.gmra.mxu3 %v3734_v31  ;;  %v3774_v7 = vld [vmem:[%s5262_s3 + $0x118] sm:$0xff] }
  0x41   : > { %915 = vst [vmem:[#allocation2 + $0x10] sm:$0xf] %v604_v32  ;;  %v574_v44 = vpack.c.bf16 %v542_v35, %v542_v35  ;;  %v517_v45 = vadd.f32 %v4166_v11, %v481_v25  ;;  %v518_v46 = vadd.f32 %v4166_v11, %v482_v36  ;;  %v3817_v48 = vunpack.c.l.bf16 %v4380_v30  ;;  %v975_v13 = vld [vmem:[#allocation2 + $0x78] sm:$0xf]  ;;  %2418 = vmatpush.bf16.msrb.mxu2 %v3757_v39  ;;  %v295_v26 = vld [vmem:[#allocation2 + $0x54] sm:$0x1] }
  0x42   : > { %v680_v49 = vor.u32 %v678_v28, %v677_v37  ;;  %v681_v51 = vrot.slane %v677_v37, 4  ;;  %v4393_v52 = vrot.slane %v683_v38, 7  ;;  %v743_v54 = vshrl.u32 %v573_v41, 16  ;;  %2507 = vmatpush.bf16.msrb.mxu3 %v3765_v62  ;;  %v3960_v32 = vld [vmem:[%s4160_s8 + $0x30] sm:$0xff]   ;;  %2595 = vmatpush.bf16.msrb.mxu0 %v3774_v7  ;;  %v307_v38 = vld [vmem:[#allocation2 + $0x84] sm:$0x1] }
  0x43   : > { %v746_v53 = vshll.u32 %v573_v41, 16  ;;  %v751_v57 = vshrl.u32 %v574_v44, 16  ;;  %v754_v58 = vshll.u32 %v574_v44, 16  ;;  %v549_v61 = vmax.f32 %v517_v45, 0.0  ;;  %2329 = vmatpush.bf16.msrb.mxu1 %v3749_v9  ;;  %v1003_v45 = vld [vmem:[#allocation2 + $0xa8] sm:$0xf] }
  0x44   : > { %v688_v63 = vor.u32 %v686_v40, %v4393_v52  ;;  %v948_v0 = vsel %vm4223_vm7, %v680_v49, %v947_v43  ;;  %v745_v1 = vrot.slane %v743_v54, 7  ;;  %v550_v6 = vmax.f32 %v518_v46, 0.0  ;;  %v3964_v49 = vld [vmem:[%s4160_s8 + $0x50] sm:$0xff]  }
  0x45   : > { %949 = vst [vmem:[#allocation2 + $0x48] sm:$0xf] %v948_v0  ;;  %v4416_v10 = vrot.slane %v751_v57, 7  ;;  %v581_v15 = vpack.c.bf16 %v549_v61, %v549_v61  ;;  %v281_v18 = vsel %vm4138_vm2, 0, %v280_v47  ;;  %v3818_v19 = vunpack.c.h.bf16 %v4380_v30 }
  0x46   : > { %v689_v21 = vsel %vm4175_vm4, %v681_v51, %v688_v63  ;;  %v748_v23 = vor.u32 %v746_v53, %v745_v1  ;;  %v749_v24 = vrot.slane %v745_v1, 4  ;;  %v582_v25 = vpack.c.bf16 %v550_v6, %v550_v6  ;;  %282 = vst [vmem:[#allocation2 + $0x18] sm:$0x1] %v281_v18 }
  0x47   : > { %950 = vst [vmem:[#allocation2 + $0x4c] sm:$0xf] %v689_v21  ;;  %v756_v27 = vor.u32 %v754_v58, %v4416_v10  ;;  %v811_v28 = vshrl.u32 %v581_v15, 16  ;;  %v814_v29 = vshll.u32 %v581_v15, 16  ;;  %v457_v31 = vmul.f32 %v4153_v8, %v3817_v48  ;;  %v319_v15 = vld [vmem:[#allocation2 + $0xb4] sm:$0x1] }
  0x48   : > { %v4426_v34 = vld [vmem:[#allocation2 + $0xc] sm:$0xff]  ;;  %v976_v30 = vsel %vm4223_vm7, %v748_v23, %v975_v13  ;;  %v819_v35 = vshrl.u32 %v582_v25, 16  ;;  %v822_v36 = vshll.u32 %v582_v25, 16  ;;  %v458_v37 = vmul.f32 %v4153_v8, %v3818_v19 }
  0x49   : > { %v757_v40 = vsel %vm4175_vm4, %v749_v24, %v756_v27  ;;  %977 = vst [vmem:[#allocation2 + $0x78] sm:$0xf] %v976_v30  ;;  %v813_v41 = vrot.slane %v811_v28, 7  ;;  %v493_v42 = vadd.f32 %v4166_v11, %v457_v31  ;;  %v296_v43 = vsel %vm4138_vm2, 0, %v295_v26  ;;  %2248 = vmatmul.bf16.gmra.mxu0 %v4426_v34  ;;  %v3968_v24 = vld [vmem:[%s4160_s8 + $0x70] sm:$0xff]  }
  0x4a   : > { %978 = vst [vmem:[#allocation2 + $0x7c] sm:$0xf] %v757_v40  ;;  %v4437_v44 = vrot.slane %v819_v35, 7  ;;  %v494_v46 = vadd.f32 %v4166_v11, %v458_v37  ;;  %v3837_v47 = vunpack.c.l.bf16 %v3960_v32  ;;  %v3838_v48 = vunpack.c.h.bf16 %v3960_v32 }
  0x4b   : > { %v816_v51 = vor.u32 %v814_v29, %v813_v41  ;;  %v817_v54 = vrot.slane %v813_v41, 4  ;;  %v525_v55 = vmax.f32 %v493_v42, 0.0  ;;  %297 = vst [vmem:[#allocation2 + $0x54] sm:$0x1] %v296_v43  ;;  %v308_v56 = vsel %vm4138_vm2, 0, %v307_v38 }
  0x4c   : > { %v824_v39 = vor.u32 %v822_v36, %v4437_v44  ;;  %v526_v53 = vmax.f32 %v494_v46, 0.0  ;;  %v467_v57 = vmul.f32 %v4153_v8, %v3837_v47  ;;  %v468_v58 = vmul.f32 %v4153_v8, %v3838_v48  ;;  %309 = vst [vmem:[#allocation2 + $0x84] sm:$0x1] %v308_v56  ;;  %v3756_v36 = vld [vmem:[%s5262_s3 + $0x88] sm:$0xff] }
  0x4d   : > { %v1004_v61 = vsel %vm4223_vm7, %v816_v51, %v1003_v45  ;;  %v557_v62 = vpack.c.bf16 %v525_v55, %v525_v55  ;;  %v3853_v63 = vunpack.c.l.bf16 %v3964_v49  ;;  %v3854_v0 = vunpack.c.h.bf16 %v3964_v49  ;;  %v919_v38 = vld [vmem:[#allocation2 + $0x18] sm:$0xf]  ;;  %2419 = vmatpush.bf16.msrb.mxu2 %v3756_v36  ;;  %v3763_v36 = vld [vmem:[%s5262_s3 + $0xc0] sm:$0xff] }
  0x4e   : > { %v4448_v1 = vld [vmem:[#allocation2 + $0x48] sm:$0xff]  ;;  %v825_v6 = vsel %vm4175_vm4, %v817_v54, %v824_v39  ;;  %1005 = vst [vmem:[#allocation2 + $0xa8] sm:$0xf] %v1004_v61  ;;  %v558_v7 = vpack.c.bf16 %v526_v53, %v526_v53  ;;  %v503_v9 = vadd.f32 %v4166_v11, %v467_v57  ;;  %v504_v13 = vadd.f32 %v4166_v11, %v468_v58  ;;  %v283_v58 = vld [vmem:[#allocation2 + $0x24] sm:$0x1]  ;;  %v3956_v61 = vld [vmem:[%s4160_s8 + $0x10] sm:$0xff]  }
  0x4f   : > { %1006 = vst [vmem:[#allocation2 + $0xac] sm:$0xf] %v825_v6  ;;  %v607_v18 = vshrl.u32 %v557_v62, 16  ;;  %v610_v19 = vshll.u32 %v557_v62, 16  ;;  %v475_v21 = vmul.f32 %v4153_v8, %v3853_v63  ;;  %v476_v23 = vmul.f32 %v4153_v8, %v3854_v0  ;;  %2273 = vmatmul.bf16.gmra.mxu1 %v4448_v1 }
  0x50   : > { %v615_v25 = vshrl.u32 %v558_v7, 16  ;;  %v618_v26 = vshll.u32 %v558_v7, 16  ;;  %v535_v27 = vmax.f32 %v503_v9, 0.0  ;;  %v536_v28 = vmax.f32 %v504_v13, 0.0  ;;  %v3764_v9 = vld [vmem:[%s5262_s3 + $0xc8] sm:$0xff] }
  0x51   : > { %v4458_v29 = vld [vmem:[#allocation2 + $0x78] sm:$0xff]  ;;  %v609_v31 = vrot.slane %v607_v18, 7  ;;  %v511_v32 = vadd.f32 %v4166_v11, %v475_v21  ;;  %v512_v30 = vadd.f32 %v4166_v11, %v476_v23  ;;  %v320_v35 = vsel %vm4138_vm2, 0, %v319_v15  ;;  %2508 = vmatpush.bf16.msrb.mxu3 %v3764_v9 }
  0x52   : > { %v4467_v37 = vrot.slane %v615_v25, 7  ;;  %v567_v40 = vpack.c.bf16 %v535_v27, %v535_v27  ;;  %v568_v41 = vpack.c.bf16 %v536_v28, %v536_v28  ;;  %321 = vst [vmem:[#allocation2 + $0xb4] sm:$0x1] %v320_v35  ;;  %v3869_v42 = vunpack.c.l.bf16 %v3968_v24  ;;  %2293 = vmatmul.bf16.gmra.mxu2 %v4458_v29  ;;  %v954_v39 = vld [vmem:[#allocation2 + $0x54] sm:$0xf]  ;;  %v3748_v27 = vld [vmem:[%s5262_s3 + $0x48] sm:$0xff] }
  0x53   : > { %v612_v43 = vor.u32 %v610_v19, %v609_v31  ;;  %v613_v45 = vrot.slane %v609_v31, 4  ;;  %v543_v46 = vmax.f32 %v511_v32, 0.0  ;;  %v544_v47 = vmax.f32 %v512_v30, 0.0  ;;  %v3755_v28 = vld [vmem:[%s5262_s3 + $0x80] sm:$0xff]  ;;  %2330 = vmatpush.bf16.msrb.mxu1 %v3748_v27  ;;  %v3794_v27 = vld [vmem:[%s5262_s3 + $0x1b8] sm:$0xff] }
  0x54   : > { %v620_v48 = vor.u32 %v618_v26, %v4467_v37  ;;  %v692_v49 = vshrl.u32 %v567_v40, 16  ;;  %v695_v51 = vshll.u32 %v567_v40, 16  ;;  %v700_v54 = vshrl.u32 %v568_v41, 16  ;;  %v330_v40 = vld [vmem:[#allocation2 + $0x8] sm:$0x1]  ;;  %2420 = vmatpush.bf16.msrb.mxu2 %v3755_v28 }
  0x55   : > { %v920_v55 = vsel %vm4223_vm7, %v612_v43, %v919_v38  ;;  %v703_v56 = vshll.u32 %v568_v41, 16  ;;  %v575_v53 = vpack.c.bf16 %v543_v46, %v543_v46  ;;  %v576_v57 = vpack.c.bf16 %v544_v47, %v544_v47  ;;  %v982_v43 = vld [vmem:[#allocation2 + $0x84] sm:$0xf]  ;;  %v3772_v47 = vld [vmem:[%s5262_s3 + $0x108] sm:$0xff]  ;;  %2509 = vmatpush.bf16.msrb.mxu3 %v3763_v36 }
  0x56   : > { %v3735_v62 = vld [vmem:[#allocation2 + $0xa8] sm:$0xff]  ;;  %v621_v63 = vsel %vm4175_vm4, %v613_v45, %v620_v48  ;;  %921 = vst [vmem:[#allocation2 + $0x18] sm:$0xf] %v920_v55  ;;  %v694_v0 = vrot.slane %v692_v49, 7  ;;  %v4476_v6 = vrot.slane %v700_v54, 7  ;;  %v3870_v7 = vunpack.c.h.bf16 %v3968_v24  ;;  %v3773_v24 = vld [vmem:[%s5262_s3 + $0x110] sm:$0xff] }
  0x57   : > { %922 = vst [vmem:[#allocation2 + $0x1c] sm:$0xf] %v621_v63  ;;  %v760_v13 = vshrl.u32 %v575_v53, 16  ;;  %v763_v15 = vshll.u32 %v575_v53, 16  ;;  %v768_v18 = vshrl.u32 %v576_v57, 16  ;;  %v771_v19 = vshll.u32 %v576_v57, 16  ;;  %2313 = vmatmul.bf16.gmra.mxu3 %v3735_v62  ;;  %2596 = vmatpush.bf16.msrb.mxu0 %v3773_v24 }
  0x58   : > { %v697_v21 = vor.u32 %v695_v51, %v694_v0  ;;  %v698_v23 = vrot.slane %v694_v0, 4  ;;  %v705_v25 = vor.u32 %v703_v56, %v4476_v6  ;;  %v483_v26 = vmul.f32 %v4153_v8, %v3869_v42  ;;  %v3747_v55 = vld [vmem:[%s5262_s3 + $0x40] sm:$0xff]  ;;  %2769 = vmatpush.bf16.msra.mxu2 %v3794_v27 }
  0x59   : > { %v762_v31 = vrot.slane %v760_v13, 7  ;;  %v4492_v32 = vrot.slane %v768_v18, 7  ;;  %v484_v30 = vmul.f32 %v4153_v8, %v3870_v7  ;;  %v284_v35 = vsel %vm4138_vm2, 0, %v283_v58  ;;  %v4037_v7 = vld [vmem:[%s5261_s2] ss:$0 sm:$0xff]  ;;  %2331 = vmatpush.bf16.msrb.mxu1 %v3747_v55 }
  0x5a   : > { %v5296_v38 = vmov 0  ;;  %v706_v41 = vsel %vm4175_vm4, %v698_v23, %v705_v25  ;;  %v955_v42 = vsel %vm4223_vm7, %v697_v21, %v954_v39  ;;  %v519_v45 = vadd.f32 %v4166_v11, %v483_v26  ;;  %285 = vst [vmem:[#allocation2 + $0x24] sm:$0x1] %v284_v35  ;;  %v3771_v13 = vld [vmem:[%s5262_s3 + $0x100] sm:$0xff]  ;;  %v333_v18 = vld [vmem:[#allocation2 + $0x14] sm:$0x1] }
  0x5b   : > { %v5297_v38 = vsel %vm4502_vm8, 4294967295, %v5296_v38  ;;  %v3821_v46 = vunpack.c.l.bf16 %v3956_v61  ;;  %956 = vst [vmem:[#allocation2 + $0x54] sm:$0xf] %v955_v42  ;;  %v765_v48 = vor.u32 %v763_v15, %v762_v31  ;;  %v766_v49 = vrot.slane %v762_v31, 4  ;;  %2597 = vmatpush.bf16.msrb.mxu0 %v3772_v47  ;;  %v336_v55 = vld [vmem:[#allocation2 + $0x20] sm:$0x1] }
  0x5c   : > { %5298 = vst [vmem:[#allocation5_spill] sm:$0xff] %v5297_v38  ;;  %v773_v51 = vor.u32 %v771_v19, %v4492_v32  ;;  %v520_v54 = vadd.f32 %v4166_v11, %v484_v30  ;;  %v551_v56 = vmax.f32 %v519_v45, 0.0  ;;  %v3822_v39 = vunpack.c.h.bf16 %v3956_v61 }
  0x5d   : > { %957 = vst [vmem:[#allocation2 + $0x58] sm:$0xf] %v706_v41  ;;  %v459_v53 = vmul.f32 %v4153_v8, %v3821_v46  ;;  %v331_v57 = vsel %vm4502_vm8, 0, %v330_v40  ;;  %v983_v11 = vsel %vm4223_vm7, %v765_v48, %v982_v43  ;;  %v4036_v8 = vld [vmem:[%s5260_s1] ss:$0 sm:$0xff]  ;;  %v334_v35 = vsel %vm4502_vm8, 0, %v333_v18 }
  0x5e   : > { %v774_v58 = vsel %vm4175_vm4, %v766_v49, %v773_v51  ;;  %v552_v62 = vmax.f32 %v520_v54, 0.0  ;;  %332 = vst [vmem:[#allocation2 + $0x8] sm:$0x1] %v331_v57  ;;  %v4526_v63 = vld [vmem:[#allocation2 + $0x18] sm:$0xff]  ;;  %v583_v0 = vpack.c.bf16 %v551_v56, %v551_v56  ;;  %v460_v61 = vmul.f32 %v4036_v8, %v3822_v39  ;;  %v1010_v41 = vld [vmem:[#allocation2 + $0xb4] sm:$0xf] }
  0x5f   : > { %984 = vst [vmem:[#allocation2 + $0x84] sm:$0xf] %v983_v11  ;;  %v495_v9 = vadd.f32 %v4037_v7, %v459_v53  ;;  %2253 = vmatmul.bf16.gmra.mxu0 %v4526_v63  ;;  %v3786_v8 = vld [vmem:[%s5262_s3 + $0x178] sm:$0xff]  ;;  %vm1542_vm9 = vcmask 1046528   ;;  %vm1333_vm10 = vsmask.f32 7424 }
  0x60   : > { %985 = vst [vmem:[#allocation2 + $0x88] sm:$0xf] %v774_v58  ;;  %v584_v15 = vpack.c.bf16 %v552_v62, %v552_v62  ;;  %v828_v19 = vshrl.u32 %v583_v0, 16  ;;  %v831_v21 = vshll.u32 %v583_v0, 16  ;;  %v496_v23 = vadd.f32 %v4037_v7, %v460_v61  ;;  %2598 = vmatpush.bf16.msrb.mxu0 %v3771_v13  ;;  %v3802_v0 = vld [vmem:[%s5262_s3 + $0x1f8] sm:$0xff]  ;;  %2680 = vmatpush.bf16.msra.mxu1 %v3786_v8 }
  0x61   : > { %v527_v25 = vmax.f32 %v495_v9, 0.0  ;;  %335 = vst [vmem:[#allocation2 + $0x14] sm:$0x1] %v334_v35  ;;  %v926_v51 = vld [vmem:[#allocation2 + $0x24] sm:$0xf]  ;;  %v605_v62 = vrot.slane %v4372_v3, 4  ;;  %2858 = vmatpush.bf16.msra.mxu3 %v3802_v0 }
  0x62   : > { %v836_v26 = vshrl.u32 %v584_v15, 16  ;;  %v839_v24 = vshll.u32 %v584_v15, 16  ;;  %v830_v28 = vrot.slane %v828_v19, 7  ;;  %v528_v31 = vmax.f32 %v496_v23, 0.0  ;;  %v3810_v61 = vld [vmem:[%s5262_s3 + $0x238] sm:$0xff] }
  0x63   : > { %v559_v30 = vpack.c.bf16 %v527_v25, %v527_v25  ;;  %v1337_v3 = vshll.u32 %v4316_v60, 16  ;;  %v337_v15 = vsel %vm4502_vm8, 0, %v336_v55  ;;  %v339_v23 = vld [vmem:[#allocation2 + $0x2c] sm:$0x1]  ;;  %v622_v35 = vrot.slane %v4467_v37, 4 }
  0x64   : > { %v4543_v36 = vld [vmem:[#allocation2 + $0x54] sm:$0xff]  ;;  %v4545_v40 = vrot.slane %v836_v26, 7  ;;  %v833_v42 = vor.u32 %v831_v21, %v830_v28  ;;  %v834_v43 = vrot.slane %v830_v28, 4  ;;  %v560_v45 = vpack.c.bf16 %v528_v31, %v528_v31  ;;  %2947 = vmatpush.bf16.msra.mxu0 %v3810_v61  ;;  %338 = vst [vmem:[#allocation2 + $0x20] sm:$0x1] %v337_v15 }
  0x65   : > { %v624_v46 = vshrl.u32 %v559_v30, 16  ;;  %v1098_v47 = vld [vmem:[#allocation2 + $0x8] sm:$0x1]  ;;  %2278 = vmatmul.bf16.gmra.mxu1 %v4543_v36  ;;  %v627_v49 = vshll.u32 %v559_v30, 16  ;;  %v340_v26 = vsel %vm4502_vm8, 0, %v339_v23  ;;  %v1335_v28 = vshrl.u32 %v4316_v60, 16 }
  0x66   : > { %v841_v48 = vor.u32 %v839_v24, %v4545_v40  ;;  %v1099_v54 = vsel %vm4138_vm2, %v4172_v14, %v1098_v47  ;;  %v1011_v39 = vsel %vm4223_vm7, %v833_v42, %v1010_v41  ;;  %v632_v57 = vshrl.u32 %v560_v45, 16  ;;  %341 = vst [vmem:[#allocation2 + $0x2c] sm:$0x1] %v340_v26  ;;  %v342_v0 = vld [vmem:[#allocation2 + $0x38] sm:$0x1] }
  0x67   : > { %v4552_v56 = vld [vmem:[#allocation2 + $0x84] sm:$0xff]  ;;  %v626_v53 = vrot.slane %v624_v46, 7  ;;  %v635_v58 = vshll.u32 %v560_v45, 16  ;;  %1100 = vst [vmem:[#allocation2 + $0x8] sm:$0x1] %v1099_v54  ;;  %v1339_v31 = vrot.slane %v1337_v3, 1 }
  0x68   : > { %v842_v11 = vsel %vm4175_vm4, %v834_v43, %v841_v48  ;;  %1012 = vst [vmem:[#allocation2 + $0xb4] sm:$0xf] %v1011_v39  ;;  %2298 = vmatmul.bf16.gmra.mxu2 %v4552_v56  ;;  %v634_v13 = vrot.slane %v632_v57, 7  ;;  %v916_v21 = vld [vmem:[#allocation2 + $0x14] sm:$0x1]  ;;  %v1543_v45 = vrot.slane %v4316_v60, 1 }
  0x69   : > { %1013 = vst [vmem:[#allocation2 + $0xb8] sm:$0xf] %v842_v11  ;;  %v629_v7 = vor.u32 %v627_v49, %v626_v53  ;;  %v630_v9 = vrot.slane %v626_v53, 4  ;;  %v917_v25 = vsel %vm4138_vm2, %v605_v62, %v916_v21  ;;  %v1340_v43 = vor.u32 %v1339_v31, %v1335_v28  ;;  %v3793_v21 = vld [vmem:[%s5262_s3 + $0x1b0] sm:$0xff] }
  0x6a   : > { %v637_v18 = vor.u32 %v635_v58, %v634_v13  ;;  %918 = vst [vmem:[#allocation2 + $0x14] sm:$0x1] %v917_v25  ;;  %v1349_v62 = vshll.u32 %v4426_v34, 16  ;;  %v1347_v8 = vshrl.u32 %v4426_v34, 16  ;;  %v656_v23 = vrot.slane %v4219_v12, 4  ;;  %2770 = vmatpush.bf16.msra.mxu2 %v3793_v21  ;;  %v3785_v12 = vld [vmem:[%s5262_s3 + $0x170] sm:$0xff] }
  0x6b   : > { %v927_v19 = vsel %vm4223_vm7, %v629_v7, %v926_v51  ;;  %v923_v46 = vld [vmem:[#allocation2 + $0x20] sm:$0x1]  ;;  %v639_v51 = vrot.slane %v634_v13, 4  ;;  %v3809_v31 = vld [vmem:[%s5262_s3 + $0x230] sm:$0xff]  ;;  %2681 = vmatpush.bf16.msra.mxu1 %v3785_v12  ;;  %vm3208_vm11 = vcmask 1041408  }
  0x6c   : > { %928 = vst [vmem:[#allocation2 + $0x24] sm:$0xf] %v927_v19  ;;  %v638_v24 = vsel %vm4175_vm4, %v630_v9, %v637_v18  ;;  %v924_v49 = vsel %vm4138_vm2, %v622_v35, %v923_v46  ;;  %v1351_v61 = vrot.slane %v1349_v62, 1  ;;  %v343_v9 = vsel %vm4502_vm8, 0, %v342_v0  ;;  %2948 = vmatpush.bf16.msra.mxu0 %v3809_v31  ;;  %v4038_v12 = vld [vmem:[#allocation2 + $0x30] sm:$0xff] }
  0x6d   : > { %929 = vst [vmem:[#allocation2 + $0x28] sm:$0xf] %v638_v24  ;;  %v930_v57 = vld [vmem:[#allocation2 + $0x2c] sm:$0x1]  ;;  %v1546_v18 = vrot.slane %v4426_v34, 1  ;;  %v1361_v35 = vshll.u32 %v4526_v63, 16 }
  0x6e   : > { %v1137_v27 = vld [vmem:[#allocation2 + $0x8] sm:$0x1]  ;;  %925 = vst [vmem:[#allocation2 + $0x20] sm:$0x1] %v924_v49  ;;  %v931_v58 = vsel %vm4138_vm2, %v639_v51, %v930_v57  ;;  %v1352_v13 = vor.u32 %v1351_v61, %v1347_v8  ;;  %v1549_v51 = vrot.slane %v4526_v63, 1  ;;  %v1385_v31 = vshll.u32 %v4038_v12, 16 }
  0x6f   : > { %v1301_v30 = vunpack.c.l.b16 %v1137_v27  ;;  %932 = vst [vmem:[#allocation2 + $0x2c] sm:$0x1] %v931_v58 }
  0x70   : > { %v3736_v41 = vld [vmem:[#allocation2 + $0xb4] sm:$0xff]  ;;  %344 = vst [vmem:[#allocation2 + $0x38] sm:$0x1] %v343_v9 }
  0x71   : > { %v1317_v42 = vpack.c.b16 %v1301_v30, %v1301_v30  ;;  %2318 = vmatmul.bf16.gmra.mxu3 %v3736_v41  ;;  %v1140_v54 = vld [vmem:[#allocation2 + $0x14] sm:$0x1]  ;;  %v345_v41 = vld [vmem:[#allocation2 + $0x44] sm:$0x1] }
  0x72   : > { %v1302_v39 = vunpack.c.l.b16 %v1140_v54  ;;  %v346_v46 = vsel %vm4502_vm8, 0, %v345_v41  ;;  %v1383_v41 = vshrl.u32 %v4038_v12, 16 }
  0x73   : > { %v1342_v47 = vshll.u32 %v1317_v42, 16  ;;  %v1544_v48 = vrot.slane %v1317_v42, 1  ;;  %v1359_v42 = vshrl.u32 %v4526_v63, 16  ;;  %347 = vst [vmem:[#allocation2 + $0x44] sm:$0x1] %v346_v46 }
  0x74   : > { %v4585_v55 = vld [vmem:[#allocation2 + $0x24] sm:$0xff]  ;;  %v1318_v11 = vpack.c.b16 %v1302_v39, %v1302_v39 }
  0x75   : > { %v1344_v37 = vrot.slane %v1342_v47, 1  ;;  %v1545_v53 = vsel %vm1542_vm9, %v1543_v45, %v1544_v48  ;;  %2258 = vmatmul.bf16.gmra.mxu0 %v4585_v55  ;;  %v1143_v15 = vld [vmem:[#allocation2 + $0x20] sm:$0x1]  ;;  %v1371_v62 = vshrl.u32 %v4585_v55, 16 }
  0x76   : > { %v1354_v7 = vshll.u32 %v1318_v11, 16  ;;  %v1547_v19 = vrot.slane %v1318_v11, 1  ;;  %v1303_v26 = vunpack.c.l.b16 %v1143_v15  ;;  %v1146_v49 = vld [vmem:[#allocation2 + $0x2c] sm:$0x1]  ;;  %v1373_v11 = vshll.u32 %v4585_v55, 16 }
  0x77   : > { %v1345_v60 = vsel %vm1333_vm10, %v1340_v43, %v1344_v37  ;;  %v937_v24 = vld [vmem:[#allocation2 + $0x38] sm:$0x1]  ;;  %v1363_v43 = vrot.slane %v1361_v35, 1  ;;  %v673_v37 = vrot.slane %v4307_v50, 4  ;;  %v348_v50 = vld [vmem:[#allocation2 + $0x50] sm:$0x1] }
  0x78   : > { %2332 = vmatmul.bf16.vlgmr.msrb.gmra.mxu1 %v1345_v60  ;;  %2421 = vmatmul.bf16.vlgmr.msrb.gmra.mxu2 %v1545_v53  ;;  %v1356_v3 = vrot.slane %v1354_v7, 1  ;;  %v938_v27 = vsel %vm4138_vm2, %v656_v23, %v937_v24  ;;  %v4606_v28 = vsel %vm1542_vm9, %v1546_v18, %v1547_v19  ;;  %v1319_v30 = vpack.c.b16 %v1303_v26, %v1303_v26  ;;  %v3792_v18 = vld [vmem:[%s5262_s3 + $0x1a8] sm:$0xff]  ;;  %v351_v35 = vld [vmem:[#allocation2 + $0x5c] sm:$0x1] }
  0x79   : > { %939 = vst [vmem:[#allocation2 + $0x38] sm:$0x1] %v938_v27  ;;  %v1364_v47 = vor.u32 %v1363_v43, %v1359_v42  ;;  %v1304_v53 = vunpack.c.l.b16 %v1146_v49  ;;  %v1375_v0 = vrot.slane %v1373_v11, 1  ;;  %v349_v61 = vsel %vm4502_vm8, 0, %v348_v50  ;;  %2771 = vmatpush.bf16.msra.mxu2 %v3792_v18  ;;  %v3808_v27 = vld [vmem:[%s5262_s3 + $0x228] sm:$0xff] }
  0x7a   : > { %v1357_v25 = vsel %vm1333_vm10, %v1352_v13, %v1356_v3  ;;  %v1366_v45 = vshll.u32 %v1319_v30, 16  ;;  %v1550_v54 = vrot.slane %v1319_v30, 1  ;;  %v944_v57 = vld [vmem:[#allocation2 + $0x44] sm:$0x1]  ;;  %350 = vst [vmem:[#allocation2 + $0x50] sm:$0x1] %v349_v61  ;;  %2949 = vmatpush.bf16.msra.mxu0 %v3808_v27 }
  0x7b   : > { %v945_v60 = vsel %vm4138_vm2, %v673_v37, %v944_v57  ;;  %v1376_v7 = vor.u32 %v1375_v0, %v1371_v62  ;;  %v1552_v3 = vrot.slane %v4585_v55, 1  ;;  %v690_v19 = vrot.slane %v4393_v52, 4  ;;  %v3784_v52 = vld [vmem:[%s5262_s3 + $0x168] sm:$0xff]  ;;  %v3791_v27 = vld [vmem:[%s5262_s3 + $0x1a0] sm:$0xff] }
  0x7c   : > { %v1368_v48 = vrot.slane %v1366_v45, 1  ;;  %v4631_v58 = vsel %vm1542_vm9, %v1549_v51, %v1550_v54  ;;  %946 = vst [vmem:[#allocation2 + $0x44] sm:$0x1] %v945_v60  ;;  %2682 = vmatpush.bf16.msra.mxu1 %v3784_v52  ;;  %v1387_v42 = vrot.slane %v1385_v31, 1  ;;  %v352_v45 = vsel %vm4502_vm8, 0, %v351_v35 }
  0x7d   : > { %353 = vst [vmem:[#allocation2 + $0x5c] sm:$0x1] %v352_v45  ;;  %v1555_v49 = vrot.slane %v4038_v12, 1  ;;  %2772 = vmatpush.bf16.msra.mxu2 %v3791_v27 }
  0x7e   : > { %v4626_v39 = vsel %vm1333_vm10, %v1364_v47, %v1368_v48  ;;  %v1388_v46 = vor.u32 %v1387_v42, %v1383_v41 }
  0x80   : > { %v1149_v13 = vld [vmem:[#allocation2 + $0x38] sm:$0x1] }
  0x81   : > { %2510 = vmatmul.bf16.vlgmr.msrb.gmra.mxu3 %v4426_v34  ;;  %v3801_v34 = vld [vmem:[%s5262_s3 + $0x1f0] sm:$0xff]  ;;  %v1305_v23 = vunpack.c.l.b16 %v1149_v13  ;;  %v1395_v13 = vshrl.u32 %v4367_v59, 16 }
  0x82   : > { %2859 = vmatpush.bf16.msra.mxu3 %v3801_v34 }
  0x83   : > { %v1321_v34 = vpack.c.b16 %v1305_v23, %v1305_v23  ;;  %v1152_v48 = vld [vmem:[#allocation2 + $0x44] sm:$0x1] }
  0x84   : > { %v1306_v60 = vunpack.c.l.b16 %v1152_v48 }
  0x85   : > { %2599 = vmatmul.bf16.vlgmr.msrb.gmra.mxu0 %v1357_v25  ;;  %v1390_v43 = vshll.u32 %v1321_v34, 16  ;;  %v1556_v51 = vrot.slane %v1321_v34, 1 }
  0x86   : > { %v1322_v0 = vpack.c.b16 %v1306_v60, %v1306_v60  ;;  %v1407_v60 = vshrl.u32 %v4448_v1, 16 }
  0x87   : > { %v1392_v47 = vrot.slane %v1390_v43, 1  ;;  %v4681_v50 = vsel %vm1542_vm9, %v1555_v49, %v1556_v51  ;;  %v1409_v49 = vshll.u32 %v4448_v1, 16  ;;  %v357_v51 = vld [vmem:[#allocation2 + $0x74] sm:$0x1] }
  0x88   : > { %2337 = vmatmul.bf16.gmra.mxu1 %v1357_v25  ;;  %2426 = vmatmul.bf16.gmra.mxu2 %v4606_v28  ;;  %v951_v25 = vld [vmem:[#allocation2 + $0x50] sm:$0x1]  ;;  %v1559_v52 = vrot.slane %v1322_v0, 1 }
  0x89   : > { %v952_v26 = vsel %vm4138_vm2, %v690_v19, %v951_v25  ;;  %v4676_v57 = vsel %vm1333_vm10, %v1388_v46, %v1392_v47  ;;  %v3783_v46 = vld [vmem:[%s5262_s3 + $0x160] sm:$0xff] }
  0x8a   : > { %953 = vst [vmem:[#allocation2 + $0x50] sm:$0x1] %v952_v26  ;;  %v3807_v47 = vld [vmem:[%s5262_s3 + $0x220] sm:$0xff]  ;;  %2683 = vmatpush.bf16.msra.mxu1 %v3783_v46 }
  0x8b   : > { %2950 = vmatpush.bf16.msra.mxu0 %v3807_v47  ;;  %v360_v47 = vld [vmem:[#allocation2 + $0x80] sm:$0x1] }
  0x91   : > { %2515 = vmatmul.bf16.gmra.mxu3 %v4526_v63  ;;  %v1320_v63 = vpack.c.b16 %v1304_v53, %v1304_v53  ;;  %v707_v53 = vrot.slane %v4476_v6, 4  ;;  %v1397_v6 = vshll.u32 %v4367_v59, 16  ;;  %v1155_v25 = vld [vmem:[#allocation2 + $0x50] sm:$0x1] }
  0x92   : > { %v1307_v35 = vunpack.c.l.b16 %v1155_v25  ;;  %v741_v25 = vrot.slane %v4327_v5, 4 }
  0x93   : > { %v1378_v8 = vshll.u32 %v1320_v63, 16  ;;  %v1553_v15 = vrot.slane %v1320_v63, 1  ;;  %v958_v63 = vld [vmem:[#allocation2 + $0x5c] sm:$0x1] }
  0x94   : > { %v959_v11 = vsel %vm4138_vm2, %v707_v53, %v958_v63  ;;  %v1323_v48 = vpack.c.b16 %v1307_v35, %v1307_v35  ;;  %v1411_v63 = vrot.slane %v1409_v49, 1 }
  0x95   : > { %2604 = vmatmul.bf16.gmra.mxu0 %v4626_v39  ;;  %v1380_v9 = vrot.slane %v1378_v8, 1  ;;  %v4652_v24 = vsel %vm1542_vm9, %v1552_v3, %v1553_v15  ;;  %960 = vst [vmem:[#allocation2 + $0x5c] sm:$0x1] %v959_v11  ;;  %v1399_v3 = vrot.slane %v1397_v6, 1  ;;  %v1402_v15 = vshll.u32 %v1322_v0, 16 }
  0x96   : > { %v1414_v11 = vshll.u32 %v1323_v48, 16  ;;  %v358_v0 = vsel %vm4502_vm8, 0, %v357_v51 }
  0x97   : > { %v4647_v21 = vsel %vm1333_vm10, %v1376_v7, %v1380_v9  ;;  %v354_v9 = vld [vmem:[#allocation2 + $0x68] sm:$0x1]  ;;  %v1400_v19 = vor.u32 %v1399_v3, %v1395_v13  ;;  %v1404_v23 = vrot.slane %v1402_v15, 1  ;;  %359 = vst [vmem:[#allocation2 + $0x74] sm:$0x1] %v358_v0  ;;  %v1412_v3 = vor.u32 %v1411_v63, %v1407_v60 }
  0x98   : > { %2342 = vmatmul.bf16.gmra.mxu1 %v4626_v39  ;;  %2431 = vmatmul.bf16.gmra.mxu2 %v4631_v58  ;;  %v355_v18 = vsel %vm4502_vm8, 0, %v354_v9  ;;  %v1416_v15 = vrot.slane %v1414_v11, 1  ;;  %v361_v60 = vsel %vm4502_vm8, 0, %v360_v47 }
  0x99   : > { %356 = vst [vmem:[#allocation2 + $0x68] sm:$0x1] %v355_v18  ;;  %v4709_v31 = vsel %vm1333_vm10, %v1400_v19, %v1404_v23  ;;  %v1561_v19 = vrot.slane %v4448_v1, 1  ;;  %v1562_v23 = vrot.slane %v1323_v48, 1  ;;  %v1419_v48 = vshrl.u32 %v4543_v36, 16 }
  0x9a   : > { %362 = vst [vmem:[#allocation2 + $0x80] sm:$0x1] %v361_v60 }
  0x9c   : > { %v1158_v18 = vld [vmem:[#allocation2 + $0x5c] sm:$0x1] }
  0x9e   : > { %v972_v27 = vld [vmem:[#allocation2 + $0x74] sm:$0x1] }
  0xa0   : > { %v965_v42 = vld [vmem:[#allocation2 + $0x68] sm:$0x1] }
  0xa1   : > { %2520 = vmatmul.bf16.gmra.mxu3 %v4585_v55  ;;  %v3800_v55 = vld [vmem:[%s5262_s3 + $0x1e8] sm:$0xff]  ;;  %v979_v47 = vld [vmem:[#allocation2 + $0x80] sm:$0x1] }
  0xa2   : > { %2860 = vmatpush.bf16.msra.mxu3 %v3800_v55  ;;  %v1558_v55 = vrot.slane %v4367_v59, 1 }
  0xa4   : > { %v4718_v45 = vsel %vm1542_vm9, %v1558_v55, %v1559_v52  ;;  %v4748_v55 = vsel %vm1333_vm10, %v1412_v3, %v1416_v15  ;;  %v1308_v52 = vunpack.c.l.b16 %v1158_v18 }
  0xa5   : > { %2609 = vmatmul.bf16.gmra.mxu0 %v4647_v21 }
  0xa6   : > { %v1324_v5 = vpack.c.b16 %v1308_v52, %v1308_v52  ;;  %v758_v52 = vrot.slane %v4416_v10, 4  ;;  %v3798_v10 = vld [vmem:[%s5262_s3 + $0x1d8] sm:$0xff] }
  0xa8   : > { %2347 = vmatmul.bf16.gmra.mxu1 %v4647_v21  ;;  %2436 = vmatmul.bf16.gmra.mxu2 %v4652_v24  ;;  %v1426_v51 = vshll.u32 %v1324_v5, 16 }
  0xa9   : > { %v4666_v30 = vpop.f32.mrf.mxu1 }
  0xaa   : > { %v1428_v0 = vrot.slane %v1426_v51, 1  ;;  %v4800_v51 = vld [vmem:[#allocation2 + $0x60] sm:$0xff] }
  0xab   : > { %5306 = vst [vmem:[#allocation13_spill] sm:$0xff] %v4800_v51  ;;  %v1433_v60 = vshll.u32 %v4800_v51, 16  ;;  %v1567_v14 = vrot.slane %v4800_v51, 1 }
  0xb0   : > { %v4684_v62 = vpop.f32.mrf.mxu0 }
  0xb1   : > { %2525 = vmatmul.bf16.gmra.mxu3 %v4038_v12  ;;  %v4672_v37 = vpop.f32.mrf.mxu1  ;;  %v724_v12 = vrot.slane %v4227_v20, 4  ;;  %v3799_v20 = vld [vmem:[%s5262_s3 + $0x1e0] sm:$0xff] }
  0xb2   : > { %v4670_v54 = vpop.f32.mrf.mxu2  ;;  %2861 = vmatpush.bf16.msra.mxu3 %v3799_v20 }
  0xb3   : > { %v4689_v8 = vpop.f32.mrf.mxu3 }
  0xb5   : > { %2614 = vmatmul.bf16.gmra.mxu0 %v4676_v57 }
  0xb6   : > { %2862 = vmatpush.bf16.msra.mxu3 %v3798_v10 }
  0xb8   : > { %2352 = vmatmul.bf16.gmra.mxu1 %v4676_v57  ;;  %2441 = vmatmul.bf16.gmra.mxu2 %v4681_v50  ;;  %v4699_v26 = vpop.f32.mrf.mxu0 }
  0xb9   : > { %v4693_v7 = vpop.f32.mrf.mxu1 }
  0xba   : > { %v4691_v61 = vpop.f32.mrf.mxu2 }
  0xbb   : > { %v4705_v34 = vpop.f32.mrf.mxu3 }
  0xbc   : > { %5299 = vst [vmem:[#allocation6_spill] sm:$0xff] %v4705_v34 }
  0xc1   : > { %2530 = vmatmul.bf16.gmra.mxu3 %v4367_v59  ;;  %v4713_v43 = vpop.f32.mrf.mxu1  ;;  %v966_v59 = vsel %vm4138_vm2, %v724_v12, %v965_v42  ;;  %v973_v12 = vsel %vm4138_vm2, %v741_v25, %v972_v27  ;;  %v4755_v42 = vsel %vm1542_vm9, %v1561_v19, %v1562_v23  ;;  %v1564_v19 = vrot.slane %v4543_v36, 1 }
  0xc2   : > { %v4711_v41 = vpop.f32.mrf.mxu2  ;;  %967 = vst [vmem:[#allocation2 + $0x68] sm:$0x1] %v966_v59  ;;  %v1421_v59 = vshll.u32 %v4543_v36, 16  ;;  %v1565_v23 = vrot.slane %v1324_v5, 1 }
  0xc3   : > { %v4738_v6 = vpop.f32.mrf.mxu3  ;;  %5301 = vst [vmem:[#allocation8_spill] sm:$0xff] %v4755_v42 }
  0xc4   : > { %5300 = vst [vmem:[#allocation7_spill] sm:$0xff] %v4738_v6  ;;  %v1423_v49 = vrot.slane %v1421_v59, 1  ;;  %v3790_v59 = vld [vmem:[%s5262_s3 + $0x198] sm:$0xff] }
  0xc5   : > { %2619 = vmatmul.bf16.gmra.mxu0 %v4709_v31  ;;  %974 = vst [vmem:[#allocation2 + $0x74] sm:$0x1] %v973_v12  ;;  %2773 = vmatpush.bf16.msra.mxu2 %v3790_v59 }
  0xc6   : > { %v4733_v53 = vpop.f32.mrf.mxu0  ;;  %v1424_v11 = vor.u32 %v1423_v49, %v1419_v48  ;;  %v980_v48 = vsel %vm4138_vm2, %v758_v52, %v979_v47  ;;  %v4790_v49 = vsel %vm1542_vm9, %v1564_v19, %v1565_v23  ;;  %v363_v19 = vld [vmem:[#allocation2 + $0x8c] sm:$0x1]  ;;  %v1431_v23 = vshrl.u32 %v4800_v51, 16  ;;  %v3806_v47 = vld [vmem:[%s5262_s3 + $0x218] sm:$0xff] }
  0xc7   : > { %5305 = vst [vmem:[#allocation12_spill] sm:$0xff] %v4790_v49  ;;  %v1435_v52 = vrot.slane %v1433_v60, 1  ;;  %2951 = vmatpush.bf16.msra.mxu0 %v3806_v47 }
  0xc8   : > { %2357 = vmatmul.bf16.gmra.mxu1 %v4709_v31  ;;  %2446 = vmatmul.bf16.gmra.mxu2 %v4718_v45  ;;  %v4782_v27 = vsel %vm1333_vm10, %v1424_v11, %v1428_v0  ;;  %981 = vst [vmem:[#allocation2 + $0x80] sm:$0x1] %v980_v48  ;;  %v364_v48 = vsel %vm4502_vm8, 0, %v363_v19 }
  0xc9   : > { %v1161_v15 = vld [vmem:[#allocation2 + $0x68] sm:$0x1]  ;;  %5304 = vst [vmem:[#allocation11_spill] sm:$0xff] %v4782_v27  ;;  %v1436_v10 = vor.u32 %v1435_v52, %v1431_v23 }
  0xca   : > { %v4740_v9 = vpop.f32.mrf.mxu2  ;;  %v1309_v12 = vunpack.c.l.b16 %v1161_v15  ;;  %365 = vst [vmem:[#allocation2 + $0x8c] sm:$0x1] %v364_v48 }
  0xcc   : > { %v4742_v13 = vpop.f32.mrf.mxu1  ;;  %v1325_v5 = vpack.c.b16 %v1309_v12, %v1309_v12  ;;  %v1164_v4 = vld [vmem:[#allocation2 + $0x74] sm:$0x1] }
  0xcd   : > { %v1310_v19 = vunpack.c.l.b16 %v1164_v4 }
  0xce   : > { %v4752_v35 = vpop.f32.mrf.mxu0  ;;  %v1438_v59 = vshll.u32 %v1325_v5, 16  ;;  %v1568_v60 = vrot.slane %v1325_v5, 1 }
  0xd0   : > { %v4834_v5 = vsel %vm1542_vm9, %v1567_v14, %v1568_v60 }
  0xd1   : > { %2535 = vmatmul.bf16.gmra.mxu3 %v4448_v1  ;;  %v4758_v1 = vpop.f32.mrf.mxu3  ;;  %v986_v48 = vld [vmem:[#allocation2 + $0x8c] sm:$0x1]  ;;  %5310 = vst [vmem:[#allocation17_spill] sm:$0xff] %v4834_v5 }
  0xd2   : > { %5302 = vst [vmem:[#allocation9_spill] sm:$0xff] %v4758_v1 }
  0xd4   : > { %v4765_v46 = vpop.f32.mrf.mxu1 }
  0xd5   : > { %2624 = vmatmul.bf16.gmra.mxu0 %v4748_v55  ;;  %v4762_v20 = vpop.f32.mrf.mxu2 }
  0xd8   : > { %2362 = vmatmul.bf16.gmra.mxu1 %v4748_v55  ;;  %2451 = vmatmul.bf16.gmra.mxu2 %v4755_v42  ;;  %v792_v42 = vrot.slane %v4234_v33, 4 }
  0xda   : > { %v4772_v3 = vpop.f32.mrf.mxu3 }
  0xdb   : > { %5303 = vst [vmem:[#allocation10_spill] sm:$0xff] %v4772_v3 }
  0xdc   : > { %v4770_v63 = vpop.f32.mrf.mxu0 }
  0xdd   : > { %v4775_v18 = vpop.f32.mrf.mxu2 }
  0xe1   : > { %2540 = vmatmul.bf16.gmra.mxu3 %v4543_v36  ;;  %v3782_v36 = vld [vmem:[%s5262_s3 + $0x158] sm:$0xff] }
  0xe2   : > { %v4778_v25 = vpop.f32.mrf.mxu1  ;;  %2684 = vmatpush.bf16.msra.mxu1 %v3782_v36  ;;  %v4806_v0 = vpop.f32.mrf.mxu3  ;;  %v1440_v36 = vrot.slane %v1438_v59, 1 }
  0xe3   : > { %5307 = vst [vmem:[#allocation14_spill] sm:$0xff] %v4806_v0  ;;  %v775_v0 = vrot.slane %v4492_v32, 4  ;;  %v1326_v32 = vpack.c.b16 %v1310_v19, %v1310_v19 }
  0xe4   : > { %v4804_v11 = vpop.f32.mrf.mxu0 }
  0xe5   : > { %2629 = vmatmul.bf16.gmra.mxu0 %v4782_v27  ;;  %v987_v52 = vsel %vm4138_vm2, %v775_v0, %v986_v48  ;;  %v1450_v14 = vshll.u32 %v1326_v32, 16 }
  0xe6   : > { %988 = vst [vmem:[#allocation2 + $0x8c] sm:$0x1] %v987_v52 }
  0xe8   : > { %2367 = vmatmul.bf16.gmra.mxu1 %v4782_v27  ;;  %2456 = vmatmul.bf16.gmra.mxu2 %v4790_v49  ;;  %v4824_v49 = vsel %vm1333_vm10, %v1436_v10, %v1440_v36  ;;  %v4838_v10 = vld [vmem:[#allocation2 + $0x6c] sm:$0xff]  ;;  %v366_v36 = vld [vmem:[#allocation2 + $0x98] sm:$0x1]  ;;  %v1167_v27 = vld [vmem:[#allocation2 + $0x80] sm:$0x1] }
  0xe9   : > { %5308 = vst [vmem:[#allocation15_spill] sm:$0xff] %v4824_v49  ;;  %v1445_v4 = vshll.u32 %v4838_v10, 16  ;;  %v367_v48 = vsel %vm4502_vm8, 0, %v366_v36  ;;  %v1570_v6 = vrot.slane %v4838_v10, 1 }
  0xea   : > { %v4808_v15 = vpop.f32.mrf.mxu1  ;;  %5311 = vst [vmem:[#allocation18_spill] sm:$0xff] %v4838_v10 }
  0xeb   : > { %v4811_v12 = vpop.f32.mrf.mxu2  ;;  %v1447_v0 = vrot.slane %v1445_v4, 1  ;;  %368 = vst [vmem:[#allocation2 + $0x98] sm:$0x1] %v367_v48  ;;  %v1571_v4 = vrot.slane %v1326_v32, 1 }
  0xf1   : > { %2545 = vmatmul.bf16.gmra.mxu3 %v4800_v51 }
  0xf2   : > { %v4821_v3 = vpop.f32.mrf.mxu0 }
  0xf3   : > { %v4826_v1 = vpop.f32.mrf.mxu2 }
  0xf4   : > { %v4828_v47 = vpop.f32.mrf.mxu3 }
  0xf5   : > { %5309 = vst [vmem:[#allocation16_spill] sm:$0xff] %v4828_v47  ;;  %v2333_v23 = vpop.f32.mrf.mxu1  ;;  %2634 = vmatmul.bf16.gmra.mxu0 %v4824_v49 }
  0xf6   : > { %v2334_v59 = vadd.f32 %v2333_v23, %v4684_v62  ;;  %v1443_v62 = vshrl.u32 %v4838_v10, 16 }
  0xf8   : > { %2372 = vmatmul.bf16.gmra.mxu1 %v4824_v49  ;;  %2461 = vmatmul.bf16.gmra.mxu2 %v4834_v5  ;;  %v1448_v51 = vor.u32 %v1447_v0, %v1443_v62  ;;  %v1452_v5 = vrot.slane %v1450_v14, 1  ;;  %v993_v62 = vld [vmem:[#allocation2 + $0x98] sm:$0x1] }
  0xf9   : > { %v994_v48 = vsel %vm4138_vm2, %v792_v42, %v993_v62  ;;  %v3805_v62 = vld [vmem:[%s5262_s3 + $0x210] sm:$0xff] }
  0xfa   : > { %v4842_v47 = vpop.f32.mrf.mxu0  ;;  %v4854_v36 = vsel %vm1333_vm10, %v1448_v51, %v1452_v5  ;;  %995 = vst [vmem:[#allocation2 + $0x98] sm:$0x1] %v994_v48  ;;  %2952 = vmatpush.bf16.msra.mxu0 %v3805_v62 }
  0xfb   : > { %v2422_v60 = vpop.f32.mrf.mxu2  ;;  %5313 = vst [vmem:[#allocation20_spill] sm:$0xff] %v4854_v36 }
  0xfc   : > { %v4847_v23 = vpop.f32.mrf.mxu3  ;;  %v2423_v19 = vadd.f32 %v2422_v60, %v2334_v59  ;;  %v1311_v59 = vunpack.c.l.b16 %v1167_v27  ;;  %v3797_v27 = vld [vmem:[%s5262_s3 + $0x1d0] sm:$0xff] }
  0xfd   : > { %5312 = vst [vmem:[#allocation19_spill] sm:$0xff] %v4847_v23  ;;  %v2335_v52 = vpop.f32.mrf.mxu1  ;;  %2863 = vmatpush.bf16.msra.mxu3 %v3797_v27 }
  0xfe   : > { %v2336_v49 = vadd.f32 %v2335_v52, %v4699_v26  ;;  %v3789_v26 = vld [vmem:[%s5262_s3 + $0x190] sm:$0xff]  ;;  %v4863_v52 = vsel %vm1542_vm9, %v1570_v6, %v1571_v4  ;;  %v1327_v42 = vpack.c.b16 %v1311_v59, %v1311_v59  ;;  %v369_v6 = vld [vmem:[#allocation2 + $0xa4] sm:$0x1] }
  0xff   : > { %5314 = vst [vmem:[#allocation21_spill] sm:$0xff] %v4863_v52  ;;  %2774 = vmatpush.bf16.msra.mxu2 %v3789_v26  ;;  %v370_v59 = vsel %vm4502_vm8, 0, %v369_v6  ;;  %v809_v6 = vrot.slane %v4333_v22, 4 }
 0x100   : > { %v1462_v4 = vshll.u32 %v1327_v42, 16  ;;  %371 = vst [vmem:[#allocation2 + $0xa4] sm:$0x1] %v370_v59 }
 0x101   : > { %2550 = vmatmul.bf16.gmra.mxu3 %v4838_v10 }
 0x102   : > { %v2600_v34 = vpop.f32.mrf.mxu0 }
 0x103   : > { %v2424_v23 = vpop.f32.mrf.mxu2 }
 0x104   : > { %v2511_v0 = vpop.f32.mrf.mxu3  ;;  %v2425_v14 = vadd.f32 %v2424_v23, %v2336_v49  ;;  %v3781_v49 = vld [vmem:[%s5262_s3 + $0x150] sm:$0xff]  ;;  %v1455_v23 = vshrl.u32 %v4458_v29, 16 }
 0x105   : > { %v2338_v60 = vpop.f32.mrf.mxu1  ;;  %v2512_v32 = vadd.f32 %v2511_v0, %v2423_v19  ;;  %2639 = vmatmul.bf16.gmra.mxu0 %v4854_v36  ;;  %2685 = vmatpush.bf16.msra.mxu1 %v3781_v49  ;;  %v1464_v49 = vrot.slane %v1462_v4, 1 }
 0x106   : > { %v2339_v33 = vadd.f32 %v2338_v60, %v4733_v53  ;;  %v1457_v53 = vshll.u32 %v4458_v29, 16 }
 0x107   : > { %v4874_v51 = vadd.f32 %v2600_v34, %v2512_v32 }
 0x108   : > { %2377 = vmatmul.bf16.gmra.mxu1 %v4854_v36  ;;  %2466 = vmatmul.bf16.gmra.mxu2 %v4863_v52  ;;  %v1459_v19 = vrot.slane %v1457_v53, 1  ;;  %v1573_v52 = vrot.slane %v4458_v29, 1  ;;  %v1574_v36 = vrot.slane %v1327_v42, 1  ;;  %v1469_v42 = vshll.u32 %v4552_v56, 16 }
 0x109   : > { %5315 = vst [vmem:[#allocation22_spill] sm:$0xff] %v4874_v51  ;;  %v1170_v51 = vld [vmem:[#allocation2 + $0x8c] sm:$0x1] }
 0x10a   : > { %v2602_v5 = vpop.f32.mrf.mxu0  ;;  %v1460_v27 = vor.u32 %v1459_v19, %v1455_v23 }
 0x10b   : > { %v2427_v26 = vpop.f32.mrf.mxu2 }
 0x10c   : > { %v2513_v34 = vpop.f32.mrf.mxu3  ;;  %v2428_v0 = vadd.f32 %v2427_v26, %v2339_v33  ;;  %v4890_v33 = vsel %vm1333_vm10, %v1460_v27, %v1464_v49  ;;  %v1312_v26 = vunpack.c.l.b16 %v1170_v51 }
 0x10d   : > { %v2340_v60 = vpop.f32.mrf.mxu1  ;;  %v2514_v48 = vadd.f32 %v2513_v34, %v2425_v14  ;;  %v372_v34 = vld [vmem:[#allocation2 + $0xb0] sm:$0x1] }
 0x10e   : > { %v2341_v32 = vadd.f32 %v2340_v60, %v4752_v35  ;;  %v1000_v35 = vld [vmem:[#allocation2 + $0xa4] sm:$0x1]  ;;  %v1328_v22 = vpack.c.b16 %v1312_v26, %v1312_v26 }
 0x10f   : > { %v4884_v53 = vadd.f32 %v2602_v5, %v2514_v48  ;;  %v1001_v5 = vsel %vm4138_vm2, %v809_v6, %v1000_v35 }
 0x110   : > { %1002 = vst [vmem:[#allocation2 + $0xa4] sm:$0x1] %v1001_v5  ;;  %v1474_v48 = vshll.u32 %v1328_v22, 16  ;;  %v1577_v5 = vrot.slane %v1328_v22, 1 }
 0x111   : > { %2555 = vmatmul.bf16.gmra.mxu3 %v4458_v29  ;;  %v4896_v29 = vsel %vm1542_vm9, %v1573_v52, %v1574_v36  ;;  %v373_v52 = vsel %vm4502_vm8, 0, %v372_v34 }
 0x112   : > { %v2605_v10 = vpop.f32.mrf.mxu0  ;;  %374 = vst [vmem:[#allocation2 + $0xb0] sm:$0x1] %v373_v52  ;;  %v1476_v26 = vrot.slane %v1474_v48, 1  ;;  %v3796_v52 = vld [vmem:[%s5262_s3 + $0x1c8] sm:$0xff] }
 0x113   : > { %v2429_v14 = vpop.f32.mrf.mxu2  ;;  %2864 = vmatpush.bf16.msra.mxu3 %v3796_v52 }
 0x114   : > { %v2516_v62 = vpop.f32.mrf.mxu3  ;;  %v2430_v23 = vadd.f32 %v2429_v14, %v2341_v32 }
 0x115   : > { %v2343_v19 = vpop.f32.mrf.mxu1  ;;  %v2517_v4 = vadd.f32 %v2516_v62, %v2428_v0  ;;  %2644 = vmatmul.bf16.gmra.mxu0 %v4890_v33  ;;  %v1467_v0 = vshrl.u32 %v4552_v56, 16  ;;  %v1173_v62 = vld [vmem:[#allocation2 + $0x98] sm:$0x1] }
 0x116   : > { %v2344_v59 = vadd.f32 %v2343_v19, %v4770_v63  ;;  %v1471_v63 = vrot.slane %v1469_v42, 1  ;;  %v1576_v19 = vrot.slane %v4552_v56, 1 }
 0x117   : > { %v4901_v51 = vadd.f32 %v2605_v10, %v2517_v4  ;;  %v826_v4 = vrot.slane %v4437_v44, 4  ;;  %v1176_v52 = vld [vmem:[#allocation2 + $0xa4] sm:$0x1] }
 0x118   : > { %2382 = vmatmul.bf16.gmra.mxu1 %v4890_v33  ;;  %2471 = vmatmul.bf16.gmra.mxu2 %v4896_v29  ;;  %v1472_v14 = vor.u32 %v1471_v63, %v1467_v0 }
 0x11a   : > { %v2607_v60 = vpop.f32.mrf.mxu0 }
 0x11b   : > { %v2432_v36 = vpop.f32.mrf.mxu2 }
 0x11c   : > { %v2518_v32 = vpop.f32.mrf.mxu3  ;;  %v2433_v27 = vadd.f32 %v2432_v36, %v2344_v59  ;;  %v4914_v59 = vsel %vm1333_vm10, %v1472_v14, %v1476_v26  ;;  %v4923_v36 = vsel %vm1542_vm9, %v1576_v19, %v1577_v5 }
 0x11d   : > { %v2345_v49 = vpop.f32.mrf.mxu1  ;;  %v2519_v6 = vadd.f32 %v2518_v32, %v2430_v23  ;;  %v1313_v23 = vunpack.c.l.b16 %v1173_v62  ;;  %v3780_v32 = vld [vmem:[%s5262_s3 + $0x148] sm:$0xff] }
 0x11e   : > { %v2346_v10 = vadd.f32 %v2345_v49, %v4804_v11  ;;  %v3788_v11 = vld [vmem:[%s5262_s3 + $0x188] sm:$0xff]  ;;  %v4933_v49 = vld [vmem:[#allocation2 + $0x90] sm:$0xff]  ;;  %2686 = vmatpush.bf16.msra.mxu1 %v3780_v32 }
 0x11f   : > { %v4908_v35 = vadd.f32 %v2607_v60, %v2519_v6  ;;  %v1007_v60 = vld [vmem:[#allocation2 + $0xb0] sm:$0x1]  ;;  %2775 = vmatpush.bf16.msra.mxu2 %v3788_v11  ;;  %5316 = vst [vmem:[#allocation23_spill] sm:$0xff] %v4933_v49  ;;  %v1479_v26 = vshrl.u32 %v4933_v49, 16  ;;  %v1579_v32 = vrot.slane %v4933_v49, 1 }
 0x121   : > { %2560 = vmatmul.bf16.gmra.mxu3 %v4552_v56  ;;  %v1008_v56 = vsel %vm4138_vm2, %v826_v4, %v1007_v60  ;;  %v3804_v4 = vld [vmem:[%s5262_s3 + $0x208] sm:$0xff] }
 0x122   : > { %v2610_v42 = vpop.f32.mrf.mxu0  ;;  %1009 = vst [vmem:[#allocation2 + $0xb0] sm:$0x1] %v1008_v56  ;;  %2953 = vmatpush.bf16.msra.mxu0 %v3804_v4  ;;  %v3969_v4 = vld [vmem:[%s4160_s8 + $0x78] sm:$0xff]  }
 0x123   : > { %v2434_v34 = vpop.f32.mrf.mxu2 }
 0x124   : > { %v2521_v0 = vpop.f32.mrf.mxu3  ;;  %v2435_v63 = vadd.f32 %v2434_v34, %v2346_v10  ;;  %v375_v10 = vld [vmem:[#allocation2 + $0xbc] sm:$0x1] }
 0x125   : > { %v2348_v48 = vpop.f32.mrf.mxu1  ;;  %v2522_v22 = vadd.f32 %v2521_v0, %v2433_v27  ;;  %2649 = vmatmul.bf16.gmra.mxu0 %v4914_v59  ;;  %v1329_v27 = vpack.c.b16 %v1313_v23, %v1313_v23  ;;  %v376_v34 = vsel %vm4502_vm8, 0, %v375_v10  ;;  %v843_v10 = vrot.slane %v4545_v40, 4 }
 0x126   : > { %v2349_v44 = vadd.f32 %v2348_v48, %v4821_v3  ;;  %v1481_v3 = vshll.u32 %v4933_v49, 16  ;;  %377 = vst [vmem:[#allocation2 + $0xbc] sm:$0x1] %v376_v34  ;;  %v1314_v34 = vunpack.c.l.b16 %v1176_v52  ;;  %v3873_v40 = vunpack.c.l.bf16 %v3969_v4  ;;  %2954 = vmatpush.bf16.msra.mxu0 %v3803_v17 }
 0x127   : > { %v4936_v6 = vadd.f32 %v2610_v42, %v2522_v22  ;;  %v1486_v19 = vshll.u32 %v1329_v27, 16 }
 0x128   : > { %2387 = vmatmul.bf16.gmra.mxu1 %v4914_v59  ;;  %2476 = vmatmul.bf16.gmra.mxu2 %v4923_v36  ;;  %v1483_v62 = vrot.slane %v1481_v3, 1  ;;  %v1580_v3 = vrot.slane %v1329_v27, 1 }
 0x129   : > { %5317 = vst [vmem:[#allocation24_spill] sm:$0xff] %v4936_v6  ;;  %v1488_v56 = vrot.slane %v1486_v19, 1 }
 0x12a   : > { %v2612_v14 = vpop.f32.mrf.mxu0  ;;  %v1484_v48 = vor.u32 %v1483_v62, %v1479_v26  ;;  %v4958_v27 = vsel %vm1542_vm9, %v1579_v32, %v1580_v3  ;;  %v4044_v32 = vld [vmem:[%s5261_s2] ss:$0 sm:$0xff] }
 0x12b   : > { %v2437_v5 = vpop.f32.mrf.mxu2  ;;  %5320 = vst [vmem:[#allocation27_spill] sm:$0xff] %v4958_v27 }
 0x12c   : > { %v2523_v42 = vpop.f32.mrf.mxu3  ;;  %v2438_v23 = vadd.f32 %v2437_v5, %v2349_v44  ;;  %v4952_v5 = vsel %vm1333_vm10, %v1484_v48, %v1488_v56  ;;  %v4965_v56 = vld [vmem:[#allocation2 + $0x9c] sm:$0xff] }
 0x12d   : > { %v2350_v11 = vpop.f32.mrf.mxu1  ;;  %v2524_v60 = vadd.f32 %v2523_v42, %v2435_v63  ;;  %5319 = vst [vmem:[#allocation26_spill] sm:$0xff] %v4952_v5  ;;  %v3874_v42 = vunpack.c.h.bf16 %v3969_v4  ;;  %v1493_v52 = vshll.u32 %v4965_v56, 16  ;;  %v1491_v4 = vshrl.u32 %v4965_v56, 16 }
 0x12e   : > { %v2351_v0 = vadd.f32 %v2350_v11, %v4842_v47  ;;  %v1014_v47 = vld [vmem:[#allocation2 + $0xbc] sm:$0x1] }
 0x12f   : > { %v4946_v22 = vadd.f32 %v2612_v14, %v2524_v60  ;;  %v1015_v19 = vsel %vm4138_vm2, %v843_v10, %v1014_v47  ;;  %v4042_v60 = vld [vmem:[%s5260_s1] ss:$0 sm:$0xff] }
 0x130   : > { %1016 = vst [vmem:[#allocation2 + $0xbc] sm:$0x1] %v1015_v19  ;;  %v486_v48 = vmul.f32 %v4042_v60, %v3874_v42  ;;  %v1495_v42 = vrot.slane %v1493_v52, 1 }
 0x131   : > { %5318 = vst [vmem:[#allocation25_spill] sm:$0xff] %v4946_v22  ;;  %2565 = vmatmul.bf16.gmra.mxu3 %v4933_v49 }
 0x132   : > { %v2615_v44 = vpop.f32.mrf.mxu0  ;;  %v522_v3 = vadd.f32 %v4044_v32, %v486_v48  ;;  %v1496_v52 = vor.u32 %v1495_v42, %v1491_v4 }
 0x133   : > { %v2439_v63 = vpop.f32.mrf.mxu2 }
 0x134   : > { %v2526_v26 = vpop.f32.mrf.mxu3  ;;  %v2440_v62 = vadd.f32 %v2439_v63, %v2351_v0  ;;  %v1330_v0 = vpack.c.b16 %v1314_v34, %v1314_v34  ;;  %v554_v34 = vmax.f32 %v522_v3, 0.0 }
 0x135   : > { %v2353_v14 = vpop.f32.mrf.mxu1  ;;  %v2527_v11 = vadd.f32 %v2526_v26, %v2438_v23  ;;  %2654 = vmatmul.bf16.gmra.mxu0 %v4952_v5  ;;  %v485_v23 = vmul.f32 %v4042_v60, %v3873_v40  ;;  %v378_v26 = vld [vmem:[#allocation2 + $0xc8] sm:$0x1] }
 0x136   : > { %v2354_v47 = vadd.f32 %v2353_v14, %v4666_v30  ;;  %v1498_v22 = vshll.u32 %v1330_v0, 16  ;;  %v379_v60 = vsel %vm4502_vm8, 0, %v378_v26  ;;  %v586_v30 = vpack.c.bf16 %v554_v34, %v554_v34 }
 0x137   : > { %v4968_v10 = vadd.f32 %v2615_v44, %v2527_v11  ;;  %v521_v63 = vadd.f32 %v4044_v32, %v485_v23  ;;  %v322_v44 = vld [vmem:[#allocation2 + $0xc0] sm:$0x1]  ;;  %380 = vst [vmem:[#allocation2 + $0xc8] sm:$0x1] %v379_v60  ;;  %v1583_v26 = vrot.slane %v1330_v0, 1 }
 0x138   : > { %2392 = vmatmul.bf16.gmra.mxu1 %v4952_v5  ;;  %2481 = vmatmul.bf16.gmra.mxu2 %v4958_v27  ;;  %v323_v48 = vsel %vm4138_vm2, 0, %v322_v44  ;;  %v853_v32 = vshrl.u32 %v586_v30, 16  ;;  %v1500_v3 = vrot.slane %v1498_v22, 1 }
 0x139   : > { %5321 = vst [vmem:[#allocation28_spill] sm:$0xff] %v4968_v10  ;;  %v553_v11 = vmax.f32 %v521_v63, 0.0  ;;  %v1179_v63 = vld [vmem:[#allocation2 + $0xb0] sm:$0x1] }
 0x13a   : > { %v2617_v19 = vpop.f32.mrf.mxu0  ;;  %324 = vst [vmem:[#allocation2 + $0xc0] sm:$0x1] %v323_v48  ;;  %v855_v38 = vrot.slane %v853_v32, 7  ;;  %v1315_v4 = vunpack.c.l.b16 %v1179_v63  ;;  %v3779_v63 = vld [vmem:[%s5262_s3 + $0x140] sm:$0xff] }
 0x13b   : > { %v2442_v40 = vpop.f32.mrf.mxu2  ;;  %v585_v23 = vpack.c.bf16 %v553_v11, %v553_v11  ;;  %v4986_v11 = vsel %vm1333_vm10, %v1496_v52, %v1500_v3  ;;  %v3795_v3 = vld [vmem:[%s5262_s3 + $0x1c0] sm:$0xff]  ;;  %2687 = vmatpush.bf16.msra.mxu1 %v3779_v63 }
 0x13c   : > { %v2528_v10 = vpop.f32.mrf.mxu3  ;;  %v2443_v27 = vadd.f32 %v2442_v40, %v2354_v47  ;;  %v1582_v47 = vrot.slane %v4965_v56, 1  ;;  %v860_v42 = vrot.slane %v855_v38, 4  ;;  %2865 = vmatpush.bf16.msra.mxu3 %v3795_v3 }
 0x13d   : > { %v2355_v5 = vpop.f32.mrf.mxu1  ;;  %v2529_v14 = vadd.f32 %v2528_v10, %v2440_v62  ;;  %v845_v6 = vshrl.u32 %v585_v23, 16  ;;  %v848_v44 = vshll.u32 %v585_v23, 16  ;;  %v856_v62 = vshll.u32 %v586_v30, 16 }
 0x13e   : > { %v2356_v40 = vadd.f32 %v2355_v5, %v4672_v37  ;;  %v1021_v60 = vld [vmem:[#allocation2 + $0xc8] sm:$0x1]  ;;  %v4992_v30 = vsel %vm1542_vm9, %v1582_v47, %v1583_v26 }
 0x13f   : > { %v4980_v49 = vadd.f32 %v2617_v19, %v2529_v14  ;;  %v847_v34 = vrot.slane %v845_v6, 7  ;;  %v3787_v19 = vld [vmem:[%s5262_s3 + $0x180] sm:$0xff]  ;;  %v858_v23 = vor.u32 %v856_v62, %v855_v38  ;;  %v1022_v52 = vsel %vm4138_vm2, %v860_v42, %v1021_v60  ;;  %v5006_v47 = vld [vmem:[#allocation2 + $0xa8] sm:$0xff] }
 0x140   : > { %2776 = vmatpush.bf16.msra.mxu2 %v3787_v19  ;;  %1023 = vst [vmem:[#allocation2 + $0xc8] sm:$0x1] %v1022_v52  ;;  %v1331_v38 = vpack.c.b16 %v1315_v4, %v1315_v4  ;;  %v1505_v26 = vshll.u32 %v5006_v47, 16 }
 0x141   : > { %2570 = vmatmul.bf16.gmra.mxu3 %v4965_v56  ;;  %v850_v32 = vor.u32 %v848_v44, %v847_v34  ;;  %v851_v37 = vrot.slane %v847_v34, 4  ;;  %v1017_v6 = vld [vmem:[#allocation2 + $0xc0] sm:$0xf] }
 0x142   : > { %v2620_v10 = vpop.f32.mrf.mxu0  ;;  %v1507_v4 = vrot.slane %v1505_v26, 1  ;;  %v1510_v19 = vshll.u32 %v1331_v38, 16 }
 0x143   : > { %v2444_v22 = vpop.f32.mrf.mxu2 }
 0x144   : > { %v2531_v48 = vpop.f32.mrf.mxu3  ;;  %v2445_v14 = vadd.f32 %v2444_v22, %v2356_v40  ;;  %v859_v40 = vsel %vm4175_vm4, %v851_v37, %v858_v23  ;;  %v1503_v22 = vshrl.u32 %v5006_v47, 16  ;;  %v1586_v23 = vrot.slane %v1331_v38, 1 }
 0x145   : > { %v2358_v0 = vpop.f32.mrf.mxu1  ;;  %v2532_v5 = vadd.f32 %v2531_v48, %v2443_v27  ;;  %2659 = vmatmul.bf16.gmra.mxu0 %v4986_v11  ;;  %v1018_v27 = vsel %vm4223_vm7, %v850_v32, %v1017_v6  ;;  %1020 = vst [vmem:[#allocation2 + $0xc4] sm:$0xf] %v859_v40  ;;  %v1512_v6 = vrot.slane %v1510_v19, 1 }
 0x146   : > { %1019 = vst [vmem:[#allocation2 + $0xc0] sm:$0xf] %v1018_v27  ;;  %v2359_v44 = vadd.f32 %v2358_v0, %v4693_v7  ;;  %v1508_v37 = vor.u32 %v1507_v4, %v1503_v22  ;;  %v1182_v7 = vld [vmem:[#allocation2 + $0xbc] sm:$0x1]  ;;  %v1585_v0 = vrot.slane %v5006_v47, 1  ;;  %v5032_v4 = vld [vmem:[#allocation2 + $0xb4] sm:$0xff] }
 0x147   : > { %v5011_v34 = vadd.f32 %v2620_v10, %v2532_v5  ;;  %v1316_v26 = vunpack.c.l.b16 %v1182_v7 }
 0x148   : > { %2397 = vmatmul.bf16.gmra.mxu1 %v4986_v11  ;;  %2486 = vmatmul.bf16.gmra.mxu2 %v4992_v30  ;;  %v5025_v63 = vsel %vm1333_vm10, %v1508_v37, %v1512_v6 }
 0x149   : > { %v1332_v38 = vpack.c.b16 %v1316_v26, %v1316_v26  ;;  %v1588_v26 = vrot.slane %v5032_v4, 1 }
 0x14a   : > { %v2622_v62 = vpop.f32.mrf.mxu0 }
 0x14b   : > { %v2447_v42 = vpop.f32.mrf.mxu2 }
 0x14c   : > { %v2533_v60 = vpop.f32.mrf.mxu3  ;;  %v2448_v10 = vadd.f32 %v2447_v42, %v2359_v44 }
 0x14d   : > { %v2360_v48 = vpop.f32.mrf.mxu1  ;;  %v2534_v32 = vadd.f32 %v2533_v60, %v2445_v14  ;;  %v1515_v60 = vshrl.u32 %v5032_v4, 16 }
 0x14e   : > { %v2361_v52 = vadd.f32 %v2360_v48, %v4713_v43  ;;  %v1517_v43 = vshll.u32 %v5032_v4, 16  ;;  %v1522_v48 = vshll.u32 %v1332_v38, 16 }
 0x14f   : > { %v5019_v5 = vadd.f32 %v2622_v62, %v2534_v32  ;;  %v5028_v62 = vsel %vm1542_vm9, %v1585_v0, %v1586_v23 }
 0x151   : > { %2575 = vmatmul.bf16.gmra.mxu3 %v5006_v47 }
 0x152   : > { %v2625_v3 = vpop.f32.mrf.mxu0 }
 0x153   : > { %v2449_v27 = vpop.f32.mrf.mxu2 }
 0x154   : > { %v2536_v14 = vpop.f32.mrf.mxu3  ;;  %v2450_v40 = vadd.f32 %v2449_v27, %v2361_v52  ;;  %v1524_v52 = vrot.slane %v1522_v48, 1 }
 0x155   : > { %v2363_v44 = vpop.f32.mrf.mxu1  ;;  %v2537_v22 = vadd.f32 %v2536_v14, %v2448_v10  ;;  %2664 = vmatmul.bf16.gmra.mxu0 %v5025_v63  ;;  %v1519_v10 = vrot.slane %v1517_v43, 1 }
 0x156   : > { %v2364_v42 = vadd.f32 %v2363_v44, %v4742_v13  ;;  %v1589_v13 = vrot.slane %v1332_v38, 1 }
 0x157   : > { %v5035_v19 = vadd.f32 %v2625_v3, %v2537_v22  ;;  %v1520_v23 = vor.u32 %v1519_v10, %v1515_v60  ;;  %v1185_v3 = vld [vmem:[#allocation2 + $0xc8] sm:$0x1] }
 0x158   : > { %2402 = vmatmul.bf16.gmra.mxu1 %v5025_v63  ;;  %2491 = vmatmul.bf16.gmra.mxu2 %v5028_v62 }
 0x159   : > { %v5046_v22 = vsel %vm1333_vm10, %v1520_v23, %v1524_v52 }
 0x15a   : > { %v2627_v17 = vpop.f32.mrf.mxu0 }
 0x15b   : > { %v2452_v32 = vpop.f32.mrf.mxu2 }
 0x15c   : > { %v2538_v37 = vpop.f32.mrf.mxu3  ;;  %v2453_v6 = vadd.f32 %v2452_v32, %v2364_v42  ;;  %v5048_v42 = vld [vmem:[#allocation2 + $0xc0] sm:$0xff]  ;;  %v5051_v32 = vsel %vm1542_vm9, %v1588_v26, %v1589_v13 }
 0x15d   : > { %v2365_v7 = vpop.f32.mrf.mxu1  ;;  %v2539_v0 = vadd.f32 %v2538_v37, %v2450_v40  ;;  %v1614_v40 = vunpack.c.l.b16 %v1185_v3  ;;  %5323 = vst [vmem:[#allocation30_spill] sm:$0xff] %v5051_v32  ;;  %v1619_v38 = vshll.u32 %v5048_v42, 16 }
 0x15e   : > { %v2366_v14 = vadd.f32 %v2365_v7, %v4765_v46 }
 0x15f   : > { %v5040_v27 = vadd.f32 %v2627_v17, %v2539_v0  ;;  %v5055_v46 = vpack.c.b16 %v1614_v40, %v1614_v40  ;;  %v1621_v23 = vrot.slane %v1619_v38, 1 }
 0x161   : > { %5322 = vst [vmem:[#allocation29_spill] sm:$0xff] %v5040_v27  ;;  %2580 = vmatmul.bf16.gmra.mxu3 %v5032_v4  ;;  %v1624_v52 = vshll.u32 %v5055_v46, 16 }
 0x162   : > { %v2630_v44 = vpop.f32.mrf.mxu0  ;;  %5324 = vst [vmem:[#allocation31_spill] sm:$0xff] %v5055_v46 }
 0x163   : > { %v2454_v43 = vpop.f32.mrf.mxu2 }
 0x164   : > { %v2541_v60 = vpop.f32.mrf.mxu3  ;;  %v2455_v10 = vadd.f32 %v2454_v43, %v2366_v14 }
 0x165   : > { %v2368_v17 = vpop.f32.mrf.mxu1  ;;  %v2542_v48 = vadd.f32 %v2541_v60, %v2453_v6  ;;  %2669 = vmatmul.bf16.gmra.mxu0 %v5046_v22  ;;  %v1617_v6 = vshrl.u32 %v5048_v42, 16  ;;  %v1626_v60 = vrot.slane %v1624_v52, 1 }
 0x166   : > { %v2369_v7 = vadd.f32 %v2368_v17, %v4778_v25 }
 0x167   : > { %v5058_v37 = vadd.f32 %v2630_v44, %v2542_v48  ;;  %v1622_v40 = vor.u32 %v1621_v23, %v1617_v6 }
 0x168   : > { %2407 = vmatmul.bf16.gmra.mxu1 %v5046_v22  ;;  %2496 = vmatmul.bf16.gmra.mxu2 %v5051_v32 }
 0x169   : > { %5325 = vst [vmem:[#allocation32_spill] sm:$0xff] %v5058_v37  ;;  %v5069_v17 = vsel %vm1333_vm10, %v1622_v40, %v1626_v60 }
 0x16a   : > { %v2632_v0 = vpop.f32.mrf.mxu0 }
 0x16b   : > { %v2457_v3 = vpop.f32.mrf.mxu2 }
 0x16c   : > { %v2543_v26 = vpop.f32.mrf.mxu3  ;;  %v2458_v13 = vadd.f32 %v2457_v3, %v2369_v7  ;;  %v4047_v7 = vld [vmem:[#allocation2 + $0x18] sm:$0xff] }
 0x16d   : > { %v2370_v14 = vpop.f32.mrf.mxu1  ;;  %v2544_v43 = vadd.f32 %v2543_v26, %v2455_v10 }
 0x16e   : > { %v2371_v44 = vadd.f32 %v2370_v14, %v4808_v15 }
 0x16f   : > { %v5064_v27 = vadd.f32 %v2632_v0, %v2544_v43 }
 0x171   : > { %2585 = vmatmul.bf16.gmra.mxu3 %v5048_v42 }
 0x172   : > { %v2635_v25 = vpop.f32.mrf.mxu0 }
 0x173   : > { %v2459_v48 = vpop.f32.mrf.mxu2 }
 0x174   : > { %v2546_v38 = vpop.f32.mrf.mxu3  ;;  %v2460_v46 = vadd.f32 %v2459_v48, %v2371_v44 }
 0x175   : > { %v2373_v37 = vpop.f32.mrf.mxu1  ;;  %v2547_v32 = vadd.f32 %v2546_v38, %v2458_v13  ;;  %2674 = vmatmul.bf16.gmra.mxu0 %v5069_v17 }
 0x176   : > { %v2374_v0 = vadd.f32 %v2373_v37, %v4670_v54  ;;  %v4048_v37 = vld [vmem:[#allocation2 + $0x24] sm:$0xff] }
 0x177   : > { %v5073_v10 = vadd.f32 %v2635_v25, %v2547_v32 }
 0x178   : > { %2688 = vmatmul.bf16.vlgmr.msra.gmra.mxu1 %v4606_v28  ;;  %2777 = vmatmul.bf16.vlgmr.msra.gmra.mxu2 %v4047_v7 }
 0x17a   : > { %v2637_v15 = vpop.f32.mrf.mxu0 }
 0x17b   : > { %v2462_v6 = vpop.f32.mrf.mxu2 }
 0x17c   : > { %v2548_v23 = vpop.f32.mrf.mxu3  ;;  %v2463_v52 = vadd.f32 %v2462_v6, %v2374_v0 }
 0x17d   : > { %v2375_v3 = vpop.f32.mrf.mxu1  ;;  %v2549_v26 = vadd.f32 %v2548_v23, %v2460_v46 }
 0x17e   : > { %v2376_v13 = vadd.f32 %v2375_v3, %v4691_v61 }
 0x17f   : > { %v5076_v14 = vadd.f32 %v2637_v15, %v2549_v26 }
 0x181   : > { %2866 = vmatmul.bf16.vlgmr.msra.gmra.mxu3 %v4626_v39 }
 0x182   : > { %v2640_v43 = vpop.f32.mrf.mxu0 }
 0x183   : > { %v2464_v28 = vpop.f32.mrf.mxu2 }
 0x184   : > { %v2551_v32 = vpop.f32.mrf.mxu3  ;;  %v2465_v40 = vadd.f32 %v2464_v28, %v2376_v13  ;;  %v4049_v13 = vld [vmem:[#allocation2 + $0x30] sm:$0xff] }
 0x185   : > { %v2378_v60 = vpop.f32.mrf.mxu1  ;;  %v2552_v44 = vadd.f32 %v2551_v32, %v2463_v52  ;;  %2955 = vmatmul.bf16.vlgmr.msra.gmra.mxu0 %v4631_v58 }
 0x186   : > { %v2379_v46 = vadd.f32 %v2378_v60, %v4711_v41 }
 0x187   : > { %v5082_v54 = vadd.f32 %v2640_v43, %v2552_v44 }
 0x188   : > { %2693 = vmatmul.bf16.gmra.mxu1 %v4631_v58  ;;  %2782 = vmatmul.bf16.gmra.mxu2 %v4048_v37 }
 0x18a   : > { %v2642_v25 = vpop.f32.mrf.mxu0 }
 0x18b   : > { %v2467_v39 = vpop.f32.mrf.mxu2 }
 0x18c   : > { %v2553_v48 = vpop.f32.mrf.mxu3  ;;  %v2468_v61 = vadd.f32 %v2467_v39, %v2379_v46 }
 0x18d   : > { %v2380_v38 = vpop.f32.mrf.mxu1  ;;  %v2554_v7 = vadd.f32 %v2553_v48, %v2465_v40 }
 0x18e   : > { %v2381_v15 = vadd.f32 %v2380_v38, %v4740_v9  ;;  %v4050_v38 = vld [vmem:[#allocation2 + $0x3c] sm:$0xff] }
 0x18f   : > { %v5085_v0 = vadd.f32 %v2642_v25, %v2554_v7 }
 0x191   : > { %2871 = vmatmul.bf16.gmra.mxu3 %v4647_v21 }
 0x192   : > { %v2645_v6 = vpop.f32.mrf.mxu0 }
 0x193   : > { %v2469_v58 = vpop.f32.mrf.mxu2 }
 0x194   : > { %v2556_v23 = vpop.f32.mrf.mxu3  ;;  %v2470_v52 = vadd.f32 %v2469_v58, %v2381_v15 }
 0x195   : > { %v2383_v3 = vpop.f32.mrf.mxu1  ;;  %v2557_v26 = vadd.f32 %v2556_v23, %v2468_v61  ;;  %2960 = vmatmul.bf16.gmra.mxu0 %v4652_v24 }
 0x196   : > { %v2384_v43 = vadd.f32 %v2383_v3, %v4762_v20 }
 0x197   : > { %v5091_v41 = vadd.f32 %v2645_v6, %v2557_v26 }
 0x198   : > { %2698 = vmatmul.bf16.gmra.mxu1 %v4652_v24  ;;  %2787 = vmatmul.bf16.gmra.mxu2 %v4049_v13 }
 0x19a   : > { %v2647_v28 = vpop.f32.mrf.mxu0 }
 0x19b   : > { %v2472_v21 = vpop.f32.mrf.mxu2 }
 0x19c   : > { %v2558_v32 = vpop.f32.mrf.mxu3  ;;  %v2473_v9 = vadd.f32 %v2472_v21, %v2384_v43 }
 0x19d   : > { %v2385_v40 = vpop.f32.mrf.mxu1  ;;  %v2559_v60 = vadd.f32 %v2558_v32, %v2470_v52  ;;  %v4051_v32 = vld [vmem:[#allocation2 + $0x48] sm:$0xff] }
 0x19e   : > { %v2386_v37 = vadd.f32 %v2385_v40, %v4775_v18 }
 0x19f   : > { %v5094_v44 = vadd.f32 %v2647_v28, %v2559_v60 }
 0x1a1   : > { %2876 = vmatmul.bf16.gmra.mxu3 %v4676_v57 }
 0x1a2   : > { %v2650_v46 = vpop.f32.mrf.mxu0 }
 0x1a3   : > { %v2474_v24 = vpop.f32.mrf.mxu2 }
 0x1a4   : > { %v2561_v25 = vpop.f32.mrf.mxu3  ;;  %v2475_v39 = vadd.f32 %v2474_v24, %v2386_v37 }
 0x1a5   : > { %v2388_v48 = vpop.f32.mrf.mxu1  ;;  %v2562_v61 = vadd.f32 %v2561_v25, %v2473_v9  ;;  %2965 = vmatmul.bf16.gmra.mxu0 %v4681_v50  ;;  %v5326_v25 = vld [vmem:[#allocation6_spill] sm:$0xff] }
 0x1a6   : > { %v2389_v7 = vadd.f32 %v2388_v48, %v4811_v12 }
 0x1a7   : > { %v5100_v20 = vadd.f32 %v2650_v46, %v2562_v61 }
 0x1a8   : > { %2703 = vmatmul.bf16.gmra.mxu1 %v4681_v50  ;;  %2792 = vmatmul.bf16.gmra.mxu2 %v4050_v38 }
 0x1aa   : > { %v2652_v15 = vpop.f32.mrf.mxu0 }
 0x1ab   : > { %v2477_v57 = vpop.f32.mrf.mxu2 }
 0x1ac   : > { %v2563_v6 = vpop.f32.mrf.mxu3  ;;  %v2478_v18 = vadd.f32 %v2477_v57, %v2389_v7  ;;  %v5327_v57 = vld [vmem:[#allocation8_spill] sm:$0xff] }
 0x1ad   : > { %v2390_v58 = vpop.f32.mrf.mxu1  ;;  %v2564_v23 = vadd.f32 %v2563_v6, %v2475_v39  ;;  %v4052_v6 = vld [vmem:[#allocation2 + $0x54] sm:$0xff] }
 0x1ae   : > { %v2391_v3 = vadd.f32 %v2390_v58, %v4826_v1 }
 0x1af   : > { %v5103_v52 = vadd.f32 %v2652_v15, %v2564_v23 }
 0x1b1   : > { %2881 = vmatmul.bf16.gmra.mxu3 %v4709_v31 }
 0x1b2   : > { %v2655_v26 = vpop.f32.mrf.mxu0 }
 0x1b3   : > { %v2479_v50 = vpop.f32.mrf.mxu2 }
 0x1b4   : > { %v2566_v13 = vpop.f32.mrf.mxu3  ;;  %v2480_v43 = vadd.f32 %v2479_v50, %v2391_v3 }
 0x1b5   : > { %v2393_v28 = vpop.f32.mrf.mxu1  ;;  %v2567_v21 = vadd.f32 %v2566_v13, %v2478_v18  ;;  %2970 = vmatmul.bf16.gmra.mxu0 %v4718_v45  ;;  %v5328_v18 = vld [vmem:[#allocation7_spill] sm:$0xff] }
 0x1b6   : > { %v2394_v9 = vadd.f32 %v2393_v28, %v4689_v8  ;;  %v5329_v28 = vld [vmem:[#allocation11_spill] sm:$0xff] }
 0x1b7   : > { %v5109_v12 = vadd.f32 %v2655_v26, %v2567_v21  ;;  %v5330_v21 = vld [vmem:[#allocation9_spill] sm:$0xff] }
 0x1b8   : > { %2708 = vmatmul.bf16.gmra.mxu1 %v4718_v45  ;;  %2797 = vmatmul.bf16.gmra.mxu2 %v4051_v32 }
 0x1ba   : > { %v2657_v40 = vpop.f32.mrf.mxu0 }
 0x1bb   : > { %v2482_v31 = vpop.f32.mrf.mxu2 }
 0x1bc   : > { %v2568_v60 = vpop.f32.mrf.mxu3  ;;  %v2483_v1 = vadd.f32 %v2482_v31, %v2394_v9 }
 0x1bd   : > { %v2395_v37 = vpop.f32.mrf.mxu1  ;;  %v2569_v46 = vadd.f32 %v2568_v60, %v2480_v43 }
 0x1be   : > { %v2396_v39 = vadd.f32 %v2395_v37, %v5326_v25 }
 0x1bf   : > { %v5112_v24 = vadd.f32 %v2657_v40, %v2569_v46  ;;  %v5331_v46 = vld [vmem:[#allocation12_spill] sm:$0xff] }
 0x1c1   : > { %2886 = vmatmul.bf16.gmra.mxu3 %v4748_v55 }
 0x1c2   : > { %v2660_v48 = vpop.f32.mrf.mxu0 }
 0x1c3   : > { %v2484_v45 = vpop.f32.mrf.mxu2 }
 0x1c4   : > { %v2571_v61 = vpop.f32.mrf.mxu3  ;;  %v2485_v38 = vadd.f32 %v2484_v45, %v2396_v39  ;;  %v5332_v39 = vld [vmem:[#allocation13_spill] sm:$0xff] }
 0x1c5   : > { %v2398_v7 = vpop.f32.mrf.mxu1  ;;  %v2572_v15 = vadd.f32 %v2571_v61, %v2483_v1  ;;  %2975 = vmatmul.bf16.gmra.mxu0 %v5327_v57 }
 0x1c6   : > { %v2399_v58 = vadd.f32 %v2398_v7, %v5328_v18 }
 0x1c7   : > { %v5118_v8 = vadd.f32 %v2660_v48, %v2572_v15  ;;  %v5333_v48 = vld [vmem:[#allocation10_spill] sm:$0xff] }
 0x1c8   : > { %2713 = vmatmul.bf16.gmra.mxu1 %v5327_v57  ;;  %2802 = vmatmul.bf16.gmra.mxu2 %v4052_v6 }
 0x1ca   : > { %v2662_v23 = vpop.f32.mrf.mxu0 }
 0x1cb   : > { %v2487_v55 = vpop.f32.mrf.mxu2 }
 0x1cc   : > { %v2573_v3 = vpop.f32.mrf.mxu3  ;;  %v2488_v26 = vadd.f32 %v2487_v55, %v2399_v58  ;;  %v5334_v58 = vld [vmem:[#allocation15_spill] sm:$0xff] }
 0x1cd   : > { %v2400_v50 = vpop.f32.mrf.mxu1  ;;  %v2574_v13 = vadd.f32 %v2573_v3, %v2485_v38 }
 0x1ce   : > { %v2401_v32 = vadd.f32 %v2400_v50, %v5330_v21 }
 0x1cf   : > { %v5121_v43 = vadd.f32 %v2662_v23, %v2574_v13  ;;  %v5335_v23 = vld [vmem:[#allocation14_spill] sm:$0xff] }
 0x1d1   : > { %2891 = vmatmul.bf16.gmra.mxu3 %v5329_v28 }
 0x1d2   : > { %v2665_v9 = vpop.f32.mrf.mxu0 }
 0x1d3   : > { %v2489_v40 = vpop.f32.mrf.mxu2 }
 0x1d4   : > { %v2576_v31 = vpop.f32.mrf.mxu3  ;;  %v2490_v60 = vadd.f32 %v2489_v40, %v2401_v32  ;;  %v5336_v32 = vld [vmem:[#allocation17_spill] sm:$0xff]  ;;  %v5337_v40 = vld [vmem:[#allocation18_spill] sm:$0xff] }
 0x1d5   : > { %v2403_v1 = vpop.f32.mrf.mxu1  ;;  %v2577_v37 = vadd.f32 %v2576_v31, %v2488_v26  ;;  %2980 = vmatmul.bf16.gmra.mxu0 %v5331_v46  ;;  %v5338_v31 = vld [vmem:[#allocation16_spill] sm:$0xff] }
 0x1d6   : > { %v2404_v45 = vadd.f32 %v2403_v1, %v5333_v48 }
 0x1d7   : > { %v5127_v25 = vadd.f32 %v2665_v9, %v2577_v37 }
 0x1d8   : > { %2718 = vmatmul.bf16.gmra.mxu1 %v5331_v46  ;;  %2807 = vmatmul.bf16.gmra.mxu2 %v5332_v39 }
 0x1da   : > { %v2667_v61 = vpop.f32.mrf.mxu0 }
 0x1db   : > { %v2492_v38 = vpop.f32.mrf.mxu2 }
 0x1dc   : > { %v2578_v7 = vpop.f32.mrf.mxu3  ;;  %v2493_v15 = vadd.f32 %v2492_v38, %v2404_v45  ;;  %v5339_v38 = vld [vmem:[#allocation20_spill] sm:$0xff] }
 0x1dd   : > { %v2405_v57 = vpop.f32.mrf.mxu1  ;;  %v2579_v6 = vadd.f32 %v2578_v7, %v2490_v60  ;;  %v5340_v7 = vld [vmem:[#allocation19_spill] sm:$0xff] }
 0x1de   : > { %v2406_v55 = vadd.f32 %v2405_v57, %v5335_v23 }
 0x1df   : > { %v5131_v18 = vadd.f32 %v2667_v61, %v2579_v6 }
 0x1e1   : > { %2896 = vmatmul.bf16.gmra.mxu3 %v5334_v58 }
 0x1e2   : > { %v2670_v3 = vpop.f32.mrf.mxu0 }
 0x1e3   : > { %v2494_v26 = vpop.f32.mrf.mxu2 }
 0x1e4   : > { %v2581_v50 = vpop.f32.mrf.mxu3  ;;  %v2495_v13 = vadd.f32 %v2494_v26, %v2406_v55  ;;  %v5341_v26 = vld [vmem:[#allocation21_spill] sm:$0xff] }
 0x1e5   : > { %v2408_v28 = vpop.f32.mrf.mxu1  ;;  %v2582_v21 = vadd.f32 %v2581_v50, %v2493_v15  ;;  %2985 = vmatmul.bf16.gmra.mxu0 %v5336_v32 }
 0x1e6   : > { %v2409_v60 = vadd.f32 %v2408_v28, %v5338_v31  ;;  %v4053_v28 = vld [vmem:[#allocation2 + $0x78] sm:$0xff] }
 0x1e7   : > { %v5137_v9 = vadd.f32 %v2670_v3, %v2582_v21 }
 0x1e8   : > { %2723 = vmatmul.bf16.gmra.mxu1 %v5336_v32  ;;  %2812 = vmatmul.bf16.gmra.mxu2 %v5337_v40 }
 0x1ea   : > { %v2672_v1 = vpop.f32.mrf.mxu0 }
 0x1eb   : > { %v2497_v37 = vpop.f32.mrf.mxu2 }
 0x1ec   : > { %v2583_v46 = vpop.f32.mrf.mxu3  ;;  %v2498_v39 = vadd.f32 %v2497_v37, %v2409_v60 }
 0x1ed   : > { %v2410_v48 = vpop.f32.mrf.mxu1  ;;  %v2584_v45 = vadd.f32 %v2583_v46, %v2495_v13 }
 0x1ee   : > { %v2411_v15 = vadd.f32 %v2410_v48, %v5340_v7 }
 0x1ef   : > { %v5141_v61 = vadd.f32 %v2672_v1, %v2584_v45  ;;  %v5342_v1 = vld [vmem:[#allocation22_spill] sm:$0xff] }
 0x1f1   : > { %2901 = vmatmul.bf16.gmra.mxu3 %v5339_v38 }
 0x1f2   : > { %v2675_v57 = vpop.f32.mrf.mxu0 }
 0x1f3   : > { %v2499_v6 = vpop.f32.mrf.mxu2 }
 0x1f4   : > { %v2586_v58 = vpop.f32.mrf.mxu3  ;;  %v2500_v23 = vadd.f32 %v2499_v6, %v2411_v15 }
 0x1f5   : > { %v2689_v55 = vpop.f32.mrf.mxu1  ;;  %v2587_v3 = vadd.f32 %v2586_v58, %v2498_v39  ;;  %2990 = vmatmul.bf16.gmra.mxu0 %v5341_v26 }
 0x1f6   : > { %v2690_v37 = vadd.f32 %v2689_v55, %v5342_v1 }
 0x1f7   : > { %v5147_v50 = vadd.f32 %v2675_v57, %v2587_v3  ;;  %v4054_v57 = vld [vmem:[#allocation2 + $0x84] sm:$0xff] }
 0x1f8   : > { %2728 = vmatmul.bf16.gmra.mxu1 %v5341_v26  ;;  %2817 = vmatmul.bf16.gmra.mxu2 %v4053_v28 }
 0x1fa   : > { %v2677_v13 = vpop.f32.mrf.mxu0 }
 0x1fb   : > { %v2778_v21 = vpop.f32.mrf.mxu2 }
 0x1fc   : > { %v2588_v32 = vpop.f32.mrf.mxu3  ;;  %v2779_v48 = vadd.f32 %v2778_v21, %v2690_v37 }
 0x1fd   : > { %v2691_v40 = vpop.f32.mrf.mxu1  ;;  %v2589_v31 = vadd.f32 %v2588_v32, %v2500_v23 }
 0x1fe   : > { %v2692_v7 = vadd.f32 %v2691_v40, %v4884_v53 }
 0x1ff   : > { %v5149_v60 = vadd.f32 %v2677_v13, %v2589_v31 }
 0x201   : > { %2906 = vmatmul.bf16.gmra.mxu3 %v4890_v33 }
 0x202   : > { %v2956_v46 = vpop.f32.mrf.mxu0 }
 0x203   : > { %v2780_v39 = vpop.f32.mrf.mxu2 }
 0x204   : > { %v2867_v45 = vpop.f32.mrf.mxu3  ;;  %v2781_v6 = vadd.f32 %v2780_v39, %v2692_v7 }
 0x205   : > { %v2694_v38 = vpop.f32.mrf.mxu1  ;;  %2995 = vmatmul.bf16.gmra.mxu0 %v4896_v29  ;;  %v2868_v15 = vadd.f32 %v2867_v45, %v2779_v48 }
 0x206   : > { %v2695_v13 = vadd.f32 %v2694_v38, %v4901_v51  ;;  %v5343_v38 = vld [vmem:[#allocation23_spill] sm:$0xff] }
 0x207   : > { %v2957_v23 = vadd.f32 %v2956_v46, %v2868_v15 }
 0x208   : > { %2733 = vmatmul.bf16.gmra.mxu1 %v4896_v29  ;;  %2822 = vmatmul.bf16.gmra.mxu2 %v4054_v57 }
 0x209   : > { %v3137_v21 = vmul.f32 %v2957_v23, %v2957_v23 }
 0x20a   : > { %v2958_v58 = vpop.f32.mrf.mxu0 }
 0x20b   : > { %v2783_v33 = vpop.f32.mrf.mxu2 }
 0x20c   : > { %v2869_v55 = vpop.f32.mrf.mxu3  ;;  %v2784_v40 = vadd.f32 %v2783_v33, %v2695_v13 }
 0x20d   : > { %v2696_v3 = vpop.f32.mrf.mxu1  ;;  %v2870_v26 = vadd.f32 %v2869_v55, %v2781_v6 }
 0x20e   : > { %v2697_v45 = vadd.f32 %v2696_v3, %v4908_v35  ;;  %v5345_v3 = vld [vmem:[#allocation26_spill] sm:$0xff] }
 0x20f   : > { %v2959_v28 = vadd.f32 %v2958_v58, %v2870_v26 }
 0x211   : > { %v3878_v53 = vpack.c.bf16 %v2959_v28, %v2957_v23  ;;  %v3100_v29 = vadd.f32 %v2959_v28, %v2957_v23  ;;  %v3138_v32 = vmul.f32 %v2959_v28, %v2959_v28  ;;  %2911 = vmatmul.bf16.gmra.mxu3 %v4914_v59  ;;  %v5344_v28 = vld [vmem:[#allocation24_spill] sm:$0xff] }
 0x212   : > { %v2961_v1 = vpop.f32.mrf.mxu0 }
 0x213   : > { %3879 = vst [vmem:[%s5162_s30] sm:$0xff] %v3878_v53   ;;  %v3169_v31 = vadd.f32 %v3138_v32, %v3137_v21  ;;  %v2785_v37 = vpop.f32.mrf.mxu2 }
 0x214   : > { %v2872_v46 = vpop.f32.mrf.mxu3  ;;  %v2786_v15 = vadd.f32 %v2785_v37, %v2697_v45  ;;  %v5347_v45 = vld [vmem:[#allocation25_spill] sm:$0xff] }
 0x215   : > { %v2699_v51 = vpop.f32.mrf.mxu1  ;;  %v2873_v39 = vadd.f32 %v2872_v46, %v2784_v40  ;;  %3000 = vmatmul.bf16.gmra.mxu0 %v4923_v36  ;;  %v5346_v46 = vld [vmem:[#allocation27_spill] sm:$0xff] }
 0x216   : > { %v2700_v13 = vadd.f32 %v2699_v51, %v5344_v28 }
 0x217   : > { %v2962_v48 = vadd.f32 %v2961_v1, %v2873_v39 }
 0x218   : > { %2738 = vmatmul.bf16.gmra.mxu1 %v4923_v36  ;;  %2827 = vmatmul.bf16.gmra.mxu2 %v5343_v38 }
 0x219   : > { %v3101_v7 = vadd.f32 %v3100_v29, %v2962_v48  ;;  %v3139_v59 = vmul.f32 %v2962_v48, %v2962_v48 }
 0x21a   : > { %v2963_v6 = vpop.f32.mrf.mxu0 }
 0x21b   : > { %v3170_v57 = vadd.f32 %v3169_v31, %v3139_v59  ;;  %v2788_v58 = vpop.f32.mrf.mxu2 }
 0x21c   : > { %v2874_v33 = vpop.f32.mrf.mxu3  ;;  %v2789_v36 = vadd.f32 %v2788_v58, %v2700_v13 }
 0x21d   : > { %v2701_v23 = vpop.f32.mrf.mxu1  ;;  %v2875_v55 = vadd.f32 %v2874_v33, %v2786_v15 }
 0x21e   : > { %v2702_v38 = vadd.f32 %v2701_v23, %v5347_v45 }
 0x21f   : > { %v2964_v26 = vadd.f32 %v2963_v6, %v2875_v55 }
 0x221   : > { %v3883_v21 = vpack.c.bf16 %v2964_v26, %v2962_v48  ;;  %v3102_v53 = vadd.f32 %v3101_v7, %v2964_v26  ;;  %v3140_v35 = vmul.f32 %v2964_v26, %v2964_v26  ;;  %2916 = vmatmul.bf16.gmra.mxu3 %v5345_v3  ;;  %v5348_v26 = vld [vmem:[#allocation28_spill] sm:$0xff] }
 0x222   : > { %v2966_v32 = vpop.f32.mrf.mxu0 }
 0x223   : > { %3970 = vst [vmem:[%s5162_s30 + $0x8] sm:$0xff] %v3883_v21   ;;  %v3171_v29 = vadd.f32 %v3170_v57, %v3140_v35  ;;  %v2790_v40 = vpop.f32.mrf.mxu2 }
 0x224   : > { %v2877_v1 = vpop.f32.mrf.mxu3  ;;  %v2791_v7 = vadd.f32 %v2790_v40, %v2702_v38 }
 0x225   : > { %v2704_v31 = vpop.f32.mrf.mxu1  ;;  %v2878_v37 = vadd.f32 %v2877_v1, %v2789_v36  ;;  %3005 = vmatmul.bf16.gmra.mxu0 %v5346_v46 }
 0x226   : > { %v2705_v28 = vadd.f32 %v2704_v31, %v5348_v26  ;;  %v381_v31 = vld [vmem:[#allocation2 + $0xd4] sm:$0x1] }
 0x227   : > { %v2967_v39 = vadd.f32 %v2966_v32, %v2878_v37  ;;  %v382_v38 = vsel %vm4502_vm8, 0, %v381_v31 }
 0x228   : > { %2743 = vmatmul.bf16.gmra.mxu1 %v5346_v46  ;;  %2832 = vmatmul.bf16.gmra.mxu2 %v4965_v56  ;;  %383 = vst [vmem:[#allocation2 + $0xd4] sm:$0x1] %v382_v38 }
 0x229   : > { %v3103_v51 = vadd.f32 %v3102_v53, %v2967_v39  ;;  %v3141_v48 = vmul.f32 %v2967_v39, %v2967_v39 }
 0x22a   : > { %v2968_v15 = vpop.f32.mrf.mxu0 }
 0x22b   : > { %v3172_v59 = vadd.f32 %v3171_v29, %v3141_v48  ;;  %v2793_v57 = vpop.f32.mrf.mxu2 }
 0x22c   : > { %v2879_v6 = vpop.f32.mrf.mxu3  ;;  %v2794_v35 = vadd.f32 %v2793_v57, %v2705_v28 }
 0x22d   : > { %v2706_v58 = vpop.f32.mrf.mxu1  ;;  %v2880_v33 = vadd.f32 %v2879_v6, %v2791_v7 }
 0x22e   : > { %v2707_v1 = vadd.f32 %v2706_v58, %v4980_v49 }
 0x22f   : > { %v2969_v55 = vadd.f32 %v2968_v15, %v2880_v33  ;;  %v1132_v26 = vld [vmem:[#allocation2 + $0xd4] sm:$0x1] }
 0x231   : > { %v3888_v13 = vpack.c.bf16 %v2969_v55, %v2967_v39  ;;  %v3104_v21 = vadd.f32 %v3103_v51, %v2969_v55  ;;  %v3142_v23 = vmul.f32 %v2969_v55, %v2969_v55  ;;  %2921 = vmatmul.bf16.gmra.mxu3 %v4986_v11  ;;  %v325_v39 = vld [vmem:[#allocation2 + $0xcc] sm:$0x1] }
 0x232   : > { %v2971_v53 = vpop.f32.mrf.mxu0  ;;  %v326_v51 = vsel %vm4138_vm2, 0, %v325_v39 }
 0x233   : > { %3971 = vst [vmem:[%s5162_s30 + $0x10] sm:$0xff] %v3888_v13   ;;  %v3173_v56 = vadd.f32 %v3172_v59, %v3142_v23  ;;  %v2795_v3 = vpop.f32.mrf.mxu2  ;;  %v5350_v13 = vld [vmem:[#allocation4_spill] sm:$0xff] }
 0x234   : > { %v2882_v36 = vpop.f32.mrf.mxu3  ;;  %v2796_v46 = vadd.f32 %v2795_v3, %v2707_v1  ;;  %327 = vst [vmem:[#allocation2 + $0xcc] sm:$0x1] %v326_v51 }
 0x235   : > { %v2709_v29 = vpop.f32.mrf.mxu1  ;;  %v2883_v32 = vadd.f32 %v2882_v36, %v2794_v35  ;;  %3010 = vmatmul.bf16.gmra.mxu0 %v4992_v30 }
 0x236   : > { %v2710_v57 = vadd.f32 %v2709_v29, %v5011_v34 }
 0x237   : > { %v2972_v40 = vadd.f32 %v2971_v53, %v2883_v32  ;;  %v5351_v53 = vld [vmem:[#allocation3_spill] sm:$0xff] }
 0x238   : > { %2748 = vmatmul.bf16.gmra.mxu1 %v4992_v30  ;;  %2837 = vmatmul.bf16.gmra.mxu2 %v5006_v47 }
 0x239   : > { %v3105_v37 = vadd.f32 %v3104_v21, %v2972_v40  ;;  %v3143_v11 = vmul.f32 %v2972_v40, %v2972_v40  ;;  %v1133_v21 = vsel %vm4138_vm2, %v5350_v13, %v1132_v26 }
 0x23a   : > { %v2973_v7 = vpop.f32.mrf.mxu0  ;;  %1134 = vst [vmem:[#allocation2 + $0xd4] sm:$0x1] %v1133_v21 }
 0x23b   : > { %v3174_v48 = vadd.f32 %v3173_v56, %v3143_v11  ;;  %v2798_v49 = vpop.f32.mrf.mxu2  ;;  %v1128_v28 = vld [vmem:[#allocation2 + $0xcc] sm:$0xf] }
 0x23c   : > { %v2884_v30 = vpop.f32.mrf.mxu3  ;;  %v2799_v55 = vadd.f32 %v2798_v49, %v2710_v57  ;;  %v1129_v34 = vsel %vm4223_vm7, %v5351_v53, %v1128_v28 }
 0x23d   : > { %v2711_v59 = vpop.f32.mrf.mxu1  ;;  %v2885_v47 = vadd.f32 %v2884_v30, %v2796_v46  ;;  %1130 = vst [vmem:[#allocation2 + $0xcc] sm:$0xf] %v1129_v34 }
 0x23e   : > { %v2712_v32 = vadd.f32 %v2711_v59, %v5019_v5 }
 0x23f   : > { %v2974_v15 = vadd.f32 %v2973_v7, %v2885_v47 }
 0x241   : > { %v3893_v6 = vpack.c.bf16 %v2974_v15, %v2972_v40  ;;  %v3106_v58 = vadd.f32 %v3105_v37, %v2974_v15  ;;  %v3144_v33 = vmul.f32 %v2974_v15, %v2974_v15  ;;  %2926 = vmatmul.bf16.gmra.mxu3 %v5025_v63  ;;  %v5352_v15 = vld [vmem:[#allocation30_spill] sm:$0xff] }
 0x242   : > { %v2976_v35 = vpop.f32.mrf.mxu0  ;;  %v1188_v13 = vld [vmem:[#allocation2 + $0xd4] sm:$0x1] }
 0x243   : > { %3972 = vst [vmem:[%s5162_s30 + $0x18] sm:$0xff] %v3893_v6   ;;  %v3175_v23 = vadd.f32 %v3174_v48, %v3144_v33  ;;  %v2800_v56 = vpop.f32.mrf.mxu2  ;;  %v5353_v6 = vld [vmem:[#allocation29_spill] sm:$0xff]  ;;  %v1640_v53 = vunpack.c.l.b16 %v1188_v13 }
 0x244   : > { %v2887_v3 = vpop.f32.mrf.mxu3  ;;  %v2801_v1 = vadd.f32 %v2800_v56, %v2712_v32  ;;  %v3738_v56 = vld [vmem:[#allocation2 + $0xcc] sm:$0xff] }
 0x245   : > { %v2714_v36 = vpop.f32.mrf.mxu1  ;;  %v2888_v29 = vadd.f32 %v2887_v3, %v2799_v55  ;;  %3015 = vmatmul.bf16.gmra.mxu0 %v5028_v62  ;;  %v5354_v3 = vld [vmem:[#allocation32_spill] sm:$0xff] }
 0x246   : > { %v2715_v38 = vadd.f32 %v2714_v36, %v5035_v19 }
 0x247   : > { %v2977_v63 = vadd.f32 %v2976_v35, %v2888_v29  ;;  %v1629_v29 = vrot.slane %v5048_v42, 1 }
 0x248   : > { %2753 = vmatmul.bf16.gmra.mxu1 %v5028_v62  ;;  %2842 = vmatmul.bf16.gmra.mxu2 %v5032_v4 }
 0x249   : > { %v3107_v2 = vadd.f32 %v3106_v58, %v2977_v63  ;;  %v3145_v40 = vmul.f32 %v2977_v63, %v2977_v63 }
 0x24a   : > { %v2978_v31 = vpop.f32.mrf.mxu0 }
 0x24b   : > { %v3176_v16 = vadd.f32 %v3175_v23, %v3145_v40  ;;  %v2803_v37 = vpop.f32.mrf.mxu2 }
 0x24c   : > { %v2889_v11 = vpop.f32.mrf.mxu3  ;;  %v2804_v62 = vadd.f32 %v2803_v37, %v2715_v38  ;;  %v1645_v37 = vshll.u32 %v3738_v56, 16 }
 0x24d   : > { %v2716_v46 = vpop.f32.mrf.mxu1  ;;  %v2890_v39 = vadd.f32 %v2889_v11, %v2801_v1 }
 0x24e   : > { %v2717_v58 = vadd.f32 %v2716_v46, %v5353_v6 }
 0x24f   : > { %v2979_v45 = vadd.f32 %v2978_v31, %v2890_v39  ;;  %v1641_v31 = vpack.c.b16 %v1640_v53, %v1640_v53 }
 0x251   : > { %v3898_v51 = vpack.c.bf16 %v2979_v45, %v2977_v63  ;;  %v3108_v48 = vadd.f32 %v3107_v2, %v2979_v45  ;;  %v3146_v5 = vmul.f32 %v2979_v45, %v2979_v45  ;;  %2931 = vmatmul.bf16.gmra.mxu3 %v5046_v22  ;;  %v5355_v63 = vld [vmem:[#allocation31_spill] sm:$0xff] }
 0x252   : > { %v2981_v7 = vpop.f32.mrf.mxu0  ;;  %v1630_v32 = vrot.slane %v5355_v63, 1 }
 0x253   : > { %3973 = vst [vmem:[%s5162_s30 + $0x20] sm:$0xff] %v3898_v51   ;;  %v3177_v4 = vadd.f32 %v3176_v16, %v3146_v5  ;;  %v2805_v49 = vpop.f32.mrf.mxu2  ;;  %v1647_v5 = vrot.slane %v1645_v37, 1 }
 0x254   : > { %v2892_v30 = vpop.f32.mrf.mxu3  ;;  %v2806_v22 = vadd.f32 %v2805_v49, %v2717_v58  ;;  %v1631_v39 = vsel %vm1542_vm9, %v1629_v29, %v1630_v32 }
 0x255   : > { %v2719_v59 = vpop.f32.mrf.mxu1  ;;  %v2893_v47 = vadd.f32 %v2892_v30, %v2804_v62  ;;  %3020 = vmatmul.bf16.gmra.mxu0 %v5352_v15  ;;  %v1650_v62 = vshll.u32 %v1641_v31, 16 }
 0x256   : > { %v2720_v36 = vadd.f32 %v2719_v59, %v5354_v3 }
 0x257   : > { %v2982_v57 = vadd.f32 %v2981_v7, %v2893_v47  ;;  %v1652_v47 = vrot.slane %v1650_v62, 1 }
 0x258   : > { %2758 = vmatmul.bf16.gmra.mxu1 %v5352_v15  ;;  %2847 = vmatmul.bf16.gmra.mxu2 %v5048_v42  ;;  %v1643_v42 = vshrl.u32 %v3738_v56, 16 }
 0x259   : > { %v3109_v19 = vadd.f32 %v3108_v48, %v2982_v57  ;;  %v3147_v33 = vmul.f32 %v2982_v57, %v2982_v57 }
 0x25a   : > { %v2983_v26 = vpop.f32.mrf.mxu0  ;;  %v1648_v59 = vor.u32 %v1647_v5, %v1643_v42 }
 0x25b   : > { %v3178_v55 = vadd.f32 %v3177_v4, %v3147_v33  ;;  %v2808_v28 = vpop.f32.mrf.mxu2 }
 0x25c   : > { %v2894_v21 = vpop.f32.mrf.mxu3  ;;  %v2809_v16 = vadd.f32 %v2808_v28, %v2720_v36  ;;  %v1656_v28 = vrot.slane %v1641_v31, 1 }
 0x25d   : > { %v2721_v23 = vpop.f32.mrf.mxu1  ;;  %v2895_v35 = vadd.f32 %v2894_v21, %v2806_v22  ;;  %v1653_v22 = vsel %vm1333_vm10, %v1648_v59, %v1652_v47 }
 0x25e   : > { %v2722_v7 = vadd.f32 %v2721_v23, %v5064_v27  ;;  %v1655_v27 = vrot.slane %v3738_v56, 1 }
 0x25f   : > { %v2984_v34 = vadd.f32 %v2983_v26, %v2895_v35 }
 0x260   : > { %v1657_v3 = vsel %vm1542_vm9, %v1655_v27, %v1656_v28 }
 0x261   : > { %v3903_v2 = vpack.c.bf16 %v2984_v34, %v2982_v57  ;;  %v3110_v40 = vadd.f32 %v3109_v19, %v2984_v34  ;;  %v3148_v1 = vmul.f32 %v2984_v34, %v2984_v34  ;;  %2936 = vmatmul.bf16.gmra.mxu3 %v5069_v17 }
 0x262   : > { %v2986_v46 = vpop.f32.mrf.mxu0 }
 0x263   : > { %3974 = vst [vmem:[%s5162_s30 + $0x28] sm:$0xff] %v3903_v2   ;;  %v3179_v11 = vadd.f32 %v3178_v55, %v3148_v1  ;;  %v2810_v45 = vpop.f32.mrf.mxu2 }
 0x264   : > { %v2897_v38 = vpop.f32.mrf.mxu3  ;;  %v2811_v30 = vadd.f32 %v2810_v45, %v2722_v7 }
 0x265   : > { %v2724_v51 = vpop.f32.mrf.mxu1  ;;  %v2898_v48 = vadd.f32 %v2897_v38, %v2809_v16  ;;  %3025 = vmatmul.bf16.gmra.mxu0 %v1631_v39 }
 0x266   : > { %v2725_v26 = vadd.f32 %v2724_v51, %v5073_v10 }
 0x267   : > { %v2987_v4 = vadd.f32 %v2986_v46, %v2898_v48 }
 0x268   : > { %2763 = vmatmul.bf16.gmra.mxu1 %v1631_v39  ;;  %2852 = vmatmul.bf16.gmra.mxu2 %v3738_v56 }
 0x269   : > { %v3111_v17 = vadd.f32 %v3110_v40, %v2987_v4  ;;  %v3149_v49 = vmul.f32 %v2987_v4, %v2987_v4 }
 0x26a   : > { %v2988_v57 = vpop.f32.mrf.mxu0 }
 0x26b   : > { %v3180_v15 = vadd.f32 %v3179_v11, %v3149_v49  ;;  %v2813_v6 = vpop.f32.mrf.mxu2 }
 0x26c   : > { %v2899_v58 = vpop.f32.mrf.mxu3  ;;  %v2814_v35 = vadd.f32 %v2813_v6, %v2725_v26 }
 0x26d   : > { %v2726_v19 = vpop.f32.mrf.mxu1  ;;  %v2900_v33 = vadd.f32 %v2899_v58, %v2811_v30 }
 0x26e   : > { %v2727_v10 = vadd.f32 %v2726_v19, %v5076_v14 }
 0x26f   : > { %v2989_v55 = vadd.f32 %v2988_v57, %v2900_v33 }
 0x271   : > { %v3908_v13 = vpack.c.bf16 %v2989_v55, %v2987_v4  ;;  %v3112_v21 = vadd.f32 %v3111_v17, %v2989_v55  ;;  %v3150_v23 = vmul.f32 %v2989_v55, %v2989_v55  ;;  %2941 = vmatmul.bf16.gmra.mxu3 %v1653_v22 }
 0x272   : > { %v2991_v34 = vpop.f32.mrf.mxu0 }
 0x273   : > { %3975 = vst [vmem:[%s5162_s30 + $0x30] sm:$0xff] %v3908_v13   ;;  %v3181_v53 = vadd.f32 %v3180_v15, %v3150_v23  ;;  %v2815_v36 = vpop.f32.mrf.mxu2 }
 0x274   : > { %v2902_v29 = vpop.f32.mrf.mxu3  ;;  %v2816_v1 = vadd.f32 %v2815_v36, %v2727_v10 }
 0x275   : > { %v2729_v63 = vpop.f32.mrf.mxu1  ;;  %v2903_v32 = vadd.f32 %v2902_v29, %v2814_v35  ;;  %3030 = vmatmul.bf16.gmra.mxu0 %v1657_v3 }
 0x276   : > { %v2730_v38 = vadd.f32 %v2729_v63, %v5082_v54 }
 0x277   : > { %v2992_v2 = vadd.f32 %v2991_v34, %v2903_v32 }
 0x279   : > { %v3113_v56 = vadd.f32 %v3112_v21, %v2992_v2  ;;  %v3151_v40 = vmul.f32 %v2992_v2, %v2992_v2 }
 0x27a   : > { %v2993_v31 = vpop.f32.mrf.mxu0 }
 0x27b   : > { %v3182_v16 = vadd.f32 %v3181_v53, %v3151_v40  ;;  %v2818_v37 = vpop.f32.mrf.mxu2 }
 0x27c   : > { %v2904_v11 = vpop.f32.mrf.mxu3  ;;  %v2819_v5 = vadd.f32 %v2818_v37, %v2730_v38 }
 0x27d   : > { %v2731_v46 = vpop.f32.mrf.mxu1  ;;  %v2905_v39 = vadd.f32 %v2904_v11, %v2816_v1 }
 0x27e   : > { %v2732_v59 = vadd.f32 %v2731_v46, %v5085_v0 }
 0x27f   : > { %v2994_v45 = vadd.f32 %v2993_v31, %v2905_v39 }
 0x281   : > { %v3913_v51 = vpack.c.bf16 %v2994_v45, %v2992_v2  ;;  %v3114_v48 = vadd.f32 %v3113_v56, %v2994_v45  ;;  %v3152_v42 = vmul.f32 %v2994_v45, %v2994_v45 }
 0x282   : > { %v2996_v14 = vpop.f32.mrf.mxu0 }
 0x283   : > { %3976 = vst [vmem:[%s5162_s30 + $0x38] sm:$0xff] %v3913_v51   ;;  %v3183_v62 = vadd.f32 %v3182_v16, %v3152_v42  ;;  %v2820_v4 = vpop.f32.mrf.mxu2 }
 0x284   : > { %v2907_v7 = vpop.f32.mrf.mxu3  ;;  %v2821_v57 = vadd.f32 %v2820_v4, %v2732_v59 }
 0x285   : > { %v2734_v17 = vpop.f32.mrf.mxu1  ;;  %v2908_v49 = vadd.f32 %v2907_v7, %v2819_v5 }
 0x286   : > { %v2735_v26 = vadd.f32 %v2734_v17, %v5091_v41 }
 0x287   : > { %v2997_v30 = vadd.f32 %v2996_v14, %v2908_v49 }
 0x289   : > { %v3115_v47 = vadd.f32 %v3114_v48, %v2997_v30  ;;  %v3153_v15 = vmul.f32 %v2997_v30, %v2997_v30 }
 0x28a   : > { %v2998_v54 = vpop.f32.mrf.mxu0 }
 0x28b   : > { %v3184_v6 = vadd.f32 %v3183_v62, %v3153_v15  ;;  %v2823_v58 = vpop.f32.mrf.mxu2 }
 0x28c   : > { %v2909_v19 = vpop.f32.mrf.mxu3  ;;  %v2824_v21 = vadd.f32 %v2823_v58, %v2735_v26 }
 0x28d   : > { %v2736_v33 = vpop.f32.mrf.mxu1  ;;  %v2910_v22 = vadd.f32 %v2909_v19, %v2821_v57 }
 0x28e   : > { %v2737_v29 = vadd.f32 %v2736_v33, %v5094_v44 }
 0x28f   : > { %v2999_v55 = vadd.f32 %v2998_v54, %v2910_v22 }
 0x291   : > { %v3918_v27 = vpack.c.bf16 %v2999_v55, %v2997_v30  ;;  %v3116_v28 = vadd.f32 %v3115_v47, %v2999_v55  ;;  %v3154_v13 = vmul.f32 %v2999_v55, %v2999_v55 }
 0x292   : > { %v3001_v0 = vpop.f32.mrf.mxu0 }
 0x293   : > { %3977 = vst [vmem:[%s5162_s30 + $0x40] sm:$0xff] %v3918_v27   ;;  %v3185_v23 = vadd.f32 %v3184_v6, %v3154_v13  ;;  %v2825_v35 = vpop.f32.mrf.mxu2 }
 0x294   : > { %v2912_v53 = vpop.f32.mrf.mxu3  ;;  %v2826_v2 = vadd.f32 %v2825_v35, %v2737_v29 }
 0x295   : > { %v2739_v34 = vpop.f32.mrf.mxu1  ;;  %v2913_v3 = vadd.f32 %v2912_v53, %v2824_v21 }
 0x296   : > { %v2740_v37 = vadd.f32 %v2739_v34, %v5100_v20 }
 0x297   : > { %v3002_v36 = vadd.f32 %v3001_v0, %v2913_v3 }
 0x299   : > { %v3117_v63 = vadd.f32 %v3116_v28, %v3002_v36  ;;  %v3155_v32 = vmul.f32 %v3002_v36, %v3002_v36 }
 0x29a   : > { %v3003_v41 = vpop.f32.mrf.mxu0 }
 0x29b   : > { %v3186_v10 = vadd.f32 %v3185_v23, %v3155_v32  ;;  %v2828_v56 = vpop.f32.mrf.mxu2 }
 0x29c   : > { %v2914_v40 = vpop.f32.mrf.mxu3  ;;  %v2829_v45 = vadd.f32 %v2828_v56, %v2740_v37 }
 0x29d   : > { %v2741_v1 = vpop.f32.mrf.mxu1  ;;  %v2915_v16 = vadd.f32 %v2914_v40, %v2826_v2 }
 0x29e   : > { %v2742_v14 = vadd.f32 %v2741_v1, %v5103_v52 }
 0x29f   : > { %v3004_v31 = vadd.f32 %v3003_v41, %v2915_v16 }
 0x2a1   : > { %v3923_v11 = vpack.c.bf16 %v3004_v31, %v3002_v36  ;;  %v3118_v46 = vadd.f32 %v3117_v63, %v3004_v31  ;;  %v3156_v39 = vmul.f32 %v3004_v31, %v3004_v31 }
 0x2a2   : > { %v3006_v44 = vpop.f32.mrf.mxu0 }
 0x2a3   : > { %3978 = vst [vmem:[%s5162_s30 + $0x48] sm:$0xff] %v3923_v11   ;;  %v3187_v38 = vadd.f32 %v3186_v10, %v3156_v39  ;;  %v2830_v51 = vpop.f32.mrf.mxu2 }
 0x2a4   : > { %v2917_v48 = vpop.f32.mrf.mxu3  ;;  %v2831_v17 = vadd.f32 %v2830_v51, %v2742_v14 }
 0x2a5   : > { %v2744_v42 = vpop.f32.mrf.mxu1  ;;  %v2918_v5 = vadd.f32 %v2917_v48, %v2829_v45 }
 0x2a6   : > { %v2745_v6 = vadd.f32 %v2744_v42, %v5109_v12 }
 0x2a7   : > { %v3007_v62 = vadd.f32 %v3006_v44, %v2918_v5 }
 0x2a9   : > { %v3119_v4 = vadd.f32 %v3118_v46, %v3007_v62  ;;  %v3157_v7 = vmul.f32 %v3007_v62, %v3007_v62 }
 0x2aa   : > { %v3008_v20 = vpop.f32.mrf.mxu0 }
 0x2ab   : > { %v3188_v49 = vadd.f32 %v3187_v38, %v3157_v7  ;;  %v2833_v30 = vpop.f32.mrf.mxu2 }
 0x2ac   : > { %v2919_v59 = vpop.f32.mrf.mxu3  ;;  %v2834_v33 = vadd.f32 %v2833_v30, %v2745_v6 }
 0x2ad   : > { %v2746_v47 = vpop.f32.mrf.mxu1  ;;  %v2920_v15 = vadd.f32 %v2919_v59, %v2831_v17 }
 0x2ae   : > { %v2747_v21 = vadd.f32 %v2746_v47, %v5112_v24 }
 0x2af   : > { %v3009_v57 = vadd.f32 %v3008_v20, %v2920_v15 }
 0x2b1   : > { %v3928_v54 = vpack.c.bf16 %v3009_v57, %v3007_v62  ;;  %v3120_v58 = vadd.f32 %v3119_v4, %v3009_v57  ;;  %v3158_v19 = vmul.f32 %v3009_v57, %v3009_v57 }
 0x2b2   : > { %v3011_v52 = vpop.f32.mrf.mxu0 }
 0x2b3   : > { %3979 = vst [vmem:[%s5162_s30 + $0x50] sm:$0xff] %v3928_v54   ;;  %v3189_v22 = vadd.f32 %v3188_v49, %v3158_v19  ;;  %v2835_v55 = vpop.f32.mrf.mxu2 }
 0x2b4   : > { %v2922_v26 = vpop.f32.mrf.mxu3  ;;  %v2836_v35 = vadd.f32 %v2835_v55, %v2747_v21 }
 0x2b5   : > { %v2749_v27 = vpop.f32.mrf.mxu1  ;;  %v2923_v28 = vadd.f32 %v2922_v26, %v2834_v33 }
 0x2b6   : > { %v2750_v32 = vadd.f32 %v2749_v27, %v5118_v8 }
 0x2b7   : > { %v3012_v13 = vadd.f32 %v3011_v52, %v2923_v28 }
 0x2b9   : > { %v3121_v23 = vadd.f32 %v3120_v58, %v3012_v13  ;;  %v3159_v0 = vmul.f32 %v3012_v13, %v3012_v13 }
 0x2ba   : > { %v3013_v12 = vpop.f32.mrf.mxu0 }
 0x2bb   : > { %v3190_v53 = vadd.f32 %v3189_v22, %v3159_v0  ;;  %v2838_v34 = vpop.f32.mrf.mxu2 }
 0x2bc   : > { %v2924_v3 = vpop.f32.mrf.mxu3  ;;  %v2839_v56 = vadd.f32 %v2838_v34, %v2750_v32 }
 0x2bd   : > { %v2751_v36 = vpop.f32.mrf.mxu1  ;;  %v2925_v29 = vadd.f32 %v2924_v3, %v2836_v35 }
 0x2be   : > { %v2752_v46 = vadd.f32 %v2751_v36, %v5121_v43 }
 0x2bf   : > { %v3014_v63 = vadd.f32 %v3013_v12, %v2925_v29 }
 0x2c1   : > { %v3933_v2 = vpack.c.bf16 %v3014_v63, %v3012_v13  ;;  %v3122_v10 = vadd.f32 %v3121_v23, %v3014_v63  ;;  %v3160_v41 = vmul.f32 %v3014_v63, %v3014_v63 }
 0x2c2   : > { %v3016_v24 = vpop.f32.mrf.mxu0 }
 0x2c3   : > { %3980 = vst [vmem:[%s5162_s30 + $0x58] sm:$0xff] %v3933_v2   ;;  %v3191_v40 = vadd.f32 %v3190_v53, %v3160_v41  ;;  %v2840_v1 = vpop.f32.mrf.mxu2 }
 0x2c4   : > { %v2927_v16 = vpop.f32.mrf.mxu3  ;;  %v2841_v38 = vadd.f32 %v2840_v1, %v2752_v46 }
 0x2c5   : > { %v2754_v31 = vpop.f32.mrf.mxu1  ;;  %v2928_v37 = vadd.f32 %v2927_v16, %v2839_v56 }
 0x2c6   : > { %v2755_v14 = vadd.f32 %v2754_v31, %v5127_v25 }
 0x2c7   : > { %v3017_v11 = vadd.f32 %v3016_v24, %v2928_v37 }
 0x2c9   : > { %v3123_v39 = vadd.f32 %v3122_v10, %v3017_v11  ;;  %v3161_v45 = vmul.f32 %v3017_v11, %v3017_v11 }
 0x2ca   : > { %v3018_v8 = vpop.f32.mrf.mxu0 }
 0x2cb   : > { %v3192_v44 = vadd.f32 %v3191_v40, %v3161_v45  ;;  %v2843_v51 = vpop.f32.mrf.mxu2 }
 0x2cc   : > { %v2929_v48 = vpop.f32.mrf.mxu3  ;;  %v2844_v49 = vadd.f32 %v2843_v51, %v2755_v14 }
 0x2cd   : > { %v2756_v42 = vpop.f32.mrf.mxu1  ;;  %v2930_v5 = vadd.f32 %v2929_v48, %v2841_v38 }
 0x2ce   : > { %v2757_v6 = vadd.f32 %v2756_v42, %v5131_v18 }
 0x2cf   : > { %v3019_v62 = vadd.f32 %v3018_v8, %v2930_v5 }
 0x2d1   : > { %v3938_v4 = vpack.c.bf16 %v3019_v62, %v3017_v11  ;;  %v3124_v7 = vadd.f32 %v3123_v39, %v3019_v62  ;;  %v3162_v17 = vmul.f32 %v3019_v62, %v3019_v62 }
 0x2d2   : > { %v3021_v43 = vpop.f32.mrf.mxu0 }
 0x2d3   : > { %3981 = vst [vmem:[%s5162_s30 + $0x60] sm:$0xff] %v3938_v4   ;;  %v3193_v20 = vadd.f32 %v3192_v44, %v3162_v17  ;;  %v2845_v30 = vpop.f32.mrf.mxu2 }
 0x2d4   : > { %v2932_v59 = vpop.f32.mrf.mxu3  ;;  %v2846_v19 = vadd.f32 %v2845_v30, %v2757_v6 }
 0x2d5   : > { %v2933_v47 = vadd.f32 %v2932_v59, %v2844_v49  ;;  %v2759_v15 = vpop.f32.mrf.mxu1 }
 0x2d6   : > { %v2760_v27 = vadd.f32 %v2759_v15, %v5137_v9 }
 0x2d7   : > { %v3022_v57 = vadd.f32 %v3021_v43, %v2933_v47 }
 0x2d9   : > { %v3125_v54 = vadd.f32 %v3124_v7, %v3022_v57  ;;  %v3163_v58 = vmul.f32 %v3022_v57, %v3022_v57 }
 0x2da   : > { %v3023_v25 = vpop.f32.mrf.mxu0 }
 0x2db   : > { %v3194_v33 = vadd.f32 %v3193_v20, %v3163_v58  ;;  %v2848_v22 = vpop.f32.mrf.mxu2 }
 0x2dc   : > { %v2934_v52 = vpop.f32.mrf.mxu3  ;;  %v2849_v0 = vadd.f32 %v2848_v22, %v2760_v27 }
 0x2dd   : > { %v2935_v55 = vadd.f32 %v2934_v52, %v2846_v19  ;;  %v2761_v28 = vpop.f32.mrf.mxu1 }
 0x2de   : > { %v2762_v36 = vadd.f32 %v2761_v28, %v5141_v61 }
 0x2df   : > { %v3024_v26 = vadd.f32 %v3023_v25, %v2935_v55 }
 0x2e1   : > { %v3943_v13 = vpack.c.bf16 %v3024_v26, %v3022_v57  ;;  %v3126_v21 = vadd.f32 %v3125_v54, %v3024_v26  ;;  %v3164_v23 = vmul.f32 %v3024_v26, %v3024_v26 }
 0x2e2   : > { %v3026_v18 = vpop.f32.mrf.mxu0 }
 0x2e3   : > { %3982 = vst [vmem:[%s5162_s30 + $0x68] sm:$0xff] %v3943_v13   ;;  %v3195_v35 = vadd.f32 %v3194_v33, %v3164_v23  ;;  %v2850_v53 = vpop.f32.mrf.mxu2 }
 0x2e4   : > { %v2937_v12 = vpop.f32.mrf.mxu3  ;;  %v2851_v32 = vadd.f32 %v2850_v53, %v2762_v36 }
 0x2e5   : > { %v2938_v34 = vadd.f32 %v2937_v12, %v2849_v0  ;;  %v2764_v2 = vpop.f32.mrf.mxu1 }
 0x2e6   : > { %v2765_v1 = vadd.f32 %v2764_v2, %v5147_v50 }
 0x2e7   : > { %v3027_v3 = vadd.f32 %v3026_v18, %v2938_v34 }
 0x2e9   : > { %v3127_v29 = vadd.f32 %v3126_v21, %v3027_v3  ;;  %v3165_v63 = vmul.f32 %v3027_v3, %v3027_v3 }
 0x2ea   : > { %v3028_v10 = vpop.f32.mrf.mxu0 }
 0x2eb   : > { %v3196_v9 = vadd.f32 %v3195_v35, %v3165_v63  ;;  %v2853_v56 = vpop.f32.mrf.mxu2 }
 0x2ec   : > { %v2939_v41 = vpop.f32.mrf.mxu3  ;;  %v2854_v11 = vadd.f32 %v2853_v56, %v2765_v1 }
 0x2ed   : > { %v2940_v40 = vadd.f32 %v2939_v41, %v2851_v32  ;;  %v2766_v61 = vpop.f32.mrf.mxu1 }
 0x2ee   : > { %v2767_v51 = vadd.f32 %v2766_v61, %v5149_v60 }
 0x2ef   : > { %v3029_v24 = vadd.f32 %v3028_v10, %v2940_v40 }
 0x2f1   : > { %v3948_v16 = vpack.c.bf16 %v3029_v24, %v3027_v3  ;;  %v3128_v31 = vadd.f32 %v3127_v29, %v3029_v24  ;;  %v3166_v37 = vmul.f32 %v3029_v24, %v3029_v24 }
 0x2f2   : > { %v3031_v39 = vpop.f32.mrf.mxu0 }
 0x2f3   : > { %3983 = vst [vmem:[%s5162_s30 + $0x70] sm:$0xff] %v3948_v16   ;;  %v3197_v46 = vadd.f32 %v3196_v9, %v3166_v37  ;;  %v2855_v44 = vpop.f32.mrf.mxu2 }
 0x2f4   : > { %v2942_v45 = vpop.f32.mrf.mxu3  ;;  %v2856_v5 = vadd.f32 %v2855_v44, %v2767_v51 }
 0x2f5   : > { %v2943_v38 = vadd.f32 %v2942_v45, %v2854_v11 }
 0x2f7   : > { %v3032_v8 = vadd.f32 %v3031_v39, %v2943_v38 }
 0x2f9   : > { %v3129_v48 = vadd.f32 %v3128_v31, %v3032_v8  ;;  %v3167_v42 = vmul.f32 %v3032_v8, %v3032_v8 }
 0x2fa   : > { %v3033_v4 = vpop.f32.mrf.mxu0 }
 0x2fb   : > { %v3198_v62 = vadd.f32 %v3197_v46, %v3167_v42 }
 0x2fc   : > { %v2944_v50 = vpop.f32.mrf.mxu3 }
 0x2fd   : > { %v2945_v14 = vadd.f32 %v2944_v50, %v2856_v5 }
 0x2ff   : > { %v3034_v7 = vadd.f32 %v3033_v4, %v2945_v14 }
 0x301   : > { %v3953_v17 = vpack.c.bf16 %v3034_v7, %v3032_v8  ;;  %v3130_v49 = vadd.f32 %v3129_v48, %v3034_v7  ;;  %v3168_v20 = vmul.f32 %v3034_v7, %v3034_v7 }
 0x303   : > { %3984 = vst [vmem:[%s5162_s30 + $0x78] sm:$0xff] %v3953_v17   ;;  %v3131_v43 = vrot.slane %v3130_v49, 4  ;;  %v3199_v30 = vadd.f32 %v3198_v62, %v3168_v20 }
 0x305   : > { %v3132_v59 = vadd.f32 %v3131_v43, %v3130_v49  ;;  %v3200_v47 = vrot.slane %v3199_v30, 4 }
 0x307   : > { %v3133_v15 = vrot.slane %v3132_v59, 2  ;;  %v3201_v57 = vadd.f32 %v3200_v47, %v3199_v30 }
 0x309   : > { %v3134_v60 = vadd.f32 %v3133_v15, %v3132_v59  ;;  %v3202_v6 = vrot.slane %v3201_v57, 2 }
 0x30b   : > { %v3135_v54 = vrot.slane %v3134_v60, 1  ;;  %v3203_v58 = vadd.f32 %v3202_v6, %v3201_v57 }
 0x30d   : > { %v3204_v19 = vrot.slane %v3203_v58, 1  ;;  %v3136_v33 = vadd.f32 %v3135_v54, %v3134_v60 }
 0x30f   : > { %v3205_v25 = vadd.f32 %v3204_v19, %v3203_v58 }
 0x311   : > { %v3207_v22 = vsel %vm271_vm0, %v3136_v33, %v3205_v25 }
 0x312   : > { %v3209_v52 = vsel %vm3208_vm11, %v3207_v22, 0.0 }
 0x313   : > { %3210 = vst [vmem:[%s268_s9] sm:$0xff] %v3209_v52 }
 0x314 PF: > { %s16_s20 = sadd.s32 1, %s4077_s20   ;;  %s5356_s18 = smov %s4073_s19 }
 0x315   : > { %p13_p5 = scmp.ge.s32.totalorder %s16_s20, 4   ;;  %s5357_s19 = smov %s5359_s21 }
 0x317   :  { %15 = sbr.rel (!%p13_p5) target bundleno = 2 (0x2), region = 83 }

</bundles_post_ra>
